<compile_context>
chip_gen: v7x
topology: tpu7x:2x2x1
jax: 0.10.0
libtpu: 0.0.40
codegen_flags: <defaults>
</compile_context>

<pallas_src>
import jax
import jax.numpy as jnp
from jax.experimental import pallas as pl
from jax.experimental.pallas import tpu as pltpu


TILE_ROWS = 256  # rows per grid step; fits easily in 32 MiB scoped VMEM
                 # (x + f(1024 lanes f32) + h + out + bf16 weights << 8 MiB)


# ----------------------------------------------------------------------------
# Kernel 1: per-point feature pipeline over flattened rows
#   encoder (linear stand-in)  ->  L2 normalize per point (torch norm dim=1)
#   -> bn(Dim)+ReLU -> conv1x1(Dim->196)+bn+ReLU -> conv1x1(196->128)+bn+ReLU
#   (BN scales of the two convs are pre-folded into the weights.)
# ----------------------------------------------------------------------------
def _feature_kernel(x_ref, wenc_ref, s0_ref, t0_ref, w1_ref, t1_ref,
                    w2_ref, t2_ref, out_ref):
    x = x_ref[...]                                                  # (T, C) f32
    # encoder stand-in: bf16 MXU, f32 accumulation
    f = jnp.dot(x.astype(jnp.bfloat16), wenc_ref[...],
                preferred_element_type=jnp.float32)                 # (T, Dp)
    # L2 normalize each point's feature vector (EUP rsqrt, eps-guarded)
    inv = jax.lax.rsqrt(jnp.sum(f * f, axis=-1, keepdims=True) + 1e-12)
    f = f * inv
    # BatchNorm1d(Dim) folded to scale/shift, then ReLU (f32 elementwise)
    f = jnp.maximum(f * s0_ref[...] + t0_ref[...], 0.0)
    # Conv1d(Dim,196,1) [+ BN scale folded into W1] + shift + ReLU
    h = jnp.dot(f.astype(jnp.bfloat16), w1_ref[...],
                preferred_element_type=jnp.float32)                 # (T, Hp)
    h = jnp.maximum(h + t1_ref[...], 0.0)
    # Conv1d(196,128,1) [+ BN scale folded into W2] + shift + ReLU
    o = jnp.dot(h.astype(jnp.bfloat16), w2_ref[...],
                preferred_element_type=jnp.float32)                 # (T, D)
    out_ref[...] = jnp.maximum(o + t2_ref[...], 0.0)


def feature_pipeline(x, p):
    """x: (rows, C) float32 -> (rows, D) float32."""
    rows, C = x.shape
    Dp = p["W_enc_T"].shape[1]
    Hp = p["W1_T"].shape[1]
    D = p["W2_T"].shape[1]

    tile = TILE_ROWS
    rows_p = ((rows + tile - 1) // tile) * tile
    if rows_p != rows:
        x = jnp.pad(x, ((0, rows_p - rows), (0, 0)))

    out = pl.pallas_call(
        _feature_kernel,
        out_shape=jax.ShapeDtypeStruct((rows_p, D), jnp.float32),
        grid=(rows_p // tile,),
        in_specs=[
            pl.BlockSpec((tile, C), lambda r: (r, 0)),
            pl.BlockSpec((C, Dp), lambda r: (0, 0)),
            pl.BlockSpec((1, Dp), lambda r: (0, 0)),
            pl.BlockSpec((1, Dp), lambda r: (0, 0)),
            pl.BlockSpec((Dp, Hp), lambda r: (0, 0)),
            pl.BlockSpec((1, Hp), lambda r: (0, 0)),
            pl.BlockSpec((Hp, D), lambda r: (0, 0)),
            pl.BlockSpec((1, D), lambda r: (0, 0)),
        ],
        out_specs=pl.BlockSpec((tile, D), lambda r: (r, 0)),
        compiler_params=pltpu.CompilerParams(
            dimension_semantics=("parallel",),
            vmem_limit_bytes=32 * 1024 * 1024),
    )(x, p["W_enc_T"], p["s0"], p["t0"], p["W1_T"], p["t1"],
      p["W2_T"], p["t2"])
    return out[:rows]


# ----------------------------------------------------------------------------
# Kernel 2: prototypes via a single mask matmul
#   mask: (N+1, N*K*PN)  row0 = background, rows 1..N = per-way foreground
# ----------------------------------------------------------------------------
def _prototype_kernel(mask_ref, f_ref, out_ref):
    mask = mask_ref[...]                                            # (Ncls, NS)
    f = f_ref[...]                                                  # (NS, D)
    sums = jnp.dot(mask, f, preferred_element_type=jnp.float32)     # (Ncls, D)
    cnts = jnp.sum(mask, axis=-1, keepdims=True)                    # (Ncls, 1)
    means = sums / jnp.maximum(cnts, 1.0)                           # guarded
    # empty class -> constant 0.1 prototype (matches torch background path,
    # also protects empty-foreground ways from 0/0)
    means = jnp.where(cnts < 0.5, jnp.float32(0.1), means)
    inv = jax.lax.rsqrt(jnp.sum(means * means, axis=-1, keepdims=True) + 1e-12)
    out_ref[...] = means * inv


def compute_prototypes(mask, feat):
    """mask: (Ncls, NS) f32, feat: (NS, D) f32 -> L2-normalized (Ncls, D)."""
    Ncls = mask.shape[0]
    D = feat.shape[-1]
    return pl.pallas_call(
        _prototype_kernel,
        out_shape=jax.ShapeDtypeStruct((Ncls, D), jnp.float32),
    )(mask, feat)


# ----------------------------------------------------------------------------
# Kernel 3: lane-dense similarity + cross-entropy
#   logits computed/stored as (Ncls, PN) (PN on lanes); label-onehot matmul is
#   the identity and has been removed; per-query partial losses (no serial
#   accumulator) so the grid is "parallel".
# ----------------------------------------------------------------------------
def _sim_loss_kernel(qt_ref, protos_ref, y_ref, logits_t_ref, loss_ref):
    qt = qt_ref[0]                                                  # (D, PN)
    protos = protos_ref[...]                                        # (Ncls, D)
    s = jnp.dot(protos.astype(jnp.bfloat16), qt.astype(jnp.bfloat16),
                preferred_element_type=jnp.float32)                 # (Ncls, PN)
    logits_t_ref[0] = s

    # cross entropy over the class (sublane) axis
    y = y_ref[0]                                                    # (1, PN) i32
    mx = jnp.max(s, axis=0, keepdims=True)                          # (1, PN)
    z = s - mx
    lse = jnp.log(jnp.sum(jnp.exp(z), axis=0, keepdims=True))       # (1, PN)
    cls = jax.lax.broadcasted_iota(jnp.int32, s.shape, 0)           # (Ncls, PN)
    onehot = (cls == y).astype(jnp.float32)
    correct = jnp.sum(onehot * z, axis=0, keepdims=True)            # (1, PN)
    loss_ref[0] = jnp.sum(lse - correct, axis=-1, keepdims=True)    # (1, 1)


def sim_logits_loss(query_feat_t, protos, query_y):
    """query_feat_t (Nq, D, PN), protos (Ncls, D), query_y (Nq, 1, PN) int32
       -> logits_t (Nq, Ncls, PN), per-query loss sums (Nq, 1, 1)."""
    Nq, D, PN = query_feat_t.shape
    Ncls = protos.shape[0]
    return pl.pallas_call(
        _sim_loss_kernel,
        out_shape=(
            jax.ShapeDtypeStruct((Nq, Ncls, PN), jnp.float32),
            jax.ShapeDtypeStruct((Nq, 1, 1), jnp.float32),
        ),
        grid=(Nq,),
        in_specs=[
            pl.BlockSpec((1, D, PN), lambda i: (i, 0, 0)),
            pl.BlockSpec((Ncls, D), lambda i: (0, 0)),
            pl.BlockSpec((1, 1, PN), lambda i: (i, 0, 0)),
        ],
        out_specs=(
            pl.BlockSpec((1, Ncls, PN), lambda i: (i, 0, 0)),
            pl.BlockSpec((1, 1, 1), lambda i: (i, 0, 0)),
        ),
        compiler_params=pltpu.CompilerParams(
            dimension_semantics=("parallel",)),
    )(query_feat_t, protos, query_y)


# ----------------------------------------------------------------------------
# Parameter setup (deterministic, synthetic) + BN folding + MXU-aligned padding
# ----------------------------------------------------------------------------
def init_params(key, C, Dim=900, H=196, D=128, Dim_pad=1024, H_pad=256,
                eps=1e-5):
    ks = jax.random.split(key, 18)

    def bn(k0, k1, k2, k3, n):
        gamma = 1.0 + 0.1 * jax.random.normal(k0, (n,), jnp.float32)
        beta = 0.1 * jax.random.normal(k1, (n,), jnp.float32)
        mean = 0.1 * jax.random.normal(k2, (n,), jnp.float32)
        var = 0.5 + jax.random.uniform(k3, (n,), jnp.float32)
        return gamma, beta, mean, var

    W_enc = 0.1 * jax.random.normal(ks[0], (Dim, C), jnp.float32)
    g0, b0, m0, v0 = bn(ks[1], ks[2], ks[3], ks[4], Dim)
    W1 = 0.05 * jax.random.normal(ks[5], (H, Dim), jnp.float32)
    bias1 = 0.05 * jax.random.normal(ks[6], (H,), jnp.float32)
    g1, b1, m1, v1 = bn(ks[7], ks[8], ks[9], ks[10], H)
    W2 = 0.05 * jax.random.normal(ks[11], (D, H), jnp.float32)
    bias2 = 0.05 * jax.random.normal(ks[12], (D,), jnp.float32)
    g2, b2, m2, v2 = bn(ks[13], ks[14], ks[15], ks[16], D)

    s0 = g0 / jnp.sqrt(v0 + eps)
    t0 = b0 - m0 * s0
    s1 = g1 / jnp.sqrt(v1 + eps)
    t1 = (bias1 - m1) * s1 + b1
    s2 = g2 / jnp.sqrt(v2 + eps)
    t2 = (bias2 - m2) * s2 + b2

    # Fold BN scales of the two 1x1 convs into their weights (free algebra).
    W1f = W1 * s1[:, None]                    # (H, Dim)
    W2f = W2 * s2[:, None]                    # (D, H)

    # Zero-pad Dim->1024 and H->256 (lane/MXU aligned). Padded channels are
    # exactly zero through the whole pipeline, so the math is unchanged.
    W_enc_T = jnp.zeros((C, Dim_pad), jnp.float32).at[:, :Dim].set(W_enc.T)
    s0_p = jnp.zeros((1, Dim_pad), jnp.float32).at[:, :Dim].set(s0)
    t0_p = jnp.zeros((1, Dim_pad), jnp.float32).at[:, :Dim].set(t0)
    W1_T = jnp.zeros((Dim_pad, H_pad), jnp.float32).at[:Dim, :H].set(W1f.T)
    t1_p = jnp.zeros((1, H_pad), jnp.float32).at[:, :H].set(t1)
    W2_T = jnp.zeros((H_pad, D), jnp.float32).at[:H, :].set(W2f.T)
    t2_p = t2.reshape(1, D)

    return {
        "W_enc_T": W_enc_T.astype(jnp.bfloat16),   # (C, Dim_pad)
        "s0": s0_p, "t0": t0_p,                    # (1, Dim_pad) f32
        "W1_T": W1_T.astype(jnp.bfloat16),         # (Dim_pad, H_pad)
        "t1": t1_p,                                # (1, H_pad) f32
        "W2_T": W2_T.astype(jnp.bfloat16),         # (H_pad, D)
        "t2": t2_p,                                # (1, D) f32
    }


# ----------------------------------------------------------------------------
# SegPN forward (glue)
# ----------------------------------------------------------------------------
def seg_pn_forward(params, support_x, support_y, query_x, query_y):
    N, K, C, PN = support_x.shape
    Nq = query_x.shape[0]
    D = params["W2_T"].shape[1]
    NS = N * K * PN

    sx = jnp.transpose(support_x.astype(jnp.float32), (0, 1, 3, 2)).reshape(NS, C)
    qx = jnp.transpose(query_x.astype(jnp.float32), (0, 2, 1)).reshape(Nq * PN, C)

    # one feature-pipeline launch for support + query
    feat_all = feature_pipeline(jnp.concatenate([sx, qx], axis=0), params)
    support_feat = feat_all[:NS]                               # (NS, D)
    query_feat = feat_all[NS:].reshape(Nq, PN, D)

    # prototype masks: row 0 = background over all support points,
    # rows 1..N = foreground of way i over its own points only.
    sy = support_y.astype(jnp.float32).reshape(N, K * PN)
    bg_mask = (sy == 0).astype(jnp.float32).reshape(1, NS)
    fg = (sy == 1).astype(jnp.float32)                          # (N, K*PN)
    eye = jnp.eye(N, dtype=jnp.float32)
    fg_mask = (eye[:, :, None] * fg[None, :, :]).reshape(N, NS)
    mask = jnp.concatenate([bg_mask, fg_mask], axis=0)          # (N+1, NS)

    protos = compute_prototypes(mask, support_feat)             # (N+1, D)

    # TODO(synk): QUEST is external; feature_memory passes through unchanged,
    #             so one resident (N+1, D) prototype block serves every query.
    qt = jnp.transpose(query_feat, (0, 2, 1))                   # (Nq, D, PN)
    qy = query_y.astype(jnp.int32).reshape(Nq, 1, PN)

    logits_t, loss_per_q = sim_logits_loss(qt, protos, qy)
    logits = jnp.transpose(logits_t, (0, 2, 1))                 # (Nq, PN, N+1)
    loss = jnp.sum(loss_per_q) / (Nq * PN)
    return logits, loss


# ----------------------------------------------------------------------------
if __name__ == "__main__":
    N_WAY, K_SHOT, C_IN, PN = 2, 1, 9, 128
    N_QUERIES = N_WAY

    key = jax.random.PRNGKey(0)
    kp, k1, k2, k3, k4 = jax.random.split(key, 5)

    params = init_params(kp, C_IN)

    support_x = jax.random.normal(k1, (N_WAY, K_SHOT, C_IN, PN), jnp.float32)
    support_y = jax.random.bernoulli(k2, 0.5, (N_WAY, K_SHOT, PN)).astype(jnp.int32)
    query_x = jax.random.normal(k3, (N_QUERIES, C_IN, PN), jnp.float32)
    query_y = jax.random.randint(k4, (N_QUERIES, PN), 0, N_WAY + 1, jnp.int32)

    fwd = jax.jit(seg_pn_forward)
    logits, loss = fwd(params, support_x, support_y, query_x, query_y)
    jax.block_until_ready((logits, loss))

    assert logits.shape == (N_QUERIES, PN, N_WAY + 1)
    assert jnp.isfinite(loss)
    assert bool(jnp.all(jnp.isfinite(logits)))
    print("KERNEL_OK")
</pallas_src>

<mosaic_0001>
module attributes {stable_mosaic.version = 11 : i64} {
  func.func @_feature_kernel(%arg0: i32, %arg1: memref<256x9xf32, #tpu.memory_space<vmem>>, %arg2: memref<9x1024xbf16, #tpu.memory_space<vmem>>, %arg3: memref<1x1024xf32, #tpu.memory_space<vmem>>, %arg4: memref<1x1024xf32, #tpu.memory_space<vmem>>, %arg5: memref<1024x256xbf16, #tpu.memory_space<vmem>>, %arg6: memref<1x256xf32, #tpu.memory_space<vmem>>, %arg7: memref<256x128xbf16, #tpu.memory_space<vmem>>, %arg8: memref<1x128xf32, #tpu.memory_space<vmem>>, %arg9: memref<256x128xf32, #tpu.memory_space<vmem>>) attributes {dimension_semantics = [#tpu.dimension_semantics<parallel>], iteration_bounds = array<i64: 2>, scalar_prefetch = 0 : i64, scratch_operands = 0 : i64, tpu.core_type = #tpu.core_type<tc>, window_params = [{transform_indices = @transform_0, window_bounds = array<i64: 256, 9>}, {pipeline_mode = #tpu.pipeline_mode<synchronous>, transform_indices = @transform_1, window_bounds = array<i64: 9, 1024>}, {pipeline_mode = #tpu.pipeline_mode<synchronous>, transform_indices = @transform_2, window_bounds = array<i64: 1, 1024>}, {pipeline_mode = #tpu.pipeline_mode<synchronous>, transform_indices = @transform_3, window_bounds = array<i64: 1, 1024>}, {pipeline_mode = #tpu.pipeline_mode<synchronous>, transform_indices = @transform_4, window_bounds = array<i64: 1024, 256>}, {pipeline_mode = #tpu.pipeline_mode<synchronous>, transform_indices = @transform_5, window_bounds = array<i64: 1, 256>}, {pipeline_mode = #tpu.pipeline_mode<synchronous>, transform_indices = @transform_6, window_bounds = array<i64: 256, 128>}, {pipeline_mode = #tpu.pipeline_mode<synchronous>, transform_indices = @transform_7, window_bounds = array<i64: 1, 128>}, {transform_indices = @transform_8, window_bounds = array<i64: 256, 128>}]} {
    %c0 = arith.constant 0 : index
    %c0_0 = arith.constant 0 : index
    %0 = vector.load %arg1[%c0, %c0_0] : memref<256x9xf32, #tpu.memory_space<vmem>>, vector<256x9xf32>
    %1 = arith.truncf %0 : vector<256x9xf32> to vector<256x9xbf16>
    %c0_1 = arith.constant 0 : index
    %c0_2 = arith.constant 0 : index
    %2 = vector.load %arg2[%c0_1, %c0_2] : memref<9x1024xbf16, #tpu.memory_space<vmem>>, vector<9x1024xbf16>
    %cst = arith.constant dense<0.000000e+00> : vector<256x1024xf32>
    %3 = tpu.matmul %1, %2, %cst {dimension_numbers = #tpu.dot_dimension_numbers<[1], [0], [0], [1], [0, 0, 1, 1], [], []>} : vector<256x9xbf16>, vector<9x1024xbf16>, vector<256x1024xf32> -> vector<256x1024xf32>
    %4 = arith.mulf %3, %3 : vector<256x1024xf32>
    %cst_3 = arith.constant dense<0.000000e+00> : vector<256xf32>
    %5 = vector.multi_reduction <add>, %4, %cst_3 [1] : vector<256x1024xf32> to vector<256xf32>
    %6 = vector.shape_cast %5 : vector<256xf32> to vector<256x1xf32>
    %cst_4 = arith.constant 9.99999996E-13 : f32
    %7 = vector.broadcast %cst_4 : f32 to vector<256x1xf32>
    %8 = arith.addf %6, %7 : vector<256x1xf32>
    %9 = math.rsqrt %8 : vector<256x1xf32>
    %10 = vector.broadcast %9 : vector<256x1xf32> to vector<256x1024xf32>
    %11 = arith.mulf %3, %10 : vector<256x1024xf32>
    %c0_5 = arith.constant 0 : index
    %c0_6 = arith.constant 0 : index
    %12 = vector.load %arg3[%c0_5, %c0_6] : memref<1x1024xf32, #tpu.memory_space<vmem>>, vector<1x1024xf32>
    %13 = vector.broadcast %12 : vector<1x1024xf32> to vector<256x1024xf32>
    %14 = arith.mulf %11, %13 : vector<256x1024xf32>
    %c0_7 = arith.constant 0 : index
    %c0_8 = arith.constant 0 : index
    %15 = vector.load %arg4[%c0_7, %c0_8] : memref<1x1024xf32, #tpu.memory_space<vmem>>, vector<1x1024xf32>
    %16 = vector.broadcast %15 : vector<1x1024xf32> to vector<256x1024xf32>
    %17 = arith.addf %14, %16 : vector<256x1024xf32>
    %cst_9 = arith.constant 0.000000e+00 : f32
    %18 = vector.broadcast %cst_9 : f32 to vector<256x1024xf32>
    %19 = arith.maximumf %17, %18 : vector<256x1024xf32>
    %20 = arith.truncf %19 : vector<256x1024xf32> to vector<256x1024xbf16>
    %c0_10 = arith.constant 0 : index
    %c0_11 = arith.constant 0 : index
    %21 = vector.load %arg5[%c0_10, %c0_11] : memref<1024x256xbf16, #tpu.memory_space<vmem>>, vector<1024x256xbf16>
    %cst_12 = arith.constant dense<0.000000e+00> : vector<256x256xf32>
    %22 = tpu.matmul %20, %21, %cst_12 {dimension_numbers = #tpu.dot_dimension_numbers<[1], [0], [0], [1], [0, 0, 1, 1], [], []>} : vector<256x1024xbf16>, vector<1024x256xbf16>, vector<256x256xf32> -> vector<256x256xf32>
    %c0_13 = arith.constant 0 : index
    %c0_14 = arith.constant 0 : index
    %23 = vector.load %arg6[%c0_13, %c0_14] : memref<1x256xf32, #tpu.memory_space<vmem>>, vector<1x256xf32>
    %24 = vector.broadcast %23 : vector<1x256xf32> to vector<256x256xf32>
    %25 = arith.addf %22, %24 : vector<256x256xf32>
    %cst_15 = arith.constant 0.000000e+00 : f32
    %26 = vector.broadcast %cst_15 : f32 to vector<256x256xf32>
    %27 = arith.maximumf %25, %26 : vector<256x256xf32>
    %28 = arith.truncf %27 : vector<256x256xf32> to vector<256x256xbf16>
    %c0_16 = arith.constant 0 : index
    %c0_17 = arith.constant 0 : index
    %29 = vector.load %arg7[%c0_16, %c0_17] : memref<256x128xbf16, #tpu.memory_space<vmem>>, vector<256x128xbf16>
    %cst_18 = arith.constant dense<0.000000e+00> : vector<256x128xf32>
    %30 = tpu.matmul %28, %29, %cst_18 {dimension_numbers = #tpu.dot_dimension_numbers<[1], [0], [0], [1], [0, 0, 1, 1], [], []>} : vector<256x256xbf16>, vector<256x128xbf16>, vector<256x128xf32> -> vector<256x128xf32>
    %c0_19 = arith.constant 0 : index
    %c0_20 = arith.constant 0 : index
    %31 = vector.load %arg8[%c0_19, %c0_20] : memref<1x128xf32, #tpu.memory_space<vmem>>, vector<1x128xf32>
    %32 = vector.broadcast %31 : vector<1x128xf32> to vector<256x128xf32>
    %33 = arith.addf %30, %32 : vector<256x128xf32>
    %cst_21 = arith.constant 0.000000e+00 : f32
    %34 = vector.broadcast %cst_21 : f32 to vector<256x128xf32>
    %35 = arith.maximumf %33, %34 : vector<256x128xf32>
    %c0_22 = arith.constant 0 : index
    %c0_23 = arith.constant 0 : index
    %36 = vector.load %arg9[%c0_22, %c0_23] : memref<256x128xf32, #tpu.memory_space<vmem>>, vector<256x128xf32>
    tpu.vector_store %arg9[%c0_22, %c0_23], %35 {strides = array<i32>} : memref<256x128xf32, #tpu.memory_space<vmem>>, vector<256x128xf32>,
    return
  }
  func.func @transform_0(%arg0: i32) -> (i32, i32) {
    %c0_i32 = arith.constant 0 : i32
    %c0_i32_0 = arith.constant 0 : i32
    return %arg0, %c0_i32 : i32, i32
  }
  func.func @transform_1(%arg0: i32) -> (i32, i32) {
    %c0_i32 = arith.constant 0 : i32
    %c0_i32_0 = arith.constant 0 : i32
    %c0_i32_1 = arith.constant 0 : i32
    return %c0_i32, %c0_i32_0 : i32, i32
  }
  func.func @transform_2(%arg0: i32) -> (i32, i32) {
    %c0_i32 = arith.constant 0 : i32
    %c0_i32_0 = arith.constant 0 : i32
    %c0_i32_1 = arith.constant 0 : i32
    return %c0_i32, %c0_i32_0 : i32, i32
  }
  func.func @transform_3(%arg0: i32) -> (i32, i32) {
    %c0_i32 = arith.constant 0 : i32
    %c0_i32_0 = arith.constant 0 : i32
    %c0_i32_1 = arith.constant 0 : i32
    return %c0_i32, %c0_i32_0 : i32, i32
  }
  func.func @transform_4(%arg0: i32) -> (i32, i32) {
    %c0_i32 = arith.constant 0 : i32
    %c0_i32_0 = arith.constant 0 : i32
    %c0_i32_1 = arith.constant 0 : i32
    return %c0_i32, %c0_i32_0 : i32, i32
  }
  func.func @transform_5(%arg0: i32) -> (i32, i32) {
    %c0_i32 = arith.constant 0 : i32
    %c0_i32_0 = arith.constant 0 : i32
    %c0_i32_1 = arith.constant 0 : i32
    return %c0_i32, %c0_i32_0 : i32, i32
  }
  func.func @transform_6(%arg0: i32) -> (i32, i32) {
    %c0_i32 = arith.constant 0 : i32
    %c0_i32_0 = arith.constant 0 : i32
    %c0_i32_1 = arith.constant 0 : i32
    return %c0_i32, %c0_i32_0 : i32, i32
  }
  func.func @transform_7(%arg0: i32) -> (i32, i32) {
    %c0_i32 = arith.constant 0 : i32
    %c0_i32_0 = arith.constant 0 : i32
    %c0_i32_1 = arith.constant 0 : i32
    return %c0_i32, %c0_i32_0 : i32, i32
  }
  func.func @transform_8(%arg0: i32) -> (i32, i32) {
    %c0_i32 = arith.constant 0 : i32
    %c0_i32_0 = arith.constant 0 : i32
    return %arg0, %c0_i32 : i32, i32
  }
}

module attributes {stable_mosaic.version = 11 : i64} {
  func.func @_prototype_kernel(%arg0: memref<3x256xf32, #tpu.memory_space<vmem>>, %arg1: memref<256x128xf32, #tpu.memory_space<vmem>>, %arg2: memref<3x128xf32, #tpu.memory_space<vmem>>) attributes {dimension_semantics = [], scalar_prefetch = 0 : i64, scratch_operands = 0 : i64, tpu.core_type = #tpu.core_type<tc>} {
    %c0 = arith.constant 0 : index
    %c0_0 = arith.constant 0 : index
    %0 = vector.load %arg0[%c0, %c0_0] : memref<3x256xf32, #tpu.memory_space<vmem>>, vector<3x256xf32>
    %c0_1 = arith.constant 0 : index
    %c0_2 = arith.constant 0 : index
    %1 = vector.load %arg1[%c0_1, %c0_2] : memref<256x128xf32, #tpu.memory_space<vmem>>, vector<256x128xf32>
    %cst = arith.constant dense<0.000000e+00> : vector<3x128xf32>
    %2 = tpu.matmul %0, %1, %cst {dimension_numbers = #tpu.dot_dimension_numbers<[1], [0], [0], [1], [0, 0, 1, 1], [], []>} : vector<3x256xf32>, vector<256x128xf32>, vector<3x128xf32> -> vector<3x128xf32>
    %cst_3 = arith.constant dense<0.000000e+00> : vector<3xf32>
    %3 = vector.multi_reduction <add>, %0, %cst_3 [1] : vector<3x256xf32> to vector<3xf32>
    %4 = vector.shape_cast %3 : vector<3xf32> to vector<3x1xf32>
    %cst_4 = arith.constant 1.000000e+00 : f32
    %5 = vector.broadcast %cst_4 : f32 to vector<3x1xf32>
    %6 = arith.maximumf %4, %5 : vector<3x1xf32>
    %7 = vector.broadcast %6 : vector<3x1xf32> to vector<3x128xf32>
    %8 = arith.divf %2, %7 : vector<3x128xf32>
    %cst_5 = arith.constant 5.000000e-01 : f32
    %9 = vector.broadcast %cst_5 : f32 to vector<3x1xf32>
    %10 = arith.cmpf olt, %4, %9 : vector<3x1xf32>
    %cst_6 = arith.constant 1.000000e-01 : f32
    %11 = vector.shape_cast %10 : vector<3x1xi1> to vector<3x1xi1>
    %12 = vector.broadcast %11 : vector<3x1xi1> to vector<3x128xi1>
    %13 = vector.broadcast %cst_6 : f32 to vector<3x128xf32>
    %14 = arith.select %12, %13, %8 : vector<3x128xi1>, vector<3x128xf32>
    %15 = arith.mulf %14, %14 : vector<3x128xf32>
    %cst_7 = arith.constant dense<0.000000e+00> : vector<3xf32>
    %16 = vector.multi_reduction <add>, %15, %cst_7 [1] : vector<3x128xf32> to vector<3xf32>
    %17 = vector.shape_cast %16 : vector<3xf32> to vector<3x1xf32>
    %cst_8 = arith.constant 9.99999996E-13 : f32
    %18 = vector.broadcast %cst_8 : f32 to vector<3x1xf32>
    %19 = arith.addf %17, %18 : vector<3x1xf32>
    %20 = math.rsqrt %19 : vector<3x1xf32>
    %21 = vector.broadcast %20 : vector<3x1xf32> to vector<3x128xf32>
    %22 = arith.mulf %14, %21 : vector<3x128xf32>
    %c0_9 = arith.constant 0 : index
    %c0_10 = arith.constant 0 : index
    %23 = vector.load %arg2[%c0_9, %c0_10] : memref<3x128xf32, #tpu.memory_space<vmem>>, vector<3x128xf32>
    tpu.vector_store %arg2[%c0_9, %c0_10], %22 {strides = array<i32>} : memref<3x128xf32, #tpu.memory_space<vmem>>, vector<3x128xf32>,
    return
  }
}

module attributes {stable_mosaic.version = 11 : i64} {
  func.func @_sim_loss_kernel(%arg0: i32, %arg1: memref<1x128x128xf32, #tpu.memory_space<vmem>>, %arg2: memref<3x128xf32, #tpu.memory_space<vmem>>, %arg3: memref<1x1x128xi32, #tpu.memory_space<vmem>>, %arg4: memref<1x3x128xf32, #tpu.memory_space<vmem>>, %arg5: memref<1x1x1xf32, #tpu.memory_space<vmem>>) attributes {dimension_semantics = [#tpu.dimension_semantics<parallel>], iteration_bounds = array<i64: 2>, scalar_prefetch = 0 : i64, scratch_operands = 0 : i64, tpu.core_type = #tpu.core_type<tc>, window_params = [{transform_indices = @transform_0, window_bounds = array<i64: 1, 128, 128>}, {pipeline_mode = #tpu.pipeline_mode<synchronous>, transform_indices = @transform_1, window_bounds = array<i64: 3, 128>}, {transform_indices = @transform_2, window_bounds = array<i64: 1, 1, 128>}, {transform_indices = @transform_3, window_bounds = array<i64: 1, 3, 128>}, {transform_indices = @transform_4, window_bounds = array<i64: 1, 1, 1>}]} {
    %c0 = arith.constant 0 : index
    %c0_0 = arith.constant 0 : index
    %c0_1 = arith.constant 0 : index
    %0 = vector.load %arg1[%c0, %c0_0, %c0_1] : memref<1x128x128xf32, #tpu.memory_space<vmem>>, vector<1x128x128xf32>
    %1 = vector.shape_cast %0 : vector<1x128x128xf32> to vector<128x128xf32>
    %c0_2 = arith.constant 0 : index
    %c0_3 = arith.constant 0 : index
    %2 = vector.load %arg2[%c0_2, %c0_3] : memref<3x128xf32, #tpu.memory_space<vmem>>, vector<3x128xf32>
    %3 = arith.truncf %2 : vector<3x128xf32> to vector<3x128xbf16>
    %4 = arith.truncf %1 : vector<128x128xf32> to vector<128x128xbf16>
    %cst = arith.constant dense<0.000000e+00> : vector<3x128xf32>
    %5 = tpu.matmul %3, %4, %cst {dimension_numbers = #tpu.dot_dimension_numbers<[1], [0], [0], [1], [0, 0, 1, 1], [], []>} : vector<3x128xbf16>, vector<128x128xbf16>, vector<3x128xf32> -> vector<3x128xf32>
    %c0_4 = arith.constant 0 : index
    %c0_5 = arith.constant 0 : index
    %c0_6 = arith.constant 0 : index
    %6 = vector.load %arg4[%c0_4, %c0_5, %c0_6] : memref<1x3x128xf32, #tpu.memory_space<vmem>>, vector<1x3x128xf32>
    %7 = vector.shape_cast %6 : vector<1x3x128xf32> to vector<3x128xf32>
    %8 = vector.shape_cast %5 : vector<3x128xf32> to vector<1x3x128xf32>
    tpu.vector_store %arg4[%c0_4, %c0_5, %c0_6], %8 {strides = array<i32>} : memref<1x3x128xf32, #tpu.memory_space<vmem>>, vector<1x3x128xf32>,
    %c0_7 = arith.constant 0 : index
    %c0_8 = arith.constant 0 : index
    %c0_9 = arith.constant 0 : index
    %9 = vector.load %arg3[%c0_7, %c0_8, %c0_9] : memref<1x1x128xi32, #tpu.memory_space<vmem>>, vector<1x1x128xi32>
    %10 = vector.shape_cast %9 : vector<1x1x128xi32> to vector<1x128xi32>
    %cst_10 = arith.constant dense<0xFF800000> : vector<128xf32>
    %11 = vector.multi_reduction <maximumf>, %5, %cst_10 [0] : vector<3x128xf32> to vector<128xf32>
    %12 = vector.shape_cast %11 : vector<128xf32> to vector<1x128xf32>
    %13 = vector.broadcast %12 : vector<1x128xf32> to vector<3x128xf32>
    %14 = arith.subf %5, %13 : vector<3x128xf32>
    %15 = math.exp %14 : vector<3x128xf32>
    %cst_11 = arith.constant dense<0.000000e+00> : vector<128xf32>
    %16 = vector.multi_reduction <add>, %15, %cst_11 [0] : vector<3x128xf32> to vector<128xf32>
    %17 = vector.shape_cast %16 : vector<128xf32> to vector<1x128xf32>
    %18 = math.log %17 : vector<1x128xf32>
    %19 = tpu.iota {dimensions = array<i32: 0>} : vector<3x128xi32>
    %20 = vector.broadcast %10 : vector<1x128xi32> to vector<3x128xi32>
    %21 = arith.cmpi eq, %19, %20 : vector<3x128xi32>
    %22 = arith.extui %21 : vector<3x128xi1> to vector<3x128xi32>
    %23 = arith.sitofp %22 : vector<3x128xi32> to vector<3x128xf32>
    %24 = arith.mulf %23, %14 : vector<3x128xf32>
    %cst_12 = arith.constant dense<0.000000e+00> : vector<128xf32>
    %25 = vector.multi_reduction <add>, %24, %cst_12 [0] : vector<3x128xf32> to vector<128xf32>
    %26 = vector.shape_cast %25 : vector<128xf32> to vector<1x128xf32>
    %27 = arith.subf %18, %26 : vector<1x128xf32>
    %cst_13 = arith.constant dense<0.000000e+00> : vector<1xf32>
    %28 = vector.multi_reduction <add>, %27, %cst_13 [1] : vector<1x128xf32> to vector<1xf32>
    %29 = vector.shape_cast %28 : vector<1xf32> to vector<1x1xf32>
    %c0_14 = arith.constant 0 : index
    %c0_15 = arith.constant 0 : index
    %c0_16 = arith.constant 0 : index
    %30 = vector.load %arg5[%c0_14, %c0_15, %c0_16] : memref<1x1x1xf32, #tpu.memory_space<vmem>>, vector<1x1x1xf32>
    %31 = vector.shape_cast %30 : vector<1x1x1xf32> to vector<1x1xf32>
    %32 = vector.shape_cast %29 : vector<1x1xf32> to vector<1x1x1xf32>
    tpu.vector_store %arg5[%c0_14, %c0_15, %c0_16], %32 {strides = array<i32>} : memref<1x1x1xf32, #tpu.memory_space<vmem>>, vector<1x1x1xf32>,
    return
  }
  func.func @transform_0(%arg0: i32) -> (i32, i32, i32) {
    %c0_i32 = arith.constant 0 : i32
    %c0_i32_0 = arith.constant 0 : i32
    %c0_i32_1 = arith.constant 0 : i32
    return %arg0, %c0_i32, %c0_i32_0 : i32, i32, i32
  }
  func.func @transform_1(%arg0: i32) -> (i32, i32) {
    %c0_i32 = arith.constant 0 : i32
    %c0_i32_0 = arith.constant 0 : i32
    %c0_i32_1 = arith.constant 0 : i32
    return %c0_i32, %c0_i32_0 : i32, i32
  }
  func.func @transform_2(%arg0: i32) -> (i32, i32, i32) {
    %c0_i32 = arith.constant 0 : i32
    %c0_i32_0 = arith.constant 0 : i32
    %c0_i32_1 = arith.constant 0 : i32
    return %arg0, %c0_i32, %c0_i32_0 : i32, i32, i32
  }
  func.func @transform_3(%arg0: i32) -> (i32, i32, i32) {
    %c0_i32 = arith.constant 0 : i32
    %c0_i32_0 = arith.constant 0 : i32
    %c0_i32_1 = arith.constant 0 : i32
    return %arg0, %c0_i32, %c0_i32_0 : i32, i32, i32
  }
  func.func @transform_4(%arg0: i32) -> (i32, i32, i32) {
    %c0_i32 = arith.constant 0 : i32
    %c0_i32_0 = arith.constant 0 : i32
    %c0_i32_1 = arith.constant 0 : i32
    return %arg0, %c0_i32, %c0_i32_0 : i32, i32, i32
  }
}

</mosaic_0001>

<bundles_post_ra>
// kernel: seg_pn_forward.5
= control target key start
LH: loop header
LB: loop body
LE: loop exit
PB: predicated region body
PF: predicated region fallthrough
CT: control target
= control target key end

     0   :  { %s508_s15 = smov 0   ;;  %s571_s0 = inlined_call_operand.vmem [shape: f32[2,128,128], index: 0, kind: input, shape index: {}]   ;;  %s572_s1 = inlined_call_operand.vmem [shape: f32[3,128], index: 1, kind: input, shape index: {}]   ;;  %s573_s2 = inlined_call_operand.vmem [shape: s32[2,1,128], index: 2, kind: input, shape index: {}]   ;;  %s574_s3 = inlined_call_operand.vmem [shape: f32[2,3,128], index: 3, kind: output, shape index: {0}]   ;;  %s575_s4 = inlined_call_operand.vmem [shape: f32[2,1,1], index: 4, kind: output, shape index: {1}]  }
   0x1 LB: > { %s417_s16 = sadd.s32 4294967295, %s479_s15   ;;  %p421_p0 = scmp.ge.s32.totalorder %s479_s15, 1  ;;  %s479_s15 = sphi %s508_s15, %s15_s15  }
   0x2   : > { %p173_p1 = scmp.lt.s32.totalorder %s479_s15, 3 }
   0x4   : > { %p174_p2 = pnand %p421_p0, %p173_p1 }
   0x5   : > { %p204_p3 = scmp.lt.s32.totalorder (!%p174_p2), %s417_s16, 1  ;;  %v481_v0 = vmov (!%p174_p2), 0.0   ;;  %vm482_vm0 = vmmov (!%p174_p2), 0   ;;  %v236_v25 = vld [vmem:[%s572_s1] sm:$0x7] (!%p174_p2)  ;;  %vm288_vm1 = vcmask (!%p174_p2), 1042432   ;;  %v308_v38 = vlaneseq (!%p174_p2) }
   0x6   : > { %177 = sbr.rel (%p174_p2) target bundleno = 461 (0x1cd), region = 32  ;;  %439 = vmatprep.subr.bf16.mxu0 (!%p174_p2), %v481_v0  ;;  %455 = vmatprep.mubr.msk.bf16.mxu0 (!%p174_p2), %vm482_vm0, %v481_v0  ;;  %v237_v26 = vpack.c.bf16 (!%p174_p2), %v236_v25, %v236_v25  ;;  %vm328_vm3 = vcmask (!%p174_p2), 0  }
   0x7   : > { %v309_v41 = vshrl.u32 (!%p174_p2), %v308_v38, 7 }
   0xd   : > { %s577_s16 = smov (!%p204_p3, %s417_s16), 1 }
   0xe   : > { %s429_s17 = sshll.u32 %s577_s16, 7  ;;  %s424_s23 = sshll.u32 %s577_s16, 2 }
   0xf   : > { %s524_s20 = scalar_lea.vmem %s571_s0, %s429_s17  ;;  %s215_s26 = scalar_lea.vmem %s574_s3, %s424_s23 }
  0x10   : > { %v220_v1 = vld [vmem:[%s524_s20] sm:$0xff]  ;;  %v221_v2 = vld [vmem:[%s524_s20 + $0x8] sm:$0xff]  ;;  %v222_v3 = vld [vmem:[%s524_s20 + $0x10] sm:$0xff]  ;;  %s211_s29 = scalar_lea.vmem %s573_s2, %s577_s16  ;;  %s218_s6 = scalar_lea.vmem %s575_s4, %s577_s16 }
  0x11   : > { %v238_v4 = vpack.c.bf16 %v221_v2, %v220_v1  ;;  %v223_v5 = vld [vmem:[%s524_s20 + $0x18] sm:$0xff]  ;;  %v224_v7 = vld [vmem:[%s524_s20 + $0x20] sm:$0xff]  ;;  %v225_v8 = vld [vmem:[%s524_s20 + $0x28] sm:$0xff] }
  0x12   : > { %v239_v6 = vpack.c.bf16 %v223_v5, %v222_v3  ;;  %v240_v9 = vpack.c.bf16 %v225_v8, %v224_v7  ;;  %v226_v10 = vld [vmem:[%s524_s20 + $0x30] sm:$0xff]  ;;  %v227_v11 = vld [vmem:[%s524_s20 + $0x38] sm:$0xff]  ;;  %v228_v13 = vld [vmem:[%s524_s20 + $0x40] sm:$0xff] }
  0x13   : > { %440 = vmatpush3.bf16.msra.mxu0 %v238_v4  ;;  %v241_v12 = vpack.c.bf16 %v227_v11, %v226_v10  ;;  %v229_v14 = vld [vmem:[%s524_s20 + $0x48] sm:$0xff]  ;;  %v230_v16 = vld [vmem:[%s524_s20 + $0x50] sm:$0xff]  ;;  %v231_v17 = vld [vmem:[%s524_s20 + $0x58] sm:$0xff] }
  0x14   : > { %441 = vmatprep.subr.bf16.mxu0 %v481_v0  ;;  %v242_v15 = vpack.c.bf16 %v229_v14, %v228_v13  ;;  %v243_v18 = vpack.c.bf16 %v231_v17, %v230_v16  ;;  %v232_v19 = vld [vmem:[%s524_s20 + $0x60] sm:$0xff]  ;;  %v233_v20 = vld [vmem:[%s524_s20 + $0x68] sm:$0xff]  ;;  %v234_v22 = vld [vmem:[%s524_s20 + $0x70] sm:$0xff] }
  0x15   : > { %v244_v21 = vpack.c.bf16 %v233_v20, %v232_v19  ;;  %v235_v23 = vld [vmem:[%s524_s20 + $0x78] sm:$0xff]  ;;  %v425_v42 = vld [vmem:[%s211_s29] ss:$0 sm:$0xff] }
  0x16   : > { %v245_v24 = vpack.c.bf16 %v235_v23, %v234_v22  ;;  %vm314_vm2 = vcmp.eq.s32.totalorder %v309_v41, %v425_v42 }
  0x17   : > { %442 = vmatpush3.bf16.msra.mxu0 %v239_v6  ;;  %v426_v43 = vsel %vm314_vm2, 1.0, %v481_v0 }
  0x18   : > { %443 = vmatprep.subr.bf16.mxu0 %v481_v0 }
  0x1b   : > { %444 = vmatpush3.bf16.msra.mxu0 %v240_v9 }
  0x1c   : > { %445 = vmatprep.subr.bf16.mxu0 %v481_v0 }
  0x1f   : > { %446 = vmatpush3.bf16.msra.mxu0 %v241_v12 }
  0x20   : > { %447 = vmatprep.subr.bf16.mxu0 %v481_v0 }
  0x23   : > { %448 = vmatpush3.bf16.msra.mxu0 %v242_v15 }
  0x24   : > { %449 = vmatprep.subr.bf16.mxu0 %v481_v0 }
  0x27   : > { %450 = vmatpush3.bf16.msra.mxu0 %v243_v18 }
  0x28   : > { %451 = vmatprep.subr.bf16.mxu0 %v481_v0 }
  0x2b   : > { %452 = vmatpush3.bf16.msra.mxu0 %v244_v21 }
  0x2c   : > { %453 = vmatprep.subr.bf16.mxu0 %v481_v0 }
  0x2f   : > { %454 = vmatpush3.bf16.msra.mxu0 %v245_v24 }
  0x32   : > { %456 = vmatmul.mubr.bf16.vlgmr.msra.gmra.mrb[0].mxu0 %v237_v26 }
 0x105   : > { %v280_v27 = vpop.f32.mrb[0].mxu0 }
 0x106   : > { %286 = vst [vmem:[%s215_s26] sm:$0x7] %v280_v27  ;;  %v289_v28 = vsel %vm288_vm1, %v280_v27, -inf  ;;  %v457_v29 = vpop.f32.mrb[1].mxu0 }
 0x107   : > { %v290_v30 = vrot.slane %v289_v28, 4  ;;  %v283_v31 = vpop.f32.mrb[2].mxu0 }
 0x108   : > { %v458_v32 = vpop.f32.mrb[3].mxu0 }
 0x109   : > { %v291_v33 = vmax.f32 %v289_v28, %v290_v30 }
 0x10b   : > { %v292_v34 = vrot.slane %v291_v33, 2 }
 0x10d   : > { %v293_v35 = vmax.f32 %v291_v33, %v292_v34 }
 0x10f   : > { %v294_v36 = vrot.slane %v293_v35, 1 }
 0x111   : > { %v295_v37 = vmax.f32 %v293_v35, %v294_v36 }
 0x113   : > { %v296_v39 = vsub.f32 %v280_v27, %v295_v37 }
 0x115   : > { %v297_v40 = vmul.f32 1.442695, %v296_v39  ;;  %v317_v44 = vmul.f32 %v426_v43, %v296_v39 }
 0x117   : > { %469 = vpow2.f32 %v297_v40  ;;  %v318_v48 = vsel %vm288_vm1, %v317_v44, 0.0 }
 0x118   : > { %v319_v50 = vrot.slane %v318_v48, 4 }
 0x11a   : > { %v320_v53 = vadd.f32 %v319_v50, %v318_v48 }
 0x11c   : > { %v321_v56 = vrot.slane %v320_v53, 2 }
 0x11e   : > { %v322_v57 = vadd.f32 %v321_v56, %v320_v53 }
 0x120   : > { %v323_v58 = vrot.slane %v322_v57, 1 }
 0x121   : > { %v470_v45 = vpop.eup %469 }
 0x122   : > { %v299_v46 = vsel %vm288_vm1, %v470_v45, 0.0  ;;  %v324_v61 = vadd.f32 %v323_v58, %v322_v57 }
 0x123   : > { %v300_v47 = vrot.slane %v299_v46, 4 }
 0x125   : > { %v301_v49 = vadd.f32 %v300_v47, %v299_v46 }
 0x127   : > { %v302_v51 = vrot.slane %v301_v49, 2 }
 0x129   : > { %v303_v52 = vadd.f32 %v302_v51, %v301_v49 }
 0x12b   : > { %v304_v54 = vrot.slane %v303_v52, 1 }
 0x12d   : > { %v305_v55 = vadd.f32 %v304_v54, %v303_v52 }
 0x12f   : > { %471 = vlog2.f32 %v305_v55 }
 0x139   : > { %v472_v59 = vpop.eup %471 }
 0x13a   : > { %v307_v60 = vmul.f32 0.6931472, %v472_v59 }
 0x13c   : > { %v325_v62 = vsub.f32 %v307_v60, %v324_v61 }
 0x13e   : > { %326 = vadd.xlane.f32.xlu0 %v325_v62 }
 0x1cb   : > { %v327_v63 = vpop.xlane.xlu0 %326 }
 0x1cc   : > { %329 = vst.msk [vmem:[%s218_s6] sm:$0x1] %vm328_vm3, %v327_v63 }
 0x1cd PF: > { %s15_s15 = sadd.s32 1, %s479_s15  }
 0x1ce   : > { %p12_p4 = scmp.ge.s32.totalorder %s15_s15, 4  }
 0x1d0   :  { %14 = sbr.rel (!%p12_p4) target bundleno = 1 (0x1), region = 77 }

// kernel: seg_pn_forward.4
= control target key start
LH: loop header
LB: loop body
LE: loop exit
PB: predicated region body
PF: predicated region fallthrough
CT: control target
= control target key end

     0   :  { %vm117_vm0 = vcmask 1042432   ;;  %s334_s1 = inlined_call_operand.vmem [shape: f32[256,128], index: 1, kind: input, shape index: {}]   ;;  %s335_s0 = inlined_call_operand.vmem [shape: f32[3,256], index: 0, kind: input, shape index: {}]   ;;  %s336_s2 = inlined_call_operand.vmem [shape: f32[3,128], index: 2, kind: output, shape index: {}]  }
   0x1   :  { %v28_v0 = vld [vmem:[%s334_s1 + $0x80] sm:$0xff]  ;;  %v29_v1 = vld [vmem:[%s334_s1 + $0x88] sm:$0xff]  ;;  %v30_v5 = vld [vmem:[%s334_s1 + $0x90] sm:$0xff] }
   0x2   :  { %v12_v2 = vld [vmem:[%s334_s1] sm:$0xff]  ;;  %v177_v3 = vpack.c.bf16 %v29_v1, %v28_v0  ;;  %v13_v4 = vld [vmem:[%s334_s1 + $0x8] sm:$0xff]  ;;  %v31_v6 = vld [vmem:[%s334_s1 + $0x98] sm:$0xff] }
   0x3   :  { %v179_v7 = vpack.c.bf16 %v13_v4, %v12_v2  ;;  %v181_v8 = vpack.c.bf16 %v31_v6, %v30_v5  ;;  %v14_v9 = vld [vmem:[%s334_s1 + $0x10] sm:$0xff]  ;;  %v15_v10 = vld [vmem:[%s334_s1 + $0x18] sm:$0xff]  ;;  %v32_v11 = vld [vmem:[%s334_s1 + $0xa0] sm:$0xff] }
   0x4   :  { %178 = vmatprep.subr.bf16.mxu0 %v177_v3  ;;  %v33_v12 = vld [vmem:[%s334_s1 + $0xa8] sm:$0xff]  ;;  %v183_v13 = vpack.c.bf16 %v15_v10, %v14_v9  ;;  %v16_v15 = vld [vmem:[%s334_s1 + $0x20] sm:$0xff]  ;;  %v34_v17 = vld [vmem:[%s334_s1 + $0xb0] sm:$0xff] }
   0x5   :  { %180 = vmatpush3.bf16.msra.mxu0 %v179_v7  ;;  %v185_v14 = vpack.c.bf16 %v33_v12, %v32_v11  ;;  %v17_v16 = vld [vmem:[%s334_s1 + $0x28] sm:$0xff]  ;;  %v35_v18 = vld [vmem:[%s334_s1 + $0xb8] sm:$0xff]  ;;  %v18_v21 = vld [vmem:[%s334_s1 + $0x30] sm:$0xff] }
   0x6   :  { %182 = vmatprep.subr.bf16.mxu0 %v181_v8  ;;  %v187_v19 = vpack.c.bf16 %v17_v16, %v16_v15  ;;  %v189_v20 = vpack.c.bf16 %v35_v18, %v34_v17  ;;  %v19_v22 = vld [vmem:[%s334_s1 + $0x38] sm:$0xff]  ;;  %v36_v23 = vld [vmem:[%s334_s1 + $0xc0] sm:$0xff]  ;;  %v37_v24 = vld [vmem:[%s334_s1 + $0xc8] sm:$0xff] }
   0x7   :  { %v11_v25 = vld [vmem:[%s335_s0] sm:$0x77]  ;;  %v191_v28 = vpack.c.bf16 %v19_v22, %v18_v21  ;;  %v193_v29 = vpack.c.bf16 %v37_v24, %v36_v23  ;;  %v21_v31 = vld [vmem:[%s334_s1 + $0x48] sm:$0xff]  ;;  %v38_v33 = vld [vmem:[%s334_s1 + $0xd0] sm:$0xff] }
   0x8   :  { %v45_v26 = vcombine.high %v11_v25, %v11_v25  ;;  %v118_v27 = vsel %vm117_vm0, %v11_v25, 0.0  ;;  %v20_v30 = vld [vmem:[%s334_s1 + $0x40] sm:$0xff]  ;;  %v39_v34 = vld [vmem:[%s334_s1 + $0xd8] sm:$0xff]  ;;  %v22_v38 = vld [vmem:[%s334_s1 + $0x50] sm:$0xff] }
   0x9   :  { %184 = vmatpush3.bf16.msra.mxu0 %v183_v13  ;;  %v195_v36 = vpack.c.bf16 %v21_v31, %v20_v30  ;;  %v197_v37 = vpack.c.bf16 %v39_v34, %v38_v33  ;;  %v23_v39 = vld [vmem:[%s334_s1 + $0x58] sm:$0xff]  ;;  %v40_v40 = vld [vmem:[%s334_s1 + $0xe0] sm:$0xff]  ;;  %v41_v41 = vld [vmem:[%s334_s1 + $0xe8] sm:$0xff] }
   0xa   :  { %186 = vmatprep.subr.bf16.mxu0 %v185_v14  ;;  %111 = vmatprep.mubr.f32.mxu0 %v45_v26  ;;  %v119_v32 = vsel %vm117_vm0, %v45_v26, 0.0  ;;  %v199_v42 = vpack.c.bf16 %v23_v39, %v22_v38  ;;  %v201_v43 = vpack.c.bf16 %v41_v41, %v40_v40  ;;  %v24_v44 = vld [vmem:[%s334_s1 + $0x60] sm:$0xff]  ;;  %v25_v45 = vld [vmem:[%s334_s1 + $0x68] sm:$0xff]  ;;  %v42_v46 = vld [vmem:[%s334_s1 + $0xf0] sm:$0xff] }
   0xb   :  { %v120_v35 = vadd.f32 %v119_v32, %v118_v27  ;;  %v43_v47 = vld [vmem:[%s334_s1 + $0xf8] sm:$0xff]  ;;  %v203_v48 = vpack.c.bf16 %v25_v45, %v24_v44  ;;  %v26_v50 = vld [vmem:[%s334_s1 + $0x70] sm:$0xff] }
   0xc   :  { %v205_v49 = vpack.c.bf16 %v43_v47, %v42_v46  ;;  %v27_v51 = vld [vmem:[%s334_s1 + $0x78] sm:$0xff] }
   0xd   :  { %188 = vmatpush3.bf16.msra.mxu0 %v187_v19  ;;  %121 = vadd.xlane.f32.xlu0 %v120_v35  ;;  %v207_v52 = vpack.c.bf16 %v27_v51, %v26_v50 }
   0xe   :  { %190 = vmatprep.subr.bf16.mxu0 %v189_v20 }
  0x11   :  { %192 = vmatpush3.bf16.msra.mxu0 %v191_v28 }
  0x12   :  { %194 = vmatprep.subr.bf16.mxu0 %v193_v29 }
  0x15   :  { %196 = vmatpush3.bf16.msra.mxu0 %v195_v36 }
  0x16   :  { %198 = vmatprep.subr.bf16.mxu0 %v197_v37 }
  0x19   :  { %200 = vmatpush3.bf16.msra.mxu0 %v199_v42 }
  0x1a   :  { %202 = vmatprep.subr.bf16.mxu0 %v201_v43 }
  0x1d   :  { %204 = vmatpush3.bf16.msra.mxu0 %v203_v48 }
  0x1e   :  { %206 = vmatprep.subr.bf16.mxu0 %v205_v49 }
  0x21   :  { %208 = vmatpush3.bf16.msra.mxu0 %v207_v52 }
  0x24   :  { %112 = vmatmul.mubr.f32.vlgmr.msra.gmra.mrb[0].mxu0 %v11_v25 }
  0x9a   :  { %v122_v53 = vpop.xlane.xlu0 %121 }
  0x9b   :  { %v123_v54 = vmax.f32 %v122_v53, 1.0  ;;  %vm126_vm1 = vcmp.lt.f32.partialorder %v122_v53, 0.5 }
  0x9d   :  { %210 = vrcp.f32 %v123_v54 }
  0xa7   :  { %v211_v56 = vpop.eup %210 }
  0xf7   :  { %v174_v55 = vpop.f32.mrb[0].mxu0 }
  0xf8   :  { %v175_v57 = vpop.f32.mrb[1].mxu0 }
  0xf9   :  { %v176_v58 = vadd.f32 %v175_v57, %v174_v55 }
  0xfb   :  { %v125_v59 = vmul.f32 %v211_v56, %v176_v58 }
  0xfd   :  { %v129_v60 = vsel %vm126_vm1, 0.1, %v125_v59 }
  0xfe   :  { %v130_v61 = vmul.f32 %v129_v60, %v129_v60 }
 0x100   :  { %v131_v62 = vsel %vm117_vm0, %v130_v61, 0.0 }
 0x101   :  { %132 = vadd.xlane.f32.xlu0 %v131_v62 }
 0x18e   :  { %v133_v63 = vpop.xlane.xlu0 %132 }
 0x18f   :  { %v134_v0 = vadd.f32 1e-12, %v133_v63 }
 0x191   :  { %212 = vrsqrt.f32 %v134_v0 }
 0x19b   :  { %v213_v1 = vpop.eup %212 }
 0x19c   :  { %v136_v2 = vmul.f32 %v213_v1, %v129_v60 }
 0x19e   :  { %137 = vst [vmem:[%s336_s2] sm:$0x7] %v136_v2 }

// kernel: seg_pn_forward.3
= control target key start
LH: loop header
LB: loop body
LE: loop exit
PB: predicated region body
PF: predicated region fallthrough
CT: control target
= control target key end

     0   :  { %13 = vsyncpa [#allocation3], 0  ;;  %s6169_s27 = smov 0   ;;  %s9467_s0 = inlined_call_operand.vmem [shape: f32[512,9], index: 0, kind: input, shape index: {}]   ;;  %s9468_s1 = inlined_call_operand.vmem [shape: bf16[9,1024], index: 1, kind: input, shape index: {}]   ;;  %s9469_s2 = inlined_call_operand.vmem [shape: f32[1,1024], index: 2, kind: input, shape index: {}]   ;;  %s9470_s3 = inlined_call_operand.vmem [shape: f32[1,1024], index: 3, kind: input, shape index: {}]   ;;  %s9471_s4 = inlined_call_operand.hbm [shape: bf16[1024,256], index: 4, kind: input, shape index: {}]   ;;  %s9472_s5 = inlined_call_operand.vmem [shape: f32[1,256], index: 5, kind: input, shape index: {}]   ;;  %s9473_s6 = inlined_call_operand.vmem [shape: bf16[256,128], index: 6, kind: input, shape index: {}]   ;;  %s9474_s7 = inlined_call_operand.vmem [shape: f32[1,128], index: 7, kind: input, shape index: {}]   ;;  %s9475_s8 = inlined_call_operand.vmem [shape: f32[512,128], index: 8, kind: output, shape index: {}]  }
   0x1 LB: > { %s5182_s28 = sadd.s32 4294967295, %s6117_s27   ;;  %p5184_p0 = scmp.ge.s32.totalorder %s6117_s27, 1  ;;  %s6117_s27 = sphi %s6169_s27, %s19_s27  }
   0x2   : > { %p223_p1 = scmp.lt.s32.totalorder %s6117_s27, 3  ;;  %s6119_s29 = smov [#allocation2]  }
   0x3   : > { %s244_s30 = sshll.u32 %s6119_s29, 4  ;;  %p6183_p3 = scmp.eq.s32.totalorder %s5182_s28, 0  ;;  %s245_s30 = int_to_ptr.vmem [resolvable:$true] %s244_s30 }
   0x4   : > { %p6177_p2 = pnand %p5184_p0, %p223_p1  ;;  %s6079_s14 = scalar_lea.hbm %s9471_s4, 16384 }
   0x5   : > { %s9760_s10 = scalar_select %p6183_p3, 1, 0 }
   0x6   : > { %s9759_s9 = scalar_select %p6177_p2, 1, 0 }
   0x7   : > { %p5786_p4 = pneg %p6177_p2  ;;  %p6080_p6 = scmp.ne.s32.totalorder %s9471_s4, %s6079_s14 }
   0x8   : > { %p6086_p10 = scmp.lt.u32.totalorder %s6079_s14, %s9471_s4 }
   0x9   : > { %p6191_p5 = pnand %p6183_p3, %p5786_p4 }
   0xb   : > { %p6081_p7 = pneg %p6191_p5 }
   0xd   : > { %p6082_p8 = pnand %p6081_p7, %p6080_p6 }
   0xf   : > { %p6083_p9 = pneg %p6082_p8 }
  0x11   : > { %p6088_p11 = pnand %p6086_p10, %p6083_p9 }
  0x13   : > { %6091 = shalt.err (!%p6088_p11)
}
  0x14   : > { %s6092_s19 = scalar_lea.vmem %s245_s30, 16384  ;;  %p6100_p1 = scmp.lt.s32.totalorder %s245_s30, %s245_s30 }
  0x15   : > { %p6093_p12 = scmp.ne.s32.totalorder %s245_s30, %s6092_s19  ;;  %p6101_p4 = scmp.lt.s32.totalorder %s6092_s19, %s6092_s19 }
  0x17   : > { %p6095_p13 = pnand %p6093_p12, %p6081_p7  ;;  %p6102_p3 = por %p6101_p4, %p6100_p1 }
  0x19   : > { %p6096_p0 = pneg %p6095_p13 }
  0x1b   : > { %p6103_p2 = pnand %p6102_p3, %p6096_p0 }
  0x1d   : > { %6106 = shalt.err (!%p6103_p2)
}
  0x1e   : > { %s6120_s20 = smov 128   ;;  %s6121_s21 = smov 8  }
  0x1f   : > { %5789 = dma.hbm_to_vmem [thread:$0]  (!%p6191_p5), %s9471_s4, 16384, %s245_s30, [#allocation3], %s6120_s20, %s6120_s20, %s6121_s21  }
  0x20   : > { %p9762_p6 = scmp.ne.s32.totalorder %s9759_s9, 0 }
  0x22   : > { %278 = sbr.rel (%p9762_p6) target bundleno = 1713 (0x6b1), region = 52 }
  0x29   : > { %p9763_p8 = scmp.ne.s32.totalorder %s9760_s10, 0 }
  0x2b   : > { %6112 = dma.done.wait (%p9763_p8), [#allocation3], 16384  }
  0x2c   : > { %6114 = vsyncadd (%p9763_p8), [#allocation3], 4294950912  ;;  %vm462_vm0 = vcmask 1043456   ;;  %v9479_v0 = vmov 0   ;;  %s5189_s24 = sshll.u32 %s5182_s28, 5  ;;  %vm463_vm1 = vcmask 1044480  }
  0x2d   : > { %522 = vmatprep.mubr.bf16.mxu1 %v9479_v0  ;;  %908 = vmatprep.mubr.bf16.mxu0 %v9479_v0  ;;  %p313_p2 = scmp.lt.s32.totalorder %s5189_s24, 63  ;;  %v6123_v1 = vmov 65535   ;;  %v373_v3 = vld [vmem:[%s9468_s1] sm:$0xff]  ;;  %v374_v6 = vld [vmem:[%s9468_s1 + $0x8] sm:$0xff]  ;;  %vm413_vm2 = vcmask 72704   ;;  %v375_v21 = vld [vmem:[%s9468_s1 + $0x10] sm:$0xff] }
  0x2e   : > { %v464_v2 = vsel %vm462_vm0, 4294967295, %v6123_v1  ;;  %v377_v4 = vld [vmem:[%s9468_s1 + $0x20] sm:$0x11]  ;;  %v378_v9 = vld [vmem:[%s9468_s1 + $0x28] sm:$0x11] }
  0x2f   : > { %s10408_s24 = smov (!%p313_p2, %s5189_s24), 63  ;;  %v6230_v5 = vsel %vm463_vm1, %v464_v2, 0  ;;  %v5194_v7 = vcombine.high %v373_v3, %v377_v4  ;;  %v5193_v8 = vcombine.low %v373_v3, %v377_v4  ;;  %v5195_v12 = vcombine.low %v374_v6, %v378_v9  ;;  %v379_v22 = vld [vmem:[%s9468_s1 + $0x30] sm:$0x11] }
  0x30   : > { %s5190_s25 = sshll.u32 %s10408_s24, 3  ;;  %v5196_v13 = vcombine.high %v374_v6, %v378_v9  ;;  %v5198_v24 = vcombine.high %v375_v21, %v379_v22  ;;  %v5197_v25 = vcombine.low %v375_v21, %v379_v22  ;;  %v6405_v9 = vld [vmem:[%s9468_s1 + $0x38] sm:$0x11] }
  0x31   : > { %s6237_s11 = scalar_lea.vmem %s9467_s0, %s5190_s25  ;;  %v470_v14 = vand.u32 %v5194_v7, %v6230_v5  ;;  %v467_v15 = vand.u32 %v5193_v8, %v6230_v5  ;;  %v473_v18 = vand.u32 %v5195_v12, %v6230_v5  ;;  %v6400_v8 = vld [vmem:[%s9468_s1 + $0x18] sm:$0xff]  ;;  %s9399_s13 = scalar_lea.vmem %s9475_s8, %s5190_s25 }
  0x32   : > { %v325_v10 = vld [vmem:[%s6237_s11] sm:$0xff]  ;;  %v326_v11 = vld [vmem:[%s6237_s11 + $0x8] sm:$0xff]  ;;  %v476_v16 = vand.u32 %v5196_v13, %v6230_v5  ;;  %v327_v19 = vld [vmem:[%s6237_s11 + $0x10] sm:$0xff]  ;;  %v482_v26 = vand.u32 %v5198_v24, %v6230_v5  ;;  %v6268_v27 = vand.u32 %v5197_v25, %v6230_v5 }
  0x33   : > { %490 = vmatprep.subr.bf16.mxu1 %v470_v14  ;;  %v6250_v17 = vpack.c.bf16 %v326_v11, %v325_v10  ;;  %v328_v20 = vld [vmem:[%s6237_s11 + $0x18] sm:$0xff]  ;;  %v329_v28 = vld [vmem:[%s6237_s11 + $0x20] sm:$0xff]  ;;  %v330_v29 = vld [vmem:[%s6237_s11 + $0x28] sm:$0xff]  ;;  %v5200_v11 = vcombine.high %v6400_v8, %v6405_v9 }
  0x34   : > { %491 = vmatpush1.bf16.msra.mxu1 %v467_v15  ;;  %v6264_v23 = vpack.c.bf16 %v328_v20, %v327_v19  ;;  %876 = vmatprep.subr.bf16.mxu0 %v482_v26  ;;  %v6276_v30 = vpack.c.bf16 %v330_v29, %v329_v28  ;;  %v331_v31 = vld [vmem:[%s6237_s11 + $0x30] sm:$0xff]  ;;  %v332_v32 = vld [vmem:[%s6237_s11 + $0x38] sm:$0xff]  ;;  %v333_v34 = vld [vmem:[%s6237_s11 + $0x40] sm:$0xff] }
  0x35   : > { %683 = vmatprep.subr.bf16.mxu1 %v476_v16  ;;  %877 = vmatpush1.bf16.msra.mxu0 %v6268_v27  ;;  %v6286_v33 = vpack.c.bf16 %v332_v32, %v331_v31  ;;  %v334_v35 = vld [vmem:[%s6237_s11 + $0x48] sm:$0xff]  ;;  %v335_v37 = vld [vmem:[%s6237_s11 + $0x50] sm:$0xff]  ;;  %v336_v38 = vld [vmem:[%s6237_s11 + $0x58] sm:$0xff]  ;;  %v488_v12 = vand.u32 %v5200_v11, %v6230_v5 }
  0x36   : > { %v6296_v36 = vpack.c.bf16 %v334_v35, %v333_v34  ;;  %v6306_v39 = vpack.c.bf16 %v336_v38, %v335_v37  ;;  %v337_v40 = vld [vmem:[%s6237_s11 + $0x60] sm:$0xff]  ;;  %v338_v41 = vld [vmem:[%s6237_s11 + $0x68] sm:$0xff]  ;;  %v339_v43 = vld [vmem:[%s6237_s11 + $0x70] sm:$0xff] }
  0x37   : > { %5201 = vmatmul.mubr.msk.bf16.vlgmr.msra.gmra.mrb[0].mxu1 %vm413_vm2, %v6250_v17  ;;  %v6316_v42 = vpack.c.bf16 %v338_v41, %v337_v40  ;;  %v340_v44 = vld [vmem:[%s6237_s11 + $0x78] sm:$0xff]  ;;  %v341_v46 = vld [vmem:[%s6237_s11 + $0x80] sm:$0xff]  ;;  %v342_v47 = vld [vmem:[%s6237_s11 + $0x88] sm:$0xff] }
  0x38   : > { %684 = vmatpush1.bf16.msra.mxu1 %v473_v18  ;;  %532 = vmatprep.mubr.bf16.mxu1 %v9479_v0  ;;  %v6326_v45 = vpack.c.bf16 %v340_v44, %v339_v43  ;;  %v6336_v48 = vpack.c.bf16 %v342_v47, %v341_v46  ;;  %v343_v49 = vld [vmem:[%s6237_s11 + $0x90] sm:$0xff]  ;;  %v344_v50 = vld [vmem:[%s6237_s11 + $0x98] sm:$0xff]  ;;  %v345_v52 = vld [vmem:[%s6237_s11 + $0xa0] sm:$0xff] }
  0x39   : > { %5524 = vmatprep.subr.bf16.mxu1 %v482_v26  ;;  %5233 = vmatmul.mubr.msk.bf16.vlgmr.msra.gmra.mrb[0].mxu0 %vm413_vm2, %v6250_v17  ;;  %v6346_v51 = vpack.c.bf16 %v344_v50, %v343_v49  ;;  %v346_v53 = vld [vmem:[%s6237_s11 + $0xa8] sm:$0xff]  ;;  %v347_v55 = vld [vmem:[%s6237_s11 + $0xb0] sm:$0xff]  ;;  %v348_v56 = vld [vmem:[%s6237_s11 + $0xb8] sm:$0xff] }
  0x3a   : > { %918 = vmatprep.mubr.bf16.mxu0 %v9479_v0  ;;  %v6355_v54 = vpack.c.bf16 %v346_v53, %v345_v52  ;;  %v6362_v57 = vpack.c.bf16 %v348_v56, %v347_v55  ;;  %v349_v58 = vld [vmem:[%s6237_s11 + $0xc0] sm:$0xff]  ;;  %v350_v59 = vld [vmem:[%s6237_s11 + $0xc8] sm:$0xff]  ;;  %v351_v61 = vld [vmem:[%s6237_s11 + $0xd0] sm:$0xff] }
  0x3b   : > { %9764 = vst [vmem:[#allocation5_spill] sm:$0xff] %v6346_v51  ;;  %v6369_v60 = vpack.c.bf16 %v350_v59, %v349_v58  ;;  %v352_v62 = vld [vmem:[%s6237_s11 + $0xd8] sm:$0xff]  ;;  %v353_v1 = vld [vmem:[%s6237_s11 + $0xe0] sm:$0xff]  ;;  %v354_v2 = vld [vmem:[%s6237_s11 + $0xe8] sm:$0xff] }
  0x3c   : > { %9765 = vst [vmem:[#allocation6_spill] sm:$0xff] %v6355_v54  ;;  %9766 = vst [vmem:[#allocation7_spill] sm:$0xff] %v6362_v57  ;;  %v6376_v63 = vpack.c.bf16 %v352_v62, %v351_v61  ;;  %v6383_v3 = vpack.c.bf16 %v354_v2, %v353_v1  ;;  %v355_v4 = vld [vmem:[%s6237_s11 + $0xf0] sm:$0xff]  ;;  %v356_v6 = vld [vmem:[%s6237_s11 + $0xf8] sm:$0xff] }
  0x3d   : > { %9767 = vst [vmem:[#allocation8_spill] sm:$0xff] %v6369_v60  ;;  %v6390_v7 = vpack.c.bf16 %v356_v6, %v355_v4 }
  0x3e   : > { %9768 = vst [vmem:[#allocation9_spill] sm:$0xff] %v6376_v63  ;;  %9769 = vst [vmem:[#allocation10_spill] sm:$0xff] %v6383_v3 }
  0x3f   : > { %5202 = vmatmul.mubr.msk.bf16.gmra.mrb[4].mxu1 %vm413_vm2, %v6264_v23  ;;  %9770 = vst [vmem:[#allocation11_spill] sm:$0xff] %v6390_v7 }
  0x40   : > { %542 = vmatprep.mubr.bf16.mxu1 %v9479_v0 }
  0x41   : > { %5234 = vmatmul.mubr.msk.bf16.gmra.mrb[4].mxu0 %vm413_vm2, %v6264_v23 }
  0x42   : > { %928 = vmatprep.mubr.bf16.mxu0 %v9479_v0 }
  0x47   : > { %5203 = vmatmul.mubr.msk.bf16.gmra.mrb[8].mxu1 %vm413_vm2, %v6276_v30 }
  0x48   : > { %552 = vmatprep.mubr.bf16.mxu1 %v9479_v0 }
  0x49   : > { %5235 = vmatmul.mubr.msk.bf16.gmra.mrb[8].mxu0 %vm413_vm2, %v6276_v30 }
  0x4a   : > { %938 = vmatprep.mubr.bf16.mxu0 %v9479_v0 }
  0x4f   : > { %5204 = vmatmul.mubr.msk.bf16.gmra.mrb[12].mxu1 %vm413_vm2, %v6286_v33 }
  0x50   : > { %562 = vmatprep.mubr.bf16.mxu1 %v9479_v0 }
  0x51   : > { %5236 = vmatmul.mubr.msk.bf16.gmra.mrb[12].mxu0 %vm413_vm2, %v6286_v33 }
  0x52   : > { %948 = vmatprep.mubr.bf16.mxu0 %v9479_v0 }
  0x57   : > { %5205 = vmatmul.mubr.msk.bf16.gmra.mrb[16].mxu1 %vm413_vm2, %v6296_v36 }
  0x58   : > { %572 = vmatprep.mubr.bf16.mxu1 %v9479_v0 }
  0x59   : > { %5237 = vmatmul.mubr.msk.bf16.gmra.mrb[16].mxu0 %vm413_vm2, %v6296_v36 }
  0x5a   : > { %958 = vmatprep.mubr.bf16.mxu0 %v9479_v0 }
  0x5f   : > { %5206 = vmatmul.mubr.msk.bf16.gmra.mrb[20].mxu1 %vm413_vm2, %v6306_v39 }
  0x60   : > { %582 = vmatprep.mubr.bf16.mxu1 %v9479_v0 }
  0x61   : > { %5238 = vmatmul.mubr.msk.bf16.gmra.mrb[20].mxu0 %vm413_vm2, %v6306_v39 }
  0x62   : > { %968 = vmatprep.mubr.bf16.mxu0 %v9479_v0 }
  0x67   : > { %5207 = vmatmul.mubr.msk.bf16.gmra.mrb[24].mxu1 %vm413_vm2, %v6316_v42 }
  0x68   : > { %592 = vmatprep.mubr.bf16.mxu1 %v9479_v0 }
  0x69   : > { %5239 = vmatmul.mubr.msk.bf16.gmra.mrb[24].mxu0 %vm413_vm2, %v6316_v42 }
  0x6a   : > { %978 = vmatprep.mubr.bf16.mxu0 %v9479_v0 }
  0x6f   : > { %5208 = vmatmul.mubr.msk.bf16.gmra.mrb[28].mxu1 %vm413_vm2, %v6326_v45 }
  0x70   : > { %602 = vmatprep.mubr.bf16.mxu1 %v9479_v0 }
  0x71   : > { %5240 = vmatmul.mubr.msk.bf16.gmra.mrb[28].mxu0 %vm413_vm2, %v6326_v45 }
  0x77   : > { %5209 = vmatmul.mubr.msk.bf16.gmra.mrb[32].mxu1 %vm413_vm2, %v6336_v48 }
  0x78   : > { %612 = vmatprep.mubr.bf16.mxu1 %v9479_v0 }
  0x7f   : > { %5210 = vmatmul.mubr.msk.bf16.gmra.mrb[36].mxu1 %vm413_vm2, %v6346_v51 }
  0x80   : > { %622 = vmatprep.mubr.bf16.mxu1 %v9479_v0 }
  0x87   : > { %5211 = vmatmul.mubr.msk.bf16.gmra.mrb[40].mxu1 %vm413_vm2, %v6355_v54 }
  0x88   : > { %632 = vmatprep.mubr.bf16.mxu1 %v9479_v0 }
  0x8f   : > { %5212 = vmatmul.mubr.msk.bf16.gmra.mrb[44].mxu1 %vm413_vm2, %v6362_v57 }
  0x90   : > { %642 = vmatprep.mubr.bf16.mxu1 %v9479_v0 }
  0x97   : > { %5213 = vmatmul.mubr.msk.bf16.gmra.mrb[48].mxu1 %vm413_vm2, %v6369_v60 }
  0x98   : > { %652 = vmatprep.mubr.bf16.mxu1 %v9479_v0 }
  0x9f   : > { %5214 = vmatmul.mubr.msk.bf16.gmra.mrb[52].mxu1 %vm413_vm2, %v6376_v63 }
  0xa0   : > { %662 = vmatprep.mubr.bf16.mxu1 %v9479_v0 }
  0xa7   : > { %5215 = vmatmul.mubr.msk.bf16.gmra.mrb[56].mxu1 %vm413_vm2, %v6383_v3 }
  0xa8   : > { %672 = vmatprep.mubr.bf16.mxu1 %v9479_v0 }
  0xaf   : > { %5216 = vmatmul.mubr.msk.bf16.gmra.mrb[60].mxu1 %vm413_vm2, %v6390_v7 }
  0xb0   : > { %715 = vmatprep.mubr.bf16.mxu1 %v9479_v0 }
  0xb7   : > { %5217 = vmatmul.mubr.msk.bf16.vlgmr.msra.gmra.mrb[64].mxu1 %vm413_vm2, %v6250_v17 }
  0xb8   : > { %5525 = vmatpush1.bf16.msra.mxu1 %v6268_v27  ;;  %725 = vmatprep.mubr.bf16.mxu1 %v9479_v0 }
  0xb9   : > { %1069 = vmatprep.subr.bf16.mxu1 %v488_v12 }
  0xbf   : > { %5218 = vmatmul.mubr.msk.bf16.gmra.mrb[68].mxu1 %vm413_vm2, %v6264_v23 }
  0xc0   : > { %735 = vmatprep.mubr.bf16.mxu1 %v9479_v0 }
  0xc7   : > { %5219 = vmatmul.mubr.msk.bf16.gmra.mrb[72].mxu1 %vm413_vm2, %v6276_v30 }
  0xc8   : > { %745 = vmatprep.mubr.bf16.mxu1 %v9479_v0 }
  0xcf   : > { %5220 = vmatmul.mubr.msk.bf16.gmra.mrb[76].mxu1 %vm413_vm2, %v6286_v33 }
  0xd0   : > { %755 = vmatprep.mubr.bf16.mxu1 %v9479_v0 }
  0xd7   : > { %5221 = vmatmul.mubr.msk.bf16.gmra.mrb[80].mxu1 %vm413_vm2, %v6296_v36 }
  0xd8   : > { %765 = vmatprep.mubr.bf16.mxu1 %v9479_v0 }
  0xdf   : > { %5222 = vmatmul.mubr.msk.bf16.gmra.mrb[84].mxu1 %vm413_vm2, %v6306_v39 }
  0xe0   : > { %775 = vmatprep.mubr.bf16.mxu1 %v9479_v0 }
  0xe7   : > { %5223 = vmatmul.mubr.msk.bf16.gmra.mrb[88].mxu1 %vm413_vm2, %v6316_v42 }
  0xe8   : > { %785 = vmatprep.mubr.bf16.mxu1 %v9479_v0 }
  0xef   : > { %5224 = vmatmul.mubr.msk.bf16.gmra.mrb[92].mxu1 %vm413_vm2, %v6326_v45 }
  0xf0   : > { %795 = vmatprep.mubr.bf16.mxu1 %v9479_v0 }
  0xf7   : > { %5225 = vmatmul.mubr.msk.bf16.gmra.mrb[96].mxu1 %vm413_vm2, %v6336_v48 }
  0xf8   : > { %805 = vmatprep.mubr.bf16.mxu1 %v9479_v0 }
  0xff   : > { %5226 = vmatmul.mubr.msk.bf16.gmra.mrb[100].mxu1 %vm413_vm2, %v6346_v51 }
 0x100   : > { %815 = vmatprep.mubr.bf16.mxu1 %v9479_v0 }
 0x107   : > { %5227 = vmatmul.mubr.msk.bf16.gmra.mrb[104].mxu1 %vm413_vm2, %v6355_v54 }
 0x108   : > { %825 = vmatprep.mubr.bf16.mxu1 %v9479_v0 }
 0x10a   : > { %v6444_v13 = vpop.f32.mrb[0].mxu1 }
 0x10b   : > { %9771 = vst [vmem:[#allocation12_spill] sm:$0xff] %v6444_v13  ;;  %v1262_v14 = vmul.f32 %v6444_v13, %v6444_v13  ;;  %v6448_v15 = vpop.f32.mrb[1].mxu1 }
 0x10c   : > { %9772 = vst [vmem:[#allocation13_spill] sm:$0xff] %v6448_v15  ;;  %v1263_v16 = vmul.f32 %v6448_v15, %v6448_v15  ;;  %v6452_v18 = vpop.f32.mrb[2].mxu1  ;;  %v6487_v37 = vpop.f32.mrb[0].mxu0 }
 0x10d   : > { %9773 = vst [vmem:[#allocation14_spill] sm:$0xff] %v6452_v18  ;;  %v1270_v19 = vmul.f32 %v6452_v18, %v6452_v18  ;;  %v6456_v20 = vpop.f32.mrb[3].mxu1  ;;  %9779 = vst [vmem:[#allocation20_spill] sm:$0xff] %v6487_v37  ;;  %v6490_v38 = vpop.f32.mrb[1].mxu0 }
 0x10e   : > { %9774 = vst [vmem:[#allocation15_spill] sm:$0xff] %v6456_v20  ;;  %v1271_v21 = vmul.f32 %v6456_v20, %v6456_v20  ;;  %v6460_v22 = vadd.f32 %v1263_v16, %v1262_v14  ;;  %v6494_v41 = vpop.f32.mrb[2].mxu0 }
 0x10f   : > { %5228 = vmatmul.mubr.msk.bf16.gmra.mrb[108].mxu1 %vm413_vm2, %v6362_v57  ;;  %9780 = vst [vmem:[#allocation21_spill] sm:$0xff] %v6494_v41  ;;  %v6498_v44 = vpop.f32.mrb[3].mxu0 }
 0x110   : > { %835 = vmatprep.mubr.bf16.mxu1 %v9479_v0  ;;  %v6465_v24 = vadd.f32 %v1271_v21, %v1270_v19  ;;  %9782 = vst [vmem:[#allocation23_spill] sm:$0xff] %v6498_v44 }
 0x112   : > { %v6467_v25 = vpop.f32.mrb[4].mxu1 }
 0x113   : > { %9775 = vst [vmem:[#allocation16_spill] sm:$0xff] %v6467_v25  ;;  %v1278_v26 = vmul.f32 %v6467_v25, %v6467_v25  ;;  %v6471_v27 = vpop.f32.mrb[5].mxu1 }
 0x114   : > { %9776 = vst [vmem:[#allocation17_spill] sm:$0xff] %v6471_v27  ;;  %v1279_v28 = vmul.f32 %v6471_v27, %v6471_v27  ;;  %v6475_v29 = vpop.f32.mrb[6].mxu1  ;;  %v6518_v58 = vpop.f32.mrb[4].mxu0 }
 0x115   : > { %9777 = vst [vmem:[#allocation18_spill] sm:$0xff] %v6475_v29  ;;  %v1286_v31 = vmul.f32 %v6475_v29, %v6475_v29  ;;  %v6479_v32 = vpop.f32.mrb[7].mxu1  ;;  %9786 = vst [vmem:[#allocation27_spill] sm:$0xff] %v6518_v58  ;;  %v6521_v59 = vpop.f32.mrb[5].mxu0 }
 0x116   : > { %9778 = vst [vmem:[#allocation19_spill] sm:$0xff] %v6479_v32  ;;  %v1287_v34 = vmul.f32 %v6479_v32, %v6479_v32  ;;  %v6483_v35 = vadd.f32 %v1279_v28, %v1278_v26  ;;  %9787 = vst [vmem:[#allocation28_spill] sm:$0xff] %v6521_v59  ;;  %v6525_v62 = vpop.f32.mrb[6].mxu0 }
 0x117   : > { %5229 = vmatmul.mubr.msk.bf16.gmra.mrb[112].mxu1 %vm413_vm2, %v6369_v60  ;;  %9788 = vst [vmem:[#allocation29_spill] sm:$0xff] %v6525_v62  ;;  %v6529_v2 = vpop.f32.mrb[7].mxu0 }
 0x118   : > { %845 = vmatprep.mubr.bf16.mxu1 %v9479_v0  ;;  %v6492_v40 = vadd.f32 %v1287_v34, %v1286_v31  ;;  %9790 = vst [vmem:[#allocation31_spill] sm:$0xff] %v6529_v2 }
 0x11a   : > { %v6496_v43 = vpop.f32.mrb[8].mxu1 }
 0x11b   : > { %9781 = vst [vmem:[#allocation22_spill] sm:$0xff] %v6496_v43  ;;  %v1294_v46 = vmul.f32 %v6496_v43, %v6496_v43  ;;  %v6502_v47 = vpop.f32.mrb[9].mxu1 }
 0x11c   : > { %9783 = vst [vmem:[#allocation24_spill] sm:$0xff] %v6502_v47  ;;  %v1295_v49 = vmul.f32 %v6502_v47, %v6502_v47  ;;  %v6506_v50 = vpop.f32.mrb[10].mxu1  ;;  %v6549_v26 = vpop.f32.mrb[8].mxu0 }
 0x11d   : > { %9784 = vst [vmem:[#allocation25_spill] sm:$0xff] %v6506_v50  ;;  %v1302_v52 = vmul.f32 %v6506_v50, %v6506_v50  ;;  %v6510_v53 = vpop.f32.mrb[11].mxu1  ;;  %9794 = vst [vmem:[#allocation35_spill] sm:$0xff] %v6549_v26  ;;  %v6552_v28 = vpop.f32.mrb[9].mxu0 }
 0x11e   : > { %9785 = vst [vmem:[#allocation26_spill] sm:$0xff] %v6510_v53  ;;  %v1303_v55 = vmul.f32 %v6510_v53, %v6510_v53  ;;  %v6514_v56 = vadd.f32 %v1295_v49, %v1294_v46  ;;  %9795 = vst [vmem:[#allocation36_spill] sm:$0xff] %v6552_v28  ;;  %v6556_v34 = vpop.f32.mrb[10].mxu0 }
 0x11f   : > { %5230 = vmatmul.mubr.msk.bf16.gmra.mrb[116].mxu1 %vm413_vm2, %v6376_v63  ;;  %9796 = vst [vmem:[#allocation37_spill] sm:$0xff] %v6556_v34  ;;  %v6560_v49 = vpop.f32.mrb[11].mxu0 }
 0x120   : > { %855 = vmatprep.mubr.bf16.mxu1 %v9479_v0  ;;  %v6523_v61 = vadd.f32 %v1303_v55, %v1302_v52  ;;  %9798 = vst [vmem:[#allocation39_spill] sm:$0xff] %v6560_v49 }
 0x122   : > { %v6527_v1 = vpop.f32.mrb[12].mxu1 }
 0x123   : > { %9789 = vst [vmem:[#allocation30_spill] sm:$0xff] %v6527_v1  ;;  %v1310_v4 = vmul.f32 %v6527_v1, %v6527_v1  ;;  %v6533_v6 = vpop.f32.mrb[13].mxu1 }
 0x124   : > { %9791 = vst [vmem:[#allocation32_spill] sm:$0xff] %v6533_v6  ;;  %v1311_v11 = vmul.f32 %v6533_v6, %v6533_v6  ;;  %v6537_v12 = vpop.f32.mrb[14].mxu1 }
 0x125   : > { %9792 = vst [vmem:[#allocation33_spill] sm:$0xff] %v6537_v12  ;;  %v1318_v14 = vmul.f32 %v6537_v12, %v6537_v12  ;;  %v6541_v16 = vpop.f32.mrb[15].mxu1  ;;  %v9803_v12 = vmov 0  }
 0x126   : > { %9793 = vst [vmem:[#allocation34_spill] sm:$0xff] %v6541_v16  ;;  %v1319_v19 = vmul.f32 %v6541_v16, %v6541_v16  ;;  %v6545_v21 = vadd.f32 %v1311_v11, %v1310_v4 }
 0x127   : > { %5231 = vmatmul.mubr.msk.bf16.gmra.mrb[120].mxu1 %vm413_vm2, %v6383_v3 }
 0x128   : > { %865 = vmatprep.mubr.bf16.mxu1 %v9479_v0  ;;  %v6554_v31 = vadd.f32 %v1319_v19, %v1318_v14 }
 0x12a   : > { %v6558_v46 = vpop.f32.mrb[16].mxu1 }
 0x12b   : > { %9797 = vst [vmem:[#allocation38_spill] sm:$0xff] %v6558_v46  ;;  %v1326_v52 = vmul.f32 %v6558_v46, %v6558_v46  ;;  %v6564_v55 = vpop.f32.mrb[17].mxu1  ;;  %v6580_v46 = vpop.f32.mrb[12].mxu0 }
 0x12c   : > { %9799 = vst [vmem:[#allocation40_spill] sm:$0xff] %v6564_v55  ;;  %v1327_v4 = vmul.f32 %v6564_v55, %v6564_v55  ;;  %v6568_v11 = vpop.f32.mrb[18].mxu1  ;;  %9802 = vst [vmem:[#allocation43_spill] sm:$0xff] %v6580_v46  ;;  %v6583_v55 = vpop.f32.mrb[13].mxu0 }
 0x12d   : > { %9800 = vst [vmem:[#allocation41_spill] sm:$0xff] %v6568_v11  ;;  %v1334_v14 = vmul.f32 %v6568_v11, %v6568_v11  ;;  %v6572_v19 = vpop.f32.mrb[19].mxu1  ;;  %9804 = vst [vmem:[#allocation44_spill] sm:$0xff] %v6583_v55  ;;  %v6587_v1 = vpop.f32.mrb[14].mxu0 }
 0x12e   : > { %9801 = vst [vmem:[#allocation42_spill] sm:$0xff] %v6572_v19  ;;  %v1335_v10 = vmul.f32 %v6572_v19, %v6572_v19  ;;  %v6576_v0 = vadd.f32 %v1327_v4, %v1326_v52  ;;  %9805 = vst [vmem:[#allocation45_spill] sm:$0xff] %v6587_v1  ;;  %v6591_v6 = vpop.f32.mrb[15].mxu0 }
 0x12f   : > { %5232 = vmatmul.mubr.msk.bf16.gmra.mrb[124].mxu1 %vm413_vm2, %v6390_v7  ;;  %9807 = vst [vmem:[#allocation47_spill] sm:$0xff] %v6591_v6 }
 0x130   : > { %988 = vmatprep.mubr.bf16.mxu1 %v9803_v12  ;;  %v6585_v16 = vadd.f32 %v1335_v10, %v1334_v14  ;;  %v9810_v10 = vcombine.low %v6400_v8, %v6405_v9 }
 0x132   : > { %v6589_v11 = vpop.f32.mrb[20].mxu1  ;;  %v485_v14 = vand.u32 %v9810_v10, %v6230_v5 }
 0x133   : > { %9806 = vst [vmem:[#allocation46_spill] sm:$0xff] %v6589_v11  ;;  %v1342_v52 = vmul.f32 %v6589_v11, %v6589_v11  ;;  %v6595_v4 = vpop.f32.mrb[21].mxu1 }
 0x134   : > { %9808 = vst [vmem:[#allocation48_spill] sm:$0xff] %v6595_v4  ;;  %v1343_v19 = vmul.f32 %v6595_v4, %v6595_v4  ;;  %v6599_v50 = vpop.f32.mrb[22].mxu1  ;;  %v6615_v4 = vpop.f32.mrb[16].mxu0 }
 0x135   : > { %9809 = vst [vmem:[#allocation49_spill] sm:$0xff] %v6599_v50  ;;  %v1350_v53 = vmul.f32 %v6599_v50, %v6599_v50  ;;  %v6607_v43 = vpop.f32.mrb[23].mxu1  ;;  %9812 = vst [vmem:[#allocation51_spill] sm:$0xff] %v6615_v4  ;;  %v6618_v8 = vpop.f32.mrb[17].mxu0 }
 0x136   : > { %9811 = vst [vmem:[#allocation50_spill] sm:$0xff] %v6607_v43  ;;  %v1351_v11 = vmul.f32 %v6607_v43, %v6607_v43  ;;  %v6611_v47 = vadd.f32 %v1343_v19, %v1342_v52  ;;  %9813 = vst [vmem:[#allocation52_spill] sm:$0xff] %v6618_v8  ;;  %v6622_v9 = vpop.f32.mrb[18].mxu0 }
 0x137   : > { %5241 = vmatmul.mubr.msk.bf16.vlgmr.msra.gmra.mrb[128].mxu1 %vm413_vm2, %v6336_v48  ;;  %9814 = vst [vmem:[#allocation53_spill] sm:$0xff] %v6622_v9  ;;  %v6626_v50 = vpop.f32.mrb[19].mxu0 }
 0x138   : > { %1070 = vmatpush1.bf16.msra.mxu1 %v485_v14  ;;  %998 = vmatprep.mubr.bf16.mxu1 %v9803_v12  ;;  %v6620_v5 = vadd.f32 %v1351_v11, %v1350_v53  ;;  %9816 = vst [vmem:[#allocation55_spill] sm:$0xff] %v6626_v50 }
 0x13a   : > { %v6624_v10 = vpop.f32.mrb[24].mxu1 }
 0x13b   : > { %9815 = vst [vmem:[#allocation54_spill] sm:$0xff] %v6624_v10  ;;  %v1358_v19 = vmul.f32 %v6624_v10, %v6624_v10  ;;  %v6630_v52 = vpop.f32.mrb[25].mxu1  ;;  %v6646_v10 = vpop.f32.mrb[20].mxu0 }
 0x13c   : > { %9817 = vst [vmem:[#allocation56_spill] sm:$0xff] %v6630_v52  ;;  %v1359_v14 = vmul.f32 %v6630_v52, %v6630_v52  ;;  %v6634_v43 = vpop.f32.mrb[26].mxu1  ;;  %9821 = vst [vmem:[#allocation60_spill] sm:$0xff] %v6646_v10  ;;  %v6649_v52 = vpop.f32.mrb[21].mxu0 }
 0x13d   : > { %9818 = vst [vmem:[#allocation57_spill] sm:$0xff] %v6634_v43  ;;  %v1366_v53 = vmul.f32 %v6634_v43, %v6634_v43  ;;  %v6638_v11 = vpop.f32.mrb[27].mxu1  ;;  %9822 = vst [vmem:[#allocation61_spill] sm:$0xff] %v6649_v52  ;;  %v6653_v27 = vpop.f32.mrb[22].mxu0 }
 0x13e   : > { %9819 = vst [vmem:[#allocation58_spill] sm:$0xff] %v6638_v11  ;;  %v1367_v29 = vmul.f32 %v6638_v11, %v6638_v11  ;;  %v6642_v32 = vadd.f32 %v1359_v14, %v1358_v19  ;;  %9824 = vst [vmem:[#allocation63_spill] sm:$0xff] %v6653_v27  ;;  %v6657_v18 = vpop.f32.mrb[23].mxu0 }
 0x13f   : > { %5242 = vmatmul.mubr.msk.bf16.gmra.mrb[132].mxu1 %vm413_vm2, %v6346_v51  ;;  %9826 = vst [vmem:[#allocation65_spill] sm:$0xff] %v6657_v18 }
 0x140   : > { %9820 = vst [vmem:[#allocation59_spill] sm:$0xff] %v6642_v32  ;;  %1008 = vmatprep.mubr.bf16.mxu1 %v9803_v12  ;;  %v6651_v25 = vadd.f32 %v1367_v29, %v1366_v53 }
 0x142   : > { %9823 = vst [vmem:[#allocation62_spill] sm:$0xff] %v6651_v25  ;;  %v6655_v43 = vpop.f32.mrb[28].mxu1 }
 0x143   : > { %9825 = vst [vmem:[#allocation64_spill] sm:$0xff] %v6655_v43  ;;  %v1374_v19 = vmul.f32 %v6655_v43, %v6655_v43  ;;  %v6661_v14 = vpop.f32.mrb[29].mxu1  ;;  %v6677_v43 = vpop.f32.mrb[24].mxu0 }
 0x144   : > { %9827 = vst [vmem:[#allocation66_spill] sm:$0xff] %v6661_v14  ;;  %v1375_v11 = vmul.f32 %v6661_v14, %v6661_v14  ;;  %v6665_v20 = vpop.f32.mrb[30].mxu1  ;;  %9831 = vst [vmem:[#allocation70_spill] sm:$0xff] %v6677_v43  ;;  %v6680_v14 = vpop.f32.mrb[25].mxu0 }
 0x145   : > { %9828 = vst [vmem:[#allocation67_spill] sm:$0xff] %v6665_v20  ;;  %v1382_v29 = vmul.f32 %v6665_v20, %v6665_v20  ;;  %v6669_v53 = vpop.f32.mrb[31].mxu1  ;;  %9832 = vst [vmem:[#allocation71_spill] sm:$0xff] %v6680_v14  ;;  %v6684_v25 = vpop.f32.mrb[26].mxu0 }
 0x146   : > { %9829 = vst [vmem:[#allocation68_spill] sm:$0xff] %v6669_v53  ;;  %v1383_v13 = vmul.f32 %v6669_v53, %v6669_v53  ;;  %v6673_v15 = vadd.f32 %v1375_v11, %v1374_v19  ;;  %9834 = vst [vmem:[#allocation73_spill] sm:$0xff] %v6684_v25  ;;  %v6688_v32 = vpop.f32.mrb[27].mxu0 }
 0x147   : > { %5243 = vmatmul.mubr.msk.bf16.gmra.mrb[136].mxu1 %vm413_vm2, %v6355_v54  ;;  %9836 = vst [vmem:[#allocation75_spill] sm:$0xff] %v6688_v32 }
 0x148   : > { %9830 = vst [vmem:[#allocation69_spill] sm:$0xff] %v6673_v15  ;;  %1018 = vmatprep.mubr.bf16.mxu1 %v9803_v12  ;;  %v6682_v51 = vadd.f32 %v1383_v13, %v1382_v29 }
 0x14a   : > { %9833 = vst [vmem:[#allocation72_spill] sm:$0xff] %v6682_v51  ;;  %v6686_v20 = vpop.f32.mrb[32].mxu1 }
 0x14b   : > { %9835 = vst [vmem:[#allocation74_spill] sm:$0xff] %v6686_v20  ;;  %v1390_v11 = vmul.f32 %v6686_v20, %v6686_v20  ;;  %v6692_v19 = vpop.f32.mrb[33].mxu1  ;;  %v6708_v20 = vpop.f32.mrb[28].mxu0 }
 0x14c   : > { %9837 = vst [vmem:[#allocation76_spill] sm:$0xff] %v6692_v19  ;;  %v1391_v53 = vmul.f32 %v6692_v19, %v6692_v19  ;;  %v6696_v54 = vpop.f32.mrb[34].mxu1  ;;  %9841 = vst [vmem:[#allocation80_spill] sm:$0xff] %v6708_v20  ;;  %v6713_v19 = vpop.f32.mrb[29].mxu0 }
 0x14d   : > { %9838 = vst [vmem:[#allocation77_spill] sm:$0xff] %v6696_v54  ;;  %v1398_v13 = vmul.f32 %v6696_v54, %v6696_v54  ;;  %v6700_v29 = vpop.f32.mrb[35].mxu1  ;;  %9843 = vst [vmem:[#allocation82_spill] sm:$0xff] %v6713_v19  ;;  %v6715_v25 = vpop.f32.mrb[30].mxu0 }
 0x14e   : > { %9839 = vst [vmem:[#allocation78_spill] sm:$0xff] %v6700_v29  ;;  %v6702_v51 = vadd.f32 %v1391_v53, %v1390_v11  ;;  %v1399_v15 = vmul.f32 %v6700_v29, %v6700_v29  ;;  %9844 = vst [vmem:[#allocation83_spill] sm:$0xff] %v6715_v25  ;;  %v6719_v53 = vpop.f32.mrb[31].mxu0 }
 0x14f   : > { %5244 = vmatmul.mubr.msk.bf16.gmra.mrb[140].mxu1 %vm413_vm2, %v6362_v57  ;;  %9846 = vst [vmem:[#allocation85_spill] sm:$0xff] %v6719_v53 }
 0x150   : > { %9840 = vst [vmem:[#allocation79_spill] sm:$0xff] %v6702_v51  ;;  %v6710_v32 = vadd.f32 %v1399_v15, %v1398_v13  ;;  %1028 = vmatprep.mubr.bf16.mxu1 %v9803_v12 }
 0x152   : > { %9842 = vst [vmem:[#allocation81_spill] sm:$0xff] %v6710_v32  ;;  %v6717_v54 = vpop.f32.mrb[36].mxu1 }
 0x153   : > { %9845 = vst [vmem:[#allocation84_spill] sm:$0xff] %v6717_v54  ;;  %v1406_v11 = vmul.f32 %v6717_v54, %v6717_v54  ;;  %v6723_v29 = vpop.f32.mrb[37].mxu1 }
 0x154   : > { %9847 = vst [vmem:[#allocation86_spill] sm:$0xff] %v6723_v29  ;;  %v1407_v57 = vmul.f32 %v6723_v29, %v6723_v29  ;;  %v6727_v15 = vpop.f32.mrb[38].mxu1 }
 0x155   : > { %9848 = vst [vmem:[#allocation87_spill] sm:$0xff] %v6727_v15  ;;  %v1414_v13 = vmul.f32 %v6727_v15, %v6727_v15  ;;  %v6731_v32 = vpop.f32.mrb[39].mxu1 }
 0x156   : > { %9849 = vst [vmem:[#allocation88_spill] sm:$0xff] %v6731_v32  ;;  %v6733_v51 = vadd.f32 %v1407_v57, %v1406_v11  ;;  %v1415_v53 = vmul.f32 %v6731_v32, %v6731_v32 }
 0x157   : > { %5245 = vmatmul.mubr.msk.bf16.gmra.mrb[144].mxu1 %vm413_vm2, %v6369_v60 }
 0x158   : > { %v6739_v54 = vadd.f32 %v1415_v53, %v1414_v13  ;;  %1038 = vmatprep.mubr.bf16.mxu1 %v9803_v12 }
 0x15a   : > { %9850 = vst [vmem:[#allocation89_spill] sm:$0xff] %v6739_v54  ;;  %v6742_v29 = vpop.f32.mrb[40].mxu1 }
 0x15b   : > { %9851 = vst [vmem:[#allocation90_spill] sm:$0xff] %v6742_v29  ;;  %v1422_v25 = vmul.f32 %v6742_v29, %v6742_v29  ;;  %v6746_v15 = vpop.f32.mrb[41].mxu1 }
 0x15c   : > { %9852 = vst [vmem:[#allocation91_spill] sm:$0xff] %v6746_v15  ;;  %v1423_v57 = vmul.f32 %v6746_v15, %v6746_v15  ;;  %v6750_v11 = vpop.f32.mrb[42].mxu1 }
 0x15d   : > { %9853 = vst [vmem:[#allocation92_spill] sm:$0xff] %v6750_v11  ;;  %v1430_v32 = vmul.f32 %v6750_v11, %v6750_v11  ;;  %v6754_v60 = vpop.f32.mrb[43].mxu1 }
 0x15e   : > { %9854 = vst [vmem:[#allocation93_spill] sm:$0xff] %v6754_v60  ;;  %v6756_v53 = vadd.f32 %v1423_v57, %v1422_v25  ;;  %v1431_v13 = vmul.f32 %v6754_v60, %v6754_v60 }
 0x15f   : > { %5246 = vmatmul.mubr.msk.bf16.gmra.mrb[148].mxu1 %vm413_vm2, %v6376_v63 }
 0x160   : > { %v6762_v29 = vadd.f32 %v1431_v13, %v1430_v32  ;;  %1048 = vmatprep.mubr.bf16.mxu1 %v9803_v12 }
 0x162   : > { %9855 = vst [vmem:[#allocation94_spill] sm:$0xff] %v6762_v29  ;;  %v6765_v15 = vpop.f32.mrb[44].mxu1 }
 0x163   : > { %9856 = vst [vmem:[#allocation95_spill] sm:$0xff] %v6765_v15  ;;  %v1438_v54 = vmul.f32 %v6765_v15, %v6765_v15  ;;  %v6769_v11 = vpop.f32.mrb[45].mxu1 }
 0x164   : > { %9857 = vst [vmem:[#allocation96_spill] sm:$0xff] %v6769_v11  ;;  %v1439_v25 = vmul.f32 %v6769_v11, %v6769_v11  ;;  %v6773_v57 = vpop.f32.mrb[46].mxu1 }
 0x165   : > { %9858 = vst [vmem:[#allocation97_spill] sm:$0xff] %v6773_v57  ;;  %v1446_v60 = vmul.f32 %v6773_v57, %v6773_v57  ;;  %v6777_v63 = vpop.f32.mrb[47].mxu1 }
 0x166   : > { %9859 = vst [vmem:[#allocation98_spill] sm:$0xff] %v6777_v63  ;;  %v6779_v32 = vadd.f32 %v1439_v25, %v1438_v54  ;;  %v1447_v13 = vmul.f32 %v6777_v63, %v6777_v63 }
 0x167   : > { %5247 = vmatmul.mubr.msk.bf16.gmra.mrb[152].mxu1 %vm413_vm2, %v6383_v3 }
 0x168   : > { %v6785_v15 = vadd.f32 %v1447_v13, %v1446_v60  ;;  %1058 = vmatprep.mubr.bf16.mxu1 %v9803_v12 }
 0x16a   : > { %9860 = vst [vmem:[#allocation99_spill] sm:$0xff] %v6785_v15  ;;  %v6788_v11 = vpop.f32.mrb[48].mxu1 }
 0x16b   : > { %9861 = vst [vmem:[#allocation100_spill] sm:$0xff] %v6788_v11  ;;  %v1454_v29 = vmul.f32 %v6788_v11, %v6788_v11  ;;  %v6792_v57 = vpop.f32.mrb[49].mxu1 }
 0x16c   : > { %9862 = vst [vmem:[#allocation101_spill] sm:$0xff] %v6792_v57  ;;  %v1455_v54 = vmul.f32 %v6792_v57, %v6792_v57  ;;  %v6796_v25 = vpop.f32.mrb[50].mxu1 }
 0x16d   : > { %9863 = vst [vmem:[#allocation102_spill] sm:$0xff] %v6796_v25  ;;  %v1462_v63 = vmul.f32 %v6796_v25, %v6796_v25  ;;  %v6800_v3 = vpop.f32.mrb[51].mxu1 }
 0x16e   : > { %9864 = vst [vmem:[#allocation103_spill] sm:$0xff] %v6800_v3  ;;  %v6802_v60 = vadd.f32 %v1455_v54, %v1454_v29  ;;  %v1463_v13 = vmul.f32 %v6800_v3, %v6800_v3 }
 0x16f   : > { %5248 = vmatmul.mubr.msk.bf16.gmra.mrb[156].mxu1 %vm413_vm2, %v6390_v7 }
 0x170   : > { %v6808_v11 = vadd.f32 %v1463_v13, %v1462_v63  ;;  %1101 = vmatprep.mubr.bf16.mxu1 %v9803_v12 }
 0x172   : > { %9865 = vst [vmem:[#allocation104_spill] sm:$0xff] %v6808_v11  ;;  %v6811_v57 = vpop.f32.mrb[52].mxu1 }
 0x173   : > { %9866 = vst [vmem:[#allocation105_spill] sm:$0xff] %v6811_v57  ;;  %v1470_v15 = vmul.f32 %v6811_v57, %v6811_v57  ;;  %v6815_v25 = vpop.f32.mrb[53].mxu1 }
 0x174   : > { %9867 = vst [vmem:[#allocation106_spill] sm:$0xff] %v6815_v25  ;;  %v1471_v29 = vmul.f32 %v6815_v25, %v6815_v25  ;;  %v6819_v54 = vpop.f32.mrb[54].mxu1 }
 0x175   : > { %9868 = vst [vmem:[#allocation107_spill] sm:$0xff] %v6819_v54  ;;  %v1478_v3 = vmul.f32 %v6819_v54, %v6819_v54  ;;  %v6823_v7 = vpop.f32.mrb[55].mxu1 }
 0x176   : > { %9869 = vst [vmem:[#allocation108_spill] sm:$0xff] %v6823_v7  ;;  %v6825_v63 = vadd.f32 %v1471_v29, %v1470_v15  ;;  %v1479_v13 = vmul.f32 %v6823_v7, %v6823_v7 }
 0x177   : > { %5249 = vmatmul.mubr.msk.bf16.vlgmr.msra.gmra.mrb[160].mxu1 %vm413_vm2, %v6250_v17 }
 0x178   : > { %v6831_v57 = vadd.f32 %v1479_v13, %v1478_v3  ;;  %1111 = vmatprep.mubr.bf16.mxu1 %v9803_v12 }
 0x17a   : > { %9870 = vst [vmem:[#allocation109_spill] sm:$0xff] %v6831_v57  ;;  %v6834_v25 = vpop.f32.mrb[56].mxu1 }
 0x17b   : > { %9871 = vst [vmem:[#allocation110_spill] sm:$0xff] %v6834_v25  ;;  %v1486_v11 = vmul.f32 %v6834_v25, %v6834_v25  ;;  %v6838_v54 = vpop.f32.mrb[57].mxu1 }
 0x17c   : > { %9872 = vst [vmem:[#allocation111_spill] sm:$0xff] %v6838_v54  ;;  %v1487_v15 = vmul.f32 %v6838_v54, %v6838_v54  ;;  %v6842_v29 = vpop.f32.mrb[58].mxu1 }
 0x17d   : > { %9873 = vst [vmem:[#allocation112_spill] sm:$0xff] %v6842_v29  ;;  %v1494_v7 = vmul.f32 %v6842_v29, %v6842_v29  ;;  %v6846_v17 = vpop.f32.mrb[59].mxu1 }
 0x17e   : > { %9874 = vst [vmem:[#allocation113_spill] sm:$0xff] %v6846_v17  ;;  %v6848_v3 = vadd.f32 %v1487_v15, %v1486_v11  ;;  %v1495_v13 = vmul.f32 %v6846_v17, %v6846_v17 }
 0x17f   : > { %5250 = vmatmul.mubr.msk.bf16.gmra.mrb[164].mxu1 %vm413_vm2, %v6264_v23 }
 0x180   : > { %v6854_v25 = vadd.f32 %v1495_v13, %v1494_v7  ;;  %1121 = vmatprep.mubr.bf16.mxu1 %v9803_v12 }
 0x182   : > { %9875 = vst [vmem:[#allocation114_spill] sm:$0xff] %v6854_v25  ;;  %v6857_v54 = vpop.f32.mrb[60].mxu1 }
 0x183   : > { %9876 = vst [vmem:[#allocation115_spill] sm:$0xff] %v6857_v54  ;;  %v1502_v57 = vmul.f32 %v6857_v54, %v6857_v54  ;;  %v6861_v29 = vpop.f32.mrb[61].mxu1 }
 0x184   : > { %9877 = vst [vmem:[#allocation116_spill] sm:$0xff] %v6861_v29  ;;  %v1503_v11 = vmul.f32 %v6861_v29, %v6861_v29  ;;  %v6865_v15 = vpop.f32.mrb[62].mxu1 }
 0x185   : > { %9878 = vst [vmem:[#allocation117_spill] sm:$0xff] %v6865_v15  ;;  %v1510_v17 = vmul.f32 %v6865_v15, %v6865_v15  ;;  %v6869_v23 = vpop.f32.mrb[63].mxu1 }
 0x186   : > { %9879 = vst [vmem:[#allocation118_spill] sm:$0xff] %v6869_v23  ;;  %v6871_v7 = vadd.f32 %v1503_v11, %v1502_v57  ;;  %v1511_v13 = vmul.f32 %v6869_v23, %v6869_v23 }
 0x187   : > { %5251 = vmatmul.mubr.msk.bf16.gmra.mrb[168].mxu1 %vm413_vm2, %v6276_v30 }
 0x188   : > { %9880 = vst [vmem:[#allocation119_spill] sm:$0xff] %v6871_v7  ;;  %v6877_v54 = vadd.f32 %v1511_v13, %v1510_v17  ;;  %1131 = vmatprep.mubr.bf16.mxu1 %v9803_v12  ;;  %v1266_v13 = vmul.f32 %v6487_v37, %v6487_v37  ;;  %v1275_v37 = vmul.f32 %v6498_v44, %v6498_v44 }
 0x189   : > { %v1283_v44 = vmul.f32 %v6521_v59, %v6521_v59 }
 0x18a   : > { %9881 = vst [vmem:[#allocation120_spill] sm:$0xff] %v6877_v54  ;;  %v6880_v29 = vpop.f32.mrb[64].mxu1 }
 0x18b   : > { %9882 = vst [vmem:[#allocation121_spill] sm:$0xff] %v6880_v29  ;;  %v1264_v25 = vmul.f32 %v6880_v29, %v6880_v29  ;;  %v6884_v15 = vpop.f32.mrb[65].mxu1 }
 0x18c   : > { %9883 = vst [vmem:[#allocation122_spill] sm:$0xff] %v6884_v15  ;;  %v1265_v57 = vmul.f32 %v6884_v15, %v6884_v15  ;;  %v6888_v11 = vpop.f32.mrb[66].mxu1  ;;  %v1267_v15 = vmul.f32 %v6490_v38, %v6490_v38 }
 0x18d   : > { %9884 = vst [vmem:[#allocation123_spill] sm:$0xff] %v6888_v11  ;;  %v1519_v23 = vadd.f32 %v6460_v22, %v1264_v25  ;;  %v1272_v30 = vmul.f32 %v6888_v11, %v6888_v11  ;;  %v6893_v17 = vpop.f32.mrb[67].mxu1  ;;  %v1274_v22 = vmul.f32 %v6494_v41, %v6494_v41 }
 0x18e   : > { %9885 = vst [vmem:[#allocation124_spill] sm:$0xff] %v6893_v17  ;;  %v1273_v29 = vmul.f32 %v6893_v17, %v6893_v17 }
 0x18f   : > { %v1520_v54 = vadd.f32 %v1519_v23, %v1265_v57  ;;  %v1528_v7 = vadd.f32 %v6465_v24, %v1272_v30  ;;  %5252 = vmatmul.mubr.msk.bf16.gmra.mrb[172].mxu1 %vm413_vm2, %v6286_v33 }
 0x190   : > { %1141 = vmatprep.mubr.bf16.mxu1 %v9803_v12 }
 0x191   : > { %v1529_v25 = vadd.f32 %v1528_v7, %v1273_v29  ;;  %v1521_v11 = vadd.f32 %v1520_v54, %v1266_v13 }
 0x192   : > { %v6909_v17 = vpop.f32.mrb[68].mxu1 }
 0x193   : > { %v6911_v23 = vadd.f32 %v1521_v11, %v1267_v15  ;;  %v1530_v24 = vadd.f32 %v1529_v25, %v1274_v22  ;;  %v1280_v57 = vmul.f32 %v6909_v17, %v6909_v17  ;;  %v6915_v30 = vpop.f32.mrb[69].mxu1  ;;  %v1282_v11 = vmul.f32 %v6518_v58, %v6518_v58 }
 0x194   : > { %v1281_v33 = vmul.f32 %v6915_v30, %v6915_v30  ;;  %v6919_v41 = vpop.f32.mrb[70].mxu1 }
 0x195   : > { %v1537_v54 = vadd.f32 %v6483_v35, %v1280_v57  ;;  %v6922_v29 = vadd.f32 %v1530_v24, %v1275_v37  ;;  %v1288_v7 = vmul.f32 %v6919_v41, %v6919_v41  ;;  %v6926_v15 = vpop.f32.mrb[71].mxu1  ;;  %v1290_v35 = vmul.f32 %v6525_v62, %v6525_v62 }
 0x196   : > { %v1289_v13 = vmul.f32 %v6926_v15, %v6926_v15  ;;  %v1291_v57 = vmul.f32 %v6529_v2, %v6529_v2  ;;  %v1299_v2 = vmul.f32 %v6552_v28, %v6552_v28 }
 0x197   : > { %v1538_v22 = vadd.f32 %v1537_v54, %v1281_v33  ;;  %v1546_v25 = vadd.f32 %v6492_v40, %v1288_v7  ;;  %5253 = vmatmul.mubr.msk.bf16.gmra.mrb[176].mxu1 %vm413_vm2, %v6296_v36 }
 0x198   : > { %1151 = vmatprep.mubr.bf16.mxu1 %v9803_v12 }
 0x199   : > { %v1547_v37 = vadd.f32 %v1546_v25, %v1289_v13  ;;  %v1539_v24 = vadd.f32 %v1538_v22, %v1282_v11  ;;  %v1298_v25 = vmul.f32 %v6549_v26, %v6549_v26 }
 0x19a   : > { %v6942_v58 = vpop.f32.mrb[72].mxu1 }
 0x19b   : > { %v6944_v33 = vadd.f32 %v1539_v24, %v1283_v44  ;;  %v1548_v40 = vadd.f32 %v1547_v37, %v1290_v35  ;;  %v1296_v54 = vmul.f32 %v6942_v58, %v6942_v58  ;;  %v6948_v7 = vpop.f32.mrb[73].mxu1 }
 0x19c   : > { %v1297_v36 = vmul.f32 %v6948_v7, %v6948_v7  ;;  %v6952_v62 = vpop.f32.mrb[74].mxu1 }
 0x19d   : > { %v1555_v11 = vadd.f32 %v6514_v56, %v1296_v54  ;;  %v6955_v13 = vadd.f32 %v1548_v40, %v1291_v57  ;;  %v1304_v22 = vmul.f32 %v6952_v62, %v6952_v62  ;;  %v6959_v44 = vpop.f32.mrb[75].mxu1  ;;  %v1306_v56 = vmul.f32 %v6556_v34, %v6556_v34 }
 0x19e   : > { %v1305_v35 = vmul.f32 %v6959_v44, %v6959_v44  ;;  %v1307_v54 = vmul.f32 %v6560_v49, %v6560_v49  ;;  %v1315_v49 = vmul.f32 %v6583_v55, %v6583_v55 }
 0x19f   : > { %v1556_v37 = vadd.f32 %v1555_v11, %v1297_v36  ;;  %v1564_v24 = vadd.f32 %v6523_v61, %v1304_v22  ;;  %5254 = vmatmul.mubr.msk.bf16.gmra.mrb[180].mxu1 %vm413_vm2, %v6306_v39 }
 0x1a0   : > { %1161 = vmatprep.mubr.bf16.mxu1 %v9803_v12 }
 0x1a1   : > { %v1565_v57 = vadd.f32 %v1564_v24, %v1305_v35  ;;  %v1557_v40 = vadd.f32 %v1556_v37, %v1298_v25  ;;  %v1314_v24 = vmul.f32 %v6580_v46, %v6580_v46 }
 0x1a2   : > { %v6975_v26 = vpop.f32.mrb[76].mxu1 }
 0x1a3   : > { %v6977_v36 = vadd.f32 %v1557_v40, %v1299_v2  ;;  %v1566_v61 = vadd.f32 %v1565_v57, %v1306_v56  ;;  %v1312_v11 = vmul.f32 %v6975_v26, %v6975_v26  ;;  %v6981_v22 = vpop.f32.mrb[77].mxu1 }
 0x1a4   : > { %v1313_v39 = vmul.f32 %v6981_v22, %v6981_v22  ;;  %v6985_v34 = vpop.f32.mrb[78].mxu1 }
 0x1a5   : > { %v1573_v25 = vadd.f32 %v6545_v21, %v1312_v11  ;;  %v6988_v35 = vadd.f32 %v1566_v61, %v1307_v54  ;;  %v1320_v37 = vmul.f32 %v6985_v34, %v6985_v34  ;;  %v6992_v2 = vpop.f32.mrb[79].mxu1  ;;  %v1322_v21 = vmul.f32 %v6587_v1, %v6587_v1 }
 0x1a6   : > { %v1321_v56 = vmul.f32 %v6992_v2, %v6992_v2  ;;  %v1323_v11 = vmul.f32 %v6591_v6, %v6591_v6  ;;  %v1331_v6 = vmul.f32 %v6618_v8, %v6618_v8  ;;  %v1363_v8 = vmul.f32 %v6680_v14, %v6680_v14 }
 0x1a7   : > { %v1574_v57 = vadd.f32 %v1573_v25, %v1313_v39  ;;  %v1582_v40 = vadd.f32 %v6554_v31, %v1320_v37  ;;  %5255 = vmatmul.mubr.msk.bf16.gmra.mrb[184].mxu1 %vm413_vm2, %v6316_v42 }
 0x1a8   : > { %1171 = vmatprep.mubr.bf16.mxu1 %v9803_v12 }
 0x1a9   : > { %v1583_v54 = vadd.f32 %v1582_v40, %v1321_v56  ;;  %v1575_v61 = vadd.f32 %v1574_v57, %v1314_v24  ;;  %v1330_v40 = vmul.f32 %v6615_v4, %v6615_v4 }
 0x1aa   : > { %v7008_v46 = vpop.f32.mrb[80].mxu1 }
 0x1ab   : > { %v7010_v39 = vadd.f32 %v1575_v61, %v1315_v49  ;;  %v1584_v31 = vadd.f32 %v1583_v54, %v1322_v21  ;;  %v1328_v25 = vmul.f32 %v7008_v46, %v7008_v46  ;;  %v7014_v37 = vpop.f32.mrb[81].mxu1 }
 0x1ac   : > { %v1329_v42 = vmul.f32 %v7014_v37, %v7014_v37  ;;  %v7018_v1 = vpop.f32.mrb[82].mxu1 }
 0x1ad   : > { %9886 = vst [vmem:[#allocation125_spill] sm:$0xff] %v7018_v1  ;;  %v1591_v24 = vadd.f32 %v6576_v0, %v1328_v25  ;;  %v7021_v56 = vadd.f32 %v1584_v31, %v1323_v11  ;;  %v1336_v57 = vmul.f32 %v7018_v1, %v7018_v1  ;;  %v7025_v49 = vpop.f32.mrb[83].mxu1  ;;  %v1338_v0 = vmul.f32 %v6622_v9, %v6622_v9 }
 0x1ae   : > { %v1337_v21 = vmul.f32 %v7025_v49, %v7025_v49  ;;  %v1339_v25 = vmul.f32 %v6626_v50, %v6626_v50  ;;  %v1347_v50 = vmul.f32 %v6649_v52, %v6649_v52 }
 0x1af   : > { %v1592_v54 = vadd.f32 %v1591_v24, %v1329_v42  ;;  %v1600_v61 = vadd.f32 %v6585_v16, %v1336_v57  ;;  %5256 = vmatmul.mubr.msk.bf16.gmra.mrb[188].mxu1 %vm413_vm2, %v6326_v45 }
 0x1b0   : > { %1181 = vmatprep.mubr.bf16.mxu1 %v9803_v12 }
 0x1b1   : > { %v1601_v11 = vadd.f32 %v1600_v61, %v1337_v21  ;;  %v1593_v31 = vadd.f32 %v1592_v54, %v1330_v40  ;;  %v1346_v61 = vmul.f32 %v6646_v10, %v6646_v10 }
 0x1b2   : > { %v7041_v4 = vpop.f32.mrb[84].mxu1 }
 0x1b3   : > { %9887 = vst [vmem:[#allocation126_spill] sm:$0xff] %v7041_v4  ;;  %v7043_v42 = vadd.f32 %v1593_v31, %v1331_v6  ;;  %v1602_v16 = vadd.f32 %v1601_v11, %v1338_v0  ;;  %v1344_v24 = vmul.f32 %v7041_v4, %v7041_v4  ;;  %v7047_v57 = vpop.f32.mrb[85].mxu1  ;;  %v5805_v4 = vld [vmem:[#allocation2] ss:$8 sps:$4 sm:$0xff]  }
 0x1b4   : > { %9888 = vst [vmem:[#allocation127_spill] sm:$0xff] %v7047_v57  ;;  %v1345_v45 = vmul.f32 %v7047_v57, %v7047_v57  ;;  %v7051_v9 = vpop.f32.mrb[86].mxu1  ;;  %v5828_v57 = vld [vmem:[#allocation2 + $0x74] ss:$8 sps:$4 sm:$0xff]  }
 0x1b5   : > { %9889 = vst [vmem:[#allocation128_spill] sm:$0xff] %v7051_v9  ;;  %v1609_v40 = vadd.f32 %v6611_v47, %v1344_v24  ;;  %v7054_v21 = vadd.f32 %v1602_v16, %v1339_v25  ;;  %v1352_v54 = vmul.f32 %v7051_v9, %v7051_v9  ;;  %v7058_v6 = vpop.f32.mrb[87].mxu1  ;;  %v1354_v47 = vmul.f32 %v6653_v27, %v6653_v27 }
 0x1b6   : > { %9890 = vst [vmem:[#allocation129_spill] sm:$0xff] %v7058_v6  ;;  %v1353_v0 = vmul.f32 %v7058_v6, %v7058_v6  ;;  %v1355_v24 = vmul.f32 %v6657_v18, %v6657_v18  ;;  %v9896_v18 = vld [vmem:[#allocation62_spill] sm:$0xff] }
 0x1b7   : > { %v1610_v11 = vadd.f32 %v1609_v40, %v1345_v45  ;;  %v1618_v31 = vadd.f32 %v6620_v5, %v1352_v54  ;;  %5257 = vmatmul.mubr.msk.bf16.gmra.mrb[192].mxu1 %vm413_vm2, %v6336_v48 }
 0x1b8   : > { %1191 = vmatprep.mubr.bf16.mxu1 %v9803_v12 }
 0x1b9   : > { %v1619_v25 = vadd.f32 %v1618_v31, %v1353_v0  ;;  %v1611_v16 = vadd.f32 %v1610_v11, %v1346_v61  ;;  %v9894_v0 = vld [vmem:[#allocation59_spill] sm:$0xff] }
 0x1ba   : > { %v7074_v10 = vpop.f32.mrb[88].mxu1 }
 0x1bb   : > { %9891 = vst [vmem:[#allocation130_spill] sm:$0xff] %v7074_v10  ;;  %v7076_v45 = vadd.f32 %v1611_v16, %v1347_v50  ;;  %v1620_v5 = vadd.f32 %v1619_v25, %v1354_v47  ;;  %v1360_v40 = vmul.f32 %v7074_v10, %v7074_v10  ;;  %v7080_v54 = vpop.f32.mrb[89].mxu1  ;;  %v1362_v47 = vmul.f32 %v6677_v43, %v6677_v43  ;;  %v9899_v43 = vld [vmem:[#allocation75_spill] sm:$0xff] }
 0x1bc   : > { %9892 = vst [vmem:[#allocation131_spill] sm:$0xff] %v7080_v54  ;;  %v1361_v48 = vmul.f32 %v7080_v54, %v7080_v54  ;;  %v7084_v27 = vpop.f32.mrb[90].mxu1  ;;  %v1371_v28 = vmul.f32 %v9899_v43, %v9899_v43  ;;  %v9905_v43 = vld [vmem:[#allocation72_spill] sm:$0xff]  ;;  %v9953_v54 = vld [vmem:[#allocation119_spill] sm:$0xff] }
 0x1bd   : > { %9893 = vst [vmem:[#allocation132_spill] sm:$0xff] %v7084_v27  ;;  %v1627_v61 = vadd.f32 %v9894_v0, %v1360_v40  ;;  %v7087_v11 = vadd.f32 %v1620_v5, %v1355_v24  ;;  %v1368_v31 = vmul.f32 %v7084_v27, %v7084_v27  ;;  %v7091_v50 = vpop.f32.mrb[91].mxu1  ;;  %v9897_v40 = vld [vmem:[#allocation5_spill] sm:$0xff] }
 0x1be   : > { %9895 = vst [vmem:[#allocation59_spill] sm:$0xff] %v7091_v50  ;;  %v1369_v25 = vmul.f32 %v7091_v50, %v7091_v50  ;;  %v9898_v24 = vld [vmem:[#allocation73_spill] sm:$0xff] }
 0x1bf   : > { %v1628_v16 = vadd.f32 %v1627_v61, %v1361_v48  ;;  %v1636_v52 = vadd.f32 %v9896_v18, %v1368_v31  ;;  %5258 = vmatmul.mubr.msk.bf16.gmra.mrb[196].mxu1 %vm413_vm2, %v9897_v40  ;;  %v1370_v5 = vmul.f32 %v9898_v24, %v9898_v24 }
 0x1c0   : > { %1201 = vmatprep.mubr.bf16.mxu1 %v9803_v12 }
 0x1c1   : > { %v1637_v0 = vadd.f32 %v1636_v52, %v1369_v25  ;;  %v1629_v55 = vadd.f32 %v1628_v16, %v1362_v47  ;;  %v9903_v52 = vld [vmem:[#allocation69_spill] sm:$0xff] }
 0x1c2   : > { %v7107_v59 = vpop.f32.mrb[92].mxu1 }
 0x1c3   : > { %9900 = vst [vmem:[#allocation62_spill] sm:$0xff] %v7107_v59  ;;  %v7109_v48 = vadd.f32 %v1629_v55, %v1363_v8  ;;  %v1638_v18 = vadd.f32 %v1637_v0, %v1370_v5  ;;  %v1376_v61 = vmul.f32 %v7107_v59, %v7107_v59  ;;  %v7113_v31 = vpop.f32.mrb[93].mxu1  ;;  %v1378_v8 = vmul.f32 %v6708_v20, %v6708_v20  ;;  %v9908_v20 = vld [vmem:[#allocation85_spill] sm:$0xff] }
 0x1c4   : > { %9901 = vst [vmem:[#allocation5_spill] sm:$0xff] %v7113_v31  ;;  %v1377_v40 = vmul.f32 %v7113_v31, %v7113_v31  ;;  %v7117_v24 = vpop.f32.mrb[94].mxu1  ;;  %v1379_v59 = vmul.f32 %v6713_v19, %v6713_v19  ;;  %v1387_v31 = vmul.f32 %v9908_v20, %v9908_v20  ;;  %v9915_v19 = vld [vmem:[#allocation7_spill] sm:$0xff] }
 0x1c5   : > { %9902 = vst [vmem:[#allocation133_spill] sm:$0xff] %v7117_v24  ;;  %v1645_v47 = vadd.f32 %v9903_v52, %v1376_v61  ;;  %v7120_v25 = vadd.f32 %v1638_v18, %v1371_v28  ;;  %v1384_v16 = vmul.f32 %v7117_v24, %v7117_v24  ;;  %v7124_v55 = vpop.f32.mrb[95].mxu1  ;;  %v9906_v61 = vld [vmem:[#allocation6_spill] sm:$0xff]  ;;  %v9907_v28 = vld [vmem:[#allocation83_spill] sm:$0xff] }
 0x1c6   : > { %9904 = vst [vmem:[#allocation69_spill] sm:$0xff] %v7124_v55  ;;  %v1385_v5 = vmul.f32 %v7124_v55, %v7124_v55  ;;  %v1386_v18 = vmul.f32 %v9907_v28, %v9907_v28 }
 0x1c7   : > { %v1646_v0 = vadd.f32 %v1645_v47, %v1377_v40  ;;  %v1654_v14 = vadd.f32 %v9905_v43, %v1384_v16  ;;  %5259 = vmatmul.mubr.msk.bf16.gmra.mrb[200].mxu1 %vm413_vm2, %v9906_v61 }
 0x1c8   : > { %1211 = vmatprep.mubr.bf16.mxu1 %v9803_v12 }
 0x1c9   : > { %v1655_v52 = vadd.f32 %v1654_v14, %v1385_v5  ;;  %v1647_v24 = vadd.f32 %v1646_v0, %v1378_v8  ;;  %v9912_v14 = vld [vmem:[#allocation79_spill] sm:$0xff] }
 0x1ca   : > { %v7140_v55 = vpop.f32.mrb[96].mxu1 }
 0x1cb   : > { %9909 = vst [vmem:[#allocation72_spill] sm:$0xff] %v7140_v55  ;;  %v7142_v40 = vadd.f32 %v1647_v24, %v1379_v59  ;;  %v1656_v43 = vadd.f32 %v1655_v52, %v1386_v18  ;;  %v1392_v47 = vmul.f32 %v7140_v55, %v7140_v55  ;;  %v7146_v16 = vpop.f32.mrb[97].mxu1  ;;  %v9914_v52 = vld [vmem:[#allocation81_spill] sm:$0xff]  ;;  %v9921_v55 = vld [vmem:[#allocation8_spill] sm:$0xff] }
 0x1cc   : > { %9910 = vst [vmem:[#allocation6_spill] sm:$0xff] %v7146_v16  ;;  %v1393_v61 = vmul.f32 %v7146_v16, %v7146_v16  ;;  %v7150_v28 = vpop.f32.mrb[98].mxu1  ;;  %v9933_v16 = vld [vmem:[#allocation10_spill] sm:$0xff] }
 0x1cd   : > { %9911 = vst [vmem:[#allocation134_spill] sm:$0xff] %v7150_v28  ;;  %v1663_v8 = vadd.f32 %v9912_v14, %v1392_v47  ;;  %v7153_v5 = vadd.f32 %v1656_v43, %v1387_v31  ;;  %v1400_v0 = vmul.f32 %v7150_v28, %v7150_v28  ;;  %v7157_v59 = vpop.f32.mrb[99].mxu1 }
 0x1ce   : > { %9913 = vst [vmem:[#allocation79_spill] sm:$0xff] %v7157_v59  ;;  %v1401_v24 = vmul.f32 %v7157_v59, %v7157_v59  ;;  %v9927_v59 = vld [vmem:[#allocation9_spill] sm:$0xff] }
 0x1cf   : > { %v7161_v18 = vadd.f32 %v1663_v8, %v1393_v61  ;;  %v1672_v20 = vadd.f32 %v9914_v52, %v1400_v0  ;;  %5260 = vmatmul.mubr.msk.bf16.gmra.mrb[204].mxu1 %vm413_vm2, %v9915_v19 }
 0x1d0   : > { %1221 = vmatprep.mubr.bf16.mxu1 %v9803_v12 }
 0x1d1   : > { %v7167_v47 = vadd.f32 %v1672_v20, %v1401_v24 }
 0x1d2   : > { %v7169_v31 = vpop.f32.mrb[100].mxu1 }
 0x1d3   : > { %9916 = vst [vmem:[#allocation81_spill] sm:$0xff] %v7169_v31  ;;  %v1408_v43 = vmul.f32 %v7169_v31, %v7169_v31  ;;  %v7173_v14 = vpop.f32.mrb[101].mxu1  ;;  %v9920_v31 = vld [vmem:[#allocation89_spill] sm:$0xff] }
 0x1d4   : > { %9917 = vst [vmem:[#allocation7_spill] sm:$0xff] %v7173_v14  ;;  %v1409_v61 = vmul.f32 %v7173_v14, %v7173_v14  ;;  %v7177_v8 = vpop.f32.mrb[102].mxu1 }
 0x1d5   : > { %9918 = vst [vmem:[#allocation135_spill] sm:$0xff] %v7177_v8  ;;  %v1681_v0 = vadd.f32 %v6733_v51, %v1408_v43  ;;  %v1416_v19 = vmul.f32 %v7177_v8, %v7177_v8  ;;  %v7182_v52 = vpop.f32.mrb[103].mxu1 }
 0x1d6   : > { %9919 = vst [vmem:[#allocation136_spill] sm:$0xff] %v7182_v52  ;;  %v1417_v20 = vmul.f32 %v7182_v52, %v7182_v52 }
 0x1d7   : > { %v7186_v24 = vadd.f32 %v1681_v0, %v1409_v61  ;;  %v1690_v28 = vadd.f32 %v9920_v31, %v1416_v19  ;;  %5261 = vmatmul.mubr.msk.bf16.gmra.mrb[208].mxu1 %vm413_vm2, %v9921_v55 }
 0x1d8   : > { %1231 = vmatprep.mubr.bf16.mxu1 %v9803_v12 }
 0x1d9   : > { %v7192_v14 = vadd.f32 %v1690_v28, %v1417_v20 }
 0x1da   : > { %v7194_v51 = vpop.f32.mrb[104].mxu1 }
 0x1db   : > { %9922 = vst [vmem:[#allocation89_spill] sm:$0xff] %v7194_v51  ;;  %v1424_v43 = vmul.f32 %v7194_v51, %v7194_v51  ;;  %v7198_v8 = vpop.f32.mrb[105].mxu1  ;;  %v9926_v51 = vld [vmem:[#allocation94_spill] sm:$0xff] }
 0x1dc   : > { %9923 = vst [vmem:[#allocation8_spill] sm:$0xff] %v7198_v8  ;;  %v1425_v61 = vmul.f32 %v7198_v8, %v7198_v8  ;;  %v7202_v0 = vpop.f32.mrb[106].mxu1 }
 0x1dd   : > { %9924 = vst [vmem:[#allocation137_spill] sm:$0xff] %v7202_v0  ;;  %v1699_v31 = vadd.f32 %v6756_v53, %v1424_v43  ;;  %v1432_v55 = vmul.f32 %v7202_v0, %v7202_v0  ;;  %v7207_v19 = vpop.f32.mrb[107].mxu1 }
 0x1de   : > { %9925 = vst [vmem:[#allocation138_spill] sm:$0xff] %v7207_v19  ;;  %v1433_v28 = vmul.f32 %v7207_v19, %v7207_v19 }
 0x1df   : > { %v7211_v20 = vadd.f32 %v1699_v31, %v1425_v61  ;;  %v1708_v52 = vadd.f32 %v9926_v51, %v1432_v55  ;;  %5262 = vmatmul.mubr.msk.bf16.gmra.mrb[212].mxu1 %vm413_vm2, %v9927_v59 }
 0x1e0   : > { %1241 = vmatprep.mubr.bf16.mxu1 %v9803_v12 }
 0x1e1   : > { %v7217_v8 = vadd.f32 %v1708_v52, %v1433_v28 }
 0x1e2   : > { %v7219_v53 = vpop.f32.mrb[108].mxu1 }
 0x1e3   : > { %9928 = vst [vmem:[#allocation94_spill] sm:$0xff] %v7219_v53  ;;  %v1440_v43 = vmul.f32 %v7219_v53, %v7219_v53  ;;  %v7223_v0 = vpop.f32.mrb[109].mxu1  ;;  %v9932_v53 = vld [vmem:[#allocation99_spill] sm:$0xff] }
 0x1e4   : > { %9929 = vst [vmem:[#allocation9_spill] sm:$0xff] %v7223_v0  ;;  %v1441_v61 = vmul.f32 %v7223_v0, %v7223_v0  ;;  %v7227_v31 = vpop.f32.mrb[110].mxu1 }
 0x1e5   : > { %9930 = vst [vmem:[#allocation139_spill] sm:$0xff] %v7227_v31  ;;  %v1717_v51 = vadd.f32 %v6779_v32, %v1440_v43  ;;  %v1448_v59 = vmul.f32 %v7227_v31, %v7227_v31  ;;  %v7232_v55 = vpop.f32.mrb[111].mxu1 }
 0x1e6   : > { %9931 = vst [vmem:[#allocation140_spill] sm:$0xff] %v7232_v55  ;;  %v1449_v52 = vmul.f32 %v7232_v55, %v7232_v55  ;;  %v9939_v55 = vld [vmem:[#allocation11_spill] sm:$0xff] }
 0x1e7   : > { %v7236_v28 = vadd.f32 %v1717_v51, %v1441_v61  ;;  %v1726_v19 = vadd.f32 %v9932_v53, %v1448_v59  ;;  %5263 = vmatmul.mubr.msk.bf16.gmra.mrb[216].mxu1 %vm413_vm2, %v9933_v16 }
 0x1e8   : > { %1251 = vmatprep.mubr.bf16.mxu1 %v9803_v12 }
 0x1e9   : > { %v7242_v0 = vadd.f32 %v1726_v19, %v1449_v52  ;;  %v9938_v52 = vld [vmem:[#allocation104_spill] sm:$0xff] }
 0x1ea   : > { %v7244_v32 = vpop.f32.mrb[112].mxu1 }
 0x1eb   : > { %9934 = vst [vmem:[#allocation99_spill] sm:$0xff] %v7244_v32  ;;  %v1456_v43 = vmul.f32 %v7244_v32, %v7244_v32  ;;  %v7248_v31 = vpop.f32.mrb[113].mxu1 }
 0x1ec   : > { %9935 = vst [vmem:[#allocation10_spill] sm:$0xff] %v7248_v31  ;;  %v1457_v61 = vmul.f32 %v7248_v31, %v7248_v31  ;;  %v7252_v51 = vpop.f32.mrb[114].mxu1 }
 0x1ed   : > { %9936 = vst [vmem:[#allocation141_spill] sm:$0xff] %v7252_v51  ;;  %v1735_v53 = vadd.f32 %v6802_v60, %v1456_v43  ;;  %v1464_v16 = vmul.f32 %v7252_v51, %v7252_v51  ;;  %v7257_v12 = vpop.f32.mrb[115].mxu1 }
 0x1ee   : > { %9937 = vst [vmem:[#allocation142_spill] sm:$0xff] %v7257_v12  ;;  %v1465_v19 = vmul.f32 %v7257_v12, %v7257_v12 }
 0x1ef   : > { %v7261_v59 = vadd.f32 %v1735_v53, %v1457_v61  ;;  %v1744_v32 = vadd.f32 %v9938_v52, %v1464_v16  ;;  %5264 = vmatmul.mubr.msk.bf16.gmra.mrb[220].mxu1 %vm413_vm2, %v9939_v55 }
 0x1f1   : > { %v7266_v31 = vadd.f32 %v1744_v32, %v1465_v19  ;;  %v9944_v19 = vld [vmem:[#allocation109_spill] sm:$0xff] }
 0x1f2   : > { %v7268_v27 = vpop.f32.mrb[116].mxu1 }
 0x1f3   : > { %9940 = vst [vmem:[#allocation104_spill] sm:$0xff] %v7268_v27  ;;  %v1472_v60 = vmul.f32 %v7268_v27, %v7268_v27  ;;  %v7272_v43 = vpop.f32.mrb[117].mxu1 }
 0x1f4   : > { %9941 = vst [vmem:[#allocation11_spill] sm:$0xff] %v7272_v43  ;;  %v1473_v51 = vmul.f32 %v7272_v43, %v7272_v43  ;;  %v7276_v12 = vpop.f32.mrb[118].mxu1 }
 0x1f5   : > { %9942 = vst [vmem:[#allocation143_spill] sm:$0xff] %v7276_v12  ;;  %v1753_v61 = vadd.f32 %v6825_v63, %v1472_v60  ;;  %v1480_v53 = vmul.f32 %v7276_v12, %v7276_v12  ;;  %v7281_v55 = vpop.f32.mrb[119].mxu1 }
 0x1f6   : > { %9943 = vst [vmem:[#allocation144_spill] sm:$0xff] %v7281_v55  ;;  %v1481_v32 = vmul.f32 %v7281_v55, %v7281_v55 }
 0x1f7   : > { %v7285_v16 = vadd.f32 %v1753_v61, %v1473_v51  ;;  %v1762_v52 = vadd.f32 %v9944_v19, %v1480_v53  ;;  %v9949_v19 = vld [vmem:[#allocation114_spill] sm:$0xff] }
 0x1f9   : > { %v7288_v27 = vadd.f32 %v1762_v52, %v1481_v32 }
 0x1fa   : > { %v7290_v10 = vpop.f32.mrb[120].mxu1 }
 0x1fb   : > { %9945 = vst [vmem:[#allocation109_spill] sm:$0xff] %v7290_v10  ;;  %v1488_v43 = vmul.f32 %v7290_v10, %v7290_v10  ;;  %v7294_v63 = vpop.f32.mrb[121].mxu1 }
 0x1fc   : > { %9946 = vst [vmem:[#allocation145_spill] sm:$0xff] %v7294_v63  ;;  %v1489_v60 = vmul.f32 %v7294_v63, %v7294_v63  ;;  %v7298_v12 = vpop.f32.mrb[122].mxu1 }
 0x1fd   : > { %9947 = vst [vmem:[#allocation146_spill] sm:$0xff] %v7298_v12  ;;  %v1771_v55 = vadd.f32 %v6848_v3, %v1488_v43  ;;  %v1496_v51 = vmul.f32 %v7298_v12, %v7298_v12  ;;  %v7303_v61 = vpop.f32.mrb[123].mxu1 }
 0x1fe   : > { %9948 = vst [vmem:[#allocation147_spill] sm:$0xff] %v7303_v61  ;;  %v1497_v53 = vmul.f32 %v7303_v61, %v7303_v61 }
 0x1ff   : > { %v7307_v32 = vadd.f32 %v1771_v55, %v1489_v60  ;;  %v1780_v52 = vadd.f32 %v9949_v19, %v1496_v51  ;;  %v9955_v19 = vld [vmem:[#allocation120_spill] sm:$0xff] }
 0x201   : > { %v7310_v10 = vadd.f32 %v1780_v52, %v1497_v53 }
 0x202   : > { %v7312_v50 = vpop.f32.mrb[124].mxu1 }
 0x203   : > { %9950 = vst [vmem:[#allocation114_spill] sm:$0xff] %v7312_v50  ;;  %v1504_v63 = vmul.f32 %v7312_v50, %v7312_v50  ;;  %v7316_v3 = vpop.f32.mrb[125].mxu1 }
 0x204   : > { %9951 = vst [vmem:[#allocation148_spill] sm:$0xff] %v7316_v3  ;;  %v1505_v43 = vmul.f32 %v7316_v3, %v7316_v3  ;;  %v7320_v12 = vpop.f32.mrb[126].mxu1 }
 0x205   : > { %9952 = vst [vmem:[#allocation149_spill] sm:$0xff] %v7320_v12  ;;  %v1789_v61 = vadd.f32 %v9953_v54, %v1504_v63  ;;  %v1512_v55 = vmul.f32 %v7320_v12, %v7320_v12  ;;  %v7325_v60 = vpop.f32.mrb[127].mxu1 }
 0x206   : > { %9954 = vst [vmem:[#allocation119_spill] sm:$0xff] %v7325_v60  ;;  %v1513_v51 = vmul.f32 %v7325_v60, %v7325_v60 }
 0x207   : > { %v7329_v53 = vadd.f32 %v1789_v61, %v1505_v43  ;;  %v1798_v52 = vadd.f32 %v9955_v19, %v1512_v55 }
 0x209   : > { %v7332_v50 = vadd.f32 %v1798_v52, %v1513_v51 }
 0x20a   : > { %v7334_v9 = vpop.f32.mrb[128].mxu1 }
 0x20b   : > { %9956 = vst [vmem:[#allocation120_spill] sm:$0xff] %v7334_v9  ;;  %v1394_v3 = vmul.f32 %v7334_v9, %v7334_v9  ;;  %v7338_v54 = vpop.f32.mrb[129].mxu1 }
 0x20c   : > { %9957 = vst [vmem:[#allocation150_spill] sm:$0xff] %v7338_v54  ;;  %v1395_v63 = vmul.f32 %v7338_v54, %v7338_v54  ;;  %v7342_v12 = vpop.f32.mrb[130].mxu1 }
 0x20d   : > { %9958 = vst [vmem:[#allocation151_spill] sm:$0xff] %v7342_v12  ;;  %v1665_v60 = vadd.f32 %v7161_v18, %v1394_v3  ;;  %v1402_v61 = vmul.f32 %v7342_v12, %v7342_v12  ;;  %v7347_v43 = vpop.f32.mrb[131].mxu1 }
 0x20e   : > { %9959 = vst [vmem:[#allocation152_spill] sm:$0xff] %v7347_v43  ;;  %v1403_v55 = vmul.f32 %v7347_v43, %v7347_v43 }
 0x20f   : > { %v7351_v51 = vadd.f32 %v1665_v60, %v1395_v63  ;;  %v1674_v19 = vadd.f32 %v7167_v47, %v1402_v61 }
 0x211   : > { %v7354_v52 = vadd.f32 %v1674_v19, %v1403_v55 }
 0x212   : > { %v7356_v9 = vpop.f32.mrb[132].mxu1 }
 0x213   : > { %9960 = vst [vmem:[#allocation153_spill] sm:$0xff] %v7356_v9  ;;  %v1410_v54 = vmul.f32 %v7356_v9, %v7356_v9  ;;  %v7360_v18 = vpop.f32.mrb[133].mxu1 }
 0x214   : > { %9961 = vst [vmem:[#allocation154_spill] sm:$0xff] %v7360_v18  ;;  %v1411_v3 = vmul.f32 %v7360_v18, %v7360_v18  ;;  %v7364_v12 = vpop.f32.mrb[134].mxu1 }
 0x215   : > { %9962 = vst [vmem:[#allocation155_spill] sm:$0xff] %v7364_v12  ;;  %v1683_v43 = vadd.f32 %v7186_v24, %v1410_v54  ;;  %v1418_v60 = vmul.f32 %v7364_v12, %v7364_v12  ;;  %v7369_v47 = vpop.f32.mrb[135].mxu1 }
 0x216   : > { %9963 = vst [vmem:[#allocation156_spill] sm:$0xff] %v7369_v47  ;;  %v1419_v63 = vmul.f32 %v7369_v47, %v7369_v47 }
 0x217   : > { %v7373_v61 = vadd.f32 %v1683_v43, %v1411_v3  ;;  %v1692_v55 = vadd.f32 %v7192_v14, %v1418_v60 }
 0x219   : > { %v7376_v19 = vadd.f32 %v1692_v55, %v1419_v63 }
 0x21a   : > { %v7378_v9 = vpop.f32.mrb[136].mxu1 }
 0x21b   : > { %9964 = vst [vmem:[#allocation157_spill] sm:$0xff] %v7378_v9  ;;  %v1426_v18 = vmul.f32 %v7378_v9, %v7378_v9  ;;  %v7382_v24 = vpop.f32.mrb[137].mxu1 }
 0x21c   : > { %9965 = vst [vmem:[#allocation158_spill] sm:$0xff] %v7382_v24  ;;  %v1427_v54 = vmul.f32 %v7382_v24, %v7382_v24  ;;  %v7386_v12 = vpop.f32.mrb[138].mxu1 }
 0x21d   : > { %9966 = vst [vmem:[#allocation159_spill] sm:$0xff] %v7386_v12  ;;  %v1701_v47 = vadd.f32 %v7211_v20, %v1426_v18  ;;  %v1434_v43 = vmul.f32 %v7386_v12, %v7386_v12  ;;  %v7391_v14 = vpop.f32.mrb[139].mxu1 }
 0x21e   : > { %9967 = vst [vmem:[#allocation160_spill] sm:$0xff] %v7391_v14  ;;  %v1435_v3 = vmul.f32 %v7391_v14, %v7391_v14 }
 0x21f   : > { %v7395_v60 = vadd.f32 %v1701_v47, %v1427_v54  ;;  %v1710_v63 = vadd.f32 %v7217_v8, %v1434_v43 }
 0x221   : > { %v7398_v55 = vadd.f32 %v1710_v63, %v1435_v3 }
 0x222   : > { %v7400_v9 = vpop.f32.mrb[140].mxu1 }
 0x223   : > { %9968 = vst [vmem:[#allocation161_spill] sm:$0xff] %v7400_v9  ;;  %v1442_v24 = vmul.f32 %v7400_v9, %v7400_v9  ;;  %v7404_v20 = vpop.f32.mrb[141].mxu1 }
 0x224   : > { %9969 = vst [vmem:[#allocation162_spill] sm:$0xff] %v7404_v20  ;;  %v1443_v18 = vmul.f32 %v7404_v20, %v7404_v20  ;;  %v7408_v12 = vpop.f32.mrb[142].mxu1 }
 0x225   : > { %9970 = vst [vmem:[#allocation163_spill] sm:$0xff] %v7408_v12  ;;  %v1719_v14 = vadd.f32 %v7236_v28, %v1442_v24  ;;  %v1450_v47 = vmul.f32 %v7408_v12, %v7408_v12  ;;  %v7413_v8 = vpop.f32.mrb[143].mxu1 }
 0x226   : > { %9971 = vst [vmem:[#allocation164_spill] sm:$0xff] %v7413_v8  ;;  %v1451_v54 = vmul.f32 %v7413_v8, %v7413_v8 }
 0x227   : > { %v7417_v43 = vadd.f32 %v1719_v14, %v1443_v18  ;;  %v1728_v3 = vadd.f32 %v7242_v0, %v1450_v47 }
 0x229   : > { %v7420_v63 = vadd.f32 %v1728_v3, %v1451_v54 }
 0x22a   : > { %v7422_v9 = vpop.f32.mrb[144].mxu1 }
 0x22b   : > { %9972 = vst [vmem:[#allocation165_spill] sm:$0xff] %v7422_v9  ;;  %v1458_v20 = vmul.f32 %v7422_v9, %v7422_v9  ;;  %v7426_v28 = vpop.f32.mrb[145].mxu1 }
 0x22c   : > { %9973 = vst [vmem:[#allocation166_spill] sm:$0xff] %v7426_v28  ;;  %v1459_v24 = vmul.f32 %v7426_v28, %v7426_v28  ;;  %v7430_v12 = vpop.f32.mrb[146].mxu1 }
 0x22d   : > { %9974 = vst [vmem:[#allocation167_spill] sm:$0xff] %v7430_v12  ;;  %v1737_v8 = vadd.f32 %v7261_v59, %v1458_v20  ;;  %v1466_v14 = vmul.f32 %v7430_v12, %v7430_v12  ;;  %v7435_v0 = vpop.f32.mrb[147].mxu1 }
 0x22e   : > { %9975 = vst [vmem:[#allocation168_spill] sm:$0xff] %v7435_v0  ;;  %v1467_v18 = vmul.f32 %v7435_v0, %v7435_v0 }
 0x22f   : > { %v7439_v47 = vadd.f32 %v1737_v8, %v1459_v24  ;;  %v1746_v54 = vadd.f32 %v7266_v31, %v1466_v14 }
 0x231   : > { %v7442_v3 = vadd.f32 %v1746_v54, %v1467_v18 }
 0x232   : > { %v7444_v9 = vpop.f32.mrb[148].mxu1 }
 0x233   : > { %9976 = vst [vmem:[#allocation169_spill] sm:$0xff] %v7444_v9  ;;  %v1474_v28 = vmul.f32 %v7444_v9, %v7444_v9  ;;  %v7448_v59 = vpop.f32.mrb[149].mxu1  ;;  %v5807_v9 = vld [vmem:[#allocation2 + $0x4] ss:$8 sps:$4 sm:$0xff]  }
 0x234   : > { %9977 = vst [vmem:[#allocation170_spill] sm:$0xff] %v7448_v59  ;;  %v1475_v20 = vmul.f32 %v7448_v59, %v7448_v59  ;;  %v7452_v12 = vpop.f32.mrb[150].mxu1  ;;  %3886 = vmatprep.subr.bf16.mxu0 %v5807_v9 }
 0x235   : > { %9978 = vst [vmem:[#allocation171_spill] sm:$0xff] %v7452_v12  ;;  %v1755_v0 = vadd.f32 %v7285_v16, %v1474_v28  ;;  %v1482_v8 = vmul.f32 %v7452_v12, %v7452_v12  ;;  %v7457_v31 = vpop.f32.mrb[151].mxu1  ;;  %3887 = vmatpush1.bf16.msra.mxu0 %v5805_v4  ;;  %v5813_v4 = vld [vmem:[#allocation2 + $0x24] ss:$8 sps:$4 sm:$0xff]  }
 0x236   : > { %9979 = vst [vmem:[#allocation172_spill] sm:$0xff] %v7457_v31  ;;  %v1483_v24 = vmul.f32 %v7457_v31, %v7457_v31 }
 0x237   : > { %v7461_v14 = vadd.f32 %v1755_v0, %v1475_v20  ;;  %v1764_v18 = vadd.f32 %v7288_v27, %v1482_v8  ;;  %v5810_v8 = vld [vmem:[#allocation2 + $0x14] ss:$8 sps:$4 sm:$0xff]  }
 0x238   : > { %3888 = vmatprep.subr.bf16.mxu0 %v5810_v8 }
 0x239   : > { %v7464_v54 = vadd.f32 %v1764_v18, %v1483_v24  ;;  %v5808_v18 = vld [vmem:[#allocation2 + $0x10] ss:$8 sps:$4 sm:$0xff]  }
 0x23a   : > { %v7466_v59 = vpop.f32.mrb[152].mxu1  ;;  %3889 = vmatpush1.bf16.msra.mxu0 %v5808_v18 }
 0x23b   : > { %9980 = vst [vmem:[#allocation173_spill] sm:$0xff] %v7466_v59  ;;  %v1490_v16 = vmul.f32 %v7466_v59, %v7466_v59  ;;  %v7470_v28 = vpop.f32.mrb[153].mxu1  ;;  %3890 = vmatprep.subr.bf16.mxu0 %v5813_v4 }
 0x23c   : > { %9981 = vst [vmem:[#allocation174_spill] sm:$0xff] %v7470_v28  ;;  %v1491_v12 = vmul.f32 %v7470_v28, %v7470_v28  ;;  %v7474_v31 = vpop.f32.mrb[154].mxu1 }
 0x23d   : > { %9982 = vst [vmem:[#allocation175_spill] sm:$0xff] %v7474_v31  ;;  %v1773_v27 = vadd.f32 %v7307_v32, %v1490_v16  ;;  %v1498_v0 = vmul.f32 %v7474_v31, %v7474_v31  ;;  %v7479_v20 = vpop.f32.mrb[155].mxu1  ;;  %v5811_v16 = vld [vmem:[#allocation2 + $0x20] ss:$8 sps:$4 sm:$0xff]  }
 0x23e   : > { %9983 = vst [vmem:[#allocation176_spill] sm:$0xff] %v7479_v20  ;;  %v1499_v24 = vmul.f32 %v7479_v20, %v7479_v20  ;;  %3891 = vmatpush1.bf16.msra.mxu0 %v5811_v16  ;;  %v5817_v16 = vld [vmem:[#allocation2 + $0x40] ss:$8 sps:$4 sm:$0xff]  }
 0x23f   : > { %v7483_v59 = vadd.f32 %v1773_v27, %v1491_v12  ;;  %v1782_v9 = vadd.f32 %v7310_v10, %v1498_v0 }
 0x241   : > { %v7486_v28 = vadd.f32 %v1782_v9, %v1499_v24  ;;  %v5816_v24 = vld [vmem:[#allocation2 + $0x34] ss:$8 sps:$4 sm:$0xff]   ;;  %v5814_v9 = vld [vmem:[#allocation2 + $0x30] ss:$8 sps:$4 sm:$0xff]  }
 0x242   : > { %v7488_v32 = vpop.f32.mrb[156].mxu1  ;;  %3892 = vmatprep.subr.bf16.mxu0 %v5816_v24 }
 0x243   : > { %9984 = vst [vmem:[#allocation177_spill] sm:$0xff] %v7488_v32  ;;  %v1506_v31 = vmul.f32 %v7488_v32, %v7488_v32  ;;  %v7492_v6 = vpop.f32.mrb[157].mxu1  ;;  %3893 = vmatpush1.bf16.msra.mxu0 %v5814_v9  ;;  %v5825_v9 = vld [vmem:[#allocation2 + $0x64] ss:$8 sps:$4 sm:$0xff]  }
 0x244   : > { %9985 = vst [vmem:[#allocation178_spill] sm:$0xff] %v7492_v6  ;;  %v1507_v12 = vmul.f32 %v7492_v6, %v7492_v6  ;;  %v7496_v27 = vpop.f32.mrb[158].mxu1 }
 0x245   : > { %9986 = vst [vmem:[#allocation179_spill] sm:$0xff] %v7496_v27  ;;  %v1791_v10 = vadd.f32 %v7329_v53, %v1506_v31  ;;  %v1514_v0 = vmul.f32 %v7496_v27, %v7496_v27  ;;  %v7501_v8 = vpop.f32.mrb[159].mxu1  ;;  %v5819_v53 = vld [vmem:[#allocation2 + $0x44] ss:$8 sps:$4 sm:$0xff]  }
 0x246   : > { %9987 = vst [vmem:[#allocation180_spill] sm:$0xff] %v7501_v8  ;;  %v1515_v18 = vmul.f32 %v7501_v8, %v7501_v8  ;;  %3894 = vmatprep.subr.bf16.mxu0 %v5819_v53  ;;  %v5822_v8 = vld [vmem:[#allocation2 + $0x54] ss:$8 sps:$4 sm:$0xff]  }
 0x247   : > { %v7505_v32 = vadd.f32 %v1791_v10, %v1507_v12  ;;  %v1800_v4 = vadd.f32 %v7332_v50, %v1514_v0  ;;  %3895 = vmatpush1.bf16.msra.mxu0 %v5817_v16  ;;  %v5820_v50 = vld [vmem:[#allocation2 + $0x50] ss:$8 sps:$4 sm:$0xff]  }
 0x248   : > { %3896 = vmatprep.subr.bf16.mxu0 %v5822_v8 }
 0x249   : > { %v7508_v6 = vadd.f32 %v1800_v4, %v1515_v18 }
 0x24a   : > { %v7510_v31 = vpop.f32.mrb[160].mxu1 }
 0x24b   : > { %9988 = vst [vmem:[#allocation181_spill] sm:$0xff] %v7510_v31  ;;  %v1268_v27 = vmul.f32 %v7510_v31, %v7510_v31  ;;  %v7514_v20 = vpop.f32.mrb[161].mxu1  ;;  %3897 = vmatpush1.bf16.msra.mxu0 %v5820_v50 }
 0x24c   : > { %9989 = vst [vmem:[#allocation182_spill] sm:$0xff] %v7514_v20  ;;  %v1269_v12 = vmul.f32 %v7514_v20, %v7514_v20  ;;  %v7518_v10 = vpop.f32.mrb[162].mxu1  ;;  %v5823_v20 = vld [vmem:[#allocation2 + $0x60] ss:$8 sps:$4 sm:$0xff]   ;;  %3898 = vmatprep.subr.bf16.mxu0 %v5825_v9 }
 0x24d   : > { %9990 = vst [vmem:[#allocation183_spill] sm:$0xff] %v7518_v10  ;;  %v1276_v0 = vmul.f32 %v7518_v10, %v7518_v10  ;;  %v7522_v24 = vpop.f32.mrb[163].mxu1  ;;  %v1523_v18 = vadd.f32 %v6911_v23, %v1268_v27 }
 0x24e   : > { %9991 = vst [vmem:[#allocation184_spill] sm:$0xff] %v7522_v24  ;;  %v1277_v4 = vmul.f32 %v7522_v24, %v7522_v24  ;;  %v10110_v24 = vld [vmem:[#allocation87_spill] sm:$0xff] }
 0x24f   : > { %v1524_v53 = vadd.f32 %v1523_v18, %v1269_v12  ;;  %v1532_v31 = vadd.f32 %v6922_v29, %v1276_v0  ;;  %3899 = vmatpush1.bf16.msra.mxu0 %v5823_v20  ;;  %v5826_v29 = vld [vmem:[#allocation2 + $0x70] ss:$8 sps:$4 sm:$0xff]   ;;  %v5831_v0 = vld [vmem:[#allocation2 + $0x84] ss:$8 sps:$4 sm:$0xff]  }
 0x250   : > { %3900 = vmatprep.subr.bf16.mxu0 %v5828_v57 }
 0x251   : > { %1525 = vadd.xlane.f32.xlu0 %v1524_v53  ;;  %v1533_v16 = vadd.f32 %v1532_v31, %v1277_v4  ;;  %v5829_v53 = vld [vmem:[#allocation2 + $0x80] ss:$8 sps:$4 sm:$0xff]  }
 0x252   : > { %v7528_v1 = vpop.f32.mrb[164].mxu1 }
 0x253   : > { %9992 = vst [vmem:[#allocation185_spill] sm:$0xff] %v7528_v1  ;;  %v1284_v10 = vmul.f32 %v7528_v1, %v7528_v1  ;;  %v7532_v23 = vpop.f32.mrb[165].mxu1  ;;  %3901 = vmatpush1.bf16.msra.mxu0 %v5826_v29  ;;  %v5834_v29 = vld [vmem:[#allocation2 + $0x94] ss:$8 sps:$4 sm:$0xff]  }
 0x254   : > { %9993 = vst [vmem:[#allocation186_spill] sm:$0xff] %v7532_v23  ;;  %v1285_v27 = vmul.f32 %v7532_v23, %v7532_v23  ;;  %v7536_v8 = vpop.f32.mrb[166].mxu1  ;;  %3902 = vmatprep.subr.bf16.mxu0 %v5831_v0 }
 0x255   : > { %9994 = vst [vmem:[#allocation187_spill] sm:$0xff] %v7536_v8  ;;  %v1292_v12 = vmul.f32 %v7536_v8, %v7536_v8  ;;  %1534 = vadd.xlane.f32.xlu0 %v1533_v16  ;;  %v7540_v31 = vpop.f32.mrb[167].mxu1  ;;  %v1541_v50 = vadd.f32 %v6944_v33, %v1284_v10 }
 0x256   : > { %9995 = vst [vmem:[#allocation188_spill] sm:$0xff] %v7540_v31  ;;  %v1293_v18 = vmul.f32 %v7540_v31, %v7540_v31  ;;  %v10109_v31 = vld [vmem:[#allocation88_spill] sm:$0xff] }
 0x257   : > { %v1542_v9 = vadd.f32 %v1541_v50, %v1285_v27  ;;  %v1550_v4 = vadd.f32 %v6955_v13, %v1292_v12  ;;  %3903 = vmatpush1.bf16.msra.mxu0 %v5829_v53  ;;  %v5832_v50 = vld [vmem:[#allocation2 + $0x90] ss:$8 sps:$4 sm:$0xff]  }
 0x258   : > { %3904 = vmatprep.subr.bf16.mxu0 %v5834_v29  ;;  %v5840_v29 = vld [vmem:[#allocation2 + $0xb4] ss:$8 sps:$4 sm:$0xff]  }
 0x259   : > { %1543 = vadd.xlane.f32.xlu1 %v1542_v9  ;;  %v1551_v20 = vadd.f32 %v1550_v4, %v1293_v18  ;;  %v5837_v4 = vld [vmem:[#allocation2 + $0xa4] ss:$8 sps:$4 sm:$0xff]  }
 0x25a   : > { %v7546_v1 = vpop.f32.mrb[168].mxu1 }
 0x25b   : > { %9996 = vst [vmem:[#allocation189_spill] sm:$0xff] %v7546_v1  ;;  %v1300_v16 = vmul.f32 %v7546_v1, %v7546_v1  ;;  %v7550_v8 = vpop.f32.mrb[169].mxu1  ;;  %3905 = vmatpush1.bf16.msra.mxu0 %v5832_v50  ;;  %v5838_v50 = vld [vmem:[#allocation2 + $0xb0] ss:$8 sps:$4 sm:$0xff]  }
 0x25c   : > { %9997 = vst [vmem:[#allocation190_spill] sm:$0xff] %v7550_v8  ;;  %v1301_v33 = vmul.f32 %v7550_v8, %v7550_v8  ;;  %v7554_v57 = vpop.f32.mrb[170].mxu1  ;;  %3906 = vmatprep.subr.bf16.mxu0 %v5837_v4  ;;  %v5843_v4 = vld [vmem:[#allocation2 + $0xc4] ss:$8 sps:$4 sm:$0xff]  }
 0x25d   : > { %9998 = vst [vmem:[#allocation191_spill] sm:$0xff] %v7554_v57  ;;  %v1308_v13 = vmul.f32 %v7554_v57, %v7554_v57  ;;  %1552 = vadd.xlane.f32.xlu1 %v1551_v20  ;;  %v7558_v10 = vpop.f32.mrb[171].mxu1  ;;  %v1559_v27 = vadd.f32 %v6977_v36, %v1300_v16  ;;  %v5835_v20 = vld [vmem:[#allocation2 + $0xa0] ss:$8 sps:$4 sm:$0xff]  }
 0x25e   : > { %9999 = vst [vmem:[#allocation192_spill] sm:$0xff] %v7558_v10  ;;  %v1309_v12 = vmul.f32 %v7558_v10, %v7558_v10  ;;  %v10100_v10 = vld [vmem:[#allocation67_spill] sm:$0xff] }
 0x25f   : > { %v1560_v0 = vadd.f32 %v1559_v27, %v1301_v33  ;;  %v1568_v18 = vadd.f32 %v6988_v35, %v1308_v13  ;;  %3907 = vmatpush1.bf16.msra.mxu0 %v5835_v20 }
 0x260   : > { %3908 = vmatprep.subr.bf16.mxu0 %v5840_v29  ;;  %v5846_v29 = vld [vmem:[#allocation2 + $0xd4] ss:$8 sps:$4 sm:$0xff]  }
 0x261   : > { %1561 = vadd.xlane.f32.xlu0 %v1560_v0  ;;  %v1569_v9 = vadd.f32 %v1568_v18, %v1309_v12 }
 0x262   : > { %v7564_v53 = vpop.f32.mrb[172].mxu1 }
 0x263   : > { %10000 = vst [vmem:[#allocation193_spill] sm:$0xff] %v7564_v53  ;;  %v1316_v57 = vmul.f32 %v7564_v53, %v7564_v53  ;;  %1570 = vadd.xlane.f32.xlu1 %v1569_v9  ;;  %v7568_v36 = vpop.f32.mrb[173].mxu1  ;;  %3909 = vmatpush1.bf16.msra.mxu0 %v5838_v50  ;;  %v5844_v50 = vld [vmem:[#allocation2 + $0xd0] ss:$8 sps:$4 sm:$0xff]  }
 0x264   : > { %10001 = vst [vmem:[#allocation194_spill] sm:$0xff] %v7568_v36  ;;  %v1317_v16 = vmul.f32 %v7568_v36, %v7568_v36  ;;  %v7572_v33 = vpop.f32.mrb[174].mxu1  ;;  %3910 = vmatprep.subr.bf16.mxu0 %v5843_v4  ;;  %v10088_v36 = vld [vmem:[#allocation49_spill] sm:$0xff] }
 0x265   : > { %10002 = vst [vmem:[#allocation195_spill] sm:$0xff] %v7572_v33  ;;  %v1324_v35 = vmul.f32 %v7572_v33, %v7572_v33  ;;  %v7576_v13 = vpop.f32.mrb[175].mxu1  ;;  %v1577_v27 = vadd.f32 %v7010_v39, %v1316_v57  ;;  %v5841_v33 = vld [vmem:[#allocation2 + $0xc0] ss:$8 sps:$4 sm:$0xff]  }
 0x266   : > { %10003 = vst [vmem:[#allocation196_spill] sm:$0xff] %v7576_v13  ;;  %v1325_v12 = vmul.f32 %v7576_v13, %v7576_v13 }
 0x267   : > { %v1578_v0 = vadd.f32 %v1577_v27, %v1317_v16  ;;  %v1586_v18 = vadd.f32 %v7021_v56, %v1324_v35  ;;  %3911 = vmatpush1.bf16.msra.mxu0 %v5841_v33  ;;  %v5849_v33 = vld [vmem:[#allocation2 + $0xe4] ss:$8 sps:$4 sm:$0xff]  }
 0x268   : > { %3912 = vmatprep.subr.bf16.mxu0 %v5846_v29  ;;  %v5852_v29 = vld [vmem:[#allocation2 + $0xf4] ss:$8 sps:$4 sm:$0xff]  }
 0x269   : > { %1579 = vadd.xlane.f32.xlu0 %v1578_v0  ;;  %v1587_v9 = vadd.f32 %v1586_v18, %v1325_v12 }
 0x26a   : > { %v7582_v20 = vpop.f32.mrb[176].mxu1 }
 0x26b   : > { %10004 = vst [vmem:[#allocation197_spill] sm:$0xff] %v7582_v20  ;;  %v1332_v53 = vmul.f32 %v7582_v20, %v7582_v20  ;;  %1588 = vadd.xlane.f32.xlu1 %v1587_v9  ;;  %v7586_v39 = vpop.f32.mrb[177].mxu1  ;;  %3913 = vmatpush1.bf16.msra.mxu0 %v5844_v50  ;;  %v5850_v50 = vld [vmem:[#allocation2 + $0xf0] ss:$8 sps:$4 sm:$0xff]  }
 0x26c   : > { %10005 = vst [vmem:[#allocation198_spill] sm:$0xff] %v7586_v39  ;;  %v1333_v57 = vmul.f32 %v7586_v39, %v7586_v39  ;;  %v7590_v16 = vpop.f32.mrb[178].mxu1  ;;  %3914 = vmatprep.subr.bf16.mxu0 %v5849_v33  ;;  %v5859_v39 = vld [vmem:[#allocation2 + $0x120] ss:$8 sps:$4 sm:$0xff]  }
 0x26d   : > { %10006 = vst [vmem:[#allocation199_spill] sm:$0xff] %v7590_v16  ;;  %v1340_v56 = vmul.f32 %v7590_v16, %v7590_v16  ;;  %v7594_v35 = vpop.f32.mrb[179].mxu1  ;;  %v1595_v27 = vadd.f32 %v7043_v42, %v1332_v53  ;;  %v5847_v16 = vld [vmem:[#allocation2 + $0xe0] ss:$8 sps:$4 sm:$0xff]  }
 0x26e   : > { %10007 = vst [vmem:[#allocation200_spill] sm:$0xff] %v7594_v35  ;;  %v1341_v12 = vmul.f32 %v7594_v35, %v7594_v35 }
 0x26f   : > { %v1596_v0 = vadd.f32 %v1595_v27, %v1333_v57  ;;  %v1604_v18 = vadd.f32 %v7054_v21, %v1340_v56  ;;  %3915 = vmatpush1.bf16.msra.mxu0 %v5847_v16 }
 0x270   : > { %3916 = vmatprep.subr.bf16.mxu0 %v5852_v29 }
 0x271   : > { %1597 = vadd.xlane.f32.xlu0 %v1596_v0  ;;  %v1605_v9 = vadd.f32 %v1604_v18, %v1341_v12 }
 0x272   : > { %v7600_v4 = vpop.f32.mrb[180].mxu1 }
 0x273   : > { %10008 = vst [vmem:[#allocation201_spill] sm:$0xff] %v7600_v4  ;;  %v1348_v20 = vmul.f32 %v7600_v4, %v7600_v4  ;;  %1606 = vadd.xlane.f32.xlu1 %v1605_v9  ;;  %v7604_v42 = vpop.f32.mrb[181].mxu1  ;;  %3917 = vmatpush1.bf16.msra.mxu0 %v5850_v50 }
 0x274   : > { %10009 = vst [vmem:[#allocation202_spill] sm:$0xff] %v7604_v42  ;;  %v1349_v53 = vmul.f32 %v7604_v42, %v7604_v42  ;;  %v7608_v57 = vpop.f32.mrb[182].mxu1  ;;  %v10064_v42 = vld [vmem:[#allocation19_spill] sm:$0xff] }
 0x275   : > { %10010 = vst [vmem:[#allocation203_spill] sm:$0xff] %v7608_v57  ;;  %v1356_v21 = vmul.f32 %v7608_v57, %v7608_v57  ;;  %v7612_v56 = vpop.f32.mrb[183].mxu1  ;;  %v1613_v27 = vadd.f32 %v7076_v45, %v1348_v20  ;;  %v5855_v45 = vld [vmem:[#allocation2 + $0x104] ss:$8 sps:$4 sm:$0xff]  }
 0x276   : > { %10011 = vst [vmem:[#allocation204_spill] sm:$0xff] %v7612_v56  ;;  %v1357_v12 = vmul.f32 %v7612_v56, %v7612_v56  ;;  %4079 = vmatprep.subr.bf16.mxu0 %v5855_v45  ;;  %v5853_v56 = vld [vmem:[#allocation2 + $0x100] ss:$8 sps:$4 sm:$0xff]  }
 0x277   : > { %v1614_v0 = vadd.f32 %v1613_v27, %v1349_v53  ;;  %v1622_v18 = vadd.f32 %v7087_v11, %v1356_v21 }
 0x279   : > { %1615 = vadd.xlane.f32.xlu0 %v1614_v0  ;;  %v1623_v9 = vadd.f32 %v1622_v18, %v1357_v12 }
 0x27a   : > { %v7618_v16 = vpop.f32.mrb[184].mxu1 }
 0x27b   : > { %10012 = vst [vmem:[#allocation205_spill] sm:$0xff] %v7618_v16  ;;  %v1364_v33 = vmul.f32 %v7618_v16, %v7618_v16  ;;  %1624 = vadd.xlane.f32.xlu1 %v1623_v9  ;;  %v7622_v57 = vpop.f32.mrb[185].mxu1 }
 0x27c   : > { %10013 = vst [vmem:[#allocation206_spill] sm:$0xff] %v7622_v57  ;;  %v1365_v20 = vmul.f32 %v7622_v57, %v7622_v57  ;;  %v7626_v4 = vpop.f32.mrb[186].mxu1 }
 0x27d   : > { %10014 = vst [vmem:[#allocation207_spill] sm:$0xff] %v7626_v4  ;;  %v1372_v11 = vmul.f32 %v7626_v4, %v7626_v4  ;;  %v7630_v53 = vpop.f32.mrb[187].mxu1  ;;  %v1631_v21 = vadd.f32 %v7109_v48, %v1364_v33 }
 0x27e   : > { %10015 = vst [vmem:[#allocation208_spill] sm:$0xff] %v7630_v53  ;;  %v1373_v27 = vmul.f32 %v7630_v53, %v7630_v53 }
 0x27f   : > { %v1632_v29 = vadd.f32 %v1631_v21, %v1365_v20  ;;  %v1640_v12 = vadd.f32 %v7120_v25, %v1372_v11 }
 0x281   : > { %1633 = vadd.xlane.f32.xlu0 %v1632_v29  ;;  %v1641_v50 = vadd.f32 %v1640_v12, %v1373_v27 }
 0x282   : > { %v7636_v0 = vpop.f32.mrb[188].mxu1 }
 0x283   : > { %10016 = vst [vmem:[#allocation209_spill] sm:$0xff] %v7636_v0  ;;  %v1380_v18 = vmul.f32 %v7636_v0, %v7636_v0  ;;  %1642 = vadd.xlane.f32.xlu1 %v1641_v50  ;;  %v7640_v9 = vpop.f32.mrb[189].mxu1 }
 0x284   : > { %10017 = vst [vmem:[#allocation210_spill] sm:$0xff] %v7640_v9  ;;  %v1381_v48 = vmul.f32 %v7640_v9, %v7640_v9  ;;  %v7644_v33 = vpop.f32.mrb[190].mxu1 }
 0x285   : > { %10018 = vst [vmem:[#allocation211_spill] sm:$0xff] %v7644_v33  ;;  %v1388_v45 = vmul.f32 %v7644_v33, %v7644_v33  ;;  %v7648_v20 = vpop.f32.mrb[191].mxu1  ;;  %v1649_v25 = vadd.f32 %v7142_v40, %v1380_v18 }
 0x286   : > { %10019 = vst [vmem:[#allocation212_spill] sm:$0xff] %v7648_v20  ;;  %v1389_v11 = vmul.f32 %v7648_v20, %v7648_v20 }
 0x287   : > { %v1650_v21 = vadd.f32 %v1649_v25, %v1381_v48  ;;  %v1658_v27 = vadd.f32 %v7153_v5, %v1388_v45 }
 0x289   : > { %1651 = vadd.xlane.f32.xlu0 %v1650_v21  ;;  %v1659_v29 = vadd.f32 %v1658_v27, %v1389_v11 }
 0x28a   : > { %v7654_v12 = vpop.f32.mrb[192].mxu1 }
 0x28b   : > { %10020 = vst [vmem:[#allocation213_spill] sm:$0xff] %v7654_v12  ;;  %v1396_v50 = vmul.f32 %v7654_v12, %v7654_v12  ;;  %1660 = vadd.xlane.f32.xlu1 %v1659_v29  ;;  %v7658_v0 = vpop.f32.mrb[193].mxu1 }
 0x28c   : > { %10021 = vst [vmem:[#allocation214_spill] sm:$0xff] %v7658_v0  ;;  %v1397_v33 = vmul.f32 %v7658_v0, %v7658_v0  ;;  %v7662_v40 = vpop.f32.mrb[194].mxu1 }
 0x28d   : > { %10022 = vst [vmem:[#allocation215_spill] sm:$0xff] %v7662_v40  ;;  %v1404_v18 = vmul.f32 %v7662_v40, %v7662_v40  ;;  %v7666_v48 = vpop.f32.mrb[195].mxu1  ;;  %v1667_v5 = vadd.f32 %v7351_v51, %v1396_v50 }
 0x28e   : > { %10023 = vst [vmem:[#allocation216_spill] sm:$0xff] %v7666_v48  ;;  %v1405_v45 = vmul.f32 %v7666_v48, %v7666_v48 }
 0x28f   : > { %v1668_v25 = vadd.f32 %v1667_v5, %v1397_v33  ;;  %v1676_v11 = vadd.f32 %v7354_v52, %v1404_v18 }
 0x291   : > { %1669 = vadd.xlane.f32.xlu0 %v1668_v25  ;;  %v1677_v21 = vadd.f32 %v1676_v11, %v1405_v45 }
 0x292   : > { %v7672_v27 = vpop.f32.mrb[196].mxu1 }
 0x293   : > { %10024 = vst [vmem:[#allocation217_spill] sm:$0xff] %v7672_v27  ;;  %v1412_v29 = vmul.f32 %v7672_v27, %v7672_v27  ;;  %1678 = vadd.xlane.f32.xlu1 %v1677_v21  ;;  %v7676_v12 = vpop.f32.mrb[197].mxu1 }
 0x294   : > { %10025 = vst [vmem:[#allocation218_spill] sm:$0xff] %v7676_v12  ;;  %v1413_v40 = vmul.f32 %v7676_v12, %v7676_v12  ;;  %v7680_v51 = vpop.f32.mrb[198].mxu1 }
 0x295   : > { %10026 = vst [vmem:[#allocation219_spill] sm:$0xff] %v7680_v51  ;;  %v1420_v33 = vmul.f32 %v7680_v51, %v7680_v51  ;;  %v7684_v50 = vpop.f32.mrb[199].mxu1  ;;  %v1685_v52 = vadd.f32 %v7373_v61, %v1412_v29 }
 0x296   : > { %10027 = vst [vmem:[#allocation220_spill] sm:$0xff] %v7684_v50  ;;  %v1421_v18 = vmul.f32 %v7684_v50, %v7684_v50 }
 0x297   : > { %v1686_v5 = vadd.f32 %v1685_v52, %v1413_v40  ;;  %v1694_v45 = vadd.f32 %v7376_v19, %v1420_v33 }
 0x299   : > { %1687 = vadd.xlane.f32.xlu0 %v1686_v5  ;;  %v1695_v25 = vadd.f32 %v1694_v45, %v1421_v18 }
 0x29a   : > { %v7690_v11 = vpop.f32.mrb[200].mxu1 }
 0x29b   : > { %10028 = vst [vmem:[#allocation221_spill] sm:$0xff] %v7690_v11  ;;  %v1428_v21 = vmul.f32 %v7690_v11, %v7690_v11  ;;  %1696 = vadd.xlane.f32.xlu1 %v1695_v25  ;;  %v7694_v27 = vpop.f32.mrb[201].mxu1 }
 0x29c   : > { %10029 = vst [vmem:[#allocation222_spill] sm:$0xff] %v7694_v27  ;;  %v1429_v51 = vmul.f32 %v7694_v27, %v7694_v27  ;;  %v7698_v61 = vpop.f32.mrb[202].mxu1 }
 0x29d   : > { %10030 = vst [vmem:[#allocation223_spill] sm:$0xff] %v7698_v61  ;;  %v1436_v40 = vmul.f32 %v7698_v61, %v7698_v61  ;;  %v7702_v29 = vpop.f32.mrb[203].mxu1  ;;  %v1703_v19 = vadd.f32 %v7395_v60, %v1428_v21 }
 0x29e   : > { %10031 = vst [vmem:[#allocation224_spill] sm:$0xff] %v7702_v29  ;;  %v1437_v33 = vmul.f32 %v7702_v29, %v7702_v29 }
 0x29f   : > { %v1704_v52 = vadd.f32 %v1703_v19, %v1429_v51  ;;  %v1712_v18 = vadd.f32 %v7398_v55, %v1436_v40 }
 0x2a1   : > { %1705 = vadd.xlane.f32.xlu0 %v1704_v52  ;;  %v1713_v5 = vadd.f32 %v1712_v18, %v1437_v33 }
 0x2a2   : > { %v7708_v45 = vpop.f32.mrb[204].mxu1 }
 0x2a3   : > { %10032 = vst [vmem:[#allocation225_spill] sm:$0xff] %v7708_v45  ;;  %v1444_v25 = vmul.f32 %v7708_v45, %v7708_v45  ;;  %1714 = vadd.xlane.f32.xlu1 %v1713_v5  ;;  %v7712_v11 = vpop.f32.mrb[205].mxu1 }
 0x2a4   : > { %10033 = vst [vmem:[#allocation226_spill] sm:$0xff] %v7712_v11  ;;  %v1445_v61 = vmul.f32 %v7712_v11, %v7712_v11  ;;  %v7716_v60 = vpop.f32.mrb[206].mxu1 }
 0x2a5   : > { %10034 = vst [vmem:[#allocation227_spill] sm:$0xff] %v7716_v60  ;;  %v1452_v51 = vmul.f32 %v7716_v60, %v7716_v60  ;;  %v7720_v21 = vpop.f32.mrb[207].mxu1  ;;  %v1721_v55 = vadd.f32 %v7417_v43, %v1444_v25 }
 0x2a6   : > { %10035 = vst [vmem:[#allocation228_spill] sm:$0xff] %v7720_v21  ;;  %v1453_v40 = vmul.f32 %v7720_v21, %v7720_v21  ;;  %v10057_v21 = vld [vmem:[#allocation121_spill] sm:$0xff] }
 0x2a7   : > { %v1722_v19 = vadd.f32 %v1721_v55, %v1445_v61  ;;  %v1730_v33 = vadd.f32 %v7420_v63, %v1452_v51 }
 0x2a9   : > { %1723 = vadd.xlane.f32.xlu0 %v1722_v19  ;;  %v1731_v52 = vadd.f32 %v1730_v33, %v1453_v40 }
 0x2aa   : > { %v7726_v18 = vpop.f32.mrb[208].mxu1 }
 0x2ab   : > { %10036 = vst [vmem:[#allocation229_spill] sm:$0xff] %v7726_v18  ;;  %v1460_v5 = vmul.f32 %v7726_v18, %v7726_v18  ;;  %1732 = vadd.xlane.f32.xlu1 %v1731_v52  ;;  %v7730_v45 = vpop.f32.mrb[209].mxu1 }
 0x2ac   : > { %10037 = vst [vmem:[#allocation230_spill] sm:$0xff] %v7730_v45  ;;  %v1461_v60 = vmul.f32 %v7730_v45, %v7730_v45  ;;  %v7734_v43 = vpop.f32.mrb[210].mxu1 }
 0x2ad   : > { %10038 = vst [vmem:[#allocation231_spill] sm:$0xff] %v7734_v43  ;;  %v1468_v61 = vmul.f32 %v7734_v43, %v7734_v43  ;;  %v7738_v25 = vpop.f32.mrb[211].mxu1  ;;  %v1739_v63 = vadd.f32 %v7439_v47, %v1460_v5 }
 0x2ae   : > { %10039 = vst [vmem:[#allocation232_spill] sm:$0xff] %v7738_v25  ;;  %v1469_v51 = vmul.f32 %v7738_v25, %v7738_v25  ;;  %v10056_v25 = vld [vmem:[#allocation122_spill] sm:$0xff] }
 0x2af   : > { %v1740_v55 = vadd.f32 %v1739_v63, %v1461_v60  ;;  %v1748_v40 = vadd.f32 %v7442_v3, %v1468_v61 }
 0x2b1   : > { %1741 = vadd.xlane.f32.xlu0 %v1740_v55  ;;  %v1749_v19 = vadd.f32 %v1748_v40, %v1469_v51 }
 0x2b2   : > { %v7744_v33 = vpop.f32.mrb[212].mxu1 }
 0x2b3   : > { %10040 = vst [vmem:[#allocation233_spill] sm:$0xff] %v7744_v33  ;;  %v1476_v52 = vmul.f32 %v7744_v33, %v7744_v33  ;;  %1750 = vadd.xlane.f32.xlu1 %v1749_v19  ;;  %v7748_v18 = vpop.f32.mrb[213].mxu1 }
 0x2b4   : > { %10041 = vst [vmem:[#allocation234_spill] sm:$0xff] %v7748_v18  ;;  %v1477_v43 = vmul.f32 %v7748_v18, %v7748_v18  ;;  %v7752_v47 = vpop.f32.mrb[214].mxu1 }
 0x2b5   : > { %10042 = vst [vmem:[#allocation235_spill] sm:$0xff] %v7752_v47  ;;  %v1484_v60 = vmul.f32 %v7752_v47, %v7752_v47  ;;  %v7756_v5 = vpop.f32.mrb[215].mxu1  ;;  %v1757_v3 = vadd.f32 %v7461_v14, %v1476_v52 }
 0x2b6   : > { %10043 = vst [vmem:[#allocation236_spill] sm:$0xff] %v7756_v5  ;;  %v1485_v61 = vmul.f32 %v7756_v5, %v7756_v5  ;;  %v10055_v5 = vld [vmem:[#allocation12_spill] sm:$0xff] }
 0x2b7   : > { %v1758_v63 = vadd.f32 %v1757_v3, %v1477_v43  ;;  %v1766_v51 = vadd.f32 %v7464_v54, %v1484_v60 }
 0x2b9   : > { %1759 = vadd.xlane.f32.xlu0 %v1758_v63  ;;  %v1767_v55 = vadd.f32 %v1766_v51, %v1485_v61 }
 0x2ba   : > { %v7762_v40 = vpop.f32.mrb[216].mxu1 }
 0x2bb   : > { %10044 = vst [vmem:[#allocation237_spill] sm:$0xff] %v7762_v40  ;;  %v1492_v19 = vmul.f32 %v7762_v40, %v7762_v40  ;;  %1768 = vadd.xlane.f32.xlu1 %v1767_v55  ;;  %v7766_v33 = vpop.f32.mrb[217].mxu1 }
 0x2bc   : > { %10045 = vst [vmem:[#allocation238_spill] sm:$0xff] %v7766_v33  ;;  %v1493_v47 = vmul.f32 %v7766_v33, %v7766_v33  ;;  %v7770_v14 = vpop.f32.mrb[218].mxu1 }
 0x2bd   : > { %10046 = vst [vmem:[#allocation239_spill] sm:$0xff] %v7770_v14  ;;  %v1500_v43 = vmul.f32 %v7770_v14, %v7770_v14  ;;  %v7774_v52 = vpop.f32.mrb[219].mxu1  ;;  %v1775_v54 = vadd.f32 %v7483_v59, %v1492_v19 }
 0x2be   : > { %10047 = vst [vmem:[#allocation240_spill] sm:$0xff] %v7774_v52  ;;  %v1501_v60 = vmul.f32 %v7774_v52, %v7774_v52 }
 0x2bf   : > { %v1776_v3 = vadd.f32 %v1775_v54, %v1493_v47  ;;  %v1784_v61 = vadd.f32 %v7486_v28, %v1500_v43 }
 0x2c1   : > { %1777 = vadd.xlane.f32.xlu0 %v1776_v3  ;;  %v1785_v63 = vadd.f32 %v1784_v61, %v1501_v60 }
 0x2c2   : > { %v7780_v51 = vpop.f32.mrb[220].mxu1 }
 0x2c3   : > { %10048 = vst [vmem:[#allocation241_spill] sm:$0xff] %v7780_v51  ;;  %v1508_v55 = vmul.f32 %v7780_v51, %v7780_v51  ;;  %1786 = vadd.xlane.f32.xlu1 %v1785_v63  ;;  %v7784_v40 = vpop.f32.mrb[221].mxu1  ;;  %v2128_v63 = vlaneseq }
 0x2c4   : > { %10049 = vst [vmem:[#allocation242_spill] sm:$0xff] %v7784_v40  ;;  %v1509_v14 = vmul.f32 %v7784_v40, %v7784_v40  ;;  %v7788_v59 = vpop.f32.mrb[222].mxu1 }
 0x2c5   : > { %10050 = vst [vmem:[#allocation243_spill] sm:$0xff] %v7788_v59  ;;  %v1516_v47 = vmul.f32 %v7788_v59, %v7788_v59  ;;  %v7792_v19 = vpop.f32.mrb[223].mxu1  ;;  %v1793_v28 = vadd.f32 %v7505_v32, %v1508_v55  ;;  %v7798_v52 = vshrl.u32 %v2128_v63, 7 }
 0x2c6   : > { %10051 = vst [vmem:[#allocation244_spill] sm:$0xff] %v7792_v19  ;;  %v1517_v43 = vmul.f32 %v7792_v19, %v7792_v19 }
 0x2c7   : > { %v1794_v54 = vadd.f32 %v1793_v28, %v1509_v14  ;;  %v1802_v60 = vadd.f32 %v7508_v6, %v1516_v47  ;;  %v7801_v32 = vsub.s32 1, %v7798_v52  ;;  %v7804_v14 = vsub.s32 0, %v7798_v52  ;;  %v2126_v47 = vld [vmem:[%s9469_s2] sm:$0xff] }
 0x2c8   : > { %v2142_v6 = vsub.s32 3, %v7798_v52 }
 0x2c9   : > { %1795 = vadd.xlane.f32.xlu0 %v1794_v54  ;;  %v1803_v3 = vadd.f32 %v1802_v60, %v1517_v43  ;;  %10052 = vst [vmem:[#allocation245_spill] sm:$0xff] %v7801_v32  ;;  %10053 = vst [vmem:[#allocation246_spill] sm:$0xff] %v7804_v14  ;;  %v7815_v28 = vrot.slane %v2126_v47, %v7801_v32  ;;  %v7818_v43 = vrot.slane %v2126_v47, %v7804_v14 }
 0x2ca   : > { %v7820_v54 = vrot.slane %v2126_v47, %v2142_v6 }
 0x2cb   : > { %1804 = vadd.xlane.f32.xlu1 %v1803_v3 }
 0x2de   : > { %v1526_v61 = vpop.xlane.xlu0 %1525 }
 0x2df   : > { %v1806_v51 = vadd.f32 1e-12, %v1526_v61 }
 0x2e1   : > { %6013 = vrsqrt.f32 %v1806_v51  ;;  %v2138_v51 = vsub.s32 2, %v7798_v52 }
 0x2e2   : > { %v1535_v40 = vpop.xlane.xlu0 %1534 }
 0x2e3   : > { %v1807_v59 = vadd.f32 1e-12, %v1535_v40  ;;  %v2424_v40 = vld [vmem:[%s9470_s3] sm:$0xff]  ;;  %v7830_v63 = vrot.slane %v2126_v47, %v2138_v51 }
 0x2e4   : > { %v7825_v3 = vrot.slane %v2424_v40, %v7801_v32  ;;  %v7828_v61 = vrot.slane %v2424_v40, %v7804_v14  ;;  %v7840_v32 = vrot.slane %v2424_v40, %v2142_v6  ;;  %v7848_v50 = vrot.slane %v2424_v40, %v2138_v51  ;;  %v10058_v6 = vld [vmem:[#allocation15_spill] sm:$0xff] }
 0x2e5   : > { %6015 = vrsqrt.f32 %v1807_v59 }
 0x2e6   : > { %v1544_v33 = vpop.xlane.xlu1 %1543 }
 0x2e7   : > { %v1808_v55 = vadd.f32 1e-12, %v1544_v33 }
 0x2e9   : > { %6017 = vrsqrt.f32 %v1808_v55  ;;  %v10054_v55 = vld [vmem:[#allocation13_spill] sm:$0xff] }
 0x2ea   : > { %v1553_v59 = vpop.xlane.xlu1 %1552 }
 0x2eb   : > { %v7822_v33 = vpop.eup %6013  ;;  %v1809_v60 = vadd.f32 1e-12, %v1553_v59 }
 0x2ec   : > { %v1871_v19 = vmul.f32 %v7822_v33, %v10054_v55  ;;  %v1870_v18 = vmul.f32 %v7822_v33, %v10055_v5  ;;  %v1873_v45 = vmul.f32 %v7822_v33, %v10056_v25  ;;  %v1872_v59 = vmul.f32 %v7822_v33, %v10057_v21 }
 0x2ed   : > { %6019 = vrsqrt.f32 %v1809_v60  ;;  %v7852_v21 = vmul.f32 %v7822_v33, %v6490_v38 }
 0x2ee   : > { %v1562_v11 = vpop.xlane.xlu0 %1561  ;;  %v2169_v14 = vmul.f32 %v7815_v28, %v1871_v19  ;;  %v2168_v47 = vmul.f32 %v7818_v43, %v1870_v18  ;;  %v2171_v29 = vmul.f32 %v7820_v54, %v1873_v45  ;;  %v2170_v5 = vmul.f32 %v7830_v63, %v1872_v59  ;;  %v10059_v18 = vld [vmem:[#allocation14_spill] sm:$0xff]  ;;  %v10060_v59 = vld [vmem:[#allocation124_spill] sm:$0xff] }
 0x2ef   : > { %v7845_v55 = vpop.eup %6015  ;;  %v1810_v27 = vadd.f32 1e-12, %v1562_v11 }
 0x2f0   : > { %v1571_v25 = vpop.xlane.xlu1 %1570  ;;  %v1879_v60 = vmul.f32 %v7845_v55, %v10058_v6  ;;  %v2467_v19 = vadd.f32 %v7825_v3, %v2169_v14  ;;  %v1878_v45 = vmul.f32 %v7845_v55, %v10059_v18  ;;  %v2466_v12 = vadd.f32 %v7828_v61, %v2168_v47  ;;  %v10061_v47 = vld [vmem:[#allocation123_spill] sm:$0xff] }
 0x2f1   : > { %6021 = vrsqrt.f32 %v1810_v27  ;;  %v1811_v11 = vadd.f32 1e-12, %v1571_v25  ;;  %v1881_v51 = vmul.f32 %v7845_v55, %v10060_v59  ;;  %v2469_v40 = vadd.f32 %v7840_v32, %v2171_v29  ;;  %v10062_v29 = vld [vmem:[#allocation17_spill] sm:$0xff] }
 0x2f2   : > { %v2177_v38 = vmul.f32 %v7815_v28, %v1879_v60  ;;  %v2723_v48 = vmax.f32 %v2467_v19, 0.0  ;;  %v2176_v0 = vmul.f32 %v7818_v43, %v1878_v45  ;;  %v2722_v6 = vmax.f32 %v2466_v12, 0.0  ;;  %v10063_v19 = vld [vmem:[#allocation16_spill] sm:$0xff] }
 0x2f3   : > { %v7865_v20 = vpop.eup %6017  ;;  %6023 = vrsqrt.f32 %v1811_v11  ;;  %v2179_v14 = vmul.f32 %v7820_v54, %v1881_v51  ;;  %v2725_v18 = vmax.f32 %v2469_v40, 0.0  ;;  %v1880_v27 = vmul.f32 %v7845_v55, %v10061_v47 }
 0x2f4   : > { %v2475_v25 = vadd.f32 %v7825_v3, %v2177_v38  ;;  %v2474_v59 = vadd.f32 %v7828_v61, %v2176_v0  ;;  %v1887_v60 = vmul.f32 %v7865_v20, %v10062_v29  ;;  %v1886_v45 = vmul.f32 %v7865_v20, %v10063_v19 }
 0x2f5   : > { %v2477_v12 = vadd.f32 %v7840_v32, %v2179_v14  ;;  %v2178_v11 = vmul.f32 %v7830_v63, %v1880_v27  ;;  %v2468_v51 = vadd.f32 %v7848_v50, %v2170_v5  ;;  %v1889_v40 = vmul.f32 %v7865_v20, %v6915_v30 }
 0x2f6   : > { %v1580_v47 = vpop.xlane.xlu0 %1579  ;;  %v2731_v9 = vmax.f32 %v2475_v25, 0.0  ;;  %v2730_v38 = vmax.f32 %v2474_v59, 0.0  ;;  %v2185_v0 = vmul.f32 %v7815_v28, %v1887_v60  ;;  %v2184_v4 = vmul.f32 %v7818_v43, %v1886_v45  ;;  %v10065_v60 = vld [vmem:[#allocation18_spill] sm:$0xff] }
 0x2f7   : > { %v7883_v29 = vpop.eup %6019  ;;  %v1812_v16 = vadd.f32 1e-12, %v1580_v47  ;;  %v2733_v19 = vmax.f32 %v2477_v12, 0.0  ;;  %v2476_v14 = vadd.f32 %v7848_v50, %v2178_v11  ;;  %v2724_v53 = vmax.f32 %v2468_v51, 0.0  ;;  %v5858_v12 = vld [vmem:[#allocation2 + $0x114] ss:$8 sps:$4 sm:$0xff]  }
 0x2f8   : > { %v1589_v27 = vpop.xlane.xlu1 %1588  ;;  %v2979_v57 = vpack.c.bf16 %v2731_v9, %v2723_v48  ;;  %v2978_v5 = vpack.c.bf16 %v2730_v38, %v2722_v6  ;;  %v1895_v30 = vmul.f32 %v7883_v29, %v10064_v42  ;;  %v2483_v25 = vadd.f32 %v7825_v3, %v2185_v0  ;;  %v10066_v0 = vld [vmem:[#allocation24_spill] sm:$0xff] }
 0x2f9   : > { %6025 = vrsqrt.f32 %v1812_v16  ;;  %v1813_v59 = vadd.f32 1e-12, %v1589_v27  ;;  %v1894_v45 = vmul.f32 %v7883_v29, %v10065_v60  ;;  %v2482_v47 = vadd.f32 %v7828_v61, %v2184_v4 }
 0x2fa   : > { %3918 = vmatprep.mubr.bf16.mxu0 %v2979_v57  ;;  %v2193_v11 = vmul.f32 %v7815_v28, %v1895_v30  ;;  %v2739_v51 = vmax.f32 %v2483_v25, 0.0  ;;  %v7893_v9 = vpack.c.bf16 %v2733_v19, %v2725_v18  ;;  %v2732_v48 = vmax.f32 %v2476_v14, 0.0  ;;  %v5856_v57 = vld [vmem:[#allocation2 + $0x110] ss:$8 sps:$4 sm:$0xff]   ;;  %v10067_v18 = vld [vmem:[#allocation22_spill] sm:$0xff] }
 0x2fb   : > { %v7895_v6 = vpop.eup %6021  ;;  %6027 = vrsqrt.f32 %v1813_v59  ;;  %3919 = vmatmul.mubr.bf16.vlgmr.msra.gmra.mrb[32].mxu0 %v2978_v5  ;;  %v2192_v42 = vmul.f32 %v7818_v43, %v1894_v45  ;;  %v2738_v16 = vmax.f32 %v2482_v47, 0.0  ;;  %v1897_v38 = vmul.f32 %v7883_v29, %v6926_v15  ;;  %v5861_v25 = vld [vmem:[#allocation2 + $0x124] ss:$8 sps:$4 sm:$0xff]  }
 0x2fc   : > { %4080 = vmatpush1.bf16.msra.mxu0 %v5853_v56  ;;  %v2491_v4 = vadd.f32 %v7825_v3, %v2193_v11  ;;  %v1903_v27 = vmul.f32 %v7895_v6, %v10066_v0  ;;  %v1902_v19 = vmul.f32 %v7895_v6, %v10067_v18  ;;  %v7905_v14 = vpack.c.bf16 %v2732_v48, %v2724_v53  ;;  %v10069_v47 = vld [vmem:[#allocation26_spill] sm:$0xff]  ;;  %v10070_v48 = vld [vmem:[#allocation25_spill] sm:$0xff] }
 0x2fd   : > { %v7907_v30 = vpop.eup %6023  ;;  %v2490_v5 = vadd.f32 %v7828_v61, %v2192_v42  ;;  %4081 = vmatprep.subr.bf16.mxu0 %v5858_v12  ;;  %v2187_v15 = vmul.f32 %v7820_v54, %v1889_v40  ;;  %v2195_v56 = vmul.f32 %v7820_v54, %v1897_v38  ;;  %v1888_v59 = vmul.f32 %v7865_v20, %v6909_v17 }
 0x2fe   : > { %10068 = vst [vmem:[#allocation13_spill] sm:$0xff] %v7907_v30  ;;  %v1598_v60 = vpop.xlane.xlu0 %1597  ;;  %v2747_v45 = vmax.f32 %v2491_v4, 0.0  ;;  %v1911_v11 = vmul.f32 %v7907_v30, %v10069_v47  ;;  %v2201_v53 = vmul.f32 %v7815_v28, %v1903_v27  ;;  %v1910_v0 = vmul.f32 %v7907_v30, %v10070_v48 }
 0x2ff   : > { %v1814_v42 = vadd.f32 1e-12, %v1598_v60  ;;  %v2746_v12 = vmax.f32 %v2490_v5, 0.0  ;;  %v2200_v18 = vmul.f32 %v7818_v43, %v1902_v19  ;;  %v2485_v40 = vadd.f32 %v7840_v32, %v2187_v15  ;;  %v5864_v5 = vld [vmem:[#allocation2 + $0x134] ss:$8 sps:$4 sm:$0xff]  }
 0x300   : > { %v1607_v38 = vpop.xlane.xlu1 %1606  ;;  %v2987_v35 = vpack.c.bf16 %v2747_v45, %v2739_v51  ;;  %4082 = vmatpush1.bf16.msra.mxu0 %v5856_v57  ;;  %v2209_v17 = vmul.f32 %v7815_v28, %v1911_v11  ;;  %v2499_v4 = vadd.f32 %v7825_v3, %v2201_v53  ;;  %v2208_v47 = vmul.f32 %v7818_v43, %v1910_v0 }
 0x301   : > { %6029 = vrsqrt.f32 %v1814_v42  ;;  %v1815_v27 = vadd.f32 1e-12, %v1607_v38  ;;  %v2986_v13 = vpack.c.bf16 %v2746_v12, %v2738_v16  ;;  %v2498_v60 = vadd.f32 %v7828_v61, %v2200_v18  ;;  %4083 = vmatprep.subr.bf16.mxu0 %v5861_v25  ;;  %v10073_v42 = vld [vmem:[#allocation30_spill] sm:$0xff]  ;;  %v5862_v18 = vld [vmem:[#allocation2 + $0x130] ss:$8 sps:$4 sm:$0xff]  }
 0x302   : > { %3928 = vmatprep.mubr.bf16.mxu0 %v2987_v35  ;;  %v2507_v19 = vadd.f32 %v7825_v3, %v2209_v17  ;;  %v2755_v15 = vmax.f32 %v2499_v4, 0.0  ;;  %v2506_v51 = vadd.f32 %v7828_v61, %v2208_v47  ;;  %v2493_v57 = vadd.f32 %v7840_v32, %v2195_v56  ;;  %v10072_v35 = vld [vmem:[#allocation32_spill] sm:$0xff]  ;;  %v5867_v38 = vld [vmem:[#allocation2 + $0x144] ss:$8 sps:$4 sm:$0xff]  }
 0x303   : > { %v7928_v45 = vpop.eup %6025  ;;  %6031 = vrsqrt.f32 %v1815_v27  ;;  %3929 = vmatmul.mubr.bf16.gmra.mrb[36].mxu0 %v2986_v13  ;;  %v2754_v11 = vmax.f32 %v2498_v60, 0.0  ;;  %v2741_v53 = vmax.f32 %v2485_v40, 0.0  ;;  %v1896_v16 = vmul.f32 %v7883_v29, %v6919_v41  ;;  %v10075_v27 = vld [vmem:[#allocation34_spill] sm:$0xff] }
 0x304   : > { %10071 = vst [vmem:[#allocation12_spill] sm:$0xff] %v7928_v45  ;;  %v2763_v48 = vmax.f32 %v2507_v19, 0.0  ;;  %v2762_v25 = vmax.f32 %v2506_v51, 0.0  ;;  %4084 = vmatpush1.bf16.msra.mxu0 %v5859_v39  ;;  %v1919_v0 = vmul.f32 %v7928_v45, %v10072_v35  ;;  %v1918_v12 = vmul.f32 %v7928_v45, %v10073_v42  ;;  %v10076_v35 = vld [vmem:[#allocation33_spill] sm:$0xff] }
 0x305   : > { %v7936_v56 = vpop.eup %6027  ;;  %4085 = vmatprep.subr.bf16.mxu0 %v5864_v5  ;;  %v2749_v13 = vmax.f32 %v2493_v57, 0.0  ;;  %v2186_v40 = vmul.f32 %v7830_v63, %v1888_v59  ;;  %v2194_v17 = vmul.f32 %v7830_v63, %v1896_v16  ;;  %v1905_v41 = vmul.f32 %v7895_v6, %v6948_v7 }
 0x306   : > { %10074 = vst [vmem:[#allocation122_spill] sm:$0xff] %v7936_v56  ;;  %v1616_v39 = vpop.xlane.xlu0 %1615  ;;  %v2995_v4 = vpack.c.bf16 %v2763_v48, %v2755_v15  ;;  %v2994_v47 = vpack.c.bf16 %v2762_v25, %v2754_v11  ;;  %v1927_v60 = vmul.f32 %v7936_v56, %v10075_v27  ;;  %v2217_v19 = vmul.f32 %v7815_v28, %v1919_v0  ;;  %v5865_v11 = vld [vmem:[#allocation2 + $0x140] ss:$8 sps:$4 sm:$0xff]  }
 0x307   : > { %v1816_v51 = vadd.f32 1e-12, %v1616_v39  ;;  %v1926_v5 = vmul.f32 %v7936_v56, %v10076_v35  ;;  %v2216_v57 = vmul.f32 %v7818_v43, %v1918_v12  ;;  %v7948_v59 = vpack.c.bf16 %v2749_v13, %v2741_v53  ;;  %v5870_v12 = vld [vmem:[#allocation2 + $0x154] ss:$8 sps:$4 sm:$0xff]   ;;  %v10079_v35 = vld [vmem:[#allocation38_spill] sm:$0xff] }
 0x308   : > { %3938 = vmatprep.mubr.bf16.mxu0 %v2995_v4  ;;  %v1625_v16 = vpop.xlane.xlu1 %1624  ;;  %v2225_v7 = vmul.f32 %v7815_v28, %v1927_v60  ;;  %v2515_v15 = vadd.f32 %v7825_v3, %v2217_v19  ;;  %4086 = vmatpush1.bf16.msra.mxu0 %v5862_v18  ;;  %v2484_v48 = vadd.f32 %v7848_v50, %v2186_v40 }
 0x309   : > { %6033 = vrsqrt.f32 %v1816_v51  ;;  %v1817_v25 = vadd.f32 1e-12, %v1625_v16  ;;  %v2224_v0 = vmul.f32 %v7818_v43, %v1926_v5  ;;  %v2514_v42 = vadd.f32 %v7828_v61, %v2216_v57  ;;  %4087 = vmatprep.subr.bf16.mxu0 %v5867_v38  ;;  %v10078_v51 = vld [vmem:[#allocation40_spill] sm:$0xff] }
 0x30a   : > { %v2523_v53 = vadd.f32 %v7825_v3, %v2225_v7  ;;  %v2771_v13 = vmax.f32 %v2515_v15, 0.0  ;;  %v2492_v39 = vadd.f32 %v7848_v50, %v2194_v17  ;;  %v2740_v4 = vmax.f32 %v2484_v48, 0.0  ;;  %v5868_v17 = vld [vmem:[#allocation2 + $0x150] ss:$8 sps:$4 sm:$0xff]  }
 0x30b   : > { %v7957_v27 = vpop.eup %6029  ;;  %6035 = vrsqrt.f32 %v1817_v25  ;;  %3939 = vmatmul.mubr.bf16.gmra.mrb[40].mxu0 %v2994_v47  ;;  %v2522_v18 = vadd.f32 %v7828_v61, %v2224_v0  ;;  %v2770_v40 = vmax.f32 %v2514_v42, 0.0  ;;  %v1913_v60 = vmul.f32 %v7907_v30, %v6959_v44  ;;  %v5873_v47 = vld [vmem:[#allocation2 + $0x164] ss:$8 sps:$4 sm:$0xff]  }
 0x30c   : > { %10077 = vst [vmem:[#allocation121_spill] sm:$0xff] %v7957_v27  ;;  %v2779_v19 = vmax.f32 %v2523_v53, 0.0  ;;  %v1935_v38 = vmul.f32 %v7957_v27, %v10078_v51  ;;  %v1934_v5 = vmul.f32 %v7957_v27, %v10079_v35  ;;  %4088 = vmatpush1.bf16.msra.mxu0 %v5865_v11  ;;  %v2748_v57 = vmax.f32 %v2492_v39, 0.0  ;;  %v10081_v42 = vld [vmem:[#allocation42_spill] sm:$0xff]  ;;  %v10082_v39 = vld [vmem:[#allocation41_spill] sm:$0xff] }
 0x30d   : > { %v7966_v16 = vpop.eup %6031  ;;  %v2778_v7 = vmax.f32 %v2522_v18, 0.0  ;;  %4089 = vmatprep.subr.bf16.mxu0 %v5870_v12  ;;  %v2203_v15 = vmul.f32 %v7820_v54, %v1905_v41  ;;  %v2211_v48 = vmul.f32 %v7820_v54, %v1913_v60  ;;  %v1904_v44 = vmul.f32 %v7895_v6, %v6942_v58 }
 0x30e   : > { %10080 = vst [vmem:[#allocation15_spill] sm:$0xff] %v7966_v16  ;;  %v1634_v25 = vpop.xlane.xlu0 %1633  ;;  %v3003_v0 = vpack.c.bf16 %v2779_v19, %v2771_v13  ;;  %v1943_v53 = vmul.f32 %v7966_v16, %v10081_v42  ;;  %v2233_v11 = vmul.f32 %v7815_v28, %v1935_v38  ;;  %v1942_v51 = vmul.f32 %v7966_v16, %v10082_v39  ;;  %v5871_v42 = vld [vmem:[#allocation2 + $0x160] ss:$8 sps:$4 sm:$0xff]  }
 0x30f   : > { %v1818_v18 = vadd.f32 1e-12, %v1634_v25  ;;  %v3002_v12 = vpack.c.bf16 %v2778_v7, %v2770_v40  ;;  %v2232_v35 = vmul.f32 %v7818_v43, %v1934_v5  ;;  %v7978_v41 = vpack.c.bf16 %v2748_v57, %v2740_v4  ;;  %v5876_v40 = vld [vmem:[#allocation2 + $0x174] ss:$8 sps:$4 sm:$0xff]  }
 0x310   : > { %3948 = vmatprep.mubr.bf16.mxu0 %v3003_v0  ;;  %v1643_v60 = vpop.xlane.xlu1 %1642  ;;  %v2241_v58 = vmul.f32 %v7815_v28, %v1943_v53  ;;  %v2531_v13 = vadd.f32 %v7825_v3, %v2233_v11  ;;  %v2240_v19 = vmul.f32 %v7818_v43, %v1942_v51  ;;  %4090 = vmatpush1.bf16.msra.mxu0 %v5868_v17 }
 0x311   : > { %6037 = vrsqrt.f32 %v1818_v18  ;;  %v1819_v38 = vadd.f32 1e-12, %v1643_v60  ;;  %v2530_v39 = vadd.f32 %v7828_v61, %v2232_v35  ;;  %4091 = vmatprep.subr.bf16.mxu0 %v5873_v47  ;;  %v2501_v5 = vadd.f32 %v7840_v32, %v2203_v15  ;;  %v10084_v18 = vld [vmem:[#allocation48_spill] sm:$0xff]  ;;  %v10085_v35 = vld [vmem:[#allocation46_spill] sm:$0xff] }
 0x312   : > { %v2539_v4 = vadd.f32 %v7825_v3, %v2241_v58  ;;  %v2787_v57 = vmax.f32 %v2531_v13, 0.0  ;;  %v2538_v7 = vadd.f32 %v7828_v61, %v2240_v19  ;;  %v2509_v25 = vadd.f32 %v7840_v32, %v2211_v48  ;;  %v5874_v58 = vld [vmem:[#allocation2 + $0x170] ss:$8 sps:$4 sm:$0xff]   ;;  %v5879_v13 = vld [vmem:[#allocation2 + $0x184] ss:$8 sps:$4 sm:$0xff]  }
 0x313   : > { %v7988_v0 = vpop.eup %6033  ;;  %6039 = vrsqrt.f32 %v1819_v38  ;;  %3949 = vmatmul.mubr.bf16.gmra.mrb[44].mxu0 %v3002_v12  ;;  %v2786_v17 = vmax.f32 %v2530_v39, 0.0  ;;  %v2757_v53 = vmax.f32 %v2501_v5, 0.0  ;;  %v1912_v11 = vmul.f32 %v7907_v30, %v6952_v62 }
 0x314   : > { %10083 = vst [vmem:[#allocation14_spill] sm:$0xff] %v7988_v0  ;;  %v2795_v47 = vmax.f32 %v2539_v4, 0.0  ;;  %v2794_v51 = vmax.f32 %v2538_v7, 0.0  ;;  %v1951_v15 = vmul.f32 %v7988_v0, %v10084_v18  ;;  %v1950_v60 = vmul.f32 %v7988_v0, %v10085_v35  ;;  %4092 = vmatpush1.bf16.msra.mxu0 %v5871_v42  ;;  %v10087_v7 = vld [vmem:[#allocation50_spill] sm:$0xff] }
 0x315   : > { %v7996_v48 = vpop.eup %6035  ;;  %4093 = vmatprep.subr.bf16.mxu0 %v5876_v40  ;;  %v2765_v12 = vmax.f32 %v2509_v25, 0.0  ;;  %v2202_v19 = vmul.f32 %v7830_v63, %v1904_v44  ;;  %v2210_v38 = vmul.f32 %v7830_v63, %v1912_v11  ;;  %v1921_v62 = vmul.f32 %v7928_v45, %v6981_v22 }
 0x316   : > { %10086 = vst [vmem:[#allocation124_spill] sm:$0xff] %v7996_v48  ;;  %v1652_v39 = vpop.xlane.xlu0 %1651  ;;  %v3011_v5 = vpack.c.bf16 %v2795_v47, %v2787_v57  ;;  %v3010_v4 = vpack.c.bf16 %v2794_v51, %v2786_v17  ;;  %v1959_v18 = vmul.f32 %v7996_v48, %v10087_v7  ;;  %v2249_v42 = vmul.f32 %v7815_v28, %v1951_v15  ;;  %v5877_v17 = vld [vmem:[#allocation2 + $0x180] ss:$8 sps:$4 sm:$0xff]  }
 0x317   : > { %v1820_v35 = vadd.f32 1e-12, %v1652_v39  ;;  %v1958_v40 = vmul.f32 %v7996_v48, %v10088_v36  ;;  %v2248_v25 = vmul.f32 %v7818_v43, %v1950_v60  ;;  %v8008_v44 = vpack.c.bf16 %v2765_v12, %v2757_v53  ;;  %v5882_v60 = vld [vmem:[#allocation2 + $0x194] ss:$8 sps:$4 sm:$0xff]  }
 0x318   : > { %3958 = vmatprep.mubr.bf16.mxu0 %v3011_v5  ;;  %v1661_v11 = vpop.xlane.xlu1 %1660  ;;  %v2257_v22 = vmul.f32 %v7815_v28, %v1959_v18  ;;  %v2547_v57 = vadd.f32 %v7825_v3, %v2249_v42  ;;  %4094 = vmatpush1.bf16.msra.mxu0 %v5874_v58  ;;  %v2500_v47 = vadd.f32 %v7848_v50, %v2202_v19 }
 0x319   : > { %6041 = vrsqrt.f32 %v1820_v35  ;;  %v1821_v51 = vadd.f32 1e-12, %v1661_v11  ;;  %v2256_v15 = vmul.f32 %v7818_v43, %v1958_v40  ;;  %v2546_v36 = vadd.f32 %v7828_v61, %v2248_v25  ;;  %4095 = vmatprep.subr.bf16.mxu0 %v5879_v13  ;;  %v10090_v35 = vld [vmem:[#allocation56_spill] sm:$0xff]  ;;  %v10091_v40 = vld [vmem:[#allocation54_spill] sm:$0xff] }
 0x31a   : > { %v2555_v53 = vadd.f32 %v7825_v3, %v2257_v22  ;;  %v2803_v12 = vmax.f32 %v2547_v57, 0.0  ;;  %v2508_v39 = vadd.f32 %v7848_v50, %v2210_v38  ;;  %v2756_v5 = vmax.f32 %v2500_v47, 0.0  ;;  %v5880_v38 = vld [vmem:[#allocation2 + $0x190] ss:$8 sps:$4 sm:$0xff]  }
 0x31b   : > { %v8017_v7 = vpop.eup %6037  ;;  %6043 = vrsqrt.f32 %v1821_v51  ;;  %3959 = vmatmul.mubr.bf16.gmra.mrb[48].mxu0 %v3010_v4  ;;  %v2554_v58 = vadd.f32 %v7828_v61, %v2256_v15  ;;  %v2802_v19 = vmax.f32 %v2546_v36, 0.0  ;;  %v1929_v18 = vmul.f32 %v7936_v56, %v6992_v2  ;;  %v5885_v4 = vld [vmem:[#allocation2 + $0x1a4] ss:$8 sps:$4 sm:$0xff]  }
 0x31c   : > { %10089 = vst [vmem:[#allocation123_spill] sm:$0xff] %v8017_v7  ;;  %v2811_v42 = vmax.f32 %v2555_v53, 0.0  ;;  %v1967_v13 = vmul.f32 %v8017_v7, %v10090_v35  ;;  %v1966_v25 = vmul.f32 %v8017_v7, %v10091_v40  ;;  %4096 = vmatpush1.bf16.msra.mxu0 %v5877_v17  ;;  %v2764_v11 = vmax.f32 %v2508_v39, 0.0  ;;  %v10093_v53 = vld [vmem:[#allocation58_spill] sm:$0xff]  ;;  %v10094_v39 = vld [vmem:[#allocation57_spill] sm:$0xff] }
 0x31d   : > { %v8026_v22 = vpop.eup %6039  ;;  %v2810_v57 = vmax.f32 %v2554_v58, 0.0  ;;  %4097 = vmatprep.subr.bf16.mxu0 %v5882_v60  ;;  %v2219_v47 = vmul.f32 %v7820_v54, %v1921_v62  ;;  %v2227_v51 = vmul.f32 %v7820_v54, %v1929_v18  ;;  %v1920_v2 = vmul.f32 %v7928_v45, %v6975_v26 }
 0x31e   : > { %10092 = vst [vmem:[#allocation17_spill] sm:$0xff] %v8026_v22  ;;  %v1670_v15 = vpop.xlane.xlu0 %1669  ;;  %v3019_v36 = vpack.c.bf16 %v2811_v42, %v2803_v12  ;;  %v1975_v35 = vmul.f32 %v8026_v22, %v10093_v53  ;;  %v2265_v17 = vmul.f32 %v7815_v28, %v1967_v13  ;;  %v1974_v40 = vmul.f32 %v8026_v22, %v10094_v39  ;;  %v5883_v53 = vld [vmem:[#allocation2 + $0x1a0] ss:$8 sps:$4 sm:$0xff]  }
 0x31f   : > { %v1822_v58 = vadd.f32 1e-12, %v1670_v15  ;;  %v3018_v60 = vpack.c.bf16 %v2810_v57, %v2802_v19  ;;  %v2264_v1 = vmul.f32 %v7818_v43, %v1966_v25  ;;  %v8038_v62 = vpack.c.bf16 %v2764_v11, %v2756_v5  ;;  %v5888_v19 = vld [vmem:[#allocation2 + $0x1b4] ss:$8 sps:$4 sm:$0xff]  }
 0x320   : > { %3968 = vmatprep.mubr.bf16.mxu0 %v3019_v36  ;;  %v1679_v18 = vpop.xlane.xlu1 %1678  ;;  %v2273_v26 = vmul.f32 %v7815_v28, %v1975_v35  ;;  %v2563_v12 = vadd.f32 %v7825_v3, %v2265_v17  ;;  %v2272_v42 = vmul.f32 %v7818_v43, %v1974_v40  ;;  %4098 = vmatpush1.bf16.msra.mxu0 %v5880_v38  ;;  %v10096_v40 = vld [vmem:[#allocation66_spill] sm:$0xff] }
 0x321   : > { %6045 = vrsqrt.f32 %v1822_v58  ;;  %v1823_v13 = vadd.f32 1e-12, %v1679_v18  ;;  %v2562_v39 = vadd.f32 %v7828_v61, %v2264_v1  ;;  %4099 = vmatprep.subr.bf16.mxu0 %v5885_v4  ;;  %v2517_v25 = vadd.f32 %v7840_v32, %v2219_v47  ;;  %v10097_v58 = vld [vmem:[#allocation64_spill] sm:$0xff] }
 0x322   : > { %v2571_v5 = vadd.f32 %v7825_v3, %v2273_v26  ;;  %v2819_v11 = vmax.f32 %v2563_v12, 0.0  ;;  %v2570_v57 = vadd.f32 %v7828_v61, %v2272_v42  ;;  %v2525_v15 = vadd.f32 %v7840_v32, %v2227_v51  ;;  %v5886_v26 = vld [vmem:[#allocation2 + $0x1b0] ss:$8 sps:$4 sm:$0xff]   ;;  %v5891_v12 = vld [vmem:[#allocation2 + $0x1c4] ss:$8 sps:$4 sm:$0xff]  }
 0x323   : > { %v8048_v36 = vpop.eup %6041  ;;  %6047 = vrsqrt.f32 %v1823_v13  ;;  %3969 = vmatmul.mubr.bf16.gmra.mrb[52].mxu0 %v3018_v60  ;;  %v2818_v38 = vmax.f32 %v2562_v39, 0.0  ;;  %v2773_v35 = vmax.f32 %v2517_v25, 0.0  ;;  %v1928_v1 = vmul.f32 %v7936_v56, %v6985_v34  ;;  %v10145_v56 = vld [vmem:[#allocation112_spill] sm:$0xff] }
 0x324   : > { %10095 = vst [vmem:[#allocation16_spill] sm:$0xff] %v8048_v36  ;;  %v2827_v4 = vmax.f32 %v2571_v5, 0.0  ;;  %v2826_v17 = vmax.f32 %v2570_v57, 0.0  ;;  %v1983_v47 = vmul.f32 %v8048_v36, %v10096_v40  ;;  %v1982_v18 = vmul.f32 %v8048_v36, %v10097_v58  ;;  %4100 = vmatpush1.bf16.msra.mxu0 %v5883_v53  ;;  %v10099_v57 = vld [vmem:[#allocation68_spill] sm:$0xff] }
 0x325   : > { %v8056_v51 = vpop.eup %6043  ;;  %4101 = vmatprep.subr.bf16.mxu0 %v5888_v19  ;;  %v2781_v60 = vmax.f32 %v2525_v15, 0.0  ;;  %v2218_v42 = vmul.f32 %v7830_v63, %v1920_v2  ;;  %v2226_v13 = vmul.f32 %v7830_v63, %v1928_v1  ;;  %v1937_v34 = vmul.f32 %v7957_v27, %v7014_v37 }
 0x326   : > { %10098 = vst [vmem:[#allocation19_spill] sm:$0xff] %v8056_v51  ;;  %v1688_v39 = vpop.xlane.xlu0 %1687  ;;  %v3027_v25 = vpack.c.bf16 %v2827_v4, %v2819_v11  ;;  %v3026_v5 = vpack.c.bf16 %v2826_v17, %v2818_v38  ;;  %v1991_v40 = vmul.f32 %v8056_v51, %v10099_v57  ;;  %v2281_v53 = vmul.f32 %v7815_v28, %v1983_v47  ;;  %v5889_v38 = vld [vmem:[#allocation2 + $0x1c0] ss:$8 sps:$4 sm:$0xff]  }
 0x327   : > { %v1824_v58 = vadd.f32 1e-12, %v1688_v39  ;;  %v1990_v19 = vmul.f32 %v8056_v51, %v10100_v10  ;;  %v2280_v15 = vmul.f32 %v7818_v43, %v1982_v18  ;;  %v8068_v2 = vpack.c.bf16 %v2781_v60, %v2773_v35  ;;  %v5894_v18 = vld [vmem:[#allocation2 + $0x1d4] ss:$8 sps:$4 sm:$0xff]  }
 0x328   : > { %3978 = vmatprep.mubr.bf16.mxu0 %v3027_v25  ;;  %v1697_v1 = vpop.xlane.xlu1 %1696  ;;  %v2289_v37 = vmul.f32 %v7815_v28, %v1991_v40  ;;  %v2579_v11 = vadd.f32 %v7825_v3, %v2281_v53  ;;  %4102 = vmatpush1.bf16.msra.mxu0 %v5886_v26  ;;  %v2516_v4 = vadd.f32 %v7848_v50, %v2218_v42 }
 0x329   : > { %6049 = vrsqrt.f32 %v1824_v58  ;;  %v1825_v17 = vadd.f32 1e-12, %v1697_v1  ;;  %v2288_v47 = vmul.f32 %v7818_v43, %v1990_v19  ;;  %v2578_v10 = vadd.f32 %v7828_v61, %v2280_v15  ;;  %4103 = vmatprep.subr.bf16.mxu0 %v5891_v12  ;;  %v10101_v58 = vld [vmem:[#allocation76_spill] sm:$0xff]  ;;  %v10102_v19 = vld [vmem:[#allocation74_spill] sm:$0xff] }
 0x32a   : > { %v2587_v35 = vadd.f32 %v7825_v3, %v2289_v37  ;;  %v2835_v60 = vmax.f32 %v2579_v11, 0.0  ;;  %v2524_v39 = vadd.f32 %v7848_v50, %v2226_v13  ;;  %v2772_v25 = vmax.f32 %v2516_v4, 0.0  ;;  %v5892_v13 = vld [vmem:[#allocation2 + $0x1d0] ss:$8 sps:$4 sm:$0xff]  }
 0x32b   : > { %v8077_v57 = vpop.eup %6045  ;;  %6051 = vrsqrt.f32 %v1825_v17  ;;  %3979 = vmatmul.mubr.bf16.gmra.mrb[56].mxu0 %v3026_v5  ;;  %v2586_v26 = vadd.f32 %v7828_v61, %v2288_v47  ;;  %v2834_v42 = vmax.f32 %v2578_v10, 0.0  ;;  %v1945_v40 = vmul.f32 %v7966_v16, %v7025_v49  ;;  %v5897_v5 = vld [vmem:[#allocation2 + $0x1e4] ss:$8 sps:$4 sm:$0xff]  }
 0x32c   : > { %v2843_v53 = vmax.f32 %v2587_v35, 0.0  ;;  %v1999_v12 = vmul.f32 %v8077_v57, %v10101_v58  ;;  %v1998_v15 = vmul.f32 %v8077_v57, %v10102_v19  ;;  %4104 = vmatpush1.bf16.msra.mxu0 %v5889_v38  ;;  %v2780_v1 = vmax.f32 %v2524_v39, 0.0  ;;  %v10103_v35 = vld [vmem:[#allocation78_spill] sm:$0xff]  ;;  %v10104_v39 = vld [vmem:[#allocation77_spill] sm:$0xff] }
 0x32d   : > { %v8086_v37 = vpop.eup %6047  ;;  %v2842_v11 = vmax.f32 %v2586_v26, 0.0  ;;  %4105 = vmatprep.subr.bf16.mxu0 %v5894_v18  ;;  %v2235_v4 = vmul.f32 %v7820_v54, %v1937_v34  ;;  %v2243_v17 = vmul.f32 %v7820_v54, %v1945_v40  ;;  %v1936_v49 = vmul.f32 %v7957_v27, %v7008_v46 }
 0x32e   : > { %v1706_v47 = vpop.xlane.xlu0 %1705  ;;  %v3035_v10 = vpack.c.bf16 %v2843_v53, %v2835_v60  ;;  %v2007_v58 = vmul.f32 %v8086_v37, %v10103_v35  ;;  %v2297_v38 = vmul.f32 %v7815_v28, %v1999_v12  ;;  %v2006_v19 = vmul.f32 %v8086_v37, %v10104_v39  ;;  %v5895_v35 = vld [vmem:[#allocation2 + $0x1e0] ss:$8 sps:$4 sm:$0xff]  }
 0x32f   : > { %v1826_v26 = vadd.f32 1e-12, %v1706_v47  ;;  %v3034_v18 = vpack.c.bf16 %v2842_v11, %v2834_v42  ;;  %v2296_v8 = vmul.f32 %v7818_v43, %v1998_v15  ;;  %v8098_v34 = vpack.c.bf16 %v2780_v1, %v2772_v25  ;;  %v5900_v15 = vld [vmem:[#allocation2 + $0x1f4] ss:$8 sps:$4 sm:$0xff]  }
 0x330   : > { %3988 = vmatprep.mubr.bf16.mxu0 %v3035_v10  ;;  %v1715_v40 = vpop.xlane.xlu1 %1714  ;;  %v2305_v46 = vmul.f32 %v7815_v28, %v2007_v58  ;;  %v2595_v60 = vadd.f32 %v7825_v3, %v2297_v38  ;;  %v2304_v53 = vmul.f32 %v7818_v43, %v2006_v19  ;;  %4106 = vmatpush1.bf16.msra.mxu0 %v5892_v13  ;;  %v10105_v19 = vld [vmem:[#allocation125_spill] sm:$0xff] }
 0x331   : > { %6053 = vrsqrt.f32 %v1826_v26  ;;  %v1827_v39 = vadd.f32 1e-12, %v1715_v40  ;;  %v2594_v42 = vadd.f32 %v7828_v61, %v2296_v8  ;;  %4107 = vmatprep.subr.bf16.mxu0 %v5897_v5  ;;  %v2533_v25 = vadd.f32 %v7840_v32, %v2235_v4  ;;  %v10106_v40 = vld [vmem:[#allocation86_spill] sm:$0xff] }
 0x332   : > { %v2603_v1 = vadd.f32 %v7825_v3, %v2305_v46  ;;  %v2851_v11 = vmax.f32 %v2595_v60, 0.0  ;;  %v2602_v47 = vadd.f32 %v7828_v61, %v2304_v53  ;;  %v2541_v10 = vadd.f32 %v7840_v32, %v2243_v17  ;;  %v10107_v46 = vld [vmem:[#allocation84_spill] sm:$0xff] }
 0x333   : > { %v8109_v58 = vpop.eup %6049  ;;  %6055 = vrsqrt.f32 %v1827_v39  ;;  %3989 = vmatmul.mubr.bf16.gmra.mrb[60].mxu0 %v3034_v18  ;;  %v2850_v13 = vmax.f32 %v2594_v42, 0.0  ;;  %v2789_v38 = vmax.f32 %v2533_v25, 0.0  ;;  %v1944_v8 = vmul.f32 %v7966_v16, %v10105_v19  ;;  %v5898_v53 = vld [vmem:[#allocation2 + $0x1f0] ss:$8 sps:$4 sm:$0xff]   ;;  %v5903_v39 = vld [vmem:[#allocation2 + $0x204] ss:$8 sps:$4 sm:$0xff]  }
 0x334   : > { %v2859_v5 = vmax.f32 %v2603_v1, 0.0  ;;  %v2858_v26 = vmax.f32 %v2602_v47, 0.0  ;;  %v2015_v4 = vmul.f32 %v8109_v58, %v10106_v40  ;;  %v2014_v60 = vmul.f32 %v8109_v58, %v10107_v46  ;;  %4108 = vmatpush1.bf16.msra.mxu0 %v5895_v35  ;;  %v10108_v19 = vld [vmem:[#allocation127_spill] sm:$0xff] }
 0x335   : > { %v8117_v17 = vpop.eup %6051  ;;  %4109 = vmatprep.subr.bf16.mxu0 %v5900_v15  ;;  %v2797_v18 = vmax.f32 %v2541_v10, 0.0  ;;  %v2234_v42 = vmul.f32 %v7830_v63, %v1936_v49  ;;  %v2242_v25 = vmul.f32 %v7830_v63, %v1944_v8  ;;  %v1953_v1 = vmul.f32 %v7988_v0, %v10108_v19 }
 0x336   : > { %v1724_v47 = vpop.xlane.xlu0 %1723  ;;  %v3043_v12 = vpack.c.bf16 %v2859_v5, %v2851_v11  ;;  %v3042_v40 = vpack.c.bf16 %v2858_v26, %v2850_v13  ;;  %v2023_v46 = vmul.f32 %v8117_v17, %v10109_v31  ;;  %v2313_v35 = vmul.f32 %v7815_v28, %v2015_v4  ;;  %v10116_v31 = vld [vmem:[#allocation92_spill] sm:$0xff] }
 0x337   : > { %v1828_v23 = vadd.f32 1e-12, %v1724_v47  ;;  %v2022_v15 = vmul.f32 %v8117_v17, %v10110_v24  ;;  %v2312_v10 = vmul.f32 %v7818_v43, %v2014_v60  ;;  %v8129_v49 = vpack.c.bf16 %v2797_v18, %v2789_v38 }
 0x338   : > { %3998 = vmatprep.mubr.bf16.mxu0 %v3043_v12  ;;  %v1733_v8 = vpop.xlane.xlu1 %1732  ;;  %v2321_v19 = vmul.f32 %v7815_v28, %v2023_v46  ;;  %v2611_v11 = vadd.f32 %v7825_v3, %v2313_v35  ;;  %4110 = vmatpush1.bf16.msra.mxu0 %v5898_v53  ;;  %v2532_v13 = vadd.f32 %v7848_v50, %v2234_v42  ;;  %v10112_v35 = vld [vmem:[#allocation91_spill] sm:$0xff] }
 0x339   : > { %6057 = vrsqrt.f32 %v1828_v23  ;;  %v1829_v5 = vadd.f32 1e-12, %v1733_v8  ;;  %v2320_v26 = vmul.f32 %v7818_v43, %v2022_v15  ;;  %v2610_v24 = vadd.f32 %v7828_v61, %v2312_v10  ;;  %4272 = vmatprep.subr.bf16.mxu0 %v5903_v39  ;;  %v10111_v23 = vld [vmem:[#allocation129_spill] sm:$0xff]  ;;  %v10113_v15 = vld [vmem:[#allocation90_spill] sm:$0xff] }
 0x33a   : > { %v2619_v38 = vadd.f32 %v7825_v3, %v2321_v19  ;;  %v2867_v12 = vmax.f32 %v2611_v11, 0.0  ;;  %v2540_v4 = vadd.f32 %v7848_v50, %v2242_v25  ;;  %v2788_v60 = vmax.f32 %v2532_v13, 0.0  ;;  %v10114_v13 = vld [vmem:[#allocation126_spill] sm:$0xff] }
 0x33b   : > { %v8139_v18 = vpop.eup %6053  ;;  %6059 = vrsqrt.f32 %v1829_v5  ;;  %3999 = vmatmul.mubr.bf16.gmra.mrb[64].mxu0 %v3042_v40  ;;  %v2618_v53 = vadd.f32 %v7828_v61, %v2320_v26  ;;  %v2866_v42 = vmax.f32 %v2610_v24, 0.0  ;;  %v1961_v47 = vmul.f32 %v7996_v48, %v10111_v23 }
 0x33c   : > { %v2875_v46 = vmax.f32 %v2619_v38, 0.0  ;;  %v2031_v39 = vmul.f32 %v8139_v18, %v10112_v35  ;;  %v2030_v10 = vmul.f32 %v8139_v18, %v10113_v15  ;;  %v2796_v8 = vmax.f32 %v2540_v4, 0.0  ;;  %v10115_v38 = vld [vmem:[#allocation93_spill] sm:$0xff] }
 0x33d   : > { %v8148_v25 = vpop.eup %6055  ;;  %v2874_v19 = vmax.f32 %v2618_v53, 0.0  ;;  %v2251_v11 = vmul.f32 %v7820_v54, %v1953_v1  ;;  %v2259_v40 = vmul.f32 %v7820_v54, %v1961_v47  ;;  %v1952_v5 = vmul.f32 %v7988_v0, %v10114_v13  ;;  %v10124_v0 = vld [vmem:[#allocation97_spill] sm:$0xff] }
 0x33e   : > { %v1742_v26 = vpop.xlane.xlu0 %1741  ;;  %v3051_v24 = vpack.c.bf16 %v2875_v46, %v2867_v12  ;;  %v2039_v23 = vmul.f32 %v8148_v25, %v10115_v38  ;;  %v2329_v35 = vmul.f32 %v7815_v28, %v2031_v39  ;;  %v2038_v4 = vmul.f32 %v8148_v25, %v10116_v31 }
 0x33f   : > { %v1830_v15 = vadd.f32 1e-12, %v1742_v26  ;;  %v3050_v16 = vpack.c.bf16 %v2874_v19, %v2866_v42  ;;  %v2328_v53 = vmul.f32 %v7818_v43, %v2030_v10  ;;  %v8160_v1 = vpack.c.bf16 %v2796_v8, %v2788_v60 }
 0x340   : > { %4008 = vmatprep.mubr.bf16.mxu0 %v3051_v24  ;;  %v1751_v47 = vpop.xlane.xlu1 %1750  ;;  %v2337_v13 = vmul.f32 %v7815_v28, %v2039_v23  ;;  %v2627_v12 = vadd.f32 %v7825_v3, %v2329_v35  ;;  %v2336_v46 = vmul.f32 %v7818_v43, %v2038_v4  ;;  %v2549_v38 = vadd.f32 %v7840_v32, %v2251_v11  ;;  %v10118_v35 = vld [vmem:[#allocation128_spill] sm:$0xff] }
 0x341   : > { %10117 = vst [vmem:[#allocation18_spill] sm:$0xff] %v8160_v1  ;;  %6061 = vrsqrt.f32 %v1830_v15  ;;  %v1831_v39 = vadd.f32 1e-12, %v1751_v47  ;;  %v2626_v31 = vadd.f32 %v7828_v61, %v2328_v53  ;;  %v2557_v42 = vadd.f32 %v7840_v32, %v2259_v40  ;;  %v10119_v53 = vld [vmem:[#allocation96_spill] sm:$0xff]  ;;  %v10120_v47 = vld [vmem:[#allocation95_spill] sm:$0xff] }
 0x342   : > { %v2635_v10 = vadd.f32 %v7825_v3, %v2337_v13  ;;  %v2883_v60 = vmax.f32 %v2627_v12, 0.0  ;;  %v2634_v8 = vadd.f32 %v7828_v61, %v2336_v46  ;;  %v2805_v19 = vmax.f32 %v2549_v38, 0.0 }
 0x343   : > { %v8170_v26 = vpop.eup %6057  ;;  %6063 = vrsqrt.f32 %v1831_v39  ;;  %4009 = vmatmul.mubr.bf16.gmra.mrb[68].mxu0 %v3050_v16  ;;  %v2882_v24 = vmax.f32 %v2626_v31, 0.0  ;;  %v2813_v23 = vmax.f32 %v2557_v42, 0.0  ;;  %v1960_v11 = vmul.f32 %v7996_v48, %v10118_v35  ;;  %v10122_v39 = vld [vmem:[#allocation131_spill] sm:$0xff]  ;;  %v10123_v35 = vld [vmem:[#allocation98_spill] sm:$0xff] }
 0x344   : > { %v2891_v4 = vmax.f32 %v2635_v10, 0.0  ;;  %v2890_v15 = vmax.f32 %v2634_v8, 0.0  ;;  %v2047_v40 = vmul.f32 %v8170_v26, %v10119_v53  ;;  %v2046_v13 = vmul.f32 %v8170_v26, %v10120_v47 }
 0x345   : > { %v8178_v12 = vpop.eup %6059  ;;  %v8180_v46 = vpack.c.bf16 %v2813_v23, %v2805_v19  ;;  %v2250_v38 = vmul.f32 %v7830_v63, %v1952_v5  ;;  %v2258_v16 = vmul.f32 %v7830_v63, %v1960_v11  ;;  %v1969_v31 = vmul.f32 %v8017_v7, %v10122_v39 }
 0x346   : > { %v1760_v42 = vpop.xlane.xlu0 %1759  ;;  %v3059_v10 = vpack.c.bf16 %v2891_v4, %v2883_v60  ;;  %v3058_v8 = vpack.c.bf16 %v2890_v15, %v2882_v24  ;;  %v2055_v53 = vmul.f32 %v8178_v12, %v10123_v35  ;;  %v2345_v48 = vmul.f32 %v7815_v28, %v2047_v40  ;;  %v10125_v4 = vld [vmem:[#allocation59_spill] sm:$0xff] }
 0x347   : > { %10121 = vst [vmem:[#allocation24_spill] sm:$0xff] %v8180_v46  ;;  %v1832_v47 = vadd.f32 1e-12, %v1760_v42  ;;  %v2054_v19 = vmul.f32 %v8178_v12, %v10124_v0  ;;  %v2344_v23 = vmul.f32 %v7818_v43, %v2046_v13  ;;  %v2548_v5 = vadd.f32 %v7848_v50, %v2250_v38 }
 0x348   : > { %4018 = vmatprep.mubr.bf16.mxu0 %v3059_v10  ;;  %v1769_v11 = vpop.xlane.xlu1 %1768  ;;  %v2353_v39 = vmul.f32 %v7815_v28, %v2055_v53  ;;  %v2643_v60 = vadd.f32 %v7825_v3, %v2345_v48  ;;  %v2556_v24 = vadd.f32 %v7848_v50, %v2258_v16  ;;  %v1977_v15 = vmul.f32 %v8026_v22, %v10125_v4  ;;  %v10127_v4 = vld [vmem:[#allocation100_spill] sm:$0xff] }
 0x349   : > { %6065 = vrsqrt.f32 %v1832_v47  ;;  %v1833_v40 = vadd.f32 1e-12, %v1769_v11  ;;  %v2352_v42 = vmul.f32 %v7818_v43, %v2054_v19  ;;  %v2642_v0 = vadd.f32 %v7828_v61, %v2344_v23  ;;  %v10126_v11 = vld [vmem:[#allocation101_spill] sm:$0xff] }
 0x34a   : > { %v2651_v13 = vadd.f32 %v7825_v3, %v2353_v39  ;;  %v2899_v38 = vmax.f32 %v2643_v60, 0.0  ;;  %v2804_v10 = vmax.f32 %v2548_v5, 0.0  ;;  %v2812_v35 = vmax.f32 %v2556_v24, 0.0 }
 0x34b   : > { %v8201_v27 = vpop.eup %6061  ;;  %6067 = vrsqrt.f32 %v1833_v40  ;;  %4019 = vmatmul.mubr.bf16.gmra.mrb[72].mxu0 %v3058_v8  ;;  %v2650_v48 = vadd.f32 %v7828_v61, %v2352_v42  ;;  %v2898_v16 = vmax.f32 %v2642_v0, 0.0  ;;  %v2267_v53 = vmul.f32 %v7820_v54, %v1969_v31  ;;  %v10129_v40 = vld [vmem:[#allocation130_spill] sm:$0xff] }
 0x34c   : > { %v2907_v47 = vmax.f32 %v2651_v13, 0.0  ;;  %v2063_v19 = vmul.f32 %v8201_v27, %v10126_v11  ;;  %v2062_v23 = vmul.f32 %v8201_v27, %v10127_v4  ;;  %v8209_v39 = vpack.c.bf16 %v2812_v35, %v2804_v10  ;;  %v10130_v13 = vld [vmem:[#allocation103_spill] sm:$0xff]  ;;  %v10131_v4 = vld [vmem:[#allocation102_spill] sm:$0xff] }
 0x34d   : > { %v8211_v5 = vpop.eup %6063  ;;  %v2906_v60 = vmax.f32 %v2650_v48, 0.0  ;;  %v2275_v24 = vmul.f32 %v7820_v54, %v1977_v15  ;;  %v2565_v8 = vadd.f32 %v7840_v32, %v2267_v53  ;;  %v1968_v42 = vmul.f32 %v8017_v7, %v10129_v40 }
 0x34e   : > { %10128 = vst [vmem:[#allocation22_spill] sm:$0xff] %v8209_v39  ;;  %v1778_v31 = vpop.xlane.xlu0 %1777  ;;  %v3067_v0 = vpack.c.bf16 %v2907_v47, %v2899_v38  ;;  %v2071_v11 = vmul.f32 %v8211_v5, %v10130_v13  ;;  %v2361_v46 = vmul.f32 %v7815_v28, %v2063_v19  ;;  %v2070_v10 = vmul.f32 %v8211_v5, %v10131_v4 }
 0x34f   : > { %v1834_v35 = vadd.f32 1e-12, %v1778_v31  ;;  %v3066_v39 = vpack.c.bf16 %v2906_v60, %v2898_v16  ;;  %v2360_v48 = vmul.f32 %v7818_v43, %v2062_v23  ;;  %v2573_v15 = vadd.f32 %v7840_v32, %v2275_v24  ;;  %v10132_v24 = vld [vmem:[#allocation132_spill] sm:$0xff] }
 0x350   : > { %4028 = vmatprep.mubr.bf16.mxu0 %v3067_v0  ;;  %v1787_v53 = vpop.xlane.xlu1 %1786  ;;  %v2369_v40 = vmul.f32 %v7815_v28, %v2071_v11  ;;  %v2659_v38 = vadd.f32 %v7825_v3, %v2361_v46  ;;  %v2368_v47 = vmul.f32 %v7818_v43, %v2070_v10  ;;  %v2821_v13 = vmax.f32 %v2565_v8, 0.0 }
 0x351   : > { %6069 = vrsqrt.f32 %v1834_v35  ;;  %v1835_v19 = vadd.f32 1e-12, %v1787_v53  ;;  %v2658_v7 = vadd.f32 %v7828_v61, %v2360_v48  ;;  %v2829_v4 = vmax.f32 %v2573_v15, 0.0  ;;  %v10134_v48 = vld [vmem:[#allocation106_spill] sm:$0xff]  ;;  %v10135_v53 = vld [vmem:[#allocation105_spill] sm:$0xff] }
 0x352   : > { %v2667_v16 = vadd.f32 %v7825_v3, %v2369_v40  ;;  %v2915_v60 = vmax.f32 %v2659_v38, 0.0  ;;  %v2666_v23 = vadd.f32 %v7828_v61, %v2368_v47  ;;  %v1976_v31 = vmul.f32 %v8026_v22, %v10132_v24  ;;  %v10138_v24 = vld [vmem:[#allocation108_spill] sm:$0xff] }
 0x353   : > { %v8232_v0 = vpop.eup %6065  ;;  %6071 = vrsqrt.f32 %v1835_v19  ;;  %4029 = vmatmul.mubr.bf16.gmra.mrb[76].mxu0 %v3066_v39  ;;  %v2914_v46 = vmax.f32 %v2658_v7, 0.0  ;;  %v8234_v11 = vpack.c.bf16 %v2829_v4, %v2821_v13  ;;  %v2266_v8 = vmul.f32 %v7830_v63, %v1968_v42  ;;  %v10136_v39 = vld [vmem:[#allocation5_spill] sm:$0xff] }
 0x354   : > { %v2923_v10 = vmax.f32 %v2667_v16, 0.0  ;;  %v2922_v35 = vmax.f32 %v2666_v23, 0.0  ;;  %v2079_v15 = vmul.f32 %v8232_v0, %v10134_v48  ;;  %v2078_v40 = vmul.f32 %v8232_v0, %v10135_v53  ;;  %v10137_v13 = vld [vmem:[#allocation69_spill] sm:$0xff] }
 0x355   : > { %10133 = vst [vmem:[#allocation26_spill] sm:$0xff] %v8234_v11  ;;  %v8241_v38 = vpop.eup %6067  ;;  %v2274_v47 = vmul.f32 %v7830_v63, %v1976_v31  ;;  %v2564_v19 = vadd.f32 %v7848_v50, %v2266_v8  ;;  %v1985_v7 = vmul.f32 %v8048_v36, %v10136_v39  ;;  %v1993_v42 = vmul.f32 %v8056_v51, %v10137_v13  ;;  %v10139_v11 = vld [vmem:[#allocation107_spill] sm:$0xff] }
 0x356   : > { %v1796_v4 = vpop.xlane.xlu0 %1795  ;;  %v3075_v16 = vpack.c.bf16 %v2923_v10, %v2915_v60  ;;  %v3074_v23 = vpack.c.bf16 %v2922_v35, %v2914_v46  ;;  %v2087_v48 = vmul.f32 %v8241_v38, %v10138_v24  ;;  %v2377_v53 = vmul.f32 %v7815_v28, %v2079_v15 }
 0x357   : > { %v1836_v22 = vadd.f32 1e-12, %v1796_v4  ;;  %v2086_v31 = vmul.f32 %v8241_v38, %v10139_v11  ;;  %v2376_v8 = vmul.f32 %v7818_v43, %v2078_v40  ;;  %v2572_v1 = vadd.f32 %v7848_v50, %v2274_v47 }
 0x358   : > { %4038 = vmatprep.mubr.bf16.mxu0 %v3075_v16  ;;  %v1805_v39 = vpop.xlane.xlu1 %1804  ;;  %v2385_v13 = vmul.f32 %v7815_v28, %v2087_v48  ;;  %v2675_v60 = vadd.f32 %v7825_v3, %v2377_v53  ;;  %v2820_v46 = vmax.f32 %v2564_v19, 0.0  ;;  %v2283_v10 = vmul.f32 %v7820_v54, %v1985_v7  ;;  %v10140_v53 = vld [vmem:[#allocation111_spill] sm:$0xff] }
 0x359   : > { %6073 = vrsqrt.f32 %v1836_v22  ;;  %v1837_v35 = vadd.f32 1e-12, %v1805_v39  ;;  %v2384_v15 = vmul.f32 %v7818_v43, %v2086_v31  ;;  %v2674_v4 = vadd.f32 %v7828_v61, %v2376_v8  ;;  %v10141_v8 = vld [vmem:[#allocation110_spill] sm:$0xff] }
 0x35a   : > { %v2683_v11 = vadd.f32 %v7825_v3, %v2385_v13  ;;  %v2931_v40 = vmax.f32 %v2675_v60, 0.0  ;;  %v2828_v24 = vmax.f32 %v2572_v1, 0.0  ;;  %v2291_v47 = vmul.f32 %v7820_v54, %v1993_v42 }
 0x35b   : > { %v8263_v16 = vpop.eup %6069  ;;  %6075 = vrsqrt.f32 %v1837_v35  ;;  %4039 = vmatmul.mubr.bf16.gmra.mrb[80].mxu0 %v3074_v23  ;;  %v2682_v19 = vadd.f32 %v7828_v61, %v2384_v15  ;;  %v2930_v48 = vmax.f32 %v2674_v4, 0.0  ;;  %v2581_v22 = vadd.f32 %v7840_v32, %v2283_v10  ;;  %v10143_v35 = vld [vmem:[#allocation62_spill] sm:$0xff]  ;;  %v10144_v10 = vld [vmem:[#allocation113_spill] sm:$0xff] }
 0x35c   : > { %v2939_v7 = vmax.f32 %v2683_v11, 0.0  ;;  %v2095_v31 = vmul.f32 %v8263_v16, %v10140_v53  ;;  %v2094_v39 = vmul.f32 %v8263_v16, %v10141_v8  ;;  %v8271_v13 = vpack.c.bf16 %v2828_v24, %v2820_v46 }
 0x35d   : > { %v8273_v1 = vpop.eup %6071  ;;  %v2938_v42 = vmax.f32 %v2682_v19, 0.0  ;;  %v2589_v60 = vadd.f32 %v7840_v32, %v2291_v47  ;;  %v2837_v23 = vmax.f32 %v2581_v22, 0.0  ;;  %v1984_v15 = vmul.f32 %v8048_v36, %v10143_v35  ;;  %v10146_v19 = vld [vmem:[#allocation133_spill] sm:$0xff]  ;;  %v10152_v36 = vld [vmem:[#allocation118_spill] sm:$0xff] }
 0x35e   : > { %10142 = vst [vmem:[#allocation25_spill] sm:$0xff] %v8271_v13  ;;  %v3083_v4 = vpack.c.bf16 %v2939_v7, %v2931_v40  ;;  %v2103_v11 = vmul.f32 %v8273_v1, %v10144_v10  ;;  %v2393_v53 = vmul.f32 %v7815_v28, %v2095_v31  ;;  %v2102_v8 = vmul.f32 %v8273_v1, %v10145_v56 }
 0x35f   : > { %v3082_v46 = vpack.c.bf16 %v2938_v42, %v2930_v48  ;;  %v2392_v24 = vmul.f32 %v7818_v43, %v2094_v39  ;;  %v2845_v13 = vmax.f32 %v2589_v60, 0.0  ;;  %v1992_v47 = vmul.f32 %v8056_v51, %v10146_v19  ;;  %v10148_v48 = vld [vmem:[#allocation6_spill] sm:$0xff] }
 0x360   : > { %4048 = vmatprep.mubr.bf16.mxu0 %v3083_v4  ;;  %v2401_v22 = vmul.f32 %v7815_v28, %v2103_v11  ;;  %v2691_v40 = vadd.f32 %v7825_v3, %v2393_v53  ;;  %v2400_v7 = vmul.f32 %v7818_v43, %v2102_v8  ;;  %v2282_v35 = vmul.f32 %v7830_v63, %v1984_v15 }
 0x361   : > { %v2690_v31 = vadd.f32 %v7828_v61, %v2392_v24  ;;  %v8291_v10 = vpack.c.bf16 %v2845_v13, %v2837_v23  ;;  %v2290_v56 = vmul.f32 %v7830_v63, %v1992_v47  ;;  %v2001_v39 = vmul.f32 %v8077_v57, %v10148_v48  ;;  %v10149_v13 = vld [vmem:[#allocation79_spill] sm:$0xff]  ;;  %v10150_v48 = vld [vmem:[#allocation116_spill] sm:$0xff] }
 0x362   : > { %v2699_v42 = vadd.f32 %v7825_v3, %v2401_v22  ;;  %v2947_v60 = vmax.f32 %v2691_v40, 0.0  ;;  %v2698_v4 = vadd.f32 %v7828_v61, %v2400_v7  ;;  %v2580_v11 = vadd.f32 %v7848_v50, %v2282_v35  ;;  %v10151_v40 = vld [vmem:[#allocation115_spill] sm:$0xff] }
 0x363   : > { %10147 = vst [vmem:[#allocation32_spill] sm:$0xff] %v8291_v10  ;;  %v8299_v53 = vpop.eup %6073  ;;  %4049 = vmatmul.mubr.bf16.gmra.mrb[84].mxu0 %v3082_v46  ;;  %v2946_v15 = vmax.f32 %v2690_v31, 0.0  ;;  %v2588_v8 = vadd.f32 %v7848_v50, %v2290_v56  ;;  %v2009_v23 = vmul.f32 %v8086_v37, %v10149_v13  ;;  %v2299_v24 = vmul.f32 %v7820_v54, %v2001_v39 }
 0x364   : > { %v2955_v19 = vmax.f32 %v2699_v42, 0.0  ;;  %v2954_v47 = vmax.f32 %v2698_v4, 0.0  ;;  %v2111_v22 = vmul.f32 %v8299_v53, %v10150_v48  ;;  %v2110_v7 = vmul.f32 %v8299_v53, %v10151_v40  ;;  %v10153_v4 = vld [vmem:[#allocation117_spill] sm:$0xff] }
 0x365   : > { %v8309_v35 = vpop.eup %6075  ;;  %v2836_v51 = vmax.f32 %v2580_v11, 0.0  ;;  %v2844_v46 = vmax.f32 %v2588_v8, 0.0  ;;  %v2307_v31 = vmul.f32 %v7820_v54, %v2009_v23  ;;  %v2597_v56 = vadd.f32 %v7840_v32, %v2299_v24  ;;  %v10154_v23 = vld [vmem:[#allocation72_spill] sm:$0xff] }
 0x366   : > { %v3091_v10 = vpack.c.bf16 %v2955_v19, %v2947_v60  ;;  %v3090_v13 = vpack.c.bf16 %v2954_v47, %v2946_v15  ;;  %v2119_v39 = vmul.f32 %v8309_v35, %v10152_v36  ;;  %v2409_v42 = vmul.f32 %v7815_v28, %v2111_v22  ;;  %v10155_v22 = vld [vmem:[#allocation134_spill] sm:$0xff] }
 0x367   : > { %v2118_v48 = vmul.f32 %v8309_v35, %v10153_v4  ;;  %v2408_v40 = vmul.f32 %v7818_v43, %v2110_v7  ;;  %v8319_v45 = vpack.c.bf16 %v2844_v46, %v2836_v51  ;;  %v2605_v11 = vadd.f32 %v7840_v32, %v2307_v31 }
 0x368   : > { %4058 = vmatprep.mubr.bf16.mxu0 %v3091_v10  ;;  %v2417_v8 = vmul.f32 %v7815_v28, %v2119_v39  ;;  %v2707_v60 = vadd.f32 %v7825_v3, %v2409_v42  ;;  %v2853_v15 = vmax.f32 %v2597_v56, 0.0  ;;  %v2000_v36 = vmul.f32 %v8077_v57, %v10154_v23  ;;  %v10156_v28 = vld [vmem:[#allocation7_spill] sm:$0xff]  ;;  %v10158_v23 = vld [vmem:[#allocation81_spill] sm:$0xff] }
 0x369   : > { %v2416_v24 = vmul.f32 %v7818_v43, %v2118_v48  ;;  %v2706_v19 = vadd.f32 %v7828_v61, %v2408_v40  ;;  %v2861_v47 = vmax.f32 %v2605_v11, 0.0  ;;  %v2008_v51 = vmul.f32 %v8086_v37, %v10155_v22  ;;  %v10157_v40 = vld [vmem:[#allocation136_spill] sm:$0xff] }
 0x36a   : > { %v2715_v7 = vadd.f32 %v7825_v3, %v2417_v8  ;;  %v2963_v46 = vmax.f32 %v2707_v60, 0.0  ;;  %v2298_v10 = vmul.f32 %v7830_v63, %v2000_v36  ;;  %v2017_v31 = vmul.f32 %v8109_v58, %v10156_v28 }
 0x36b   : > { %4059 = vmatmul.mubr.bf16.gmra.mrb[88].mxu0 %v3090_v13  ;;  %v2714_v56 = vadd.f32 %v7828_v61, %v2416_v24  ;;  %v2962_v39 = vmax.f32 %v2706_v19, 0.0  ;;  %v8335_v42 = vpack.c.bf16 %v2861_v47, %v2853_v15  ;;  %v2306_v43 = vmul.f32 %v7830_v63, %v2008_v51  ;;  %v10159_v61 = vld [vmem:[#allocation135_spill] sm:$0xff] }
 0x36c   : > { %v2971_v4 = vmax.f32 %v2715_v7, 0.0  ;;  %v2596_v48 = vadd.f32 %v7848_v50, %v2298_v10  ;;  %v2025_v3 = vmul.f32 %v8117_v17, %v10157_v40  ;;  %v2315_v11 = vmul.f32 %v7820_v54, %v2017_v31  ;;  %v10161_v40 = vld [vmem:[#allocation138_spill] sm:$0xff] }
 0x36d   : > { %v2970_v8 = vmax.f32 %v2714_v56, 0.0  ;;  %v2604_v60 = vadd.f32 %v7848_v50, %v2306_v43  ;;  %v2016_v13 = vmul.f32 %v8109_v58, %v10158_v23  ;;  %v2024_v15 = vmul.f32 %v8117_v17, %v10159_v61  ;;  %v10160_v56 = vld [vmem:[#allocation8_spill] sm:$0xff] }
 0x36e   : > { %v3099_v36 = vpack.c.bf16 %v2971_v4, %v2963_v46  ;;  %v2852_v24 = vmax.f32 %v2596_v48, 0.0  ;;  %v2323_v19 = vmul.f32 %v7820_v54, %v2025_v3  ;;  %v2613_v47 = vadd.f32 %v7840_v32, %v2315_v11  ;;  %v10162_v3 = vld [vmem:[#allocation89_spill] sm:$0xff] }
 0x36f   : > { %v3098_v22 = vpack.c.bf16 %v2970_v8, %v2962_v39  ;;  %v2860_v51 = vmax.f32 %v2604_v60, 0.0  ;;  %v2314_v7 = vmul.f32 %v7830_v63, %v2016_v13  ;;  %v2322_v10 = vmul.f32 %v7830_v63, %v2024_v15  ;;  %v10163_v13 = vld [vmem:[#allocation137_spill] sm:$0xff] }
 0x370   : > { %4068 = vmatprep.mubr.bf16.mxu0 %v3099_v36  ;;  %v2621_v28 = vadd.f32 %v7840_v32, %v2323_v19  ;;  %v2869_v31 = vmax.f32 %v2613_v47, 0.0  ;;  %v2033_v43 = vmul.f32 %v8139_v18, %v10160_v56  ;;  %v2041_v46 = vmul.f32 %v8148_v25, %v10161_v40  ;;  %v10164_v19 = vld [vmem:[#allocation9_spill] sm:$0xff] }
 0x371   : > { %v8356_v4 = vpack.c.bf16 %v2860_v51, %v2852_v24  ;;  %v2612_v48 = vadd.f32 %v7848_v50, %v2314_v7  ;;  %v2620_v39 = vadd.f32 %v7848_v50, %v2322_v10  ;;  %v2032_v11 = vmul.f32 %v8139_v18, %v10162_v3 }
 0x372   : > { %v2877_v8 = vmax.f32 %v2621_v28, 0.0  ;;  %v2331_v60 = vmul.f32 %v7820_v54, %v2033_v43  ;;  %v2339_v23 = vmul.f32 %v7820_v54, %v2041_v46  ;;  %v2040_v61 = vmul.f32 %v8148_v25, %v10163_v13  ;;  %v10165_v43 = vld [vmem:[#allocation140_spill] sm:$0xff] }
 0x373   : > { %4069 = vmatmul.mubr.bf16.gmra.mrb[92].mxu0 %v3098_v22  ;;  %v2868_v15 = vmax.f32 %v2612_v48, 0.0  ;;  %v2876_v36 = vmax.f32 %v2620_v39, 0.0  ;;  %v2330_v24 = vmul.f32 %v7830_v63, %v2032_v11  ;;  %v2049_v47 = vmul.f32 %v8170_v26, %v10164_v19  ;;  %v10168_v19 = vld [vmem:[#allocation10_spill] sm:$0xff] }
 0x374   : > { %4111 = vmatprep.mubr.bf16.mxu0 %v7893_v9  ;;  %v8370_v51 = vpack.c.bf16 %v2877_v8, %v2869_v31  ;;  %v2629_v7 = vadd.f32 %v7840_v32, %v2331_v60  ;;  %v2637_v10 = vadd.f32 %v7840_v32, %v2339_v23  ;;  %v2338_v28 = vmul.f32 %v7830_v63, %v2040_v61  ;;  %v10166_v31 = vld [vmem:[#allocation94_spill] sm:$0xff]  ;;  %v10167_v23 = vld [vmem:[#allocation139_spill] sm:$0xff] }
 0x375   : > { %v8375_v56 = vpack.c.bf16 %v2876_v36, %v2868_v15  ;;  %v2628_v22 = vadd.f32 %v7848_v50, %v2330_v24  ;;  %v2057_v40 = vmul.f32 %v8178_v12, %v10165_v43  ;;  %v2347_v46 = vmul.f32 %v7820_v54, %v2049_v47  ;;  %v5901_v61 = vld [vmem:[#allocation2 + $0x200] ss:$8 sps:$4 sm:$0xff]  }
 0x376   : > { %v2885_v48 = vmax.f32 %v2629_v7, 0.0  ;;  %v2893_v39 = vmax.f32 %v2637_v10, 0.0  ;;  %v2636_v9 = vadd.f32 %v7848_v50, %v2338_v28  ;;  %v2048_v3 = vmul.f32 %v8170_v26, %v10166_v31  ;;  %v5906_v7 = vld [vmem:[#allocation2 + $0x214] ss:$8 sps:$4 sm:$0xff]   ;;  %v10169_v43 = vld [vmem:[#allocation142_spill] sm:$0xff] }
 0x377   : > { %v2884_v11 = vmax.f32 %v2628_v22, 0.0  ;;  %v2355_v8 = vmul.f32 %v7820_v54, %v2057_v40  ;;  %v2645_v60 = vadd.f32 %v7840_v32, %v2347_v46  ;;  %v2056_v13 = vmul.f32 %v8178_v12, %v10167_v23  ;;  %v10171_v23 = vld [vmem:[#allocation141_spill] sm:$0xff] }
 0x378   : > { %v8388_v15 = vpack.c.bf16 %v2893_v39, %v2885_v48  ;;  %v2892_v36 = vmax.f32 %v2636_v9, 0.0  ;;  %v2346_v24 = vmul.f32 %v7830_v63, %v2048_v3  ;;  %v2065_v47 = vmul.f32 %v8201_v27, %v10168_v19  ;;  %v10170_v9 = vld [vmem:[#allocation99_spill] sm:$0xff] }
 0x379   : > { %v2653_v10 = vadd.f32 %v7840_v32, %v2355_v8  ;;  %v2901_v28 = vmax.f32 %v2645_v60, 0.0  ;;  %v2354_v22 = vmul.f32 %v7830_v63, %v2056_v13  ;;  %v2073_v40 = vmul.f32 %v8211_v5, %v10169_v43 }
 0x37a   : > { %v8397_v46 = vpack.c.bf16 %v2892_v36, %v2884_v11  ;;  %v2644_v48 = vadd.f32 %v7848_v50, %v2346_v24  ;;  %v2363_v39 = vmul.f32 %v7820_v54, %v2065_v47  ;;  %v2064_v31 = vmul.f32 %v8201_v27, %v10170_v9  ;;  %v5904_v11 = vld [vmem:[#allocation2 + $0x210] ss:$8 sps:$4 sm:$0xff]  }
 0x37b   : > { %4112 = vmatmul.mubr.bf16.vlgmr.msra.gmra.mrb[32].mxu0 %v7905_v14  ;;  %v2909_v3 = vmax.f32 %v2653_v10, 0.0  ;;  %v2652_v8 = vadd.f32 %v7848_v50, %v2354_v22  ;;  %v2371_v60 = vmul.f32 %v7820_v54, %v2073_v40  ;;  %v2072_v13 = vmul.f32 %v8211_v5, %v10171_v23  ;;  %v10172_v47 = vld [vmem:[#allocation11_spill] sm:$0xff]  ;;  %v5909_v10 = vld [vmem:[#allocation2 + $0x224] ss:$8 sps:$4 sm:$0xff]  }
 0x37c   : > { %4121 = vmatprep.mubr.bf16.mxu0 %v7948_v59  ;;  %4273 = vmatpush1.bf16.msra.mxu0 %v5901_v61  ;;  %v2900_v36 = vmax.f32 %v2644_v48, 0.0  ;;  %v2661_v24 = vadd.f32 %v7840_v32, %v2363_v39  ;;  %v2362_v19 = vmul.f32 %v7830_v63, %v2064_v31  ;;  %v2081_v14 = vmul.f32 %v8232_v0, %v10172_v47  ;;  %v10173_v48 = vld [vmem:[#allocation144_spill] sm:$0xff] }
 0x37d   : > { %4274 = vmatprep.subr.bf16.mxu0 %v5906_v7  ;;  %v8413_v22 = vpack.c.bf16 %v2909_v3, %v2901_v28  ;;  %v2908_v43 = vmax.f32 %v2652_v8, 0.0  ;;  %v2669_v40 = vadd.f32 %v7840_v32, %v2371_v60  ;;  %v2370_v9 = vmul.f32 %v7830_v63, %v2072_v13  ;;  %v10175_v28 = vld [vmem:[#allocation104_spill] sm:$0xff]  ;;  %v5907_v8 = vld [vmem:[#allocation2 + $0x220] ss:$8 sps:$4 sm:$0xff]  }
 0x37e   : > { %v2917_v59 = vmax.f32 %v2661_v24, 0.0  ;;  %v2660_v61 = vadd.f32 %v7848_v50, %v2362_v19  ;;  %v2089_v39 = vmul.f32 %v8241_v38, %v10173_v48  ;;  %v2379_v31 = vmul.f32 %v7820_v54, %v2081_v14  ;;  %v10176_v19 = vld [vmem:[#allocation143_spill] sm:$0xff] }
 0x37f   : > { %v8421_v23 = vpack.c.bf16 %v2908_v43, %v2900_v36  ;;  %v2925_v47 = vmax.f32 %v2669_v40, 0.0  ;;  %v2668_v7 = vadd.f32 %v7848_v50, %v2370_v9  ;;  %v2080_v3 = vmul.f32 %v8232_v0, %v10175_v28  ;;  %v5912_v14 = vld [vmem:[#allocation2 + $0x234] ss:$8 sps:$4 sm:$0xff]   ;;  %v10177_v9 = vld [vmem:[#allocation145_spill] sm:$0xff] }
 0x380   : > { %4275 = vmatpush1.bf16.msra.mxu0 %v5904_v11  ;;  %v2916_v60 = vmax.f32 %v2660_v61, 0.0  ;;  %v2387_v13 = vmul.f32 %v7820_v54, %v2089_v39  ;;  %v2677_v24 = vadd.f32 %v7840_v32, %v2379_v31  ;;  %v2088_v48 = vmul.f32 %v8241_v38, %v10176_v19 }
 0x381   : > { %10174 = vst [vmem:[#allocation30_spill] sm:$0xff] %v8421_v23  ;;  %4276 = vmatprep.subr.bf16.mxu0 %v5909_v10  ;;  %v8430_v36 = vpack.c.bf16 %v2925_v47, %v2917_v59  ;;  %v2924_v43 = vmax.f32 %v2668_v7, 0.0  ;;  %v2378_v40 = vmul.f32 %v7830_v63, %v2080_v3  ;;  %v2097_v28 = vmul.f32 %v8263_v16, %v10177_v9  ;;  %v10178_v23 = vld [vmem:[#allocation147_spill] sm:$0xff]  ;;  %v10180_v7 = vld [vmem:[#allocation109_spill] sm:$0xff] }
 0x382   : > { %v2685_v11 = vadd.f32 %v7840_v32, %v2387_v13  ;;  %v2933_v61 = vmax.f32 %v2677_v24, 0.0  ;;  %v2386_v39 = vmul.f32 %v7830_v63, %v2088_v48  ;;  %v2105_v31 = vmul.f32 %v8273_v1, %v10178_v23  ;;  %v5910_v13 = vld [vmem:[#allocation2 + $0x230] ss:$8 sps:$4 sm:$0xff]   ;;  %v10181_v48 = vld [vmem:[#allocation146_spill] sm:$0xff] }
 0x383   : > { %4122 = vmatmul.mubr.bf16.gmra.mrb[36].mxu0 %v7978_v41  ;;  %v8440_v10 = vpack.c.bf16 %v2924_v43, %v2916_v60  ;;  %v2676_v59 = vadd.f32 %v7848_v50, %v2378_v40  ;;  %v2395_v47 = vmul.f32 %v7820_v54, %v2097_v28  ;;  %v2096_v3 = vmul.f32 %v8263_v16, %v10180_v7  ;;  %v5915_v60 = vld [vmem:[#allocation2 + $0x244] ss:$8 sps:$4 sm:$0xff]   ;;  %v10182_v28 = vld [vmem:[#allocation148_spill] sm:$0xff] }
 0x384   : > { %4131 = vmatprep.mubr.bf16.mxu0 %v8008_v44  ;;  %4277 = vmatpush1.bf16.msra.mxu0 %v5907_v8  ;;  %v2941_v24 = vmax.f32 %v2685_v11, 0.0  ;;  %v2684_v19 = vadd.f32 %v7848_v50, %v2386_v39  ;;  %v2403_v23 = vmul.f32 %v7820_v54, %v2105_v31  ;;  %v2104_v41 = vmul.f32 %v8273_v1, %v10181_v48 }
 0x385   : > { %10179 = vst [vmem:[#allocation34_spill] sm:$0xff] %v8440_v10  ;;  %4278 = vmatprep.subr.bf16.mxu0 %v5912_v14  ;;  %v2932_v43 = vmax.f32 %v2676_v59, 0.0  ;;  %v2693_v40 = vadd.f32 %v7840_v32, %v2395_v47  ;;  %v2394_v9 = vmul.f32 %v7830_v63, %v2096_v3  ;;  %v2113_v44 = vmul.f32 %v8299_v53, %v10182_v28  ;;  %v10183_v14 = vld [vmem:[#allocation119_spill] sm:$0xff]  ;;  %v5913_v3 = vld [vmem:[#allocation2 + $0x240] ss:$8 sps:$4 sm:$0xff]  }
 0x386   : > { %v8455_v8 = vpack.c.bf16 %v2941_v24, %v2933_v61  ;;  %v2940_v11 = vmax.f32 %v2684_v19, 0.0  ;;  %v2701_v39 = vadd.f32 %v7840_v32, %v2403_v23  ;;  %v2402_v31 = vmul.f32 %v7830_v63, %v2104_v41  ;;  %v10185_v24 = vld [vmem:[#allocation114_spill] sm:$0xff]  ;;  %v5918_v23 = vld [vmem:[#allocation2 + $0x254] ss:$8 sps:$4 sm:$0xff]  }
 0x387   : > { %v2949_v7 = vmax.f32 %v2693_v40, 0.0  ;;  %v2692_v48 = vadd.f32 %v7848_v50, %v2394_v9  ;;  %v2121_v59 = vmul.f32 %v8309_v35, %v10183_v14  ;;  %v2411_v47 = vmul.f32 %v7820_v54, %v2113_v44  ;;  %v10186_v14 = vld [vmem:[#allocation149_spill] sm:$0xff] }
 0x388   : > { %4279 = vmatpush1.bf16.msra.mxu0 %v5910_v13  ;;  %v8463_v10 = vpack.c.bf16 %v2940_v11, %v2932_v43  ;;  %v2957_v28 = vmax.f32 %v2701_v39, 0.0  ;;  %v2700_v61 = vadd.f32 %v7848_v50, %v2402_v31  ;;  %v2112_v19 = vmul.f32 %v8299_v53, %v10185_v24  ;;  %v10188_v39 = vld [vmem:[#allocation23_spill] sm:$0xff] }
 0x389   : > { %4280 = vmatprep.subr.bf16.mxu0 %v5915_v60  ;;  %v2948_v41 = vmax.f32 %v2692_v48, 0.0  ;;  %v2419_v40 = vmul.f32 %v7820_v54, %v2121_v59  ;;  %v2709_v9 = vadd.f32 %v7840_v32, %v2411_v47  ;;  %v2120_v44 = vmul.f32 %v8309_v35, %v10186_v14  ;;  %v8483_v59 = vld [vmem:[%s9469_s2] sm:$0xff] }
 0x38a   : > { %10184 = vst [vmem:[#allocation33_spill] sm:$0xff] %v8463_v10  ;;  %v8472_v13 = vpack.c.bf16 %v2957_v28, %v2949_v7  ;;  %v2956_v43 = vmax.f32 %v2700_v61, 0.0  ;;  %v2410_v11 = vmul.f32 %v7830_v63, %v2112_v19  ;;  %v1883_v31 = vmul.f32 %v7845_v55, %v10188_v39  ;;  %v5916_v28 = vld [vmem:[#allocation2 + $0x250] ss:$8 sps:$4 sm:$0xff]   ;;  %v10213_v10 = vld [vmem:[#allocation18_spill] sm:$0xff] }
 0x38b   : > { %4132 = vmatmul.mubr.bf16.gmra.mrb[40].mxu0 %v8038_v62  ;;  %v2717_v60 = vadd.f32 %v7840_v32, %v2419_v40  ;;  %v2965_v48 = vmax.f32 %v2709_v9, 0.0  ;;  %v2418_v54 = vmul.f32 %v7830_v63, %v2120_v44  ;;  %v10189_v7 = vsub.s32 5, %v7798_v52  ;;  %v8497_v63 = vld [vmem:[%s9470_s3] sm:$0xff]  ;;  %v10192_v44 = vld [vmem:[#allocation20_spill] sm:$0xff] }
 0x38c   : > { %10187 = vst [vmem:[#allocation40_spill] sm:$0xff] %v8472_v13  ;;  %4141 = vmatprep.mubr.bf16.mxu0 %v8068_v2  ;;  %4281 = vmatpush1.bf16.msra.mxu0 %v5913_v3  ;;  %v8491_v62 = vpack.c.bf16 %v2956_v43, %v2948_v41  ;;  %v2708_v32 = vadd.f32 %v7848_v50, %v2410_v11  ;;  %v5921_v2 = vld [vmem:[#allocation2 + $0x264] ss:$8 sps:$4 sm:$0xff]  }
 0x38d   : > { %v8488_v47 = vrot.slane %v8483_v59, %v10189_v7  ;;  %v10191_v61 = vmov %v10189_v7  ;;  %4282 = vmatprep.subr.bf16.mxu0 %v5918_v23  ;;  %v2973_v3 = vmax.f32 %v2717_v60, 0.0  ;;  %v2716_v41 = vadd.f32 %v7848_v50, %v2418_v54  ;;  %v10193_v11 = vld [vmem:[#allocation21_spill] sm:$0xff]  ;;  %v10212_v13 = vld [vmem:[#allocation122_spill] sm:$0xff] }
 0x38e   : > { %10190 = vst [vmem:[#allocation38_spill] sm:$0xff] %v8491_v62  ;;  %v8502_v24 = vrot.slane %v8497_v63, %v10191_v61  ;;  %v2964_v14 = vmax.f32 %v2708_v32, 0.0  ;;  %v1874_v43 = vmul.f32 %v7822_v33, %v10192_v44  ;;  %v1882_v39 = vmul.f32 %v7845_v55, %v10193_v11 }
 0x38f   : > { %v2173_v40 = vmul.f32 %v8488_v47, %v7852_v21  ;;  %v2181_v9 = vmul.f32 %v8488_v47, %v1883_v31  ;;  %v10194_v7 = vsub.s32 4, %v7798_v52  ;;  %v8518_v60 = vpack.c.bf16 %v2973_v3, %v2965_v48  ;;  %v5919_v31 = vld [vmem:[#allocation2 + $0x260] ss:$8 sps:$4 sm:$0xff]   ;;  %v5924_v3 = vld [vmem:[#allocation2 + $0x274] ss:$8 sps:$4 sm:$0xff]  }
 0x390   : > { %v2972_v50 = vmax.f32 %v2716_v41, 0.0  ;;  %4283 = vmatpush1.bf16.msra.mxu0 %v5916_v28  ;;  %v10199_v28 = vld [vmem:[#allocation31_spill] sm:$0xff] }
 0x391   : > { %v8516_v23 = vrot.slane %v8483_v59, %v10194_v7  ;;  %10195 = vst [vmem:[#allocation42_spill] sm:$0xff] %v8518_v60  ;;  %v2471_v54 = vadd.f32 %v8502_v24, %v2173_v40  ;;  %v2479_v21 = vadd.f32 %v8502_v24, %v2181_v9  ;;  %v10196_v44 = vmov %v10194_v7  ;;  %v10197_v7 = vld [vmem:[#allocation28_spill] sm:$0xff] }
 0x392   : > { %v8527_v11 = vrot.slane %v8497_v63, %v10196_v44  ;;  %v1891_v48 = vmul.f32 %v7865_v20, %v10197_v7  ;;  %4284 = vmatprep.subr.bf16.mxu0 %v5921_v2  ;;  %v8531_v41 = vpack.c.bf16 %v2972_v50, %v2964_v14  ;;  %v1899_v19 = vmul.f32 %v7883_v29, %v10199_v28  ;;  %v10200_v44 = vld [vmem:[#allocation27_spill] sm:$0xff]  ;;  %v10202_v50 = vld [vmem:[#allocation29_spill] sm:$0xff] }
 0x393   : > { %v2172_v32 = vmul.f32 %v8516_v23, %v1874_v43  ;;  %v2180_v61 = vmul.f32 %v8516_v23, %v1882_v39  ;;  %v2727_v40 = vmax.f32 %v2471_v54, 0.0  ;;  %v2735_v9 = vmax.f32 %v2479_v21, 0.0  ;;  %4142 = vmatmul.mubr.bf16.gmra.mrb[44].mxu0 %v8098_v34  ;;  %v10203_v21 = vld [vmem:[#allocation36_spill] sm:$0xff] }
 0x394   : > { %10198 = vst [vmem:[#allocation41_spill] sm:$0xff] %v8531_v41  ;;  %v2189_v60 = vmul.f32 %v8488_v47, %v1891_v48  ;;  %v1890_v62 = vmul.f32 %v7865_v20, %v10200_v44  ;;  %v2197_v14 = vmul.f32 %v8488_v47, %v1899_v19  ;;  %v1898_v54 = vmul.f32 %v7883_v29, %v10202_v50  ;;  %v10204_v44 = vld [vmem:[#allocation39_spill] sm:$0xff]  ;;  %v10207_v41 = vld [vmem:[#allocation37_spill] sm:$0xff] }
 0x395   : > { %v2470_v43 = vadd.f32 %v8527_v11, %v2172_v32  ;;  %v2478_v39 = vadd.f32 %v8527_v11, %v2180_v61  ;;  %v8541_v2 = vpack.c.bf16 %v2735_v9, %v2727_v40  ;;  %v1907_v7 = vmul.f32 %v7895_v6, %v10203_v21  ;;  %4151 = vmatprep.mubr.bf16.mxu0 %v8129_v49  ;;  %v5922_v32 = vld [vmem:[#allocation2 + $0x270] ss:$8 sps:$4 sm:$0xff]   ;;  %v5927_v40 = vld [vmem:[#allocation2 + $0x284] ss:$8 sps:$4 sm:$0xff]  }
 0x396   : > { %4285 = vmatpush1.bf16.msra.mxu0 %v5919_v31  ;;  %v2487_v28 = vadd.f32 %v8502_v24, %v2189_v60  ;;  %v2188_v34 = vmul.f32 %v8516_v23, %v1890_v62  ;;  %v2495_v19 = vadd.f32 %v8502_v24, %v2197_v14  ;;  %v2196_v9 = vmul.f32 %v8516_v23, %v1898_v54 }
 0x397   : > { %10201 = vst [vmem:[#allocation48_spill] sm:$0xff] %v8541_v2  ;;  %v2726_v61 = vmax.f32 %v2470_v43, 0.0  ;;  %v2734_v48 = vmax.f32 %v2478_v39, 0.0  ;;  %4286 = vmatprep.subr.bf16.mxu0 %v5924_v3  ;;  %v1915_v50 = vmul.f32 %v7907_v30, %v10204_v44  ;;  %v2205_v21 = vmul.f32 %v8488_v47, %v1907_v7  ;;  %v10206_v39 = vld [vmem:[#allocation35_spill] sm:$0xff]  ;;  %v5925_v2 = vld [vmem:[#allocation2 + $0x280] ss:$8 sps:$4 sm:$0xff]  }
 0x398   : > { %v2743_v31 = vmax.f32 %v2487_v28, 0.0  ;;  %v2486_v43 = vadd.f32 %v8527_v11, %v2188_v34  ;;  %v1906_v60 = vmul.f32 %v7895_v6, %v10206_v39  ;;  %v2751_v62 = vmax.f32 %v2495_v19, 0.0  ;;  %v10209_v28 = vld [vmem:[#allocation12_spill] sm:$0xff] }
 0x399   : > { %v8556_v49 = vpack.c.bf16 %v2734_v48, %v2726_v61  ;;  %v2494_v3 = vadd.f32 %v8527_v11, %v2196_v9  ;;  %v2213_v14 = vmul.f32 %v8488_v47, %v1915_v50  ;;  %v2503_v54 = vadd.f32 %v8502_v24, %v2205_v21  ;;  %v10208_v48 = vld [vmem:[#allocation44_spill] sm:$0xff] }
 0x39a   : > { %4287 = vmatpush1.bf16.msra.mxu0 %v5922_v32  ;;  %v2742_v44 = vmax.f32 %v2486_v43, 0.0  ;;  %v1914_v7 = vmul.f32 %v7907_v30, %v10207_v41  ;;  %v2204_v61 = vmul.f32 %v8516_v23, %v1906_v60  ;;  %v1923_v34 = vmul.f32 %v10209_v28, %v10208_v48  ;;  %v5930_v39 = vld [vmem:[#allocation2 + $0x294] ss:$8 sps:$4 sm:$0xff]  }
 0x39b   : > { %10205 = vst [vmem:[#allocation46_spill] sm:$0xff] %v8556_v49  ;;  %4288 = vmatprep.subr.bf16.mxu0 %v5927_v40  ;;  %v8569_v19 = vpack.c.bf16 %v2751_v62, %v2743_v31  ;;  %v2750_v9 = vmax.f32 %v2494_v3, 0.0  ;;  %v2511_v50 = vadd.f32 %v8502_v24, %v2213_v14  ;;  %v2759_v49 = vmax.f32 %v2503_v54, 0.0  ;;  %v10211_v43 = vld [vmem:[#allocation47_spill] sm:$0xff]  ;;  %4152 = vmatmul.mubr.bf16.gmra.mrb[48].mxu0 %v10213_v10  ;;  %v10216_v3 = vld [vmem:[#allocation45_spill] sm:$0xff]  ;;  %v10217_v54 = vld [vmem:[#allocation24_spill] sm:$0xff] }
 0x39c   : > { %v2212_v32 = vmul.f32 %v8516_v23, %v1914_v7  ;;  %v2502_v21 = vadd.f32 %v8527_v11, %v2204_v61  ;;  %v1931_v41 = vmul.f32 %v10212_v13, %v10211_v43  ;;  %v2221_v60 = vmul.f32 %v8488_v47, %v1923_v34  ;;  %v10215_v31 = vld [vmem:[#allocation43_spill] sm:$0xff]  ;;  %4161 = vmatprep.mubr.bf16.mxu0 %v10217_v54 }
 0x39d   : > { %10210 = vst [vmem:[#allocation50_spill] sm:$0xff] %v8569_v19  ;;  %v8578_v48 = vpack.c.bf16 %v2750_v9, %v2742_v44  ;;  %v2767_v40 = vmax.f32 %v2511_v50, 0.0  ;;  %v1922_v62 = vmul.f32 %v10209_v28, %v10215_v31  ;;  %v1930_v14 = vmul.f32 %v10212_v13, %v10216_v3  ;;  %v5928_v7 = vld [vmem:[#allocation2 + $0x290] ss:$8 sps:$4 sm:$0xff]   ;;  %v5933_v44 = vld [vmem:[#allocation2 + $0x2a4] ss:$8 sps:$4 sm:$0xff]  }
 0x39e   : > { %4289 = vmatpush1.bf16.msra.mxu0 %v5925_v2  ;;  %v2510_v61 = vadd.f32 %v8527_v11, %v2212_v32  ;;  %v2758_v43 = vmax.f32 %v2502_v21, 0.0  ;;  %v2229_v34 = vmul.f32 %v8488_v47, %v1931_v41  ;;  %v2519_v10 = vadd.f32 %v8502_v24, %v2221_v60  ;;  %v10219_v3 = vld [vmem:[#allocation52_spill] sm:$0xff]  ;;  %v10221_v21 = vld [vmem:[#allocation55_spill] sm:$0xff] }
 0x39f   : > { %10214 = vst [vmem:[#allocation49_spill] sm:$0xff] %v8578_v48  ;;  %4290 = vmatprep.subr.bf16.mxu0 %v5930_v39  ;;  %v8588_v9 = vpack.c.bf16 %v2767_v40, %v2759_v49  ;;  %v2220_v50 = vmul.f32 %v8516_v23, %v1922_v62  ;;  %v2228_v31 = vmul.f32 %v8516_v23, %v1930_v14  ;;  %v10220_v48 = vld [vmem:[#allocation121_spill] sm:$0xff]  ;;  %v10222_v13 = vld [vmem:[#allocation15_spill] sm:$0xff] }
 0x3a0   : > { %v1939_v54 = vmul.f32 %v10220_v48, %v10219_v3  ;;  %v2766_v2 = vmax.f32 %v2510_v61, 0.0  ;;  %v2527_v19 = vadd.f32 %v8502_v24, %v2229_v34  ;;  %v2775_v32 = vmax.f32 %v2519_v10, 0.0  ;;  %v10223_v40 = vld [vmem:[#allocation51_spill] sm:$0xff]  ;;  %v5931_v14 = vld [vmem:[#allocation2 + $0x2a0] ss:$8 sps:$4 sm:$0xff]  }
 0x3a1   : > { %10218 = vst [vmem:[#allocation56_spill] sm:$0xff] %v8588_v9  ;;  %v1947_v41 = vmul.f32 %v10222_v13, %v10221_v21  ;;  %v2518_v60 = vadd.f32 %v8527_v11, %v2220_v50  ;;  %v2526_v39 = vadd.f32 %v8527_v11, %v2228_v31  ;;  %v1938_v62 = vmul.f32 %v10220_v48, %v10223_v40  ;;  %v10225_v10 = vld [vmem:[#allocation53_spill] sm:$0xff]  ;;  %v5936_v21 = vld [vmem:[#allocation2 + $0x2b4] ss:$8 sps:$4 sm:$0xff]   ;;  %v10229_v40 = vld [vmem:[#allocation22_spill] sm:$0xff] }
 0x3a2   : > { %v2237_v49 = vmul.f32 %v8488_v47, %v1939_v54  ;;  %4291 = vmatpush1.bf16.msra.mxu0 %v5928_v7  ;;  %v8602_v9 = vpack.c.bf16 %v2766_v2, %v2758_v43  ;;  %v2783_v61 = vmax.f32 %v2527_v19, 0.0  ;;  %v1946_v3 = vmul.f32 %v10222_v13, %v10225_v10  ;;  %v10227_v19 = vld [vmem:[#allocation61_spill] sm:$0xff]  ;;  %v10228_v2 = vld [vmem:[#allocation14_spill] sm:$0xff] }
 0x3a3   : > { %v2245_v34 = vmul.f32 %v8488_v47, %v1947_v41  ;;  %4292 = vmatprep.subr.bf16.mxu0 %v5933_v44  ;;  %v2774_v50 = vmax.f32 %v2518_v60, 0.0  ;;  %v2782_v28 = vmax.f32 %v2526_v39, 0.0  ;;  %v2236_v54 = vmul.f32 %v8516_v23, %v1938_v62  ;;  %4162 = vmatmul.mubr.bf16.gmra.mrb[52].mxu0 %v10229_v40  ;;  %v10231_v39 = vld [vmem:[#allocation65_spill] sm:$0xff]  ;;  %v10233_v62 = vld [vmem:[#allocation26_spill] sm:$0xff] }
 0x3a4   : > { %10224 = vst [vmem:[#allocation54_spill] sm:$0xff] %v8602_v9  ;;  %v2535_v31 = vadd.f32 %v8502_v24, %v2237_v49  ;;  %v8609_v30 = vpack.c.bf16 %v2783_v61, %v2775_v32  ;;  %v2244_v43 = vmul.f32 %v8516_v23, %v1946_v3  ;;  %v1955_v41 = vmul.f32 %v10228_v2, %v10227_v19  ;;  %v10232_v49 = vld [vmem:[#allocation124_spill] sm:$0xff] }
 0x3a5   : > { %v2543_v7 = vadd.f32 %v8502_v24, %v2245_v34  ;;  %v8616_v10 = vpack.c.bf16 %v2782_v28, %v2774_v50  ;;  %v2534_v60 = vadd.f32 %v8527_v11, %v2236_v54  ;;  %v1963_v9 = vmul.f32 %v10232_v49, %v10231_v39  ;;  %4171 = vmatprep.mubr.bf16.mxu0 %v10233_v62  ;;  %v5934_v32 = vld [vmem:[#allocation2 + $0x2b0] ss:$8 sps:$4 sm:$0xff]   ;;  %v5939_v28 = vld [vmem:[#allocation2 + $0x2c4] ss:$8 sps:$4 sm:$0xff]  }
 0x3a6   : > { %10226 = vst [vmem:[#allocation58_spill] sm:$0xff] %v8609_v30  ;;  %v2791_v44 = vmax.f32 %v2535_v31, 0.0  ;;  %4293 = vmatpush1.bf16.msra.mxu0 %v5931_v14  ;;  %v2542_v34 = vadd.f32 %v8527_v11, %v2244_v43  ;;  %v2253_v3 = vmul.f32 %v8488_v47, %v1955_v41  ;;  %v10234_v19 = vld [vmem:[#allocation60_spill] sm:$0xff]  ;;  %v10235_v54 = vld [vmem:[#allocation63_spill] sm:$0xff] }
 0x3a7   : > { %10230 = vst [vmem:[#allocation57_spill] sm:$0xff] %v8616_v10  ;;  %v2799_v61 = vmax.f32 %v2543_v7, 0.0  ;;  %v1954_v40 = vmul.f32 %v10228_v2, %v10234_v19  ;;  %4294 = vmatprep.subr.bf16.mxu0 %v5936_v21  ;;  %v2790_v50 = vmax.f32 %v2534_v60, 0.0  ;;  %v2261_v31 = vmul.f32 %v8488_v47, %v1963_v9  ;;  %v10236_v10 = vld [vmem:[#allocation71_spill] sm:$0xff]  ;;  %v10240_v2 = vld [vmem:[#allocation17_spill] sm:$0xff] }
 0x3a8   : > { %v1962_v39 = vmul.f32 %v10232_v49, %v10235_v54  ;;  %v10237_v62 = vld [vmem:[#allocation123_spill] sm:$0xff]  ;;  %v2798_v7 = vmax.f32 %v2542_v34, 0.0  ;;  %v2551_v43 = vadd.f32 %v8502_v24, %v2253_v3  ;;  %v5937_v54 = vld [vmem:[#allocation2 + $0x2c0] ss:$8 sps:$4 sm:$0xff]  }
 0x3a9   : > { %v1971_v14 = vmul.f32 %v10237_v62, %v10236_v10  ;;  %v8631_v30 = vpack.c.bf16 %v2799_v61, %v2791_v44  ;;  %v2252_v41 = vmul.f32 %v8516_v23, %v1954_v40  ;;  %v2559_v19 = vadd.f32 %v8502_v24, %v2261_v31  ;;  %v10239_v60 = vld [vmem:[#allocation75_spill] sm:$0xff]  ;;  %v10242_v61 = vld [vmem:[#allocation70_spill] sm:$0xff] }
 0x3aa   : > { %v2260_v21 = vmul.f32 %v8516_v23, %v1962_v39  ;;  %v1979_v9 = vmul.f32 %v10240_v2, %v10239_v60  ;;  %4295 = vmatpush1.bf16.msra.mxu0 %v5934_v32  ;;  %v8640_v49 = vpack.c.bf16 %v2798_v7, %v2790_v50  ;;  %v2807_v10 = vmax.f32 %v2551_v43, 0.0  ;;  %v5942_v3 = vld [vmem:[#allocation2 + $0x2d4] ss:$8 sps:$4 sm:$0xff]   ;;  %v10243_v32 = vld [vmem:[#allocation73_spill] sm:$0xff]  ;;  %v10244_v43 = vld [vmem:[#allocation82_spill] sm:$0xff] }
 0x3ab   : > { %10238 = vst [vmem:[#allocation66_spill] sm:$0xff] %v8631_v30  ;;  %v2269_v13 = vmul.f32 %v8488_v47, %v1971_v14  ;;  %v2550_v44 = vadd.f32 %v8527_v11, %v2252_v41  ;;  %v1970_v34 = vmul.f32 %v10237_v62, %v10242_v61  ;;  %4296 = vmatprep.subr.bf16.mxu0 %v5939_v28  ;;  %v2815_v40 = vmax.f32 %v2559_v19, 0.0  ;;  %v10245_v41 = vld [vmem:[#allocation16_spill] sm:$0xff]  ;;  %v10246_v30 = vld [vmem:[#allocation25_spill] sm:$0xff] }
 0x3ac   : > { %10241 = vst [vmem:[#allocation64_spill] sm:$0xff] %v8640_v49  ;;  %v2558_v31 = vadd.f32 %v8527_v11, %v2260_v21  ;;  %v2277_v39 = vmul.f32 %v8488_v47, %v1979_v9  ;;  %v1978_v50 = vmul.f32 %v10240_v2, %v10243_v32  ;;  %v1987_v49 = vmul.f32 %v10245_v41, %v10244_v43  ;;  %v10248_v9 = vld [vmem:[#allocation32_spill] sm:$0xff]  ;;  %v10250_v2 = vld [vmem:[#allocation19_spill] sm:$0xff] }
 0x3ad   : > { %v2567_v60 = vadd.f32 %v8502_v24, %v2269_v13  ;;  %v2806_v14 = vmax.f32 %v2550_v44, 0.0  ;;  %v2268_v7 = vmul.f32 %v8516_v23, %v1970_v34  ;;  %4172 = vmatmul.mubr.bf16.gmra.mrb[56].mxu0 %v10246_v30  ;;  %v8654_v28 = vpack.c.bf16 %v2815_v40, %v2807_v10  ;;  %v5940_v13 = vld [vmem:[#allocation2 + $0x2d0] ss:$8 sps:$4 sm:$0xff]   ;;  %v10249_v34 = vld [vmem:[#allocation85_spill] sm:$0xff] }
 0x3ae   : > { %v2814_v19 = vmax.f32 %v2558_v31, 0.0  ;;  %v2575_v21 = vadd.f32 %v8502_v24, %v2277_v39  ;;  %4181 = vmatprep.mubr.bf16.mxu0 %v10248_v9  ;;  %4297 = vmatpush1.bf16.msra.mxu0 %v5937_v54  ;;  %v2276_v44 = vmul.f32 %v8516_v23, %v1978_v50  ;;  %v1995_v62 = vmul.f32 %v10250_v2, %v10249_v34  ;;  %v5945_v30 = vld [vmem:[#allocation2 + $0x2e4] ss:$8 sps:$4 sm:$0xff]   ;;  %v10251_v39 = vld [vmem:[#allocation80_spill] sm:$0xff]  ;;  %v10252_v9 = vld [vmem:[#allocation83_spill] sm:$0xff] }
 0x3af   : > { %10247 = vst [vmem:[#allocation68_spill] sm:$0xff] %v8654_v28  ;;  %v2823_v61 = vmax.f32 %v2567_v60, 0.0  ;;  %v2566_v32 = vadd.f32 %v8527_v11, %v2268_v7  ;;  %4298 = vmatprep.subr.bf16.mxu0 %v5942_v3  ;;  %v2285_v31 = vmul.f32 %v8488_v47, %v1987_v49  ;;  %v1986_v54 = vmul.f32 %v10245_v41, %v10251_v39 }
 0x3b0   : > { %v8663_v10 = vpack.c.bf16 %v2814_v19, %v2806_v14  ;;  %v2831_v40 = vmax.f32 %v2575_v21, 0.0  ;;  %v2574_v60 = vadd.f32 %v8527_v11, %v2276_v44  ;;  %v2293_v7 = vmul.f32 %v8488_v47, %v1995_v62  ;;  %v10253_v19 = vld [vmem:[#allocation150_spill] sm:$0xff]  ;;  %v10254_v62 = vld [vmem:[#allocation152_spill] sm:$0xff] }
 0x3b1   : > { %v2822_v50 = vmax.f32 %v2566_v32, 0.0  ;;  %v1994_v34 = vmul.f32 %v10250_v2, %v10252_v9  ;;  %v2583_v3 = vadd.f32 %v8502_v24, %v2285_v31  ;;  %v2284_v14 = vmul.f32 %v8516_v23, %v1986_v54  ;;  %v5943_v21 = vld [vmem:[#allocation2 + $0x2e0] ss:$8 sps:$4 sm:$0xff]   ;;  %v10255_v9 = vld [vmem:[#allocation120_spill] sm:$0xff] }
 0x3b2   : > { %v8672_v28 = vpack.c.bf16 %v2831_v40, %v2823_v61  ;;  %v2003_v49 = vmul.f32 %v8077_v57, %v10253_v19  ;;  %4299 = vmatpush1.bf16.msra.mxu0 %v5940_v13  ;;  %v2830_v39 = vmax.f32 %v2574_v60, 0.0  ;;  %v2591_v44 = vadd.f32 %v8502_v24, %v2293_v7  ;;  %v5948_v61 = vld [vmem:[#allocation2 + $0x2f4] ss:$8 sps:$4 sm:$0xff]  }
 0x3b3   : > { %v2292_v32 = vmul.f32 %v8516_v23, %v1994_v34  ;;  %v2011_v43 = vmul.f32 %v8086_v37, %v10254_v62  ;;  %4300 = vmatprep.subr.bf16.mxu0 %v5945_v30  ;;  %v2839_v40 = vmax.f32 %v2583_v3, 0.0  ;;  %v2582_v31 = vadd.f32 %v8527_v11, %v2284_v14  ;;  %v10256_v3 = vld [vmem:[#allocation151_spill] sm:$0xff] }
 0x3b4   : > { %v2301_v54 = vmul.f32 %v8488_v47, %v2003_v49  ;;  %v2002_v19 = vmul.f32 %v8077_v57, %v10255_v9  ;;  %v8686_v13 = vpack.c.bf16 %v2830_v39, %v2822_v50  ;;  %v2847_v60 = vmax.f32 %v2591_v44, 0.0  ;;  %v5946_v50 = vld [vmem:[#allocation2 + $0x2f0] ss:$8 sps:$4 sm:$0xff]  }
 0x3b5   : > { %v2590_v7 = vadd.f32 %v8527_v11, %v2292_v32  ;;  %v2309_v34 = vmul.f32 %v8488_v47, %v2011_v43  ;;  %4182 = vmatmul.mubr.bf16.gmra.mrb[60].mxu0 %v8319_v45  ;;  %v2838_v62 = vmax.f32 %v2582_v31, 0.0  ;;  %v2010_v14 = vmul.f32 %v8086_v37, %v10256_v3  ;;  %v10258_v43 = vld [vmem:[#allocation154_spill] sm:$0xff] }
 0x3b6   : > { %v2599_v30 = vadd.f32 %v8502_v24, %v2301_v54  ;;  %v2300_v49 = vmul.f32 %v8516_v23, %v2002_v19  ;;  %4191 = vmatprep.mubr.bf16.mxu0 %v8335_v42  ;;  %4301 = vmatpush1.bf16.msra.mxu0 %v5943_v21  ;;  %v8696_v39 = vpack.c.bf16 %v2847_v60, %v2839_v40  ;;  %v5951_v31 = vld [vmem:[#allocation2 + $0x304] ss:$8 sps:$4 sm:$0xff]   ;;  %v10259_v19 = vld [vmem:[#allocation156_spill] sm:$0xff] }
 0x3b7   : > { %v2846_v44 = vmax.f32 %v2590_v7, 0.0  ;;  %v2607_v32 = vadd.f32 %v8502_v24, %v2309_v34  ;;  %v2019_v45 = vmul.f32 %v8109_v58, %v10258_v43  ;;  %4302 = vmatprep.subr.bf16.mxu0 %v5948_v61  ;;  %v2308_v9 = vmul.f32 %v8516_v23, %v2010_v14  ;;  %v10260_v7 = vld [vmem:[#allocation153_spill] sm:$0xff] }
 0x3b8   : > { %10257 = vst [vmem:[#allocation67_spill] sm:$0xff] %v8696_v39  ;;  %v2855_v54 = vmax.f32 %v2599_v30, 0.0  ;;  %v2598_v3 = vadd.f32 %v8527_v11, %v2300_v49  ;;  %v2027_v42 = vmul.f32 %v8117_v17, %v10259_v19  ;;  %v2018_v34 = vmul.f32 %v8109_v58, %v10260_v7  ;;  %v10261_v39 = vld [vmem:[#allocation155_spill] sm:$0xff] }
 0x3b9   : > { %v8705_v21 = vpack.c.bf16 %v2846_v44, %v2838_v62  ;;  %v2863_v40 = vmax.f32 %v2607_v32, 0.0  ;;  %v2317_v60 = vmul.f32 %v8488_v47, %v2019_v45  ;;  %v2606_v43 = vadd.f32 %v8527_v11, %v2308_v9  ;;  %v10262_v32 = vld [vmem:[#allocation158_spill] sm:$0xff] }
 0x3ba   : > { %v2854_v61 = vmax.f32 %v2598_v3, 0.0  ;;  %v2325_v30 = vmul.f32 %v8488_v47, %v2027_v42  ;;  %v2026_v14 = vmul.f32 %v8117_v17, %v10261_v39  ;;  %4303 = vmatpush1.bf16.msra.mxu0 %v5946_v50  ;;  %v2316_v44 = vmul.f32 %v8516_v23, %v2018_v34  ;;  %v10263_v42 = vld [vmem:[#allocation160_spill] sm:$0xff] }
 0x3bb   : > { %v8714_v49 = vpack.c.bf16 %v2863_v40, %v2855_v54  ;;  %v2615_v62 = vadd.f32 %v8502_v24, %v2317_v60  ;;  %v2035_v45 = vmul.f32 %v8139_v18, %v10262_v32  ;;  %4465 = vmatprep.subr.bf16.mxu0 %v5951_v31  ;;  %v2862_v19 = vmax.f32 %v2606_v43, 0.0  ;;  %v10264_v40 = vld [vmem:[#allocation157_spill] sm:$0xff] }
 0x3bc   : > { %v2623_v9 = vadd.f32 %v8502_v24, %v2325_v30  ;;  %v2324_v3 = vmul.f32 %v8516_v23, %v2026_v14  ;;  %v2043_v7 = vmul.f32 %v8148_v25, %v10263_v42  ;;  %v2614_v50 = vadd.f32 %v8527_v11, %v2316_v44  ;;  %v10265_v44 = vld [vmem:[#allocation159_spill] sm:$0xff] }
 0x3bd   : > { %v2871_v39 = vmax.f32 %v2615_v62, 0.0  ;;  %v2333_v54 = vmul.f32 %v8488_v47, %v2035_v45  ;;  %v2034_v60 = vmul.f32 %v8139_v18, %v10264_v40  ;;  %4192 = vmatmul.mubr.bf16.gmra.mrb[64].mxu0 %v8356_v4  ;;  %v8729_v34 = vpack.c.bf16 %v2862_v19, %v2854_v61  ;;  %v10266_v19 = vld [vmem:[#allocation162_spill] sm:$0xff] }
 0x3be   : > { %v2879_v31 = vmax.f32 %v2623_v9, 0.0  ;;  %v2622_v43 = vadd.f32 %v8527_v11, %v2324_v3  ;;  %v2341_v30 = vmul.f32 %v8488_v47, %v2043_v7  ;;  %4201 = vmatprep.mubr.bf16.mxu0 %v8370_v51  ;;  %v2870_v14 = vmax.f32 %v2614_v50, 0.0  ;;  %v10267_v50 = vld [vmem:[#allocation164_spill] sm:$0xff] }
 0x3bf   : > { %v2631_v62 = vadd.f32 %v8502_v24, %v2333_v54  ;;  %v2042_v32 = vmul.f32 %v8148_v25, %v10265_v44  ;;  %v2332_v45 = vmul.f32 %v8516_v23, %v2034_v60  ;;  %v2051_v9 = vmul.f32 %v8170_v26, %v10266_v19  ;;  %v10268_v60 = vld [vmem:[#allocation161_spill] sm:$0xff]  ;;  %v10269_v19 = vld [vmem:[#allocation163_spill] sm:$0xff] }
 0x3c0   : > { %v8738_v42 = vpack.c.bf16 %v2879_v31, %v2871_v39  ;;  %v2878_v4 = vmax.f32 %v2622_v43, 0.0  ;;  %v2639_v61 = vadd.f32 %v8502_v24, %v2341_v30  ;;  %v2059_v54 = vmul.f32 %v8178_v12, %v10267_v50 }
 0x3c1   : > { %v2887_v3 = vmax.f32 %v2631_v62, 0.0  ;;  %v2340_v7 = vmul.f32 %v8516_v23, %v2042_v32  ;;  %v2630_v51 = vadd.f32 %v8527_v11, %v2332_v45  ;;  %v2349_v39 = vmul.f32 %v8488_v47, %v2051_v9 }
 0x3c2   : > { %v8747_v40 = vpack.c.bf16 %v2878_v4, %v2870_v14  ;;  %v2895_v44 = vmax.f32 %v2639_v61, 0.0  ;;  %v2050_v31 = vmul.f32 %v8170_v26, %v10268_v60  ;;  %v2357_v62 = vmul.f32 %v8488_v47, %v2059_v54  ;;  %v10271_v4 = vld [vmem:[#allocation166_spill] sm:$0xff] }
 0x3c3   : > { %v2638_v43 = vadd.f32 %v8527_v11, %v2340_v7  ;;  %v2886_v30 = vmax.f32 %v2630_v51, 0.0  ;;  %v2058_v32 = vmul.f32 %v8178_v12, %v10269_v19  ;;  %v2647_v50 = vadd.f32 %v8502_v24, %v2349_v39  ;;  %v10272_v51 = vld [vmem:[#allocation168_spill] sm:$0xff]  ;;  %v10273_v39 = vld [vmem:[#allocation165_spill] sm:$0xff] }
 0x3c4   : > { %v8756_v45 = vpack.c.bf16 %v2895_v44, %v2887_v3  ;;  %v2348_v14 = vmul.f32 %v8516_v23, %v2050_v31  ;;  %v2067_v61 = vmul.f32 %v8201_v27, %v10271_v4  ;;  %v2655_v60 = vadd.f32 %v8502_v24, %v2357_v62 }
 0x3c5   : > { %v2894_v9 = vmax.f32 %v2638_v43, 0.0  ;;  %v2356_v7 = vmul.f32 %v8516_v23, %v2058_v32  ;;  %v2075_v54 = vmul.f32 %v8211_v5, %v10272_v51  ;;  %4202 = vmatmul.mubr.bf16.gmra.mrb[68].mxu0 %v8375_v56  ;;  %v2903_v19 = vmax.f32 %v2647_v50, 0.0  ;;  %v10275_v50 = vld [vmem:[#allocation167_spill] sm:$0xff] }
 0x3c6   : > { %10270 = vst [vmem:[#allocation76_spill] sm:$0xff] %v8756_v45  ;;  %v2646_v3 = vadd.f32 %v8527_v11, %v2348_v14  ;;  %v2365_v44 = vmul.f32 %v8488_v47, %v2067_v61  ;;  %v2066_v31 = vmul.f32 %v8201_v27, %v10273_v39  ;;  %4211 = vmatprep.mubr.bf16.mxu0 %v8388_v15  ;;  %v2911_v62 = vmax.f32 %v2655_v60, 0.0 }
 0x3c7   : > { %v8772_v43 = vpack.c.bf16 %v2894_v9, %v2886_v30  ;;  %v2654_v32 = vadd.f32 %v8527_v11, %v2356_v7  ;;  %v2373_v4 = vmul.f32 %v8488_v47, %v2075_v54  ;;  %v2074_v14 = vmul.f32 %v8211_v5, %v10275_v50  ;;  %v10276_v30 = vld [vmem:[#allocation170_spill] sm:$0xff] }
 0x3c8   : > { %v2902_v51 = vmax.f32 %v2646_v3, 0.0  ;;  %v2663_v56 = vadd.f32 %v8502_v24, %v2365_v44  ;;  %v2364_v61 = vmul.f32 %v8516_v23, %v2066_v31  ;;  %v8780_v45 = vpack.c.bf16 %v2911_v62, %v2903_v19  ;;  %v10277_v3 = vld [vmem:[#allocation172_spill] sm:$0xff]  ;;  %v10278_v31 = vld [vmem:[#allocation169_spill] sm:$0xff] }
 0x3c9   : > { %10274 = vst [vmem:[#allocation74_spill] sm:$0xff] %v8772_v43  ;;  %v2910_v39 = vmax.f32 %v2654_v32, 0.0  ;;  %v2671_v15 = vadd.f32 %v8502_v24, %v2373_v4  ;;  %v2083_v9 = vmul.f32 %v8232_v0, %v10276_v30  ;;  %v2372_v7 = vmul.f32 %v8516_v23, %v2074_v14  ;;  %v10279_v30 = vld [vmem:[#allocation171_spill] sm:$0xff] }
 0x3ca   : > { %v2919_v60 = vmax.f32 %v2663_v56, 0.0  ;;  %v2662_v54 = vadd.f32 %v8527_v11, %v2364_v61  ;;  %v2091_v44 = vmul.f32 %v8241_v38, %v10277_v3  ;;  %v2082_v62 = vmul.f32 %v8232_v0, %v10278_v31 }
 0x3cb   : > { %v8789_v43 = vpack.c.bf16 %v2910_v39, %v2902_v51  ;;  %v2927_v50 = vmax.f32 %v2671_v15, 0.0  ;;  %v2381_v19 = vmul.f32 %v8488_v47, %v2083_v9  ;;  %v2670_v32 = vadd.f32 %v8527_v11, %v2372_v7  ;;  %v10281_v39 = vld [vmem:[#allocation174_spill] sm:$0xff] }
 0x3cc   : > { %v2918_v4 = vmax.f32 %v2662_v54, 0.0  ;;  %v2389_v56 = vmul.f32 %v8488_v47, %v2091_v44  ;;  %v2090_v14 = vmul.f32 %v8241_v38, %v10279_v30  ;;  %v2380_v51 = vmul.f32 %v8516_v23, %v2082_v62  ;;  %v10282_v44 = vld [vmem:[#allocation176_spill] sm:$0xff]  ;;  %v10283_v62 = vld [vmem:[#allocation173_spill] sm:$0xff] }
 0x3cd   : > { %v8798_v61 = vpack.c.bf16 %v2927_v50, %v2919_v60  ;;  %v2679_v3 = vadd.f32 %v8502_v24, %v2381_v19  ;;  %v2099_v15 = vmul.f32 %v8263_v16, %v10281_v39  ;;  %4212 = vmatmul.mubr.bf16.gmra.mrb[72].mxu0 %v8397_v46  ;;  %v2926_v9 = vmax.f32 %v2670_v32, 0.0 }
 0x3ce   : > { %v2687_v7 = vadd.f32 %v8502_v24, %v2389_v56  ;;  %v2388_v54 = vmul.f32 %v8516_v23, %v2090_v14  ;;  %v2107_v31 = vmul.f32 %v8273_v1, %v10282_v44  ;;  %4221 = vmatprep.mubr.bf16.mxu0 %v8413_v22  ;;  %v2678_v50 = vadd.f32 %v8527_v11, %v2380_v51 }
 0x3cf   : > { %10280 = vst [vmem:[#allocation78_spill] sm:$0xff] %v8798_v61  ;;  %v2935_v60 = vmax.f32 %v2679_v3, 0.0  ;;  %v2397_v19 = vmul.f32 %v8488_v47, %v2099_v15  ;;  %v2098_v30 = vmul.f32 %v8263_v16, %v10283_v62  ;;  %v8814_v39 = vpack.c.bf16 %v2926_v9, %v2918_v4  ;;  %v10285_v61 = vld [vmem:[#allocation175_spill] sm:$0xff]  ;;  %v10287_v4 = vld [vmem:[#allocation178_spill] sm:$0xff] }
 0x3d0   : > { %v2943_v46 = vmax.f32 %v2687_v7, 0.0  ;;  %v2686_v32 = vadd.f32 %v8527_v11, %v2388_v54  ;;  %v2405_v56 = vmul.f32 %v8488_v47, %v2107_v31  ;;  %v2934_v14 = vmax.f32 %v2678_v50, 0.0  ;;  %v10288_v50 = vld [vmem:[#allocation180_spill] sm:$0xff] }
 0x3d1   : > { %10284 = vst [vmem:[#allocation77_spill] sm:$0xff] %v8814_v39  ;;  %v2695_v44 = vadd.f32 %v8502_v24, %v2397_v19  ;;  %v2106_v22 = vmul.f32 %v8273_v1, %v10285_v61  ;;  %v2396_v3 = vmul.f32 %v8516_v23, %v2098_v30  ;;  %v2115_v9 = vmul.f32 %v8299_v53, %v10287_v4  ;;  %v10289_v30 = vld [vmem:[#allocation177_spill] sm:$0xff]  ;;  %v10290_v4 = vld [vmem:[#allocation179_spill] sm:$0xff] }
 0x3d2   : > { %v8822_v51 = vpack.c.bf16 %v2943_v46, %v2935_v60  ;;  %v2942_v15 = vmax.f32 %v2686_v32, 0.0  ;;  %v2703_v62 = vadd.f32 %v8502_v24, %v2405_v56  ;;  %v2123_v19 = vmul.f32 %v8309_v35, %v10288_v50  ;;  %v10293_v50 = vld [vmem:[#allocation184_spill] sm:$0xff] }
 0x3d3   : > { %v2951_v7 = vmax.f32 %v2695_v44, 0.0  ;;  %v2404_v54 = vmul.f32 %v8516_v23, %v2106_v22  ;;  %v2694_v31 = vadd.f32 %v8527_v11, %v2396_v3  ;;  %v2413_v60 = vmul.f32 %v8488_v47, %v2115_v9  ;;  %v10291_v3 = vld [vmem:[#allocation30_spill] sm:$0xff] }
 0x3d4   : > { %10286 = vst [vmem:[#allocation125_spill] sm:$0xff] %v8822_v51  ;;  %v8831_v39 = vpack.c.bf16 %v2942_v15, %v2934_v14  ;;  %v2959_v61 = vmax.f32 %v2703_v62, 0.0  ;;  %v2114_v46 = vmul.f32 %v8299_v53, %v10289_v30  ;;  %v2421_v44 = vmul.f32 %v8488_v47, %v2123_v19  ;;  %v10292_v62 = vld [vmem:[#allocation182_spill] sm:$0xff] }
 0x3d5   : > { %v2702_v32 = vadd.f32 %v8527_v11, %v2404_v54  ;;  %v2950_v56 = vmax.f32 %v2694_v31, 0.0  ;;  %v2122_v22 = vmul.f32 %v8309_v35, %v10290_v4  ;;  %4222 = vmatmul.mubr.bf16.gmra.mrb[76].mxu0 %v10291_v3  ;;  %v2711_v14 = vadd.f32 %v8502_v24, %v2413_v60 }
 0x3d6   : > { %v8841_v51 = vpack.c.bf16 %v2959_v61, %v2951_v7  ;;  %v2412_v15 = vmul.f32 %v8516_v23, %v2114_v46  ;;  %v1877_v9 = vmul.f32 %v7822_v33, %v10292_v62  ;;  %4231 = vmatprep.mubr.bf16.mxu0 %v8430_v36  ;;  %v2719_v31 = vadd.f32 %v8502_v24, %v2421_v44  ;;  %v10296_v44 = vld [vmem:[#allocation181_spill] sm:$0xff] }
 0x3d7   : > { %v2958_v54 = vmax.f32 %v2702_v32, 0.0  ;;  %v2420_v47 = vmul.f32 %v8516_v23, %v2122_v22  ;;  %v1885_v19 = vmul.f32 %v7845_v55, %v10293_v50  ;;  %v2967_v30 = vmax.f32 %v2711_v14, 0.0 }
 0x3d8   : > { %v2710_v7 = vadd.f32 %v8527_v11, %v2412_v15  ;;  %v10294_v61 = vsub.s32 7, %v7798_v52  ;;  %v2975_v24 = vmax.f32 %v2719_v31, 0.0  ;;  %v1876_v4 = vmul.f32 %v7822_v33, %v10296_v44  ;;  %v10297_v15 = vld [vmem:[#allocation183_spill] sm:$0xff] }
 0x3d9   : > { %v8863_v32 = vpack.c.bf16 %v2958_v54, %v2950_v56  ;;  %v2718_v23 = vadd.f32 %v8527_v11, %v2420_v47  ;;  %v1884_v62 = vmul.f32 %v7845_v55, %v10297_v15  ;;  %v10298_v56 = vsub.s32 6, %v7798_v52  ;;  %v10300_v47 = vld [vmem:[#allocation186_spill] sm:$0xff]  ;;  %v10302_v52 = vld [vmem:[#allocation185_spill] sm:$0xff] }
 0x3da   : > { %v8856_v60 = vrot.slane %v8483_v59, %v10294_v61  ;;  %v10295_v46 = vmov %v10294_v61  ;;  %v2966_v22 = vmax.f32 %v2710_v7, 0.0  ;;  %v8872_v50 = vpack.c.bf16 %v2975_v24, %v2967_v30  ;;  %v10303_v24 = vld [vmem:[#allocation34_spill] sm:$0xff] }
 0x3db   : > { %v8861_v36 = vrot.slane %v8497_v63, %v10295_v46  ;;  %v2974_v61 = vmax.f32 %v2718_v23, 0.0  ;;  %v8877_v54 = vrot.slane %v8483_v59, %v10298_v56  ;;  %v10299_v11 = vmov %v10298_v56 }
 0x3dc   : > { %v2175_v3 = vmul.f32 %v8856_v60, %v1877_v9  ;;  %v2183_v14 = vmul.f32 %v8856_v60, %v1885_v19  ;;  %v8882_v33 = vrot.slane %v8497_v63, %v10299_v11  ;;  %v1893_v55 = vmul.f32 %v7865_v20, %v10300_v47  ;;  %v10301_v19 = vld [vmem:[#allocation188_spill] sm:$0xff] }
 0x3dd   : > { %v1901_v30 = vmul.f32 %v7883_v29, %v10301_v19  ;;  %v8890_v7 = vpack.c.bf16 %v2974_v61, %v2966_v22  ;;  %v2174_v59 = vmul.f32 %v8877_v54, %v1876_v4  ;;  %v2182_v46 = vmul.f32 %v8877_v54, %v1884_v62  ;;  %4232 = vmatmul.mubr.bf16.gmra.mrb[80].mxu0 %v10303_v24  ;;  %v10304_v4 = vld [vmem:[#allocation187_spill] sm:$0xff] }
 0x3de   : > { %v2473_v9 = vadd.f32 %v8861_v36, %v2175_v3  ;;  %v2481_v31 = vadd.f32 %v8861_v36, %v2183_v14  ;;  %v1892_v63 = vmul.f32 %v7865_v20, %v10302_v52  ;;  %v2191_v3 = vmul.f32 %v8856_v60, %v1893_v55  ;;  %4241 = vmatprep.mubr.bf16.mxu0 %v8455_v8 }
 0x3df   : > { %v2199_v14 = vmul.f32 %v8856_v60, %v1901_v30  ;;  %v2472_v22 = vadd.f32 %v8882_v33, %v2174_v59  ;;  %v2480_v15 = vadd.f32 %v8882_v33, %v2182_v46  ;;  %v1900_v62 = vmul.f32 %v7883_v29, %v10304_v4  ;;  %v10306_v29 = vld [vmem:[#allocation192_spill] sm:$0xff]  ;;  %v10307_v46 = vld [vmem:[#allocation13_spill] sm:$0xff] }
 0x3e0   : > { %v2729_v23 = vmax.f32 %v2473_v9, 0.0  ;;  %v2737_v44 = vmax.f32 %v2481_v31, 0.0  ;;  %v2190_v61 = vmul.f32 %v8877_v54, %v1892_v63  ;;  %v2489_v56 = vadd.f32 %v8861_v36, %v2191_v3  ;;  %v10305_v9 = vld [vmem:[#allocation190_spill] sm:$0xff]  ;;  %v10308_v3 = vld [vmem:[#allocation189_spill] sm:$0xff] }
 0x3e1   : > { %v2497_v11 = vadd.f32 %v8861_v36, %v2199_v14  ;;  %v1909_v31 = vmul.f32 %v7895_v6, %v10305_v9  ;;  %v2728_v47 = vmax.f32 %v2472_v22, 0.0  ;;  %v2736_v8 = vmax.f32 %v2480_v15, 0.0  ;;  %v10310_v9 = vld [vmem:[#allocation194_spill] sm:$0xff] }
 0x3e2   : > { %v8905_v20 = vpack.c.bf16 %v2737_v44, %v2729_v23  ;;  %v2198_v55 = vmul.f32 %v8877_v54, %v1900_v62  ;;  %v2488_v19 = vadd.f32 %v8882_v33, %v2190_v61  ;;  %v2745_v30 = vmax.f32 %v2489_v56, 0.0  ;;  %v10309_v62 = vld [vmem:[#allocation191_spill] sm:$0xff] }
 0x3e3   : > { %v2753_v59 = vmax.f32 %v2497_v11, 0.0  ;;  %v1917_v52 = vmul.f32 %v10307_v46, %v10306_v29  ;;  %v2207_v63 = vmul.f32 %v8856_v60, %v1909_v31  ;;  %v8916_v24 = vpack.c.bf16 %v2736_v8, %v2728_v47  ;;  %v10311_v31 = vld [vmem:[#allocation12_spill] sm:$0xff]  ;;  %v10314_v29 = vld [vmem:[#allocation33_spill] sm:$0xff] }
 0x3e4   : > { %v2496_v23 = vadd.f32 %v8882_v33, %v2198_v55  ;;  %v2744_v44 = vmax.f32 %v2488_v19, 0.0  ;;  %v1908_v14 = vmul.f32 %v7895_v6, %v10308_v3  ;;  %v1916_v61 = vmul.f32 %v10307_v46, %v10309_v62  ;;  %v10312_v8 = vld [vmem:[#allocation196_spill] sm:$0xff]  ;;  %v10313_v55 = vld [vmem:[#allocation122_spill] sm:$0xff] }
 0x3e5   : > { %v8921_v22 = vpack.c.bf16 %v2753_v59, %v2745_v30  ;;  %v2215_v15 = vmul.f32 %v8856_v60, %v1917_v52  ;;  %v2505_v4 = vadd.f32 %v8861_v36, %v2207_v63  ;;  %v1925_v47 = vmul.f32 %v10311_v31, %v10310_v9  ;;  %4242 = vmatmul.mubr.bf16.gmra.mrb[84].mxu0 %v10314_v29  ;;  %v10315_v52 = vld [vmem:[#allocation193_spill] sm:$0xff]  ;;  %v10316_v46 = vld [vmem:[#allocation40_spill] sm:$0xff] }
 0x3e6   : > { %v2752_v56 = vmax.f32 %v2496_v23, 0.0  ;;  %v2206_v11 = vmul.f32 %v8877_v54, %v1908_v14  ;;  %v1933_v19 = vmul.f32 %v10313_v55, %v10312_v8  ;;  %v2214_v59 = vmul.f32 %v8877_v54, %v1916_v61  ;;  %4251 = vmatprep.mubr.bf16.mxu0 %v10316_v46 }
 0x3e7   : > { %v2513_v6 = vadd.f32 %v8861_v36, %v2215_v15  ;;  %v2761_v30 = vmax.f32 %v2505_v4, 0.0  ;;  %v1924_v63 = vmul.f32 %v10311_v31, %v10315_v52  ;;  %v2223_v14 = vmul.f32 %v8856_v60, %v1925_v47  ;;  %v10318_v15 = vld [vmem:[#allocation195_spill] sm:$0xff] }
 0x3e8   : > { %v8938_v23 = vpack.c.bf16 %v2752_v56, %v2744_v44  ;;  %v2504_v3 = vadd.f32 %v8882_v33, %v2206_v11  ;;  %v2231_v62 = vmul.f32 %v8856_v60, %v1933_v19  ;;  %v2512_v8 = vadd.f32 %v8882_v33, %v2214_v59  ;;  %v10319_v56 = vld [vmem:[#allocation198_spill] sm:$0xff] }
 0x3e9   : > { %v2769_v9 = vmax.f32 %v2513_v6, 0.0  ;;  %v1932_v4 = vmul.f32 %v10313_v55, %v10318_v15  ;;  %v2222_v61 = vmul.f32 %v8877_v54, %v1924_v63  ;;  %v2521_v31 = vadd.f32 %v8861_v36, %v2223_v14  ;;  %v10321_v55 = vld [vmem:[#allocation200_spill] sm:$0xff]  ;;  %v10322_v15 = vld [vmem:[#allocation15_spill] sm:$0xff] }
 0x3ea   : > { %10317 = vst [vmem:[#allocation86_spill] sm:$0xff] %v8938_v23  ;;  %v2760_v29 = vmax.f32 %v2504_v3, 0.0  ;;  %v2529_v44 = vadd.f32 %v8861_v36, %v2231_v62  ;;  %v1941_v11 = vmul.f32 %v10220_v48, %v10319_v56  ;;  %v2768_v47 = vmax.f32 %v2512_v8, 0.0  ;;  %v10324_v56 = vld [vmem:[#allocation197_spill] sm:$0xff] }
 0x3eb   : > { %v8951_v52 = vpack.c.bf16 %v2769_v9, %v2761_v30  ;;  %v2230_v19 = vmul.f32 %v8877_v54, %v1932_v4  ;;  %v2520_v6 = vadd.f32 %v8882_v33, %v2222_v61  ;;  %v2777_v59 = vmax.f32 %v2521_v31, 0.0  ;;  %v10326_v61 = vld [vmem:[#allocation199_spill] sm:$0xff] }
 0x3ec   : > { %v2785_v46 = vmax.f32 %v2529_v44, 0.0  ;;  %v1949_v63 = vmul.f32 %v10322_v15, %v10321_v55  ;;  %v2239_v3 = vmul.f32 %v8856_v60, %v1941_v11  ;;  %v8958_v14 = vpack.c.bf16 %v2768_v47, %v2760_v29  ;;  %v10327_v44 = vld [vmem:[#allocation38_spill] sm:$0xff]  ;;  %v10330_v55 = vld [vmem:[#allocation204_spill] sm:$0xff] }
 0x3ed   : > { %10320 = vst [vmem:[#allocation84_spill] sm:$0xff] %v8951_v52  ;;  %v2528_v62 = vadd.f32 %v8882_v33, %v2230_v19  ;;  %v2776_v23 = vmax.f32 %v2520_v6, 0.0  ;;  %v1940_v30 = vmul.f32 %v10220_v48, %v10324_v56  ;;  %v1948_v31 = vmul.f32 %v10322_v15, %v10326_v61  ;;  %4252 = vmatmul.mubr.bf16.gmra.mrb[88].mxu0 %v10327_v44  ;;  %v10328_v47 = vld [vmem:[#allocation202_spill] sm:$0xff]  ;;  %v10333_v56 = vld [vmem:[#allocation201_spill] sm:$0xff] }
 0x3ee   : > { %10323 = vst [vmem:[#allocation127_spill] sm:$0xff] %v8958_v14  ;;  %v8963_v9 = vpack.c.bf16 %v2785_v46, %v2777_v59  ;;  %v2247_v8 = vmul.f32 %v8856_v60, %v1949_v63  ;;  %v2537_v4 = vadd.f32 %v8861_v36, %v2239_v3  ;;  %v10329_v19 = vld [vmem:[#allocation14_spill] sm:$0xff]  ;;  %v10331_v14 = vld [vmem:[#allocation124_spill] sm:$0xff] }
 0x3ef   : > { %v2784_v11 = vmax.f32 %v2528_v62, 0.0  ;;  %v2238_v29 = vmul.f32 %v8877_v54, %v1940_v30  ;;  %v1957_v6 = vmul.f32 %v10329_v19, %v10328_v47  ;;  %v1965_v48 = vmul.f32 %v10331_v14, %v10330_v55  ;;  %v10332_v59 = vld [vmem:[#allocation42_spill] sm:$0xff] }
 0x3f0   : > { %10325 = vst [vmem:[#allocation88_spill] sm:$0xff] %v8963_v9  ;;  %4261 = vmatprep.mubr.bf16.mxu0 %v10332_v59  ;;  %v2545_v46 = vadd.f32 %v8861_v36, %v2247_v8  ;;  %v2793_v63 = vmax.f32 %v2537_v4, 0.0  ;;  %v2246_v3 = vmul.f32 %v8877_v54, %v1948_v31  ;;  %v1956_v15 = vmul.f32 %v10329_v19, %v10333_v56  ;;  %v10335_v59 = vld [vmem:[#allocation203_spill] sm:$0xff] }
 0x3f1   : > { %v8980_v61 = vpack.c.bf16 %v2784_v11, %v2776_v23  ;;  %v2536_v62 = vadd.f32 %v8882_v33, %v2238_v29  ;;  %v2255_v30 = vmul.f32 %v8856_v60, %v1957_v6  ;;  %v2263_v44 = vmul.f32 %v8856_v60, %v1965_v48  ;;  %v10336_v11 = vld [vmem:[#allocation206_spill] sm:$0xff]  ;;  %v10337_v19 = vld [vmem:[#allocation123_spill] sm:$0xff] }
 0x3f2   : > { %v2801_v47 = vmax.f32 %v2545_v46, 0.0  ;;  %v2544_v55 = vadd.f32 %v8882_v33, %v2246_v3  ;;  %v1964_v8 = vmul.f32 %v10331_v14, %v10335_v59  ;;  %v2254_v4 = vmul.f32 %v8877_v54, %v1956_v15  ;;  %v10338_v14 = vld [vmem:[#allocation208_spill] sm:$0xff]  ;;  %v10339_v59 = vld [vmem:[#allocation17_spill] sm:$0xff] }
 0x3f3   : > { %10334 = vst [vmem:[#allocation87_spill] sm:$0xff] %v8980_v61  ;;  %v2792_v31 = vmax.f32 %v2536_v62, 0.0  ;;  %v2553_v9 = vadd.f32 %v8861_v36, %v2255_v30  ;;  %v2561_v23 = vadd.f32 %v8861_v36, %v2263_v44  ;;  %v1973_v29 = vmul.f32 %v10337_v19, %v10336_v11  ;;  %v10340_v11 = vld [vmem:[#allocation205_spill] sm:$0xff] }
 0x3f4   : > { %v8993_v56 = vpack.c.bf16 %v2801_v47, %v2793_v63  ;;  %v2800_v6 = vmax.f32 %v2544_v55, 0.0  ;;  %v2262_v48 = vmul.f32 %v8877_v54, %v1964_v8  ;;  %v2552_v46 = vadd.f32 %v8882_v33, %v2254_v4  ;;  %v10341_v47 = vld [vmem:[#allocation41_spill] sm:$0xff]  ;;  %v10342_v4 = vld [vmem:[#allocation207_spill] sm:$0xff] }
 0x3f5   : > { %v2809_v3 = vmax.f32 %v2553_v9, 0.0  ;;  %v2817_v61 = vmax.f32 %v2561_v23, 0.0  ;;  %v1981_v15 = vmul.f32 %v10339_v59, %v10338_v14  ;;  %v2271_v62 = vmul.f32 %v8856_v60, %v1973_v29  ;;  %4262 = vmatmul.mubr.bf16.gmra.mrb[92].mxu0 %v10341_v47  ;;  %v10343_v29 = vld [vmem:[#allocation48_spill] sm:$0xff] }
 0x3f6   : > { %v9000_v30 = vpack.c.bf16 %v2800_v6, %v2792_v31  ;;  %v2560_v44 = vadd.f32 %v8882_v33, %v2262_v48  ;;  %v2808_v52 = vmax.f32 %v2552_v46, 0.0  ;;  %v1972_v63 = vmul.f32 %v10337_v19, %v10340_v11  ;;  %4304 = vmatprep.mubr.bf16.mxu0 %v10343_v29  ;;  %v10344_v48 = vld [vmem:[#allocation210_spill] sm:$0xff]  ;;  %v10345_v19 = vld [vmem:[#allocation212_spill] sm:$0xff] }
 0x3f7   : > { %v9006_v55 = vpack.c.bf16 %v2817_v61, %v2809_v3  ;;  %v2279_v9 = vmul.f32 %v8856_v60, %v1981_v15  ;;  %v2569_v8 = vadd.f32 %v8861_v36, %v2271_v62  ;;  %v1980_v23 = vmul.f32 %v10339_v59, %v10342_v4  ;;  %v10346_v62 = vld [vmem:[#allocation209_spill] sm:$0xff] }
 0x3f8   : > { %v2816_v31 = vmax.f32 %v2560_v44, 0.0  ;;  %v2270_v6 = vmul.f32 %v8877_v54, %v1972_v63  ;;  %v1989_v46 = vmul.f32 %v10245_v41, %v10344_v48  ;;  %v1997_v14 = vmul.f32 %v10250_v2, %v10345_v19  ;;  %v10348_v48 = vld [vmem:[#allocation211_spill] sm:$0xff] }
 0x3f9   : > { %v2577_v61 = vadd.f32 %v8861_v36, %v2279_v9  ;;  %v2825_v3 = vmax.f32 %v2569_v8, 0.0  ;;  %v2278_v15 = vmul.f32 %v8877_v54, %v1980_v23  ;;  %v1988_v11 = vmul.f32 %v10245_v41, %v10346_v62  ;;  %v5949_v23 = vld [vmem:[#allocation2 + $0x300] ss:$8 sps:$4 sm:$0xff]  }
 0x3fa   : > { %v9022_v59 = vpack.c.bf16 %v2816_v31, %v2808_v52  ;;  %v2568_v44 = vadd.f32 %v8882_v33, %v2270_v6  ;;  %v2287_v63 = vmul.f32 %v8856_v60, %v1989_v46  ;;  %v2295_v47 = vmul.f32 %v8856_v60, %v1997_v14  ;;  %v10349_v31 = vld [vmem:[#allocation214_spill] sm:$0xff]  ;;  %v5954_v46 = vld [vmem:[#allocation2 + $0x314] ss:$8 sps:$4 sm:$0xff]  }
 0x3fb   : > { %v2833_v4 = vmax.f32 %v2577_v61, 0.0  ;;  %v2576_v29 = vadd.f32 %v8882_v33, %v2278_v15  ;;  %v1996_v9 = vmul.f32 %v10250_v2, %v10348_v48  ;;  %v2286_v8 = vmul.f32 %v8877_v54, %v1988_v11  ;;  %v10350_v11 = vld [vmem:[#allocation216_spill] sm:$0xff] }
 0x3fc   : > { %10347 = vst [vmem:[#allocation129_spill] sm:$0xff] %v9022_v59  ;;  %v2824_v19 = vmax.f32 %v2568_v44, 0.0  ;;  %v2585_v41 = vadd.f32 %v8861_v36, %v2287_v63  ;;  %v2593_v52 = vadd.f32 %v8861_v36, %v2295_v47  ;;  %v2005_v6 = vmul.f32 %v8077_v57, %v10349_v31  ;;  %v10351_v59 = vld [vmem:[#allocation46_spill] sm:$0xff] }
 0x3fd   : > { %v9035_v62 = vpack.c.bf16 %v2833_v4, %v2825_v3  ;;  %v2832_v14 = vmax.f32 %v2576_v29, 0.0  ;;  %v2294_v61 = vmul.f32 %v8877_v54, %v1996_v9  ;;  %v2584_v15 = vadd.f32 %v8882_v33, %v2286_v8  ;;  %4305 = vmatmul.mubr.bf16.vlgmr.msra.gmra.mrb[32].mxu0 %v10351_v59  ;;  %v10352_v3 = vld [vmem:[#allocation213_spill] sm:$0xff]  ;;  %v10353_v29 = vld [vmem:[#allocation50_spill] sm:$0xff]  ;;  %v5952_v9 = vld [vmem:[#allocation2 + $0x310] ss:$8 sps:$4 sm:$0xff]  }
 0x3fe   : > { %v2841_v2 = vmax.f32 %v2585_v41, 0.0  ;;  %v2849_v48 = vmax.f32 %v2593_v52, 0.0  ;;  %v2013_v44 = vmul.f32 %v8086_v37, %v10350_v11  ;;  %v2303_v63 = vmul.f32 %v8856_v60, %v2005_v6  ;;  %4314 = vmatprep.mubr.bf16.mxu0 %v10353_v29  ;;  %4466 = vmatpush1.bf16.msra.mxu0 %v5949_v23  ;;  %v5957_v59 = vld [vmem:[#allocation2 + $0x324] ss:$8 sps:$4 sm:$0xff]   ;;  %v5955_v29 = vld [vmem:[#allocation2 + $0x320] ss:$8 sps:$4 sm:$0xff]  }
 0x3ff   : > { %v9043_v47 = vpack.c.bf16 %v2832_v14, %v2824_v19  ;;  %v2592_v31 = vadd.f32 %v8882_v33, %v2294_v61  ;;  %v2004_v4 = vmul.f32 %v8077_v57, %v10352_v3  ;;  %v2840_v41 = vmax.f32 %v2584_v15, 0.0  ;;  %4467 = vmatprep.subr.bf16.mxu0 %v5954_v46  ;;  %v10354_v14 = vld [vmem:[#allocation215_spill] sm:$0xff]  ;;  %v10355_v57 = vld [vmem:[#allocation218_spill] sm:$0xff] }
 0x400   : > { %v9049_v8 = vpack.c.bf16 %v2849_v48, %v2841_v2  ;;  %v2311_v52 = vmul.f32 %v8856_v60, %v2013_v44  ;;  %v2601_v6 = vadd.f32 %v8861_v36, %v2303_v63  ;;  %v2012_v61 = vmul.f32 %v8086_v37, %v10354_v14  ;;  %v10356_v48 = vld [vmem:[#allocation220_spill] sm:$0xff]  ;;  %v10357_v44 = vld [vmem:[#allocation217_spill] sm:$0xff] }
 0x401   : > { %v2848_v19 = vmax.f32 %v2592_v31, 0.0  ;;  %v2302_v11 = vmul.f32 %v8877_v54, %v2004_v4  ;;  %v2021_v3 = vmul.f32 %v8109_v58, %v10355_v57  ;;  %v2029_v15 = vmul.f32 %v8117_v17, %v10356_v48 }
 0x402   : > { %v2609_v23 = vadd.f32 %v8861_v36, %v2311_v52  ;;  %v2857_v2 = vmax.f32 %v2601_v6, 0.0  ;;  %v2020_v63 = vmul.f32 %v8109_v58, %v10357_v44  ;;  %v2310_v31 = vmul.f32 %v8877_v54, %v2012_v61  ;;  %4468 = vmatpush1.bf16.msra.mxu0 %v5952_v9  ;;  %v10358_v6 = vld [vmem:[#allocation219_spill] sm:$0xff]  ;;  %v10361_v44 = vld [vmem:[#allocation49_spill] sm:$0xff] }
 0x403   : > { %v9063_v46 = vpack.c.bf16 %v2848_v19, %v2840_v41  ;;  %v2600_v37 = vadd.f32 %v8882_v33, %v2302_v11  ;;  %v2319_v4 = vmul.f32 %v8856_v60, %v2021_v3  ;;  %v2327_v52 = vmul.f32 %v8856_v60, %v2029_v15  ;;  %4469 = vmatprep.subr.bf16.mxu0 %v5957_v59  ;;  %v5960_v58 = vld [vmem:[#allocation2 + $0x334] ss:$8 sps:$4 sm:$0xff]   ;;  %v10359_v11 = vld [vmem:[#allocation222_spill] sm:$0xff] }
 0x404   : > { %v2865_v14 = vmax.f32 %v2609_v23, 0.0  ;;  %v2028_v57 = vmul.f32 %v8117_v17, %v10358_v6  ;;  %v2318_v48 = vmul.f32 %v8877_v54, %v2020_v63  ;;  %v2608_v41 = vadd.f32 %v8882_v33, %v2310_v31  ;;  %v10362_v6 = vld [vmem:[#allocation224_spill] sm:$0xff] }
 0x405   : > { %v2856_v19 = vmax.f32 %v2600_v37, 0.0  ;;  %v2617_v61 = vadd.f32 %v8861_v36, %v2319_v4  ;;  %v2037_v3 = vmul.f32 %v8139_v18, %v10359_v11  ;;  %v2625_v23 = vadd.f32 %v8861_v36, %v2327_v52  ;;  %4315 = vmatmul.mubr.bf16.gmra.mrb[36].mxu0 %v10361_v44  ;;  %v10363_v4 = vld [vmem:[#allocation56_spill] sm:$0xff]  ;;  %v5963_v44 = vld [vmem:[#allocation2 + $0x344] ss:$8 sps:$4 sm:$0xff]  }
 0x406   : > { %v9076_v9 = vpack.c.bf16 %v2865_v14, %v2857_v2  ;;  %v2326_v15 = vmul.f32 %v8877_v54, %v2028_v57  ;;  %v2616_v17 = vadd.f32 %v8882_v33, %v2318_v48  ;;  %v2864_v59 = vmax.f32 %v2608_v41, 0.0  ;;  %4324 = vmatprep.mubr.bf16.mxu0 %v10363_v4  ;;  %4470 = vmatpush1.bf16.msra.mxu0 %v5955_v29  ;;  %v5958_v2 = vld [vmem:[#allocation2 + $0x330] ss:$8 sps:$4 sm:$0xff]   ;;  %v10364_v57 = vld [vmem:[#allocation221_spill] sm:$0xff] }
 0x407   : > { %v2873_v63 = vmax.f32 %v2617_v61, 0.0  ;;  %v2045_v31 = vmul.f32 %v8148_v25, %v10362_v6  ;;  %v2335_v37 = vmul.f32 %v8856_v60, %v2037_v3  ;;  %v2881_v14 = vmax.f32 %v2625_v23, 0.0  ;;  %4471 = vmatprep.subr.bf16.mxu0 %v5960_v58  ;;  %v10365_v3 = vld [vmem:[#allocation223_spill] sm:$0xff] }
 0x408   : > { %10360 = vst [vmem:[#allocation91_spill] sm:$0xff] %v9076_v9  ;;  %v2624_v52 = vadd.f32 %v8882_v33, %v2326_v15  ;;  %v2872_v11 = vmax.f32 %v2616_v17, 0.0  ;;  %v2036_v48 = vmul.f32 %v8139_v18, %v10364_v57  ;;  %v9089_v41 = vpack.c.bf16 %v2864_v59, %v2856_v19  ;;  %v10366_v17 = vld [vmem:[#allocation226_spill] sm:$0xff]  ;;  %v10367_v59 = vld [vmem:[#allocation228_spill] sm:$0xff] }
 0x409   : > { %v2343_v61 = vmul.f32 %v8856_v60, %v2045_v31  ;;  %v2633_v6 = vadd.f32 %v8861_v36, %v2335_v37  ;;  %v2044_v4 = vmul.f32 %v8148_v25, %v10365_v3  ;;  %v9095_v29 = vpack.c.bf16 %v2881_v14, %v2873_v63  ;;  %v5961_v37 = vld [vmem:[#allocation2 + $0x340] ss:$8 sps:$4 sm:$0xff]  }
 0x40a   : > { %v2880_v23 = vmax.f32 %v2624_v52, 0.0  ;;  %v2334_v15 = vmul.f32 %v8877_v54, %v2036_v48  ;;  %v2053_v9 = vmul.f32 %v8170_v26, %v10366_v17  ;;  %v2061_v31 = vmul.f32 %v8178_v12, %v10367_v59  ;;  %4472 = vmatpush1.bf16.msra.mxu0 %v5958_v2  ;;  %v10368_v14 = vld [vmem:[#allocation225_spill] sm:$0xff]  ;;  %v5966_v48 = vld [vmem:[#allocation2 + $0x354] ss:$8 sps:$4 sm:$0xff]   ;;  %v10371_v59 = vld [vmem:[#allocation54_spill] sm:$0xff] }
 0x40b   : > { %v2641_v18 = vadd.f32 %v8861_v36, %v2343_v61  ;;  %v2889_v58 = vmax.f32 %v2633_v6, 0.0  ;;  %v2342_v19 = vmul.f32 %v8877_v54, %v2044_v4  ;;  %v2052_v52 = vmul.f32 %v8170_v26, %v10368_v14  ;;  %4473 = vmatprep.subr.bf16.mxu0 %v5963_v44  ;;  %v10369_v4 = vld [vmem:[#allocation227_spill] sm:$0xff]  ;;  %v10373_v14 = vld [vmem:[#allocation232_spill] sm:$0xff] }
 0x40c   : > { %v9104_v57 = vpack.c.bf16 %v2880_v23, %v2872_v11  ;;  %v2632_v25 = vadd.f32 %v8882_v33, %v2334_v15  ;;  %v2351_v63 = vmul.f32 %v8856_v60, %v2053_v9  ;;  %v2359_v3 = vmul.f32 %v8856_v60, %v2061_v31  ;;  %v10370_v15 = vld [vmem:[#allocation230_spill] sm:$0xff] }
 0x40d   : > { %v2897_v61 = vmax.f32 %v2641_v18, 0.0  ;;  %v2640_v6 = vadd.f32 %v8882_v33, %v2342_v19  ;;  %v2060_v2 = vmul.f32 %v8178_v12, %v10369_v4  ;;  %v2350_v23 = vmul.f32 %v8877_v54, %v2052_v52  ;;  %4325 = vmatmul.mubr.bf16.gmra.mrb[40].mxu0 %v10371_v59  ;;  %v10372_v31 = vld [vmem:[#allocation58_spill] sm:$0xff]  ;;  %v5964_v12 = vld [vmem:[#allocation2 + $0x350] ss:$8 sps:$4 sm:$0xff]  }
 0x40e   : > { %v2888_v17 = vmax.f32 %v2632_v25, 0.0  ;;  %v2649_v11 = vadd.f32 %v8861_v36, %v2351_v63  ;;  %v2069_v9 = vmul.f32 %v8201_v27, %v10370_v15  ;;  %v2657_v18 = vadd.f32 %v8861_v36, %v2359_v3  ;;  %4334 = vmatprep.mubr.bf16.mxu0 %v10372_v31  ;;  %4474 = vmatpush1.bf16.msra.mxu0 %v5961_v37  ;;  %v10375_v59 = vld [vmem:[#allocation231_spill] sm:$0xff] }
 0x40f   : > { %v9119_v26 = vpack.c.bf16 %v2897_v61, %v2889_v58  ;;  %v2896_v44 = vmax.f32 %v2640_v6, 0.0  ;;  %v2358_v19 = vmul.f32 %v8877_v54, %v2060_v2  ;;  %v2648_v63 = vadd.f32 %v8882_v33, %v2350_v23  ;;  %4475 = vmatprep.subr.bf16.mxu0 %v5966_v48  ;;  %v5969_v58 = vld [vmem:[#allocation2 + $0x364] ss:$8 sps:$4 sm:$0xff]  }
 0x410   : > { %v2905_v25 = vmax.f32 %v2649_v11, 0.0  ;;  %v2077_v52 = vmul.f32 %v8211_v5, %v10373_v14  ;;  %v2367_v4 = vmul.f32 %v8856_v60, %v2069_v9  ;;  %v2913_v6 = vmax.f32 %v2657_v18, 0.0  ;;  %v10374_v2 = vld [vmem:[#allocation229_spill] sm:$0xff]  ;;  %v10376_v9 = vld [vmem:[#allocation234_spill] sm:$0xff] }
 0x411   : > { %v9128_v61 = vpack.c.bf16 %v2896_v44, %v2888_v17  ;;  %v2656_v3 = vadd.f32 %v8882_v33, %v2358_v19  ;;  %v2068_v15 = vmul.f32 %v8201_v27, %v10374_v2  ;;  %v2904_v37 = vmax.f32 %v2648_v63, 0.0  ;;  %v5967_v18 = vld [vmem:[#allocation2 + $0x360] ss:$8 sps:$4 sm:$0xff]  }
 0x412   : > { %v2375_v11 = vmul.f32 %v8856_v60, %v2077_v52  ;;  %v2665_v23 = vadd.f32 %v8861_v36, %v2367_v4  ;;  %v2076_v31 = vmul.f32 %v8211_v5, %v10375_v59  ;;  %v9137_v14 = vpack.c.bf16 %v2913_v6, %v2905_v25  ;;  %4476 = vmatpush1.bf16.msra.mxu0 %v5964_v12  ;;  %v10377_v52 = vld [vmem:[#allocation236_spill] sm:$0xff]  ;;  %v10378_v2 = vld [vmem:[#allocation233_spill] sm:$0xff]  ;;  %v10379_v59 = vld [vmem:[#allocation235_spill] sm:$0xff] }
 0x413   : > { %v2912_v48 = vmax.f32 %v2656_v3, 0.0  ;;  %v2366_v17 = vmul.f32 %v8877_v54, %v2068_v15  ;;  %v2085_v44 = vmul.f32 %v8232_v0, %v10376_v9  ;;  %v2093_v4 = vmul.f32 %v8241_v38, %v10377_v52  ;;  %4477 = vmatprep.subr.bf16.mxu0 %v5969_v58  ;;  %v5972_v5 = vld [vmem:[#allocation2 + $0x374] ss:$8 sps:$4 sm:$0xff]   ;;  %v10380_v9 = vld [vmem:[#allocation57_spill] sm:$0xff]  ;;  %v10382_v52 = vld [vmem:[#allocation66_spill] sm:$0xff] }
 0x414   : > { %v2673_v27 = vadd.f32 %v8861_v36, %v2375_v11  ;;  %v2921_v19 = vmax.f32 %v2665_v23, 0.0  ;;  %v2374_v63 = vmul.f32 %v8877_v54, %v2076_v31  ;;  %v2084_v12 = vmul.f32 %v8232_v0, %v10378_v2  ;;  %v5970_v0 = vld [vmem:[#allocation2 + $0x370] ss:$8 sps:$4 sm:$0xff]  }
 0x415   : > { %v9146_v25 = vpack.c.bf16 %v2912_v48, %v2904_v37  ;;  %v2664_v6 = vadd.f32 %v8882_v33, %v2366_v17  ;;  %v2383_v3 = vmul.f32 %v8856_v60, %v2085_v44  ;;  %v2391_v23 = vmul.f32 %v8856_v60, %v2093_v4  ;;  %4335 = vmatmul.mubr.bf16.gmra.mrb[44].mxu0 %v10380_v9  ;;  %v10381_v17 = vld [vmem:[#allocation238_spill] sm:$0xff] }
 0x416   : > { %v2929_v15 = vmax.f32 %v2673_v27, 0.0  ;;  %v2672_v11 = vadd.f32 %v8882_v33, %v2374_v63  ;;  %v2092_v31 = vmul.f32 %v8241_v38, %v10379_v59  ;;  %v2382_v48 = vmul.f32 %v8877_v54, %v2084_v12  ;;  %4344 = vmatprep.mubr.bf16.mxu0 %v10382_v52  ;;  %4478 = vmatpush1.bf16.msra.mxu0 %v5967_v18  ;;  %v10383_v12 = vld [vmem:[#allocation240_spill] sm:$0xff]  ;;  %v5973_v52 = vld [vmem:[#allocation2 + $0x380] ss:$8 sps:$4 sm:$0xff]  }
 0x417   : > { %v2920_v58 = vmax.f32 %v2664_v6, 0.0  ;;  %v2681_v37 = vadd.f32 %v8861_v36, %v2383_v3  ;;  %v2101_v44 = vmul.f32 %v8263_v16, %v10381_v17  ;;  %v2689_v4 = vadd.f32 %v8861_v36, %v2391_v23  ;;  %4479 = vmatprep.subr.bf16.mxu0 %v5972_v5  ;;  %v5975_v6 = vld [vmem:[#allocation2 + $0x384] ss:$8 sps:$4 sm:$0xff]  }
 0x418   : > { %v9162_v27 = vpack.c.bf16 %v2929_v15, %v2921_v19  ;;  %v2928_v63 = vmax.f32 %v2672_v11, 0.0  ;;  %v2390_v38 = vmul.f32 %v8877_v54, %v2092_v31  ;;  %v2680_v3 = vadd.f32 %v8882_v33, %v2382_v48  ;;  %v10384_v15 = vld [vmem:[#allocation237_spill] sm:$0xff] }
 0x419   : > { %v2937_v2 = vmax.f32 %v2681_v37, 0.0  ;;  %v2109_v59 = vmul.f32 %v8273_v1, %v10383_v12  ;;  %v2399_v9 = vmul.f32 %v8856_v60, %v2101_v44  ;;  %v2945_v18 = vmax.f32 %v2689_v4, 0.0  ;;  %v10385_v37 = vld [vmem:[#allocation239_spill] sm:$0xff] }
 0x41a   : > { %v9170_v17 = vpack.c.bf16 %v2928_v63, %v2920_v58  ;;  %v2688_v19 = vadd.f32 %v8882_v33, %v2390_v38  ;;  %v2100_v11 = vmul.f32 %v8263_v16, %v10384_v15  ;;  %v2936_v23 = vmax.f32 %v2680_v3, 0.0  ;;  %4480 = vmatpush1.bf16.msra.mxu0 %v5970_v0  ;;  %v10386_v63 = vld [vmem:[#allocation242_spill] sm:$0xff]  ;;  %v5978_v16 = vld [vmem:[#allocation2 + $0x394] ss:$8 sps:$4 sm:$0xff]  }
 0x41b   : > { %v2407_v5 = vmul.f32 %v8856_v60, %v2109_v59  ;;  %v2697_v31 = vadd.f32 %v8861_v36, %v2399_v9  ;;  %v2108_v48 = vmul.f32 %v8273_v1, %v10385_v37  ;;  %v9179_v12 = vpack.c.bf16 %v2945_v18, %v2937_v2  ;;  %4481 = vmatprep.subr.bf16.mxu0 %v5975_v6  ;;  %v10387_v9 = vld [vmem:[#allocation244_spill] sm:$0xff]  ;;  %v10390_v37 = vld [vmem:[#allocation243_spill] sm:$0xff] }
 0x41c   : > { %v2944_v58 = vmax.f32 %v2688_v19, 0.0  ;;  %v2398_v44 = vmul.f32 %v8877_v54, %v2100_v11  ;;  %v2117_v4 = vmul.f32 %v8299_v53, %v10386_v63  ;;  %v2125_v1 = vmul.f32 %v8309_v35, %v10387_v9  ;;  %v10388_v19 = vld [vmem:[#allocation241_spill] sm:$0xff]  ;;  %v10389_v11 = vld [vmem:[#allocation64_spill] sm:$0xff] }
 0x41d   : > { %v2705_v38 = vadd.f32 %v8861_v36, %v2407_v5  ;;  %v2953_v3 = vmax.f32 %v2697_v31, 0.0  ;;  %v2406_v59 = vmul.f32 %v8877_v54, %v2108_v48  ;;  %v2116_v15 = vmul.f32 %v8299_v53, %v10388_v19  ;;  %4345 = vmatmul.mubr.bf16.gmra.mrb[48].mxu0 %v10389_v11  ;;  %v10391_v63 = vld [vmem:[#allocation68_spill] sm:$0xff]  ;;  %v5981_v53 = vld [vmem:[#allocation2 + $0x3a4] ss:$8 sps:$4 sm:$0xff]  }
 0x41e   : > { %v9188_v0 = vpack.c.bf16 %v2944_v58, %v2936_v23  ;;  %v2696_v2 = vadd.f32 %v8882_v33, %v2398_v44  ;;  %v2415_v18 = vmul.f32 %v8856_v60, %v2117_v4  ;;  %v2423_v31 = vmul.f32 %v8856_v60, %v2125_v1  ;;  %4354 = vmatprep.mubr.bf16.mxu0 %v10391_v63  ;;  %v5976_v23 = vld [vmem:[#allocation2 + $0x390] ss:$8 sps:$4 sm:$0xff]  }
 0x41f   : > { %v2961_v6 = vmax.f32 %v2705_v38, 0.0  ;;  %v2704_v5 = vadd.f32 %v8882_v33, %v2406_v59  ;;  %v2124_v48 = vmul.f32 %v8309_v35, %v10390_v37  ;;  %4482 = vmatpush1.bf16.msra.mxu0 %v5973_v52  ;;  %v2414_v4 = vmul.f32 %v8877_v54, %v2116_v15  ;;  %v5988_v37 = vld [vmem:[#allocation2 + $0x3d0] ss:$8 sps:$4 sm:$0xff]  }
 0x420   : > { %v2952_v58 = vmax.f32 %v2696_v2, 0.0  ;;  %v2713_v44 = vadd.f32 %v8861_v36, %v2415_v18  ;;  %4483 = vmatprep.subr.bf16.mxu0 %v5978_v16  ;;  %v2721_v59 = vadd.f32 %v8861_v36, %v2423_v31  ;;  %v5979_v18 = vld [vmem:[#allocation2 + $0x3a0] ss:$8 sps:$4 sm:$0xff]   ;;  %v5984_v16 = vld [vmem:[#allocation2 + $0x3b4] ss:$8 sps:$4 sm:$0xff]  }
 0x421   : > { %v9202_v9 = vpack.c.bf16 %v2961_v6, %v2953_v3  ;;  %v2960_v38 = vmax.f32 %v2704_v5, 0.0  ;;  %v2422_v60 = vmul.f32 %v8877_v54, %v2124_v48  ;;  %v2712_v35 = vadd.f32 %v8882_v33, %v2414_v4  ;;  %v5982_v54 = vld [vmem:[#allocation2 + $0x3b0] ss:$8 sps:$4 sm:$0xff]   ;;  %v5987_v6 = vld [vmem:[#allocation2 + $0x3c4] ss:$8 sps:$4 sm:$0xff]  }
 0x422   : > { %v2969_v52 = vmax.f32 %v2713_v44, 0.0  ;;  %v2977_v19 = vmax.f32 %v2721_v59, 0.0  ;;  %v5990_v5 = vld [vmem:[#allocation2 + $0x3d4] ss:$8 sps:$4 sm:$0xff]   ;;  %v5991_v48 = vld [vmem:[#allocation2 + $0x3e0] ss:$8 sps:$4 sm:$0xff]  }
 0x423   : > { %v9207_v1 = vpack.c.bf16 %v2960_v38, %v2952_v58  ;;  %v2720_v2 = vadd.f32 %v8882_v33, %v2422_v60  ;;  %4484 = vmatpush1.bf16.msra.mxu0 %v5976_v23  ;;  %v2968_v3 = vmax.f32 %v2712_v35, 0.0  ;;  %v5985_v33 = vld [vmem:[#allocation2 + $0x3c0] ss:$8 sps:$4 sm:$0xff]   ;;  %v10392_v31 = vld [vmem:[#allocation67_spill] sm:$0xff]  ;;  %v6003_v58 = vld [vmem:[%s9473_s6 + $0x58] sm:$0xff]  }
 0x424   : > { %4485 = vmatprep.subr.bf16.mxu0 %v5981_v53  ;;  %v9210_v15 = vpack.c.bf16 %v2977_v19, %v2969_v52  ;;  %v5994_v63 = vld [vmem:[#allocation2 + $0x3f0] ss:$8 sps:$4 sm:$0xff]   ;;  %v10394_v23 = vld [vmem:[#allocation74_spill] sm:$0xff]  ;;  %v10403_v19 = vld [vmem:[#allocation129_spill] sm:$0xff] }
 0x425   : > { %v2976_v11 = vmax.f32 %v2720_v2, 0.0  ;;  %4355 = vmatmul.mubr.bf16.gmra.mrb[52].mxu0 %v8663_v10  ;;  %v5993_v10 = vld [vmem:[#allocation2 + $0x3e4] ss:$8 sps:$4 sm:$0xff]   ;;  %v6009_v4 = vld [vmem:[%s9473_s6 + $0x70] sm:$0xff]   ;;  %v10399_v38 = vld [vmem:[#allocation84_spill] sm:$0xff] }
 0x426   : > { %4364 = vmatprep.mubr.bf16.mxu0 %v8672_v28  ;;  %v5996_v28 = vld [vmem:[#allocation2 + $0x3f4] ss:$8 sps:$4 sm:$0xff]   ;;  %v6008_v44 = vld [vmem:[%s9473_s6 + $0x28] sm:$0xff]  }
 0x427   : > { %v9213_v36 = vpack.c.bf16 %v2976_v11, %v2968_v3  ;;  %4486 = vmatpush1.bf16.msra.mxu0 %v5979_v18  ;;  %v10398_v53 = vld [vmem:[#allocation86_spill] sm:$0xff]  ;;  %v6012_v59 = vld [vmem:[%s9473_s6 + $0x38] sm:$0xff]   ;;  %v10400_v60 = vld [vmem:[#allocation127_spill] sm:$0xff] }
 0x428   : > { %4487 = vmatprep.subr.bf16.mxu0 %v5984_v16  ;;  %v10401_v35 = vld [vmem:[#allocation88_spill] sm:$0xff]  ;;  %v10402_v52 = vld [vmem:[#allocation87_spill] sm:$0xff] }
 0x429   : > { %v10404_v2 = vld [vmem:[#allocation91_spill] sm:$0xff] }
 0x42b   : > { %4488 = vmatpush1.bf16.msra.mxu0 %v5982_v54 }
 0x42c   : > { %4489 = vmatprep.subr.bf16.mxu0 %v5987_v6 }
 0x42d   : > { %4365 = vmatmul.mubr.bf16.gmra.mrb[56].mxu0 %v8686_v13  ;;  %v10393_v13 = vld [vmem:[#allocation76_spill] sm:$0xff] }
 0x42e   : > { %4374 = vmatprep.mubr.bf16.mxu0 %v10392_v31 }
 0x42f   : > { %4490 = vmatpush1.bf16.msra.mxu0 %v5985_v33 }
 0x430   : > { %4491 = vmatprep.subr.bf16.mxu0 %v5990_v5 }
 0x433   : > { %4492 = vmatpush1.bf16.msra.mxu0 %v5988_v37 }
 0x434   : > { %4493 = vmatprep.subr.bf16.mxu0 %v5993_v10 }
 0x435   : > { %4375 = vmatmul.mubr.bf16.gmra.mrb[60].mxu0 %v8705_v21  ;;  %v10395_v21 = vld [vmem:[#allocation78_spill] sm:$0xff] }
 0x436   : > { %4384 = vmatprep.mubr.bf16.mxu0 %v8714_v49  ;;  %v5997_v49 = vld [vmem:[%s9473_s6 + $0x40] sm:$0xff]  }
 0x437   : > { %4494 = vmatpush1.bf16.msra.mxu0 %v5991_v48  ;;  %5412 = vmatprep.subr.bf16.mxu1 %v5997_v49 }
 0x438   : > { %4495 = vmatprep.subr.bf16.mxu0 %v5996_v28 }
 0x43b   : > { %4496 = vmatpush1.bf16.msra.mxu0 %v5994_v63 }
 0x43d   : > { %4385 = vmatmul.mubr.bf16.gmra.mrb[64].mxu0 %v8729_v34  ;;  %v5998_v34 = vld [vmem:[%s9473_s6] sm:$0xff]  }
 0x43e   : > { %4394 = vmatprep.mubr.bf16.mxu0 %v8738_v42  ;;  %5413 = vmatpush3.bf16.msra.mxu1 %v5998_v34  ;;  %v10396_v42 = vld [vmem:[#allocation77_spill] sm:$0xff] }
 0x445   : > { %4395 = vmatmul.mubr.bf16.gmra.mrb[68].mxu0 %v8747_v40  ;;  %v10397_v40 = vld [vmem:[#allocation125_spill] sm:$0xff] }
 0x446   : > { %4404 = vmatprep.mubr.bf16.mxu0 %v10393_v13 }
 0x44d   : > { %4405 = vmatmul.mubr.bf16.gmra.mrb[72].mxu0 %v10394_v23 }
 0x44e   : > { %4414 = vmatprep.mubr.bf16.mxu0 %v8780_v45  ;;  %v5999_v45 = vld [vmem:[%s9473_s6 + $0x48] sm:$0xff]  }
 0x44f   : > { %5414 = vmatprep.subr.bf16.mxu1 %v5999_v45 }
 0x455   : > { %4415 = vmatmul.mubr.bf16.gmra.mrb[76].mxu0 %v8789_v43  ;;  %v6000_v43 = vld [vmem:[%s9473_s6 + $0x8] sm:$0xff]  }
 0x456   : > { %4424 = vmatprep.mubr.bf16.mxu0 %v10395_v21  ;;  %5415 = vmatpush3.bf16.msra.mxu1 %v6000_v43 }
 0x45d   : > { %4425 = vmatmul.mubr.bf16.gmra.mrb[80].mxu0 %v10396_v42 }
 0x45e   : > { %4434 = vmatprep.mubr.bf16.mxu0 %v10397_v40 }
 0x465   : > { %4435 = vmatmul.mubr.bf16.gmra.mrb[84].mxu0 %v8831_v39  ;;  %v6001_v39 = vld [vmem:[%s9473_s6 + $0x50] sm:$0xff]  }
 0x466   : > { %4444 = vmatprep.mubr.bf16.mxu0 %v8841_v51  ;;  %v6002_v51 = vld [vmem:[%s9473_s6 + $0x10] sm:$0xff]   ;;  %5416 = vmatprep.subr.bf16.mxu1 %v6001_v39 }
 0x467   : > { %5417 = vmatpush3.bf16.msra.mxu1 %v6002_v51 }
 0x468   : > { %5418 = vmatprep.subr.bf16.mxu1 %v6003_v58 }
 0x46d   : > { %4445 = vmatmul.mubr.bf16.gmra.mrb[88].mxu0 %v8863_v32  ;;  %v6004_v32 = vld [vmem:[%s9473_s6 + $0x18] sm:$0xff]  }
 0x46e   : > { %4454 = vmatprep.mubr.bf16.mxu0 %v8872_v50  ;;  %v6005_v50 = vld [vmem:[%s9473_s6 + $0x60] sm:$0xff]   ;;  %5419 = vmatpush3.bf16.msra.mxu1 %v6004_v32 }
 0x46f   : > { %5420 = vmatprep.subr.bf16.mxu1 %v6005_v50 }
 0x475   : > { %4455 = vmatmul.mubr.bf16.gmra.mrb[92].mxu0 %v8890_v7  ;;  %v6006_v7 = vld [vmem:[%s9473_s6 + $0x20] sm:$0xff]  }
 0x476   : > { %4497 = vmatprep.mubr.bf16.mxu0 %v8905_v20  ;;  %v6007_v20 = vld [vmem:[%s9473_s6 + $0x68] sm:$0xff]   ;;  %5421 = vmatpush3.bf16.msra.mxu1 %v6006_v7 }
 0x477   : > { %5422 = vmatprep.subr.bf16.mxu1 %v6007_v20 }
 0x47a   : > { %5423 = vmatpush3.bf16.msra.mxu1 %v6008_v44 }
 0x47b   : > { %5424 = vmatprep.subr.bf16.mxu1 %v6009_v4 }
 0x47d   : > { %4498 = vmatmul.mubr.bf16.vlgmr.msra.gmra.mrb[32].mxu0 %v8916_v24  ;;  %v6010_v24 = vld [vmem:[%s9473_s6 + $0x30] sm:$0xff]  }
 0x47e   : > { %4507 = vmatprep.mubr.bf16.mxu0 %v8921_v22  ;;  %v6011_v22 = vld [vmem:[%s9473_s6 + $0x78] sm:$0xff]   ;;  %5425 = vmatpush3.bf16.msra.mxu1 %v6010_v24 }
 0x47f   : > { %5426 = vmatprep.subr.bf16.mxu1 %v6011_v22 }
 0x482   : > { %5427 = vmatpush3.bf16.msra.mxu1 %v6012_v59 }
 0x485   : > { %4508 = vmatmul.mubr.bf16.gmra.mrb[36].mxu0 %v10398_v53 }
 0x486   : > { %4517 = vmatprep.mubr.bf16.mxu0 %v10399_v38 }
 0x48d   : > { %4518 = vmatmul.mubr.bf16.gmra.mrb[40].mxu0 %v10400_v60 }
 0x48e   : > { %4527 = vmatprep.mubr.bf16.mxu0 %v10401_v35 }
 0x495   : > { %4528 = vmatmul.mubr.bf16.gmra.mrb[44].mxu0 %v10402_v52 }
 0x496   : > { %4537 = vmatprep.mubr.bf16.mxu0 %v8993_v56  ;;  %v3234_v56 = vld [vmem:[%s9472_s5] sm:$0x3] }
 0x49d   : > { %4538 = vmatmul.mubr.bf16.gmra.mrb[48].mxu0 %v9000_v30  ;;  %v10405_v30 = vld [vmem:[#allocation246_spill] sm:$0xff] }
 0x49e   : > { %4547 = vmatprep.mubr.bf16.mxu0 %v9006_v55  ;;  %v9319_v55 = vrot.slane %v3234_v56, %v10405_v30 }
 0x4a5   : > { %4548 = vmatmul.mubr.bf16.gmra.mrb[52].mxu0 %v10403_v19 }
 0x4a6   : > { %4557 = vmatprep.mubr.bf16.mxu0 %v9035_v62  ;;  %v10406_v62 = vld [vmem:[#allocation245_spill] sm:$0xff] }
 0x4ad   : > { %4558 = vmatmul.mubr.bf16.gmra.mrb[56].mxu0 %v9043_v47  ;;  %v9322_v47 = vrot.slane %v3234_v56, %v10406_v62 }
 0x4ae   : > { %4567 = vmatprep.mubr.bf16.mxu0 %v9049_v8 }
 0x4b5   : > { %4568 = vmatmul.mubr.bf16.gmra.mrb[60].mxu0 %v9063_v46 }
 0x4b6   : > { %4577 = vmatprep.mubr.bf16.mxu0 %v10404_v2 }
 0x4bd   : > { %4578 = vmatmul.mubr.bf16.gmra.mrb[64].mxu0 %v9089_v41 }
 0x4be   : > { %4587 = vmatprep.mubr.bf16.mxu0 %v9095_v29 }
 0x4c5   : > { %4588 = vmatmul.mubr.bf16.gmra.mrb[68].mxu0 %v9104_v57 }
 0x4c6   : > { %4597 = vmatprep.mubr.bf16.mxu0 %v9119_v26 }
 0x4cd   : > { %4598 = vmatmul.mubr.bf16.gmra.mrb[72].mxu0 %v9128_v61 }
 0x4ce   : > { %4607 = vmatprep.mubr.bf16.mxu0 %v9137_v14 }
 0x4d5   : > { %4608 = vmatmul.mubr.bf16.gmra.mrb[76].mxu0 %v9146_v25 }
 0x4d6   : > { %4617 = vmatprep.mubr.bf16.mxu0 %v9162_v27 }
 0x4dd   : > { %4618 = vmatmul.mubr.bf16.gmra.mrb[80].mxu0 %v9170_v17 }
 0x4de   : > { %4627 = vmatprep.mubr.bf16.mxu0 %v9179_v12 }
 0x4e5   : > { %4628 = vmatmul.mubr.bf16.gmra.mrb[84].mxu0 %v9188_v0 }
 0x4e6   : > { %4637 = vmatprep.mubr.bf16.mxu0 %v9202_v9 }
 0x4ed   : > { %4638 = vmatmul.mubr.bf16.gmra.mrb[88].mxu0 %v9207_v1 }
 0x4ee   : > { %4647 = vmatprep.mubr.bf16.mxu0 %v9210_v15 }
 0x4f5   : > { %4648 = vmatmul.mubr.bf16.gmra.mrb[92].mxu0 %v9213_v36 }
 0x550   : > { %v4499_v8 = vpop.f32.mrb[32].mxu0 }
 0x551   : > { %v5526_v46 = vadd.f32 %v4499_v8, %v9319_v55  ;;  %v4501_v41 = vpop.f32.mrb[33].mxu0 }
 0x552   : > { %v5527_v29 = vadd.f32 %v4501_v41, %v9322_v47  ;;  %v4503_v57 = vpop.f32.mrb[34].mxu0 }
 0x553   : > { %v5528_v26 = vadd.f32 %v4503_v57, %v9319_v55  ;;  %v4505_v61 = vpop.f32.mrb[35].mxu0  ;;  %v4658_v25 = vmax.f32 %v5526_v46, 0.0 }
 0x554   : > { %v5529_v14 = vadd.f32 %v4505_v61, %v9322_v47  ;;  %v4659_v17 = vmax.f32 %v5527_v29, 0.0 }
 0x555   : > { %v4660_v27 = vmax.f32 %v5528_v26, 0.0 }
 0x556   : > { %v4661_v12 = vmax.f32 %v5529_v14, 0.0 }
 0x557   : > { %v4722_v0 = vpack.c.bf16 %v4660_v27, %v4658_v25 }
 0x558   : > { %v4723_v9 = vpack.c.bf16 %v4661_v12, %v4659_v17  ;;  %v4509_v1 = vpop.f32.mrb[36].mxu0 }
 0x559   : > { %v5530_v18 = vadd.f32 %v4509_v1, %v9319_v55  ;;  %v4511_v16 = vpop.f32.mrb[37].mxu0 }
 0x55a   : > { %v5531_v15 = vadd.f32 %v4511_v16, %v9322_v47  ;;  %v4513_v3 = vpop.f32.mrb[38].mxu0  ;;  %4921 = vmatprep.mubr.bf16.mxu1 %v4723_v9 }
 0x55b   : > { %v5532_v11 = vadd.f32 %v4513_v3, %v9319_v55  ;;  %v4515_v36 = vpop.f32.mrb[39].mxu0  ;;  %4922 = vmatmul.mubr.bf16.vlgmr.msra.gmra.mrb[224].mxu1 %v4722_v0  ;;  %v4662_v6 = vmax.f32 %v5530_v18, 0.0 }
 0x55c   : > { %v5533_v54 = vadd.f32 %v4515_v36, %v9322_v47  ;;  %v4663_v5 = vmax.f32 %v5531_v15, 0.0 }
 0x55d   : > { %v4664_v33 = vmax.f32 %v5532_v11, 0.0 }
 0x55e   : > { %v4665_v31 = vmax.f32 %v5533_v54, 0.0 }
 0x55f   : > { %v4724_v37 = vpack.c.bf16 %v4664_v33, %v4662_v6 }
 0x560   : > { %v4725_v10 = vpack.c.bf16 %v4665_v31, %v4663_v5  ;;  %v4519_v48 = vpop.f32.mrb[40].mxu0 }
 0x561   : > { %v5534_v28 = vadd.f32 %v4519_v48, %v9319_v55  ;;  %v4521_v63 = vpop.f32.mrb[41].mxu0 }
 0x562   : > { %v5535_v13 = vadd.f32 %v4521_v63, %v9322_v47  ;;  %v4523_v23 = vpop.f32.mrb[42].mxu0  ;;  %4929 = vmatprep.mubr.bf16.mxu1 %v4725_v10 }
 0x563   : > { %v5536_v21 = vadd.f32 %v4523_v23, %v9319_v55  ;;  %v4525_v49 = vpop.f32.mrb[43].mxu0  ;;  %4930 = vmatmul.mubr.bf16.gmra.mrb[228].mxu1 %v4724_v37  ;;  %v4666_v42 = vmax.f32 %v5534_v28, 0.0 }
 0x564   : > { %v5537_v34 = vadd.f32 %v4525_v49, %v9322_v47  ;;  %v4667_v45 = vmax.f32 %v5535_v13, 0.0 }
 0x565   : > { %v4668_v40 = vmax.f32 %v5536_v21, 0.0 }
 0x566   : > { %v4669_v43 = vmax.f32 %v5537_v34, 0.0 }
 0x567   : > { %v4726_v39 = vpack.c.bf16 %v4668_v40, %v4666_v42 }
 0x568   : > { %v4727_v51 = vpack.c.bf16 %v4669_v43, %v4667_v45  ;;  %v4529_v58 = vpop.f32.mrb[44].mxu0 }
 0x569   : > { %v5538_v32 = vadd.f32 %v4529_v58, %v9319_v55  ;;  %v4531_v50 = vpop.f32.mrb[45].mxu0 }
 0x56a   : > { %v5539_v7 = vadd.f32 %v4531_v50, %v9322_v47  ;;  %v4533_v20 = vpop.f32.mrb[46].mxu0  ;;  %4937 = vmatprep.mubr.bf16.mxu1 %v4727_v51 }
 0x56b   : > { %v5540_v44 = vadd.f32 %v4533_v20, %v9319_v55  ;;  %v4535_v4 = vpop.f32.mrb[47].mxu0  ;;  %4938 = vmatmul.mubr.bf16.gmra.mrb[232].mxu1 %v4726_v39  ;;  %v4670_v53 = vmax.f32 %v5538_v32, 0.0 }
 0x56c   : > { %v5541_v24 = vadd.f32 %v4535_v4, %v9322_v47  ;;  %v4671_v38 = vmax.f32 %v5539_v7, 0.0 }
 0x56d   : > { %v4672_v22 = vmax.f32 %v5540_v44, 0.0 }
 0x56e   : > { %v4673_v59 = vmax.f32 %v5541_v24, 0.0 }
 0x56f   : > { %v4728_v60 = vpack.c.bf16 %v4672_v22, %v4670_v53 }
 0x570   : > { %v4729_v35 = vpack.c.bf16 %v4673_v59, %v4671_v38  ;;  %v4539_v52 = vpop.f32.mrb[48].mxu0 }
 0x571   : > { %v5542_v19 = vadd.f32 %v4539_v52, %v9319_v55  ;;  %v4541_v2 = vpop.f32.mrb[49].mxu0 }
 0x572   : > { %v5543_v56 = vadd.f32 %v4541_v2, %v9322_v47  ;;  %v4543_v30 = vpop.f32.mrb[50].mxu0  ;;  %4945 = vmatprep.mubr.bf16.mxu1 %v4729_v35 }
 0x573   : > { %v5544_v62 = vadd.f32 %v4543_v30, %v9319_v55  ;;  %v4545_v8 = vpop.f32.mrb[51].mxu0  ;;  %4946 = vmatmul.mubr.bf16.gmra.mrb[236].mxu1 %v4728_v60  ;;  %v4674_v41 = vmax.f32 %v5542_v19, 0.0 }
 0x574   : > { %v5545_v46 = vadd.f32 %v4545_v8, %v9322_v47  ;;  %v4675_v57 = vmax.f32 %v5543_v56, 0.0 }
 0x575   : > { %v4676_v29 = vmax.f32 %v5544_v62, 0.0 }
 0x576   : > { %v4677_v26 = vmax.f32 %v5545_v46, 0.0 }
 0x577   : > { %v4730_v61 = vpack.c.bf16 %v4676_v29, %v4674_v41 }
 0x578   : > { %v4731_v14 = vpack.c.bf16 %v4677_v26, %v4675_v57  ;;  %v4549_v25 = vpop.f32.mrb[52].mxu0 }
 0x579   : > { %v5546_v27 = vadd.f32 %v4549_v25, %v9319_v55  ;;  %v4551_v17 = vpop.f32.mrb[53].mxu0 }
 0x57a   : > { %v5547_v12 = vadd.f32 %v4551_v17, %v9322_v47  ;;  %v4553_v0 = vpop.f32.mrb[54].mxu0  ;;  %4953 = vmatprep.mubr.bf16.mxu1 %v4731_v14 }
 0x57b   : > { %v5548_v9 = vadd.f32 %v4553_v0, %v9319_v55  ;;  %v4555_v1 = vpop.f32.mrb[55].mxu0  ;;  %4954 = vmatmul.mubr.bf16.gmra.mrb[240].mxu1 %v4730_v61  ;;  %v4678_v16 = vmax.f32 %v5546_v27, 0.0 }
 0x57c   : > { %v5549_v18 = vadd.f32 %v4555_v1, %v9322_v47  ;;  %v4679_v3 = vmax.f32 %v5547_v12, 0.0 }
 0x57d   : > { %v4680_v15 = vmax.f32 %v5548_v9, 0.0 }
 0x57e   : > { %v4681_v11 = vmax.f32 %v5549_v18, 0.0 }
 0x57f   : > { %v4732_v36 = vpack.c.bf16 %v4680_v15, %v4678_v16 }
 0x580   : > { %v4733_v54 = vpack.c.bf16 %v4681_v11, %v4679_v3  ;;  %v4559_v6 = vpop.f32.mrb[56].mxu0 }
 0x581   : > { %v5550_v33 = vadd.f32 %v4559_v6, %v9319_v55  ;;  %v4561_v5 = vpop.f32.mrb[57].mxu0 }
 0x582   : > { %v5551_v31 = vadd.f32 %v4561_v5, %v9322_v47  ;;  %v4563_v37 = vpop.f32.mrb[58].mxu0  ;;  %4961 = vmatprep.mubr.bf16.mxu1 %v4733_v54 }
 0x583   : > { %v5552_v10 = vadd.f32 %v4563_v37, %v9319_v55  ;;  %v4565_v48 = vpop.f32.mrb[59].mxu0  ;;  %4962 = vmatmul.mubr.bf16.gmra.mrb[244].mxu1 %v4732_v36  ;;  %v4682_v63 = vmax.f32 %v5550_v33, 0.0 }
 0x584   : > { %v5553_v28 = vadd.f32 %v4565_v48, %v9322_v47  ;;  %v4683_v23 = vmax.f32 %v5551_v31, 0.0 }
 0x585   : > { %v4684_v13 = vmax.f32 %v5552_v10, 0.0 }
 0x586   : > { %v4685_v21 = vmax.f32 %v5553_v28, 0.0 }
 0x587   : > { %v4734_v49 = vpack.c.bf16 %v4684_v13, %v4682_v63 }
 0x588   : > { %v4735_v34 = vpack.c.bf16 %v4685_v21, %v4683_v23  ;;  %v4569_v42 = vpop.f32.mrb[60].mxu0 }
 0x589   : > { %v5554_v40 = vadd.f32 %v4569_v42, %v9319_v55  ;;  %v4571_v45 = vpop.f32.mrb[61].mxu0 }
 0x58a   : > { %v5555_v43 = vadd.f32 %v4571_v45, %v9322_v47  ;;  %v4573_v39 = vpop.f32.mrb[62].mxu0  ;;  %4969 = vmatprep.mubr.bf16.mxu1 %v4735_v34 }
 0x58b   : > { %v5556_v51 = vadd.f32 %v4573_v39, %v9319_v55  ;;  %v4575_v58 = vpop.f32.mrb[63].mxu0  ;;  %4970 = vmatmul.mubr.bf16.gmra.mrb[248].mxu1 %v4734_v49  ;;  %v4686_v50 = vmax.f32 %v5554_v40, 0.0 }
 0x58c   : > { %v5557_v32 = vadd.f32 %v4575_v58, %v9322_v47  ;;  %v4687_v20 = vmax.f32 %v5555_v43, 0.0 }
 0x58d   : > { %v4688_v7 = vmax.f32 %v5556_v51, 0.0 }
 0x58e   : > { %v4689_v44 = vmax.f32 %v5557_v32, 0.0 }
 0x58f   : > { %v4736_v4 = vpack.c.bf16 %v4688_v7, %v4686_v50 }
 0x590   : > { %v4737_v24 = vpack.c.bf16 %v4689_v44, %v4687_v20  ;;  %v4579_v53 = vpop.f32.mrb[64].mxu0 }
 0x591   : > { %v5558_v22 = vadd.f32 %v4579_v53, %v9319_v55  ;;  %v4581_v38 = vpop.f32.mrb[65].mxu0 }
 0x592   : > { %v5559_v59 = vadd.f32 %v4581_v38, %v9322_v47  ;;  %v4583_v60 = vpop.f32.mrb[66].mxu0  ;;  %4977 = vmatprep.mubr.bf16.mxu1 %v4737_v24 }
 0x593   : > { %v5560_v35 = vadd.f32 %v4583_v60, %v9319_v55  ;;  %v4585_v52 = vpop.f32.mrb[67].mxu0  ;;  %4978 = vmatmul.mubr.bf16.gmra.mrb[252].mxu1 %v4736_v4  ;;  %v4690_v2 = vmax.f32 %v5558_v22, 0.0 }
 0x594   : > { %v5561_v19 = vadd.f32 %v4585_v52, %v9322_v47  ;;  %v4691_v30 = vmax.f32 %v5559_v59, 0.0 }
 0x595   : > { %v4692_v56 = vmax.f32 %v5560_v35, 0.0 }
 0x596   : > { %v4693_v62 = vmax.f32 %v5561_v19, 0.0 }
 0x597   : > { %v4738_v8 = vpack.c.bf16 %v4692_v56, %v4690_v2 }
 0x598   : > { %v4739_v46 = vpack.c.bf16 %v4693_v62, %v4691_v30  ;;  %v4589_v41 = vpop.f32.mrb[68].mxu0 }
 0x599   : > { %v5562_v29 = vadd.f32 %v4589_v41, %v9319_v55  ;;  %v4591_v57 = vpop.f32.mrb[69].mxu0 }
 0x59a   : > { %v5563_v26 = vadd.f32 %v4591_v57, %v9322_v47  ;;  %v4593_v61 = vpop.f32.mrb[70].mxu0  ;;  %4985 = vmatprep.mubr.bf16.mxu1 %v4739_v46 }
 0x59b   : > { %v5564_v14 = vadd.f32 %v4593_v61, %v9319_v55  ;;  %v4595_v25 = vpop.f32.mrb[71].mxu0  ;;  %4986 = vmatmul.mubr.bf16.gmra.mrb[0].mxu1 %v4738_v8  ;;  %v4694_v17 = vmax.f32 %v5562_v29, 0.0 }
 0x59c   : > { %v5565_v27 = vadd.f32 %v4595_v25, %v9322_v47  ;;  %v4695_v0 = vmax.f32 %v5563_v26, 0.0 }
 0x59d   : > { %v4696_v12 = vmax.f32 %v5564_v14, 0.0 }
 0x59e   : > { %v4697_v9 = vmax.f32 %v5565_v27, 0.0 }
 0x59f   : > { %v4740_v1 = vpack.c.bf16 %v4696_v12, %v4694_v17 }
 0x5a0   : > { %v4741_v18 = vpack.c.bf16 %v4697_v9, %v4695_v0  ;;  %v4599_v16 = vpop.f32.mrb[72].mxu0 }
 0x5a1   : > { %v5566_v15 = vadd.f32 %v4599_v16, %v9319_v55  ;;  %v4601_v3 = vpop.f32.mrb[73].mxu0 }
 0x5a2   : > { %v5567_v11 = vadd.f32 %v4601_v3, %v9322_v47  ;;  %v4603_v36 = vpop.f32.mrb[74].mxu0  ;;  %4993 = vmatprep.mubr.bf16.mxu1 %v4741_v18 }
 0x5a3   : > { %v5568_v54 = vadd.f32 %v4603_v36, %v9319_v55  ;;  %v4605_v6 = vpop.f32.mrb[75].mxu0  ;;  %4994 = vmatmul.mubr.bf16.gmra.mrb[4].mxu1 %v4740_v1  ;;  %v4698_v5 = vmax.f32 %v5566_v15, 0.0 }
 0x5a4   : > { %v5569_v33 = vadd.f32 %v4605_v6, %v9322_v47  ;;  %v4699_v37 = vmax.f32 %v5567_v11, 0.0 }
 0x5a5   : > { %v4700_v31 = vmax.f32 %v5568_v54, 0.0 }
 0x5a6   : > { %v4701_v10 = vmax.f32 %v5569_v33, 0.0 }
 0x5a7   : > { %v4742_v48 = vpack.c.bf16 %v4700_v31, %v4698_v5 }
 0x5a8   : > { %v4743_v28 = vpack.c.bf16 %v4701_v10, %v4699_v37  ;;  %v4609_v63 = vpop.f32.mrb[76].mxu0 }
 0x5a9   : > { %v5570_v13 = vadd.f32 %v4609_v63, %v9319_v55  ;;  %v4611_v23 = vpop.f32.mrb[77].mxu0 }
 0x5aa   : > { %v5571_v21 = vadd.f32 %v4611_v23, %v9322_v47  ;;  %v4613_v49 = vpop.f32.mrb[78].mxu0  ;;  %5001 = vmatprep.mubr.bf16.mxu1 %v4743_v28 }
 0x5ab   : > { %v5572_v34 = vadd.f32 %v4613_v49, %v9319_v55  ;;  %v4615_v42 = vpop.f32.mrb[79].mxu0  ;;  %5002 = vmatmul.mubr.bf16.gmra.mrb[8].mxu1 %v4742_v48  ;;  %v4702_v45 = vmax.f32 %v5570_v13, 0.0 }
 0x5ac   : > { %v5573_v40 = vadd.f32 %v4615_v42, %v9322_v47  ;;  %v4703_v39 = vmax.f32 %v5571_v21, 0.0 }
 0x5ad   : > { %v4704_v43 = vmax.f32 %v5572_v34, 0.0 }
 0x5ae   : > { %v4705_v51 = vmax.f32 %v5573_v40, 0.0 }
 0x5af   : > { %v4744_v58 = vpack.c.bf16 %v4704_v43, %v4702_v45  ;;  %v9391_v43 = vld [vmem:[%s9474_s7] ss:$0 sm:$0xff] }
 0x5b0   : > { %v4745_v32 = vpack.c.bf16 %v4705_v51, %v4703_v39  ;;  %v4619_v50 = vpop.f32.mrb[80].mxu0 }
 0x5b1   : > { %v5574_v7 = vadd.f32 %v4619_v50, %v9319_v55  ;;  %v4621_v20 = vpop.f32.mrb[81].mxu0 }
 0x5b2   : > { %v5575_v44 = vadd.f32 %v4621_v20, %v9322_v47  ;;  %v4623_v4 = vpop.f32.mrb[82].mxu0  ;;  %5009 = vmatprep.mubr.bf16.mxu1 %v4745_v32 }
 0x5b3   : > { %v5576_v24 = vadd.f32 %v4623_v4, %v9319_v55  ;;  %v4625_v53 = vpop.f32.mrb[83].mxu0  ;;  %5010 = vmatmul.mubr.bf16.gmra.mrb[12].mxu1 %v4744_v58  ;;  %v4706_v38 = vmax.f32 %v5574_v7, 0.0 }
 0x5b4   : > { %v5577_v22 = vadd.f32 %v4625_v53, %v9322_v47  ;;  %v4707_v60 = vmax.f32 %v5575_v44, 0.0 }
 0x5b5   : > { %v4708_v59 = vmax.f32 %v5576_v24, 0.0 }
 0x5b6   : > { %v4709_v35 = vmax.f32 %v5577_v22, 0.0 }
 0x5b7   : > { %v4746_v52 = vpack.c.bf16 %v4708_v59, %v4706_v38 }
 0x5b8   : > { %v4747_v19 = vpack.c.bf16 %v4709_v35, %v4707_v60  ;;  %v4629_v2 = vpop.f32.mrb[84].mxu0 }
 0x5b9   : > { %v5578_v56 = vadd.f32 %v4629_v2, %v9319_v55  ;;  %v4631_v30 = vpop.f32.mrb[85].mxu0 }
 0x5ba   : > { %v5579_v62 = vadd.f32 %v4631_v30, %v9322_v47  ;;  %v4633_v8 = vpop.f32.mrb[86].mxu0  ;;  %5017 = vmatprep.mubr.bf16.mxu1 %v4747_v19 }
 0x5bb   : > { %v5580_v46 = vadd.f32 %v4633_v8, %v9319_v55  ;;  %v4635_v41 = vpop.f32.mrb[87].mxu0  ;;  %5018 = vmatmul.mubr.bf16.gmra.mrb[16].mxu1 %v4746_v52  ;;  %v4710_v57 = vmax.f32 %v5578_v56, 0.0 }
 0x5bc   : > { %v5581_v29 = vadd.f32 %v4635_v41, %v9322_v47  ;;  %v4711_v61 = vmax.f32 %v5579_v62, 0.0 }
 0x5bd   : > { %v4712_v26 = vmax.f32 %v5580_v46, 0.0 }
 0x5be   : > { %v4713_v14 = vmax.f32 %v5581_v29, 0.0 }
 0x5bf   : > { %v4748_v25 = vpack.c.bf16 %v4712_v26, %v4710_v57 }
 0x5c0   : > { %v4749_v27 = vpack.c.bf16 %v4713_v14, %v4711_v61  ;;  %v4639_v17 = vpop.f32.mrb[88].mxu0 }
 0x5c1   : > { %v5582_v12 = vadd.f32 %v4639_v17, %v9319_v55  ;;  %v4641_v0 = vpop.f32.mrb[89].mxu0 }
 0x5c2   : > { %v5583_v9 = vadd.f32 %v4641_v0, %v9322_v47  ;;  %v4643_v1 = vpop.f32.mrb[90].mxu0  ;;  %5025 = vmatprep.mubr.bf16.mxu1 %v4749_v27 }
 0x5c3   : > { %v5584_v18 = vadd.f32 %v4643_v1, %v9319_v55  ;;  %v4645_v16 = vpop.f32.mrb[91].mxu0  ;;  %5026 = vmatmul.mubr.bf16.gmra.mrb[20].mxu1 %v4748_v25  ;;  %v4714_v3 = vmax.f32 %v5582_v12, 0.0 }
 0x5c4   : > { %v5585_v15 = vadd.f32 %v4645_v16, %v9322_v47  ;;  %v4715_v36 = vmax.f32 %v5583_v9, 0.0 }
 0x5c5   : > { %v4716_v11 = vmax.f32 %v5584_v18, 0.0 }
 0x5c6   : > { %v4717_v54 = vmax.f32 %v5585_v15, 0.0 }
 0x5c7   : > { %v4750_v6 = vpack.c.bf16 %v4716_v11, %v4714_v3 }
 0x5c8   : > { %v4751_v33 = vpack.c.bf16 %v4717_v54, %v4715_v36  ;;  %v4649_v5 = vpop.f32.mrb[92].mxu0 }
 0x5c9   : > { %v5586_v31 = vadd.f32 %v4649_v5, %v9319_v55  ;;  %v4651_v37 = vpop.f32.mrb[93].mxu0 }
 0x5ca   : > { %v5587_v10 = vadd.f32 %v4651_v37, %v9322_v47  ;;  %v4653_v48 = vpop.f32.mrb[94].mxu0  ;;  %5033 = vmatprep.mubr.bf16.mxu1 %v4751_v33 }
 0x5cb   : > { %v5588_v28 = vadd.f32 %v4653_v48, %v9319_v55  ;;  %v4655_v63 = vpop.f32.mrb[95].mxu0  ;;  %5034 = vmatmul.mubr.bf16.gmra.mrb[24].mxu1 %v4750_v6  ;;  %v4718_v23 = vmax.f32 %v5586_v31, 0.0 }
 0x5cc   : > { %v5589_v13 = vadd.f32 %v4655_v63, %v9322_v47  ;;  %v4719_v49 = vmax.f32 %v5587_v10, 0.0 }
 0x5cd   : > { %v4720_v21 = vmax.f32 %v5588_v28, 0.0 }
 0x5ce   : > { %v4721_v34 = vmax.f32 %v5589_v13, 0.0 }
 0x5cf   : > { %v4752_v42 = vpack.c.bf16 %v4720_v21, %v4718_v23 }
 0x5d0   : > { %v4753_v40 = vpack.c.bf16 %v4721_v34, %v4719_v49 }
 0x5d2   : > { %5041 = vmatprep.mubr.bf16.mxu1 %v4753_v40 }
 0x5d3   : > { %5042 = vmatmul.mubr.bf16.gmra.mrb[28].mxu1 %v4752_v42 }
 0x62e   : > { %v5428_v45 = vpop.f32.mrb[224].mxu1 }
 0x62f   : > { %v5429_v55 = vpop.f32.mrb[225].mxu1 }
 0x630   : > { %v5430_v39 = vadd.f32 %v5429_v55, %v5428_v45  ;;  %v5431_v51 = vpop.f32.mrb[226].mxu1 }
 0x631   : > { %v5432_v58 = vpop.f32.mrb[227].mxu1 }
 0x632   : > { %v4924_v47 = vadd.f32 %v5430_v39, %v9391_v43  ;;  %v5433_v32 = vadd.f32 %v5432_v58, %v5431_v51 }
 0x634   : > { %v5050_v50 = vmax.f32 %v4924_v47, 0.0  ;;  %v4927_v7 = vadd.f32 %v5433_v32, %v9391_v43 }
 0x636   : > { %5082 = vst [vmem:[%s9399_s13] sm:$0xff] %v5050_v50  ;;  %v5051_v20 = vmax.f32 %v4927_v7, 0.0  ;;  %v5434_v44 = vpop.f32.mrb[228].mxu1 }
 0x637   : > { %v5435_v4 = vpop.f32.mrb[229].mxu1 }
 0x638   : > { %5083 = vst [vmem:[%s9399_s13 + $0x8] sm:$0xff] %v5051_v20  ;;  %v5436_v24 = vadd.f32 %v5435_v4, %v5434_v44  ;;  %v5437_v53 = vpop.f32.mrb[230].mxu1 }
 0x639   : > { %v5438_v22 = vpop.f32.mrb[231].mxu1 }
 0x63a   : > { %v4932_v38 = vadd.f32 %v5436_v24, %v9391_v43  ;;  %v5439_v59 = vadd.f32 %v5438_v22, %v5437_v53 }
 0x63c   : > { %v5052_v60 = vmax.f32 %v4932_v38, 0.0  ;;  %v4935_v35 = vadd.f32 %v5439_v59, %v9391_v43 }
 0x63e   : > { %5084 = vst [vmem:[%s9399_s13 + $0x10] sm:$0xff] %v5052_v60  ;;  %v5053_v52 = vmax.f32 %v4935_v35, 0.0  ;;  %v5440_v19 = vpop.f32.mrb[232].mxu1 }
 0x63f   : > { %v5441_v2 = vpop.f32.mrb[233].mxu1 }
 0x640   : > { %5085 = vst [vmem:[%s9399_s13 + $0x18] sm:$0xff] %v5053_v52  ;;  %v5442_v56 = vadd.f32 %v5441_v2, %v5440_v19  ;;  %v5443_v30 = vpop.f32.mrb[234].mxu1 }
 0x641   : > { %v5444_v62 = vpop.f32.mrb[235].mxu1 }
 0x642   : > { %v4940_v8 = vadd.f32 %v5442_v56, %v9391_v43  ;;  %v5445_v46 = vadd.f32 %v5444_v62, %v5443_v30 }
 0x644   : > { %v5054_v41 = vmax.f32 %v4940_v8, 0.0  ;;  %v4943_v29 = vadd.f32 %v5445_v46, %v9391_v43 }
 0x646   : > { %5086 = vst [vmem:[%s9399_s13 + $0x20] sm:$0xff] %v5054_v41  ;;  %v5055_v57 = vmax.f32 %v4943_v29, 0.0  ;;  %v5446_v26 = vpop.f32.mrb[236].mxu1 }
 0x647   : > { %v5447_v61 = vpop.f32.mrb[237].mxu1 }
 0x648   : > { %5087 = vst [vmem:[%s9399_s13 + $0x28] sm:$0xff] %v5055_v57  ;;  %v5448_v14 = vadd.f32 %v5447_v61, %v5446_v26  ;;  %v5449_v25 = vpop.f32.mrb[238].mxu1 }
 0x649   : > { %v5450_v27 = vpop.f32.mrb[239].mxu1 }
 0x64a   : > { %v4948_v17 = vadd.f32 %v5448_v14, %v9391_v43  ;;  %v5451_v12 = vadd.f32 %v5450_v27, %v5449_v25 }
 0x64c   : > { %v5056_v0 = vmax.f32 %v4948_v17, 0.0  ;;  %v4951_v9 = vadd.f32 %v5451_v12, %v9391_v43 }
 0x64e   : > { %5088 = vst [vmem:[%s9399_s13 + $0x30] sm:$0xff] %v5056_v0  ;;  %v5057_v1 = vmax.f32 %v4951_v9, 0.0  ;;  %v5452_v18 = vpop.f32.mrb[240].mxu1 }
 0x64f   : > { %v5453_v16 = vpop.f32.mrb[241].mxu1 }
 0x650   : > { %5089 = vst [vmem:[%s9399_s13 + $0x38] sm:$0xff] %v5057_v1  ;;  %v5454_v15 = vadd.f32 %v5453_v16, %v5452_v18  ;;  %v5455_v3 = vpop.f32.mrb[242].mxu1 }
 0x651   : > { %v5456_v11 = vpop.f32.mrb[243].mxu1 }
 0x652   : > { %v4956_v36 = vadd.f32 %v5454_v15, %v9391_v43  ;;  %v5457_v54 = vadd.f32 %v5456_v11, %v5455_v3 }
 0x654   : > { %v5058_v6 = vmax.f32 %v4956_v36, 0.0  ;;  %v4959_v33 = vadd.f32 %v5457_v54, %v9391_v43 }
 0x656   : > { %5090 = vst [vmem:[%s9399_s13 + $0x40] sm:$0xff] %v5058_v6  ;;  %v5059_v5 = vmax.f32 %v4959_v33, 0.0  ;;  %v5458_v31 = vpop.f32.mrb[244].mxu1 }
 0x657   : > { %v5459_v37 = vpop.f32.mrb[245].mxu1 }
 0x658   : > { %5091 = vst [vmem:[%s9399_s13 + $0x48] sm:$0xff] %v5059_v5  ;;  %v5460_v10 = vadd.f32 %v5459_v37, %v5458_v31  ;;  %v5461_v48 = vpop.f32.mrb[246].mxu1 }
 0x659   : > { %v5462_v28 = vpop.f32.mrb[247].mxu1 }
 0x65a   : > { %v4964_v63 = vadd.f32 %v5460_v10, %v9391_v43  ;;  %v5463_v13 = vadd.f32 %v5462_v28, %v5461_v48 }
 0x65c   : > { %v5060_v23 = vmax.f32 %v4964_v63, 0.0  ;;  %v4967_v21 = vadd.f32 %v5463_v13, %v9391_v43 }
 0x65e   : > { %5092 = vst [vmem:[%s9399_s13 + $0x50] sm:$0xff] %v5060_v23  ;;  %v5061_v49 = vmax.f32 %v4967_v21, 0.0  ;;  %v5464_v34 = vpop.f32.mrb[248].mxu1 }
 0x65f   : > { %v5465_v42 = vpop.f32.mrb[249].mxu1 }
 0x660   : > { %5093 = vst [vmem:[%s9399_s13 + $0x58] sm:$0xff] %v5061_v49  ;;  %v5466_v40 = vadd.f32 %v5465_v42, %v5464_v34  ;;  %v5467_v45 = vpop.f32.mrb[250].mxu1 }
 0x661   : > { %v5468_v55 = vpop.f32.mrb[251].mxu1 }
 0x662   : > { %v4972_v39 = vadd.f32 %v5466_v40, %v9391_v43  ;;  %v5469_v51 = vadd.f32 %v5468_v55, %v5467_v45 }
 0x664   : > { %v5062_v58 = vmax.f32 %v4972_v39, 0.0  ;;  %v4975_v47 = vadd.f32 %v5469_v51, %v9391_v43 }
 0x666   : > { %5094 = vst [vmem:[%s9399_s13 + $0x60] sm:$0xff] %v5062_v58  ;;  %v5063_v32 = vmax.f32 %v4975_v47, 0.0  ;;  %v5470_v50 = vpop.f32.mrb[252].mxu1 }
 0x667   : > { %v5471_v7 = vpop.f32.mrb[253].mxu1 }
 0x668   : > { %5095 = vst [vmem:[%s9399_s13 + $0x68] sm:$0xff] %v5063_v32  ;;  %v5472_v20 = vadd.f32 %v5471_v7, %v5470_v50  ;;  %v5473_v44 = vpop.f32.mrb[254].mxu1 }
 0x669   : > { %v5474_v4 = vpop.f32.mrb[255].mxu1 }
 0x66a   : > { %v4980_v24 = vadd.f32 %v5472_v20, %v9391_v43  ;;  %v5475_v53 = vadd.f32 %v5474_v4, %v5473_v44 }
 0x66c   : > { %v5064_v22 = vmax.f32 %v4980_v24, 0.0  ;;  %v4983_v38 = vadd.f32 %v5475_v53, %v9391_v43 }
 0x66e   : > { %5096 = vst [vmem:[%s9399_s13 + $0x70] sm:$0xff] %v5064_v22  ;;  %v5065_v59 = vmax.f32 %v4983_v38, 0.0  ;;  %v5476_v60 = vpop.f32.mrb[0].mxu1 }
 0x66f   : > { %v5477_v35 = vpop.f32.mrb[1].mxu1 }
 0x670   : > { %5097 = vst [vmem:[%s9399_s13 + $0x78] sm:$0xff] %v5065_v59  ;;  %v5478_v52 = vadd.f32 %v5477_v35, %v5476_v60  ;;  %v5479_v19 = vpop.f32.mrb[2].mxu1 }
 0x671   : > { %v5480_v2 = vpop.f32.mrb[3].mxu1 }
 0x672   : > { %v4988_v56 = vadd.f32 %v5478_v52, %v9391_v43  ;;  %v5481_v30 = vadd.f32 %v5480_v2, %v5479_v19 }
 0x674   : > { %v5066_v62 = vmax.f32 %v4988_v56, 0.0  ;;  %v4991_v8 = vadd.f32 %v5481_v30, %v9391_v43 }
 0x676   : > { %5098 = vst [vmem:[%s9399_s13 + $0x80] sm:$0xff] %v5066_v62  ;;  %v5067_v46 = vmax.f32 %v4991_v8, 0.0  ;;  %v5482_v41 = vpop.f32.mrb[4].mxu1 }
 0x677   : > { %v5483_v29 = vpop.f32.mrb[5].mxu1 }
 0x678   : > { %5099 = vst [vmem:[%s9399_s13 + $0x88] sm:$0xff] %v5067_v46  ;;  %v5484_v57 = vadd.f32 %v5483_v29, %v5482_v41  ;;  %v5485_v26 = vpop.f32.mrb[6].mxu1 }
 0x679   : > { %v5486_v61 = vpop.f32.mrb[7].mxu1 }
 0x67a   : > { %v4996_v14 = vadd.f32 %v5484_v57, %v9391_v43  ;;  %v5487_v25 = vadd.f32 %v5486_v61, %v5485_v26 }
 0x67c   : > { %v5068_v27 = vmax.f32 %v4996_v14, 0.0  ;;  %v4999_v17 = vadd.f32 %v5487_v25, %v9391_v43 }
 0x67e   : > { %5100 = vst [vmem:[%s9399_s13 + $0x90] sm:$0xff] %v5068_v27  ;;  %v5069_v12 = vmax.f32 %v4999_v17, 0.0  ;;  %v5488_v0 = vpop.f32.mrb[8].mxu1 }
 0x67f   : > { %v5489_v9 = vpop.f32.mrb[9].mxu1 }
 0x680   : > { %5101 = vst [vmem:[%s9399_s13 + $0x98] sm:$0xff] %v5069_v12  ;;  %v5490_v1 = vadd.f32 %v5489_v9, %v5488_v0  ;;  %v5491_v18 = vpop.f32.mrb[10].mxu1 }
 0x681   : > { %v5492_v16 = vpop.f32.mrb[11].mxu1 }
 0x682   : > { %v5004_v15 = vadd.f32 %v5490_v1, %v9391_v43  ;;  %v5493_v3 = vadd.f32 %v5492_v16, %v5491_v18 }
 0x684   : > { %v5070_v11 = vmax.f32 %v5004_v15, 0.0  ;;  %v5007_v36 = vadd.f32 %v5493_v3, %v9391_v43 }
 0x686   : > { %5102 = vst [vmem:[%s9399_s13 + $0xa0] sm:$0xff] %v5070_v11  ;;  %v5071_v54 = vmax.f32 %v5007_v36, 0.0  ;;  %v5494_v6 = vpop.f32.mrb[12].mxu1 }
 0x687   : > { %v5495_v33 = vpop.f32.mrb[13].mxu1 }
 0x688   : > { %5103 = vst [vmem:[%s9399_s13 + $0xa8] sm:$0xff] %v5071_v54  ;;  %v5496_v5 = vadd.f32 %v5495_v33, %v5494_v6  ;;  %v5497_v31 = vpop.f32.mrb[14].mxu1 }
 0x689   : > { %v5498_v37 = vpop.f32.mrb[15].mxu1 }
 0x68a   : > { %v5012_v10 = vadd.f32 %v5496_v5, %v9391_v43  ;;  %v5499_v48 = vadd.f32 %v5498_v37, %v5497_v31 }
 0x68c   : > { %v5072_v28 = vmax.f32 %v5012_v10, 0.0  ;;  %v5015_v63 = vadd.f32 %v5499_v48, %v9391_v43 }
 0x68e   : > { %5104 = vst [vmem:[%s9399_s13 + $0xb0] sm:$0xff] %v5072_v28  ;;  %v5073_v13 = vmax.f32 %v5015_v63, 0.0  ;;  %v5500_v23 = vpop.f32.mrb[16].mxu1 }
 0x68f   : > { %v5501_v21 = vpop.f32.mrb[17].mxu1 }
 0x690   : > { %5105 = vst [vmem:[%s9399_s13 + $0xb8] sm:$0xff] %v5073_v13  ;;  %v5502_v49 = vadd.f32 %v5501_v21, %v5500_v23  ;;  %v5503_v34 = vpop.f32.mrb[18].mxu1 }
 0x691   : > { %v5504_v42 = vpop.f32.mrb[19].mxu1 }
 0x692   : > { %v5020_v40 = vadd.f32 %v5502_v49, %v9391_v43  ;;  %v5505_v45 = vadd.f32 %v5504_v42, %v5503_v34 }
 0x694   : > { %v5074_v55 = vmax.f32 %v5020_v40, 0.0  ;;  %v5023_v39 = vadd.f32 %v5505_v45, %v9391_v43 }
 0x696   : > { %5106 = vst [vmem:[%s9399_s13 + $0xc0] sm:$0xff] %v5074_v55  ;;  %v5075_v51 = vmax.f32 %v5023_v39, 0.0  ;;  %v5506_v58 = vpop.f32.mrb[20].mxu1 }
 0x697   : > { %v5507_v47 = vpop.f32.mrb[21].mxu1 }
 0x698   : > { %5107 = vst [vmem:[%s9399_s13 + $0xc8] sm:$0xff] %v5075_v51  ;;  %v5508_v32 = vadd.f32 %v5507_v47, %v5506_v58  ;;  %v5509_v50 = vpop.f32.mrb[22].mxu1 }
 0x699   : > { %v5510_v7 = vpop.f32.mrb[23].mxu1 }
 0x69a   : > { %v5028_v20 = vadd.f32 %v5508_v32, %v9391_v43  ;;  %v5511_v44 = vadd.f32 %v5510_v7, %v5509_v50 }
 0x69c   : > { %v5076_v4 = vmax.f32 %v5028_v20, 0.0  ;;  %v5031_v24 = vadd.f32 %v5511_v44, %v9391_v43 }
 0x69e   : > { %5108 = vst [vmem:[%s9399_s13 + $0xd0] sm:$0xff] %v5076_v4  ;;  %v5077_v53 = vmax.f32 %v5031_v24, 0.0  ;;  %v5512_v22 = vpop.f32.mrb[24].mxu1 }
 0x69f   : > { %v5513_v38 = vpop.f32.mrb[25].mxu1 }
 0x6a0   : > { %5109 = vst [vmem:[%s9399_s13 + $0xd8] sm:$0xff] %v5077_v53  ;;  %v5514_v59 = vadd.f32 %v5513_v38, %v5512_v22  ;;  %v5515_v60 = vpop.f32.mrb[26].mxu1 }
 0x6a1   : > { %v5516_v35 = vpop.f32.mrb[27].mxu1 }
 0x6a2   : > { %v5036_v52 = vadd.f32 %v5514_v59, %v9391_v43  ;;  %v5517_v19 = vadd.f32 %v5516_v35, %v5515_v60 }
 0x6a4   : > { %v5078_v2 = vmax.f32 %v5036_v52, 0.0  ;;  %v5039_v56 = vadd.f32 %v5517_v19, %v9391_v43 }
 0x6a6   : > { %5110 = vst [vmem:[%s9399_s13 + $0xe0] sm:$0xff] %v5078_v2  ;;  %v5079_v30 = vmax.f32 %v5039_v56, 0.0  ;;  %v5518_v62 = vpop.f32.mrb[28].mxu1 }
 0x6a7   : > { %v5519_v8 = vpop.f32.mrb[29].mxu1 }
 0x6a8   : > { %5111 = vst [vmem:[%s9399_s13 + $0xe8] sm:$0xff] %v5079_v30  ;;  %v5520_v46 = vadd.f32 %v5519_v8, %v5518_v62  ;;  %v5521_v41 = vpop.f32.mrb[30].mxu1 }
 0x6a9   : > { %v5522_v29 = vpop.f32.mrb[31].mxu1 }
 0x6aa   : > { %v5044_v57 = vadd.f32 %v5520_v46, %v9391_v43  ;;  %v5523_v26 = vadd.f32 %v5522_v29, %v5521_v41 }
 0x6ac   : > { %v5080_v61 = vmax.f32 %v5044_v57, 0.0  ;;  %v5047_v14 = vadd.f32 %v5523_v26, %v9391_v43 }
 0x6ae   : > { %5112 = vst [vmem:[%s9399_s13 + $0xf0] sm:$0xff] %v5080_v61  ;;  %v5081_v25 = vmax.f32 %v5047_v14, 0.0 }
 0x6b0   : > { %5113 = vst [vmem:[%s9399_s13 + $0xf8] sm:$0xff] %v5081_v25 }
 0x6b1 PF: > { %s19_s27 = sadd.s32 1, %s6117_s27  }
 0x6b2   : > { %p16_p3 = scmp.ge.s32.totalorder %s19_s27, 4  }
 0x6b4   :  { %18 = sbr.rel (!%p16_p3) target bundleno = 1 (0x1), region = 87 }
 0x6bb   :  { %5136 = vsyncpa [#allocation3], 1 }
 0x6bc   :  { %5138 = vsyncpa [#allocation3 + $0x1], 1 }

</bundles_post_ra>
